<compile_context>
chip_gen: v5e
topology: v5e:2x2
jax: 0.10.0
libtpu: 0.0.40
codegen_flags: <defaults>
</compile_context>

<pallas_src>
import functools
import numpy as np

import jax
import jax.numpy as jnp
from jax.experimental import pallas as pl
from jax.experimental.pallas import tpu as pltpu

# ----- synthetic configuration (SORT_OF_CLEVR path of the module) -------------
F_SIZE = 8        # architecture_dictionary[FILTER_SIZE]
Q_DIM = 16        # dataset_dictionary[QUESTION_EMBEDDING_SIZE] (ques_dim)
N_CLASS = 10      # dataset_dictionary[ANSWER_VOCAB_SIZE]
BATCH = 2         # config.BATCH_SIZE
IMG_HW = 64       # 64 -> 32 -> 16 -> 8 (conv stack) -> 4 (attention conv)
BN_EPS = 1e-5

_VMEM = pl.BlockSpec(memory_space=pltpu.MemorySpace.VMEM)


# ================= conv (+ BatchNorm) kernels =================================
def _conv_bn_kernel(w_ref, p_ref, b_ref, o_ref):
    # Y = relu(W @ P + b); then training-mode BatchNorm2d with batch statistics
    # (weight=1, bias=0): per-channel == per-row stats over the N*H*W columns.
    y = jnp.dot(w_ref[...], p_ref[...], preferred_element_type=jnp.float32)
    y = jnp.maximum(y + b_ref[...], 0.0)
    mean = jnp.mean(y, axis=1, keepdims=True)
    var = jnp.mean((y - mean) ** 2, axis=1, keepdims=True)
    o_ref[...] = (y - mean) * jax.lax.rsqrt(var + BN_EPS)


def pallas_conv_bn(wm, patches, bias):
    """wm: (Cout, Cin*9), patches: (Cin*9, N*Ho*Wo), bias: (Cout, 1)."""
    cout = wm.shape[0]
    cols = patches.shape[1]
    return pl.pallas_call(
        _conv_bn_kernel,
        out_shape=jax.ShapeDtypeStruct((cout, cols), jnp.float32),
        in_specs=[_VMEM] * 3,
        out_specs=_VMEM,
    )(wm, patches, bias)


def _conv3_qattn_kernel(w_ref, p_ref, b_ref, qst_ref, qaw_ref, qab_ref,
                        x_ref, a_ref):
    # conv3 + relu + batchNorm3 (same as _conv_bn_kernel)
    y = jnp.dot(w_ref[...], p_ref[...], preferred_element_type=jnp.float32)
    y = jnp.maximum(y + b_ref[...], 0.0)
    mean = jnp.mean(y, axis=1, keepdims=True)
    var = jnp.mean((y - mean) ** 2, axis=1, keepdims=True)
    x_ref[...] = (y - mean) * jax.lax.rsqrt(var + BN_EPS)
    # question_attention_layer_weight + relu  (per-sample attention-conv weights)
    a = jnp.dot(qst_ref[...], qaw_ref[...], preferred_element_type=jnp.float32)
    a_ref[...] = jnp.maximum(a + qab_ref[...], 0.0)


def pallas_conv3_qattn(wm, patches, bias, qst, qattn_w, qattn_b):
    cout = wm.shape[0]
    cols = patches.shape[1]
    mb = qst.shape[0]
    return pl.pallas_call(
        _conv3_qattn_kernel,
        out_shape=(jax.ShapeDtypeStruct((cout, cols), jnp.float32),
                   jax.ShapeDtypeStruct((mb, qattn_w.shape[1]), jnp.float32)),
        in_specs=[_VMEM] * 6,
        out_specs=(_VMEM, _VMEM),
    )(wm, patches, bias, qst, qattn_w, qattn_b)


# ================= fused head kernel ==========================================
# attention conv + BN4 + coords + qcmp + relational network + FCOutput head.
def _head_kernel(qst_ref, aw_ref, pt_ref, coord_ref,
                 qcw_ref, qcb_ref,
                 w1a_ref, w1b_ref, w1q_ref, b1_ref,
                 w2_ref, b2_ref, w3_ref, b3_ref, w4_ref, b4_ref,
                 wf1_ref, bf1_ref, wfc2_ref, bfc2_ref, wfc3_ref, bfc3_ref,
                 o_ref, *, mb, oc):
    # ---- per-sample attention conv (k=3, s=2, p=1, no bias) + relu -----------
    #   x_flat[b] = relu(Pt[b] (oc, F*9) @ Wattn[b]^T (F*9, F))  -> (oc, F)
    xs = [jnp.maximum(jnp.dot(pt_ref[b], aw_ref[b],
                              preferred_element_type=jnp.float32), 0.0)
          for b in range(mb)]
    xcat = jnp.concatenate(xs, axis=0)                           # (mb*oc, F)

    # ---- batchNorm4: training-mode batch stats per channel (weight=1, bias=0)
    mean = jnp.mean(xcat, axis=0, keepdims=True)
    var = jnp.mean((xcat - mean) ** 2, axis=0, keepdims=True)
    xn = (xcat - mean) * jax.lax.rsqrt(var + BN_EPS)

    # ---- append object coordinates -------------------------------------------
    coord = jnp.concatenate([coord_ref[...]] * mb, axis=0)       # (mb*oc, 2)
    x_ext = jnp.concatenate([xn, coord], axis=1)                 # (mb*oc, F+2)

    # ---- question_comparision_layer + relu ------------------------------------
    q = jnp.dot(qst_ref[...], qcw_ref[...], preferred_element_type=jnp.float32)
    q = jnp.maximum(q + qcb_ref[...], 0.0)                       # (mb, q_dim)

    # ---- g_fc1, decomposed over the pair-feature concat structure -------------
    #   pair row (b, p, r): [x_ext[b,r], x_ext[b,p], q[b]] @ W1 + b1
    #                     =  x_ext[b,r]@W1a + x_ext[b,p]@W1b + q[b]@W1q + b1
    xa = jnp.dot(x_ext, w1a_ref[...], preferred_element_type=jnp.float32)  # (mb*oc, 256)
    xb = jnp.dot(x_ext, w1b_ref[...], preferred_element_type=jnp.float32)  # (mb*oc, 256)
    qw = jnp.dot(q, w1q_ref[...], preferred_element_type=jnp.float32)      # (mb, 256)
    nh = xa.shape[1]

    hs = []
    for b in range(mb):
        xa_b = xa[b * oc:(b + 1) * oc]                           # (oc, 256)
        xb_b = xb[b * oc:(b + 1) * oc]
        a_part = jnp.broadcast_to(xa_b[None, :, :], (oc, oc, nh)).reshape(oc * oc, nh)
        b_part = jnp.broadcast_to(xb_b[:, None, :], (oc, oc, nh)).reshape(oc * oc, nh)
        hs.append(a_part + b_part)                               # (oc*oc, 256)
    qwb = jnp.broadcast_to((qw + b1_ref[...])[:, None, :],
                           (mb, oc * oc, nh)).reshape(mb * oc * oc, nh)
    # batch folded into the matmul M dimension: (mb*oc*oc, 256) = (512, 256)
    h = jnp.maximum(jnp.concatenate(hs, axis=0) + qwb, 0.0)

    def lin(hh, w_ref_, b_ref_, relu=True):
        # bf16 MXU operands, f32 accumulation; bias/relu stay in f32.
        y = jnp.dot(hh.astype(w_ref_.dtype), w_ref_[...],
                    preferred_element_type=jnp.float32) + b_ref_[...]
        return jnp.maximum(y, 0.0) if relu else y

    h = lin(h, w2_ref, b2_ref)                                   # g_fc2 + relu
    h = lin(h, w3_ref, b3_ref)                                   # g_fc3 + relu
    h = lin(h, w4_ref, b4_ref)                                   # g_fc4 + relu

    # ---- sum over all object pairs, per sample ---------------------------------
    g = jnp.concatenate(
        [jnp.sum(h[b * oc * oc:(b + 1) * oc * oc], axis=0, keepdims=True)
         for b in range(mb)], axis=0)                            # (mb, 256)

    f = lin(g, wf1_ref, bf1_ref)                                 # f_fc1 + relu
    f = lin(f, wfc2_ref, bfc2_ref)                               # fcout.fc2 + relu
    # TODO(synk): F.dropout(x) in FCOutputModel defaults to training=True (stochastic);
    #             treated as identity (eval mode) here.
    logits = lin(f, wfc3_ref, bfc3_ref, relu=False)              # (mb, n_class)

    m = jnp.max(logits, axis=-1, keepdims=True)
    z = logits - m
    o_ref[...] = z - jnp.log(jnp.sum(jnp.exp(z), axis=-1, keepdims=True))


def pallas_head(qst, aw_t, pt, coords, p):
    mb, oc = pt.shape[0], pt.shape[1]
    f_size = aw_t.shape[2]
    c_feat = f_size + 2
    g1 = p['g1_w']                                  # (2*(F+2)+q_dim, 256)
    bf16 = lambda a: a.astype(jnp.bfloat16)
    row = lambda a: a.reshape(1, -1)
    args = [
        qst, aw_t, pt, coords,
        p['qcmp_w'], row(p['qcmp_b']),
        g1[:c_feat], g1[c_feat:2 * c_feat], g1[2 * c_feat:], row(p['g1_b']),
        bf16(p['g2_w']), row(p['g2_b']),
        bf16(p['g3_w']), row(p['g3_b']),
        bf16(p['g4_w']), row(p['g4_b']),
        bf16(p['f1_w']), row(p['f1_b']),
        bf16(p['fc2_w']), row(p['fc2_b']),
        p['fc3_w'], row(p['fc3_b']),
    ]
    kern = functools.partial(_head_kernel, mb=mb, oc=oc)
    return pl.pallas_call(
        kern,
        out_shape=jax.ShapeDtypeStruct((mb, N_CLASS), jnp.float32),
        in_specs=[_VMEM] * len(args),
        out_specs=_VMEM,
    )(*args)


# ================= JAX glue (im2col on channel-major layout, params) ==========
def im2col_s2p1_cnhw(x):
    """(C, N, H, W), k=3, s=2, p=1 -> (C*9, N*Ho*Wo); rows ordered (C, kh, kw)."""
    c, n, h, w = x.shape
    ho = (h - 1) // 2 + 1
    wo = (w - 1) // 2 + 1
    xp = jnp.pad(x, ((0, 0), (0, 0), (1, 1), (1, 1)))
    pats = []
    for kh in range(3):
        for kw in range(3):
            pats.append(xp[:, :, kh:kh + 2 * ho:2, kw:kw + 2 * wo:2])
    p = jnp.stack(pats, axis=1)                     # (C, 9, N, Ho, Wo)
    return p.reshape(c * 9, n * ho * wo), ho, wo


def init_params(key):
    ks = list(jax.random.split(key, 32))

    def w(shape, scale=0.05):
        return jax.random.normal(ks.pop(), shape, jnp.float32) * scale

    gin = (F_SIZE + 2) * 2 + Q_DIM   # g_fc1 input dim
    p = {
        'conv1_w': w((F_SIZE, 3, 3, 3)), 'conv1_b': w((F_SIZE,)),
        'conv2_w': w((F_SIZE, F_SIZE, 3, 3)), 'conv2_b': w((F_SIZE,)),
        'conv3_w': w((F_SIZE, F_SIZE, 3, 3)), 'conv3_b': w((F_SIZE,)),
        'qattn_w': w((Q_DIM, F_SIZE * F_SIZE * 9)), 'qattn_b': w((F_SIZE * F_SIZE * 9,)),
        'qcmp_w': w((Q_DIM, Q_DIM)), 'qcmp_b': w((Q_DIM,)),
        'g1_w': w((gin, 256)), 'g1_b': w((256,)),
        'g2_w': w((256, 256)), 'g2_b': w((256,)),
        'g3_w': w((256, 256)), 'g3_b': w((256,)),
        'g4_w': w((256, 256)), 'g4_b': w((256,)),
        'f1_w': w((256, 256)), 'f1_b': w((256,)),
        'fc2_w': w((256, 256)), 'fc2_b': w((256,)),
        'fc3_w': w((256, N_CLASS)), 'fc3_b': w((N_CLASS,)),
    }
    return p


def forward(params, img, qst_raw):
    # qst = transpose(qst, 0, 1).float()
    qst = qst_raw.T.astype(jnp.float32)                       # (mb, q_dim)
    mb = img.shape[0]

    # ConvInputModel: (conv -> relu -> BN) x 3, activations kept channel-major.
    x = jnp.transpose(img, (1, 0, 2, 3))                      # (3, N, 64, 64)

    def conv_bn(x_cnhw, w, b):
        cin, n = x_cnhw.shape[0], x_cnhw.shape[1]
        patches, ho, wo = im2col_s2p1_cnhw(x_cnhw)
        y = pallas_conv_bn(w.reshape(w.shape[0], cin * 9), patches,
                           b.reshape(-1, 1))
        return y.reshape(w.shape[0], n, ho, wo)

    x = conv_bn(x, params['conv1_w'], params['conv1_b'])      # (F, N, 32, 32)
    x = conv_bn(x, params['conv2_w'], params['conv2_b'])      # (F, N, 16, 16)

    # conv3 (+ BN3) fused with the question-attention weight generation.
    patches3, ho3, wo3 = im2col_s2p1_cnhw(x)                  # (F*9, N*64)
    x3, qattn = pallas_conv3_qattn(
        params['conv3_w'].reshape(F_SIZE, F_SIZE * 9), patches3,
        params['conv3_b'].reshape(-1, 1),
        qst, params['qattn_w'], params['qattn_b'].reshape(1, -1))
    x3 = x3.reshape(F_SIZE, mb, ho3, wo3)                     # (F, N, 8, 8)

    # attention-conv im2col + per-sample weight layout (tiny XLA glue tensors).
    patches_a, da, _ = im2col_s2p1_cnhw(x3)                   # (F*9, N*16), da = 4
    oc = da * da
    pt = patches_a.reshape(F_SIZE * 9, mb, oc).transpose(1, 2, 0)    # (N, oc, F*9)
    aw_t = qattn.reshape(mb, F_SIZE, F_SIZE * 9).transpose(0, 2, 1)  # (N, F*9, F)

    # object coordinates — same hard-coded /5 table as the reference cvt_coord
    # (python2 integer division), regardless of the 4x4 feature map.
    coords = np.zeros((oc, 2), np.float32)
    for i in range(oc):
        coords[i] = [(i // 5 - 2) / 2.0, (i % 5 - 2) / 2.0]

    # fused head: attention conv + BN4 + coords + qcmp + relational net + FCOutput.
    return pallas_head(qst, aw_t, pt, jnp.asarray(coords), params)


if __name__ == "__main__":
    key = jax.random.PRNGKey(0)
    kp, ki, kq = jax.random.split(key, 3)
    params = init_params(kp)
    img = jax.random.normal(ki, (BATCH, 3, IMG_HW, IMG_HW), jnp.float32)
    qst = jax.random.normal(kq, (Q_DIM, BATCH), jnp.float32)  # transposed in forward

    fwd = jax.jit(forward)
    out = jax.block_until_ready(fwd(params, img, qst))

    assert out.shape == (BATCH, N_CLASS), out.shape
    assert bool(jnp.all(jnp.isfinite(out)))
    # log_softmax rows should sum to ~1 in probability space
    probs = jnp.exp(out).sum(axis=-1)
    assert bool(jnp.all(jnp.abs(probs - 1.0) < 1e-3)), probs
    print("KERNEL_OK")
</pallas_src>

<mosaic_0001>
module attributes {stable_mosaic.version = 11 : i64} {
  func.func @_conv_bn_kernel(%arg0: memref<8x27xf32, #tpu.memory_space<vmem>>, %arg1: memref<27x2048xf32, #tpu.memory_space<vmem>>, %arg2: memref<8x1xf32, #tpu.memory_space<vmem>>, %arg3: memref<8x2048xf32, #tpu.memory_space<vmem>>) attributes {dimension_semantics = [], scalar_prefetch = 0 : i64, scratch_operands = 0 : i64, tpu.core_type = #tpu.core_type<tc>} {
    %c0 = arith.constant 0 : index
    %c0_0 = arith.constant 0 : index
    %0 = vector.load %arg0[%c0, %c0_0] : memref<8x27xf32, #tpu.memory_space<vmem>>, vector<8x27xf32>
    %c0_1 = arith.constant 0 : index
    %c0_2 = arith.constant 0 : index
    %1 = vector.load %arg1[%c0_1, %c0_2] : memref<27x2048xf32, #tpu.memory_space<vmem>>, vector<27x2048xf32>
    %cst = arith.constant dense<0.000000e+00> : vector<8x2048xf32>
    %2 = tpu.matmul %0, %1, %cst {dimension_numbers = #tpu.dot_dimension_numbers<[1], [0], [0], [1], [0, 0, 1, 1], [], []>} : vector<8x27xf32>, vector<27x2048xf32>, vector<8x2048xf32> -> vector<8x2048xf32>
    %c0_3 = arith.constant 0 : index
    %c0_4 = arith.constant 0 : index
    %3 = vector.load %arg2[%c0_3, %c0_4] : memref<8x1xf32, #tpu.memory_space<vmem>>, vector<8x1xf32>
    %4 = vector.broadcast %3 : vector<8x1xf32> to vector<8x2048xf32>
    %5 = arith.addf %2, %4 : vector<8x2048xf32>
    %cst_5 = arith.constant 0.000000e+00 : f32
    %6 = vector.broadcast %cst_5 : f32 to vector<8x2048xf32>
    %7 = arith.maximumf %5, %6 : vector<8x2048xf32>
    %cst_6 = arith.constant dense<0.000000e+00> : vector<8xf32>
    %8 = vector.multi_reduction <add>, %7, %cst_6 [1] : vector<8x2048xf32> to vector<8xf32>
    %9 = vector.shape_cast %8 : vector<8xf32> to vector<8x1xf32>
    %cst_7 = arith.constant 2.048000e+03 : f32
    %10 = vector.broadcast %cst_7 : f32 to vector<8x1xf32>
    %11 = arith.divf %9, %10 : vector<8x1xf32>
    %12 = vector.broadcast %11 : vector<8x1xf32> to vector<8x2048xf32>
    %13 = arith.subf %7, %12 : vector<8x2048xf32>
    %14 = arith.mulf %13, %13 : vector<8x2048xf32>
    %cst_8 = arith.constant dense<0.000000e+00> : vector<8xf32>
    %15 = vector.multi_reduction <add>, %14, %cst_8 [1] : vector<8x2048xf32> to vector<8xf32>
    %16 = vector.shape_cast %15 : vector<8xf32> to vector<8x1xf32>
    %cst_9 = arith.constant 2.048000e+03 : f32
    %17 = vector.broadcast %cst_9 : f32 to vector<8x1xf32>
    %18 = arith.divf %16, %17 : vector<8x1xf32>
    %19 = vector.broadcast %11 : vector<8x1xf32> to vector<8x2048xf32>
    %20 = arith.subf %7, %19 : vector<8x2048xf32>
    %cst_10 = arith.constant 9.99999974E-6 : f32
    %21 = vector.broadcast %cst_10 : f32 to vector<8x1xf32>
    %22 = arith.addf %18, %21 : vector<8x1xf32>
    %23 = math.rsqrt %22 : vector<8x1xf32>
    %24 = vector.broadcast %23 : vector<8x1xf32> to vector<8x2048xf32>
    %25 = arith.mulf %20, %24 : vector<8x2048xf32>
    %c0_11 = arith.constant 0 : index
    %c0_12 = arith.constant 0 : index
    %26 = vector.load %arg3[%c0_11, %c0_12] : memref<8x2048xf32, #tpu.memory_space<vmem>>, vector<8x2048xf32>
    tpu.vector_store %arg3[%c0_11, %c0_12], %25 {strides = array<i32>} : memref<8x2048xf32, #tpu.memory_space<vmem>>, vector<8x2048xf32>,
    return
  }
}

module attributes {stable_mosaic.version = 11 : i64} {
  func.func @_conv_bn_kernel(%arg0: memref<8x72xf32, #tpu.memory_space<vmem>>, %arg1: memref<72x512xf32, #tpu.memory_space<vmem>>, %arg2: memref<8x1xf32, #tpu.memory_space<vmem>>, %arg3: memref<8x512xf32, #tpu.memory_space<vmem>>) attributes {dimension_semantics = [], scalar_prefetch = 0 : i64, scratch_operands = 0 : i64, tpu.core_type = #tpu.core_type<tc>} {
    %c0 = arith.constant 0 : index
    %c0_0 = arith.constant 0 : index
    %0 = vector.load %arg0[%c0, %c0_0] : memref<8x72xf32, #tpu.memory_space<vmem>>, vector<8x72xf32>
    %c0_1 = arith.constant 0 : index
    %c0_2 = arith.constant 0 : index
    %1 = vector.load %arg1[%c0_1, %c0_2] : memref<72x512xf32, #tpu.memory_space<vmem>>, vector<72x512xf32>
    %cst = arith.constant dense<0.000000e+00> : vector<8x512xf32>
    %2 = tpu.matmul %0, %1, %cst {dimension_numbers = #tpu.dot_dimension_numbers<[1], [0], [0], [1], [0, 0, 1, 1], [], []>} : vector<8x72xf32>, vector<72x512xf32>, vector<8x512xf32> -> vector<8x512xf32>
    %c0_3 = arith.constant 0 : index
    %c0_4 = arith.constant 0 : index
    %3 = vector.load %arg2[%c0_3, %c0_4] : memref<8x1xf32, #tpu.memory_space<vmem>>, vector<8x1xf32>
    %4 = vector.broadcast %3 : vector<8x1xf32> to vector<8x512xf32>
    %5 = arith.addf %2, %4 : vector<8x512xf32>
    %cst_5 = arith.constant 0.000000e+00 : f32
    %6 = vector.broadcast %cst_5 : f32 to vector<8x512xf32>
    %7 = arith.maximumf %5, %6 : vector<8x512xf32>
    %cst_6 = arith.constant dense<0.000000e+00> : vector<8xf32>
    %8 = vector.multi_reduction <add>, %7, %cst_6 [1] : vector<8x512xf32> to vector<8xf32>
    %9 = vector.shape_cast %8 : vector<8xf32> to vector<8x1xf32>
    %cst_7 = arith.constant 5.120000e+02 : f32
    %10 = vector.broadcast %cst_7 : f32 to vector<8x1xf32>
    %11 = arith.divf %9, %10 : vector<8x1xf32>
    %12 = vector.broadcast %11 : vector<8x1xf32> to vector<8x512xf32>
    %13 = arith.subf %7, %12 : vector<8x512xf32>
    %14 = arith.mulf %13, %13 : vector<8x512xf32>
    %cst_8 = arith.constant dense<0.000000e+00> : vector<8xf32>
    %15 = vector.multi_reduction <add>, %14, %cst_8 [1] : vector<8x512xf32> to vector<8xf32>
    %16 = vector.shape_cast %15 : vector<8xf32> to vector<8x1xf32>
    %cst_9 = arith.constant 5.120000e+02 : f32
    %17 = vector.broadcast %cst_9 : f32 to vector<8x1xf32>
    %18 = arith.divf %16, %17 : vector<8x1xf32>
    %19 = vector.broadcast %11 : vector<8x1xf32> to vector<8x512xf32>
    %20 = arith.subf %7, %19 : vector<8x512xf32>
    %cst_10 = arith.constant 9.99999974E-6 : f32
    %21 = vector.broadcast %cst_10 : f32 to vector<8x1xf32>
    %22 = arith.addf %18, %21 : vector<8x1xf32>
    %23 = math.rsqrt %22 : vector<8x1xf32>
    %24 = vector.broadcast %23 : vector<8x1xf32> to vector<8x512xf32>
    %25 = arith.mulf %20, %24 : vector<8x512xf32>
    %c0_11 = arith.constant 0 : index
    %c0_12 = arith.constant 0 : index
    %26 = vector.load %arg3[%c0_11, %c0_12] : memref<8x512xf32, #tpu.memory_space<vmem>>, vector<8x512xf32>
    tpu.vector_store %arg3[%c0_11, %c0_12], %25 {strides = array<i32>} : memref<8x512xf32, #tpu.memory_space<vmem>>, vector<8x512xf32>,
    return
  }
}

module attributes {stable_mosaic.version = 11 : i64} {
  func.func @_conv3_qattn_kernel(%arg0: memref<8x72xf32, #tpu.memory_space<vmem>>, %arg1: memref<72x128xf32, #tpu.memory_space<vmem>>, %arg2: memref<8x1xf32, #tpu.memory_space<vmem>>, %arg3: memref<2x16xf32, #tpu.memory_space<vmem>>, %arg4: memref<16x576xf32, #tpu.memory_space<vmem>>, %arg5: memref<1x576xf32, #tpu.memory_space<vmem>>, %arg6: memref<8x128xf32, #tpu.memory_space<vmem>>, %arg7: memref<2x576xf32, #tpu.memory_space<vmem>>) attributes {dimension_semantics = [], scalar_prefetch = 0 : i64, scratch_operands = 0 : i64, tpu.core_type = #tpu.core_type<tc>} {
    %c0 = arith.constant 0 : index
    %c0_0 = arith.constant 0 : index
    %0 = vector.load %arg0[%c0, %c0_0] : memref<8x72xf32, #tpu.memory_space<vmem>>, vector<8x72xf32>
    %c0_1 = arith.constant 0 : index
    %c0_2 = arith.constant 0 : index
    %1 = vector.load %arg1[%c0_1, %c0_2] : memref<72x128xf32, #tpu.memory_space<vmem>>, vector<72x128xf32>
    %cst = arith.constant dense<0.000000e+00> : vector<8x128xf32>
    %2 = tpu.matmul %0, %1, %cst {dimension_numbers = #tpu.dot_dimension_numbers<[1], [0], [0], [1], [0, 0, 1, 1], [], []>} : vector<8x72xf32>, vector<72x128xf32>, vector<8x128xf32> -> vector<8x128xf32>
    %c0_3 = arith.constant 0 : index
    %c0_4 = arith.constant 0 : index
    %3 = vector.load %arg2[%c0_3, %c0_4] : memref<8x1xf32, #tpu.memory_space<vmem>>, vector<8x1xf32>
    %4 = vector.broadcast %3 : vector<8x1xf32> to vector<8x128xf32>
    %5 = arith.addf %2, %4 : vector<8x128xf32>
    %cst_5 = arith.constant 0.000000e+00 : f32
    %6 = vector.broadcast %cst_5 : f32 to vector<8x128xf32>
    %7 = arith.maximumf %5, %6 : vector<8x128xf32>
    %cst_6 = arith.constant dense<0.000000e+00> : vector<8xf32>
    %8 = vector.multi_reduction <add>, %7, %cst_6 [1] : vector<8x128xf32> to vector<8xf32>
    %9 = vector.shape_cast %8 : vector<8xf32> to vector<8x1xf32>
    %cst_7 = arith.constant 1.280000e+02 : f32
    %10 = vector.broadcast %cst_7 : f32 to vector<8x1xf32>
    %11 = arith.divf %9, %10 : vector<8x1xf32>
    %12 = vector.broadcast %11 : vector<8x1xf32> to vector<8x128xf32>
    %13 = arith.subf %7, %12 : vector<8x128xf32>
    %14 = arith.mulf %13, %13 : vector<8x128xf32>
    %cst_8 = arith.constant dense<0.000000e+00> : vector<8xf32>
    %15 = vector.multi_reduction <add>, %14, %cst_8 [1] : vector<8x128xf32> to vector<8xf32>
    %16 = vector.shape_cast %15 : vector<8xf32> to vector<8x1xf32>
    %cst_9 = arith.constant 1.280000e+02 : f32
    %17 = vector.broadcast %cst_9 : f32 to vector<8x1xf32>
    %18 = arith.divf %16, %17 : vector<8x1xf32>
    %19 = vector.broadcast %11 : vector<8x1xf32> to vector<8x128xf32>
    %20 = arith.subf %7, %19 : vector<8x128xf32>
    %cst_10 = arith.constant 9.99999974E-6 : f32
    %21 = vector.broadcast %cst_10 : f32 to vector<8x1xf32>
    %22 = arith.addf %18, %21 : vector<8x1xf32>
    %23 = math.rsqrt %22 : vector<8x1xf32>
    %24 = vector.broadcast %23 : vector<8x1xf32> to vector<8x128xf32>
    %25 = arith.mulf %20, %24 : vector<8x128xf32>
    %c0_11 = arith.constant 0 : index
    %c0_12 = arith.constant 0 : index
    %26 = vector.load %arg6[%c0_11, %c0_12] : memref<8x128xf32, #tpu.memory_space<vmem>>, vector<8x128xf32>
    tpu.vector_store %arg6[%c0_11, %c0_12], %25 {strides = array<i32>} : memref<8x128xf32, #tpu.memory_space<vmem>>, vector<8x128xf32>,
    %c0_13 = arith.constant 0 : index
    %c0_14 = arith.constant 0 : index
    %27 = vector.load %arg3[%c0_13, %c0_14] : memref<2x16xf32, #tpu.memory_space<vmem>>, vector<2x16xf32>
    %c0_15 = arith.constant 0 : index
    %c0_16 = arith.constant 0 : index
    %28 = vector.load %arg4[%c0_15, %c0_16] : memref<16x576xf32, #tpu.memory_space<vmem>>, vector<16x576xf32>
    %cst_17 = arith.constant dense<0.000000e+00> : vector<2x576xf32>
    %29 = tpu.matmul %27, %28, %cst_17 {dimension_numbers = #tpu.dot_dimension_numbers<[1], [0], [0], [1], [0, 0, 1, 1], [], []>} : vector<2x16xf32>, vector<16x576xf32>, vector<2x576xf32> -> vector<2x576xf32>
    %c0_18 = arith.constant 0 : index
    %c0_19 = arith.constant 0 : index
    %30 = vector.load %arg5[%c0_18, %c0_19] : memref<1x576xf32, #tpu.memory_space<vmem>>, vector<1x576xf32>
    %31 = vector.broadcast %30 : vector<1x576xf32> to vector<2x576xf32>
    %32 = arith.addf %29, %31 : vector<2x576xf32>
    %cst_20 = arith.constant 0.000000e+00 : f32
    %33 = vector.broadcast %cst_20 : f32 to vector<2x576xf32>
    %34 = arith.maximumf %32, %33 : vector<2x576xf32>
    %c0_21 = arith.constant 0 : index
    %c0_22 = arith.constant 0 : index
    %35 = vector.load %arg7[%c0_21, %c0_22] : memref<2x576xf32, #tpu.memory_space<vmem>>, vector<2x576xf32>
    tpu.vector_store %arg7[%c0_21, %c0_22], %34 {strides = array<i32>} : memref<2x576xf32, #tpu.memory_space<vmem>>, vector<2x576xf32>,
    return
  }
}

module attributes {stable_mosaic.version = 11 : i64} {
  func.func @_head_kernel(%arg0: memref<2x16xf32, #tpu.memory_space<vmem>>, %arg1: memref<2x72x8xf32, #tpu.memory_space<vmem>>, %arg2: memref<2x16x72xf32, #tpu.memory_space<vmem>>, %arg3: memref<16x2xf32, #tpu.memory_space<vmem>>, %arg4: memref<16x16xf32, #tpu.memory_space<vmem>>, %arg5: memref<1x16xf32, #tpu.memory_space<vmem>>, %arg6: memref<10x256xf32, #tpu.memory_space<vmem>>, %arg7: memref<10x256xf32, #tpu.memory_space<vmem>>, %arg8: memref<16x256xf32, #tpu.memory_space<vmem>>, %arg9: memref<1x256xf32, #tpu.memory_space<vmem>>, %arg10: memref<256x256xbf16, #tpu.memory_space<vmem>>, %arg11: memref<1x256xf32, #tpu.memory_space<vmem>>, %arg12: memref<256x256xbf16, #tpu.memory_space<vmem>>, %arg13: memref<1x256xf32, #tpu.memory_space<vmem>>, %arg14: memref<256x256xbf16, #tpu.memory_space<vmem>>, %arg15: memref<1x256xf32, #tpu.memory_space<vmem>>, %arg16: memref<256x256xbf16, #tpu.memory_space<vmem>>, %arg17: memref<1x256xf32, #tpu.memory_space<vmem>>, %arg18: memref<256x256xbf16, #tpu.memory_space<vmem>>, %arg19: memref<1x256xf32, #tpu.memory_space<vmem>>, %arg20: memref<256x10xf32, #tpu.memory_space<vmem>>, %arg21: memref<1x10xf32, #tpu.memory_space<vmem>>, %arg22: memref<2x10xf32, #tpu.memory_space<vmem>>) attributes {dimension_semantics = [], scalar_prefetch = 0 : i64, scratch_operands = 0 : i64, tpu.core_type = #tpu.core_type<tc>} {
    %c0 = arith.constant 0 : index
    %c0_0 = arith.constant 0 : index
    %c0_1 = arith.constant 0 : index
    %0 = vector.load %arg2[%c0, %c0_0, %c0_1] : memref<2x16x72xf32, #tpu.memory_space<vmem>>, vector<1x16x72xf32>
    %1 = vector.shape_cast %0 : vector<1x16x72xf32> to vector<16x72xf32>
    %c0_2 = arith.constant 0 : index
    %c0_3 = arith.constant 0 : index
    %c0_4 = arith.constant 0 : index
    %2 = vector.load %arg1[%c0_2, %c0_3, %c0_4] : memref<2x72x8xf32, #tpu.memory_space<vmem>>, vector<1x72x8xf32>
    %3 = vector.shape_cast %2 : vector<1x72x8xf32> to vector<72x8xf32>
    %cst = arith.constant dense<0.000000e+00> : vector<16x8xf32>
    %4 = tpu.matmul %1, %3, %cst {dimension_numbers = #tpu.dot_dimension_numbers<[1], [0], [0], [1], [0, 0, 1, 1], [], []>} : vector<16x72xf32>, vector<72x8xf32>, vector<16x8xf32> -> vector<16x8xf32>
    %cst_5 = arith.constant 0.000000e+00 : f32
    %5 = vector.broadcast %cst_5 : f32 to vector<16x8xf32>
    %6 = arith.maximumf %4, %5 : vector<16x8xf32>
    %c1 = arith.constant 1 : index
    %c0_6 = arith.constant 0 : index
    %c0_7 = arith.constant 0 : index
    %7 = vector.load %arg2[%c1, %c0_6, %c0_7] : memref<2x16x72xf32, #tpu.memory_space<vmem>>, vector<1x16x72xf32>
    %8 = vector.shape_cast %7 : vector<1x16x72xf32> to vector<16x72xf32>
    %c1_8 = arith.constant 1 : index
    %c0_9 = arith.constant 0 : index
    %c0_10 = arith.constant 0 : index
    %9 = vector.load %arg1[%c1_8, %c0_9, %c0_10] : memref<2x72x8xf32, #tpu.memory_space<vmem>>, vector<1x72x8xf32>
    %10 = vector.shape_cast %9 : vector<1x72x8xf32> to vector<72x8xf32>
    %cst_11 = arith.constant dense<0.000000e+00> : vector<16x8xf32>
    %11 = tpu.matmul %8, %10, %cst_11 {dimension_numbers = #tpu.dot_dimension_numbers<[1], [0], [0], [1], [0, 0, 1, 1], [], []>} : vector<16x72xf32>, vector<72x8xf32>, vector<16x8xf32> -> vector<16x8xf32>
    %cst_12 = arith.constant 0.000000e+00 : f32
    %12 = vector.broadcast %cst_12 : f32 to vector<16x8xf32>
    %13 = arith.maximumf %11, %12 : vector<16x8xf32>
    %14 = tpu.concatenate %6, %13 in 0 : vector<16x8xf32>, vector<16x8xf32> -> vector<32x8xf32>
    %cst_13 = arith.constant dense<0.000000e+00> : vector<8xf32>
    %15 = vector.multi_reduction <add>, %14, %cst_13 [0] : vector<32x8xf32> to vector<8xf32>
    %16 = vector.shape_cast %15 : vector<8xf32> to vector<1x8xf32>
    %cst_14 = arith.constant 3.200000e+01 : f32
    %17 = vector.broadcast %cst_14 : f32 to vector<1x8xf32>
    %18 = arith.divf %16, %17 : vector<1x8xf32>
    %19 = vector.broadcast %18 : vector<1x8xf32> to vector<32x8xf32>
    %20 = arith.subf %14, %19 : vector<32x8xf32>
    %21 = arith.mulf %20, %20 : vector<32x8xf32>
    %cst_15 = arith.constant dense<0.000000e+00> : vector<8xf32>
    %22 = vector.multi_reduction <add>, %21, %cst_15 [0] : vector<32x8xf32> to vector<8xf32>
    %23 = vector.shape_cast %22 : vector<8xf32> to vector<1x8xf32>
    %cst_16 = arith.constant 3.200000e+01 : f32
    %24 = vector.broadcast %cst_16 : f32 to vector<1x8xf32>
    %25 = arith.divf %23, %24 : vector<1x8xf32>
    %26 = vector.broadcast %18 : vector<1x8xf32> to vector<32x8xf32>
    %27 = arith.subf %14, %26 : vector<32x8xf32>
    %cst_17 = arith.constant 9.99999974E-6 : f32
    %28 = vector.broadcast %cst_17 : f32 to vector<1x8xf32>
    %29 = arith.addf %25, %28 : vector<1x8xf32>
    %30 = math.rsqrt %29 : vector<1x8xf32>
    %31 = vector.broadcast %30 : vector<1x8xf32> to vector<32x8xf32>
    %32 = arith.mulf %27, %31 : vector<32x8xf32>
    %c0_18 = arith.constant 0 : index
    %c0_19 = arith.constant 0 : index
    %33 = vector.load %arg3[%c0_18, %c0_19] : memref<16x2xf32, #tpu.memory_space<vmem>>, vector<16x2xf32>
    %34 = tpu.concatenate %33, %33 in 0 : vector<16x2xf32>, vector<16x2xf32> -> vector<32x2xf32>
    %35 = tpu.concatenate %32, %34 in 1 : vector<32x8xf32>, vector<32x2xf32> -> vector<32x10xf32>
    %c0_20 = arith.constant 0 : index
    %c0_21 = arith.constant 0 : index
    %36 = vector.load %arg0[%c0_20, %c0_21] : memref<2x16xf32, #tpu.memory_space<vmem>>, vector<2x16xf32>
    %c0_22 = arith.constant 0 : index
    %c0_23 = arith.constant 0 : index
    %37 = vector.load %arg4[%c0_22, %c0_23] : memref<16x16xf32, #tpu.memory_space<vmem>>, vector<16x16xf32>
    %cst_24 = arith.constant dense<0.000000e+00> : vector<2x16xf32>
    %38 = tpu.matmul %36, %37, %cst_24 {dimension_numbers = #tpu.dot_dimension_numbers<[1], [0], [0], [1], [0, 0, 1, 1], [], []>} : vector<2x16xf32>, vector<16x16xf32>, vector<2x16xf32> -> vector<2x16xf32>
    %c0_25 = arith.constant 0 : index
    %c0_26 = arith.constant 0 : index
    %39 = vector.load %arg5[%c0_25, %c0_26] : memref<1x16xf32, #tpu.memory_space<vmem>>, vector<1x16xf32>
    %40 = vector.broadcast %39 : vector<1x16xf32> to vector<2x16xf32>
    %41 = arith.addf %38, %40 : vector<2x16xf32>
    %cst_27 = arith.constant 0.000000e+00 : f32
    %42 = vector.broadcast %cst_27 : f32 to vector<2x16xf32>
    %43 = arith.maximumf %41, %42 : vector<2x16xf32>
    %c0_28 = arith.constant 0 : index
    %c0_29 = arith.constant 0 : index
    %44 = vector.load %arg6[%c0_28, %c0_29] : memref<10x256xf32, #tpu.memory_space<vmem>>, vector<10x256xf32>
    %cst_30 = arith.constant dense<0.000000e+00> : vector<32x256xf32>
    %45 = tpu.matmul %35, %44, %cst_30 {dimension_numbers = #tpu.dot_dimension_numbers<[1], [0], [0], [1], [0, 0, 1, 1], [], []>} : vector<32x10xf32>, vector<10x256xf32>, vector<32x256xf32> -> vector<32x256xf32>
    %c0_31 = arith.constant 0 : index
    %c0_32 = arith.constant 0 : index
    %46 = vector.load %arg7[%c0_31, %c0_32] : memref<10x256xf32, #tpu.memory_space<vmem>>, vector<10x256xf32>
    %cst_33 = arith.constant dense<0.000000e+00> : vector<32x256xf32>
    %47 = tpu.matmul %35, %46, %cst_33 {dimension_numbers = #tpu.dot_dimension_numbers<[1], [0], [0], [1], [0, 0, 1, 1], [], []>} : vector<32x10xf32>, vector<10x256xf32>, vector<32x256xf32> -> vector<32x256xf32>
    %c0_34 = arith.constant 0 : index
    %c0_35 = arith.constant 0 : index
    %48 = vector.load %arg8[%c0_34, %c0_35] : memref<16x256xf32, #tpu.memory_space<vmem>>, vector<16x256xf32>
    %cst_36 = arith.constant dense<0.000000e+00> : vector<2x256xf32>
    %49 = tpu.matmul %43, %48, %cst_36 {dimension_numbers = #tpu.dot_dimension_numbers<[1], [0], [0], [1], [0, 0, 1, 1], [], []>} : vector<2x16xf32>, vector<16x256xf32>, vector<2x256xf32> -> vector<2x256xf32>
    %50 = vector.extract_strided_slice %45 {offsets = [0, 0], sizes = [16, 256], strides = [1, 1]} : vector<32x256xf32> to vector<16x256xf32>
    %51 = vector.extract_strided_slice %47 {offsets = [0, 0], sizes = [16, 256], strides = [1, 1]} : vector<32x256xf32> to vector<16x256xf32>
    %52 = vector.shape_cast %50 : vector<16x256xf32> to vector<1x16x256xf32>
    %53 = vector.shape_cast %52 : vector<1x16x256xf32> to vector<1x16x256xf32>
    %54 = vector.broadcast %53 : vector<1x16x256xf32> to vector<16x16x256xf32>
    %55 = vector.shape_cast %54 : vector<16x16x256xf32> to vector<256x256xf32>
    %56 = vector.shape_cast %51 : vector<16x256xf32> to vector<16x1x256xf32>
    %57 = vector.shape_cast %56 : vector<16x1x256xf32> to vector<16x1x256xf32>
    %58 = vector.broadcast %57 : vector<16x1x256xf32> to vector<16x16x256xf32>
    %59 = vector.shape_cast %58 : vector<16x16x256xf32> to vector<256x256xf32>
    %60 = arith.addf %55, %59 : vector<256x256xf32>
    %61 = vector.extract_strided_slice %45 {offsets = [16, 0], sizes = [16, 256], strides = [1, 1]} : vector<32x256xf32> to vector<16x256xf32>
    %62 = vector.extract_strided_slice %47 {offsets = [16, 0], sizes = [16, 256], strides = [1, 1]} : vector<32x256xf32> to vector<16x256xf32>
    %63 = vector.shape_cast %61 : vector<16x256xf32> to vector<1x16x256xf32>
    %64 = vector.shape_cast %63 : vector<1x16x256xf32> to vector<1x16x256xf32>
    %65 = vector.broadcast %64 : vector<1x16x256xf32> to vector<16x16x256xf32>
    %66 = vector.shape_cast %65 : vector<16x16x256xf32> to vector<256x256xf32>
    %67 = vector.shape_cast %62 : vector<16x256xf32> to vector<16x1x256xf32>
    %68 = vector.shape_cast %67 : vector<16x1x256xf32> to vector<16x1x256xf32>
    %69 = vector.broadcast %68 : vector<16x1x256xf32> to vector<16x16x256xf32>
    %70 = vector.shape_cast %69 : vector<16x16x256xf32> to vector<256x256xf32>
    %71 = arith.addf %66, %70 : vector<256x256xf32>
    %c0_37 = arith.constant 0 : index
    %c0_38 = arith.constant 0 : index
    %72 = vector.load %arg9[%c0_37, %c0_38] : memref<1x256xf32, #tpu.memory_space<vmem>>, vector<1x256xf32>
    %73 = vector.broadcast %72 : vector<1x256xf32> to vector<2x256xf32>
    %74 = arith.addf %49, %73 : vector<2x256xf32>
    %75 = vector.shape_cast %74 : vector<2x256xf32> to vector<2x1x256xf32>
    %76 = vector.shape_cast %75 : vector<2x1x256xf32> to vector<2x1x256xf32>
    %77 = vector.broadcast %76 : vector<2x1x256xf32> to vector<2x256x256xf32>
    %78 = vector.shape_cast %77 : vector<2x256x256xf32> to vector<512x256xf32>
    %79 = tpu.concatenate %60, %71 in 0 : vector<256x256xf32>, vector<256x256xf32> -> vector<512x256xf32>
    %80 = arith.addf %79, %78 : vector<512x256xf32>
    %cst_39 = arith.constant 0.000000e+00 : f32
    %81 = vector.broadcast %cst_39 : f32 to vector<512x256xf32>
    %82 = arith.maximumf %80, %81 : vector<512x256xf32>
    %83 = arith.truncf %82 : vector<512x256xf32> to vector<512x256xbf16>
    %c0_40 = arith.constant 0 : index
    %c0_41 = arith.constant 0 : index
    %84 = vector.load %arg10[%c0_40, %c0_41] : memref<256x256xbf16, #tpu.memory_space<vmem>>, vector<256x256xbf16>
    %cst_42 = arith.constant dense<0.000000e+00> : vector<512x256xf32>
    %85 = tpu.matmul %83, %84, %cst_42 {dimension_numbers = #tpu.dot_dimension_numbers<[1], [0], [0], [1], [0, 0, 1, 1], [], []>} : vector<512x256xbf16>, vector<256x256xbf16>, vector<512x256xf32> -> vector<512x256xf32>
    %c0_43 = arith.constant 0 : index
    %c0_44 = arith.constant 0 : index
    %86 = vector.load %arg11[%c0_43, %c0_44] : memref<1x256xf32, #tpu.memory_space<vmem>>, vector<1x256xf32>
    %87 = vector.broadcast %86 : vector<1x256xf32> to vector<512x256xf32>
    %88 = arith.addf %85, %87 : vector<512x256xf32>
    %cst_45 = arith.constant 0.000000e+00 : f32
    %89 = vector.broadcast %cst_45 : f32 to vector<512x256xf32>
    %90 = arith.maximumf %88, %89 : vector<512x256xf32>
    %91 = arith.truncf %90 : vector<512x256xf32> to vector<512x256xbf16>
    %c0_46 = arith.constant 0 : index
    %c0_47 = arith.constant 0 : index
    %92 = vector.load %arg12[%c0_46, %c0_47] : memref<256x256xbf16, #tpu.memory_space<vmem>>, vector<256x256xbf16>
    %cst_48 = arith.constant dense<0.000000e+00> : vector<512x256xf32>
    %93 = tpu.matmul %91, %92, %cst_48 {dimension_numbers = #tpu.dot_dimension_numbers<[1], [0], [0], [1], [0, 0, 1, 1], [], []>} : vector<512x256xbf16>, vector<256x256xbf16>, vector<512x256xf32> -> vector<512x256xf32>
    %c0_49 = arith.constant 0 : index
    %c0_50 = arith.constant 0 : index
    %94 = vector.load %arg13[%c0_49, %c0_50] : memref<1x256xf32, #tpu.memory_space<vmem>>, vector<1x256xf32>
    %95 = vector.broadcast %94 : vector<1x256xf32> to vector<512x256xf32>
    %96 = arith.addf %93, %95 : vector<512x256xf32>
    %cst_51 = arith.constant 0.000000e+00 : f32
    %97 = vector.broadcast %cst_51 : f32 to vector<512x256xf32>
    %98 = arith.maximumf %96, %97 : vector<512x256xf32>
    %99 = arith.truncf %98 : vector<512x256xf32> to vector<512x256xbf16>
    %c0_52 = arith.constant 0 : index
    %c0_53 = arith.constant 0 : index
    %100 = vector.load %arg14[%c0_52, %c0_53] : memref<256x256xbf16, #tpu.memory_space<vmem>>, vector<256x256xbf16>
    %cst_54 = arith.constant dense<0.000000e+00> : vector<512x256xf32>
    %101 = tpu.matmul %99, %100, %cst_54 {dimension_numbers = #tpu.dot_dimension_numbers<[1], [0], [0], [1], [0, 0, 1, 1], [], []>} : vector<512x256xbf16>, vector<256x256xbf16>, vector<512x256xf32> -> vector<512x256xf32>
    %c0_55 = arith.constant 0 : index
    %c0_56 = arith.constant 0 : index
    %102 = vector.load %arg15[%c0_55, %c0_56] : memref<1x256xf32, #tpu.memory_space<vmem>>, vector<1x256xf32>
    %103 = vector.broadcast %102 : vector<1x256xf32> to vector<512x256xf32>
    %104 = arith.addf %101, %103 : vector<512x256xf32>
    %cst_57 = arith.constant 0.000000e+00 : f32
    %105 = vector.broadcast %cst_57 : f32 to vector<512x256xf32>
    %106 = arith.maximumf %104, %105 : vector<512x256xf32>
    %107 = vector.extract_strided_slice %106 {offsets = [0, 0], sizes = [256, 256], strides = [1, 1]} : vector<512x256xf32> to vector<256x256xf32>
    %cst_58 = arith.constant dense<0.000000e+00> : vector<256xf32>
    %108 = vector.multi_reduction <add>, %107, %cst_58 [0] : vector<256x256xf32> to vector<256xf32>
    %109 = vector.shape_cast %108 : vector<256xf32> to vector<1x256xf32>
    %110 = vector.extract_strided_slice %106 {offsets = [256, 0], sizes = [256, 256], strides = [1, 1]} : vector<512x256xf32> to vector<256x256xf32>
    %cst_59 = arith.constant dense<0.000000e+00> : vector<256xf32>
    %111 = vector.multi_reduction <add>, %110, %cst_59 [0] : vector<256x256xf32> to vector<256xf32>
    %112 = vector.shape_cast %111 : vector<256xf32> to vector<1x256xf32>
    %113 = tpu.concatenate %109, %112 in 0 : vector<1x256xf32>, vector<1x256xf32> -> vector<2x256xf32>
    %114 = arith.truncf %113 : vector<2x256xf32> to vector<2x256xbf16>
    %c0_60 = arith.constant 0 : index
    %c0_61 = arith.constant 0 : index
    %115 = vector.load %arg16[%c0_60, %c0_61] : memref<256x256xbf16, #tpu.memory_space<vmem>>, vector<256x256xbf16>
    %cst_62 = arith.constant dense<0.000000e+00> : vector<2x256xf32>
    %116 = tpu.matmul %114, %115, %cst_62 {dimension_numbers = #tpu.dot_dimension_numbers<[1], [0], [0], [1], [0, 0, 1, 1], [], []>} : vector<2x256xbf16>, vector<256x256xbf16>, vector<2x256xf32> -> vector<2x256xf32>
    %c0_63 = arith.constant 0 : index
    %c0_64 = arith.constant 0 : index
    %117 = vector.load %arg17[%c0_63, %c0_64] : memref<1x256xf32, #tpu.memory_space<vmem>>, vector<1x256xf32>
    %118 = vector.broadcast %117 : vector<1x256xf32> to vector<2x256xf32>
    %119 = arith.addf %116, %118 : vector<2x256xf32>
    %cst_65 = arith.constant 0.000000e+00 : f32
    %120 = vector.broadcast %cst_65 : f32 to vector<2x256xf32>
    %121 = arith.maximumf %119, %120 : vector<2x256xf32>
    %122 = arith.truncf %121 : vector<2x256xf32> to vector<2x256xbf16>
    %c0_66 = arith.constant 0 : index
    %c0_67 = arith.constant 0 : index
    %123 = vector.load %arg18[%c0_66, %c0_67] : memref<256x256xbf16, #tpu.memory_space<vmem>>, vector<256x256xbf16>
    %cst_68 = arith.constant dense<0.000000e+00> : vector<2x256xf32>
    %124 = tpu.matmul %122, %123, %cst_68 {dimension_numbers = #tpu.dot_dimension_numbers<[1], [0], [0], [1], [0, 0, 1, 1], [], []>} : vector<2x256xbf16>, vector<256x256xbf16>, vector<2x256xf32> -> vector<2x256xf32>
    %c0_69 = arith.constant 0 : index
    %c0_70 = arith.constant 0 : index
    %125 = vector.load %arg19[%c0_69, %c0_70] : memref<1x256xf32, #tpu.memory_space<vmem>>, vector<1x256xf32>
    %126 = vector.broadcast %125 : vector<1x256xf32> to vector<2x256xf32>
    %127 = arith.addf %124, %126 : vector<2x256xf32>
    %cst_71 = arith.constant 0.000000e+00 : f32
    %128 = vector.broadcast %cst_71 : f32 to vector<2x256xf32>
    %129 = arith.maximumf %127, %128 : vector<2x256xf32>
    %c0_72 = arith.constant 0 : index
    %c0_73 = arith.constant 0 : index
    %130 = vector.load %arg20[%c0_72, %c0_73] : memref<256x10xf32, #tpu.memory_space<vmem>>, vector<256x10xf32>
    %cst_74 = arith.constant dense<0.000000e+00> : vector<2x10xf32>
    %131 = tpu.matmul %129, %130, %cst_74 {dimension_numbers = #tpu.dot_dimension_numbers<[1], [0], [0], [1], [0, 0, 1, 1], [], []>} : vector<2x256xf32>, vector<256x10xf32>, vector<2x10xf32> -> vector<2x10xf32>
    %c0_75 = arith.constant 0 : index
    %c0_76 = arith.constant 0 : index
    %132 = vector.load %arg21[%c0_75, %c0_76] : memref<1x10xf32, #tpu.memory_space<vmem>>, vector<1x10xf32>
    %133 = vector.broadcast %132 : vector<1x10xf32> to vector<2x10xf32>
    %134 = arith.addf %131, %133 : vector<2x10xf32>
    %cst_77 = arith.constant dense<0xFF800000> : vector<2xf32>
    %135 = vector.multi_reduction <maximumf>, %134, %cst_77 [1] : vector<2x10xf32> to vector<2xf32>
    %136 = vector.shape_cast %135 : vector<2xf32> to vector<2x1xf32>
    %137 = vector.broadcast %136 : vector<2x1xf32> to vector<2x10xf32>
    %138 = arith.subf %134, %137 : vector<2x10xf32>
    %139 = math.exp %138 : vector<2x10xf32>
    %cst_78 = arith.constant dense<0.000000e+00> : vector<2xf32>
    %140 = vector.multi_reduction <add>, %139, %cst_78 [1] : vector<2x10xf32> to vector<2xf32>
    %141 = vector.shape_cast %140 : vector<2xf32> to vector<2x1xf32>
    %142 = math.log %141 : vector<2x1xf32>
    %143 = vector.broadcast %142 : vector<2x1xf32> to vector<2x10xf32>
    %144 = arith.subf %138, %143 : vector<2x10xf32>
    %c0_79 = arith.constant 0 : index
    %c0_80 = arith.constant 0 : index
    %145 = vector.load %arg22[%c0_79, %c0_80] : memref<2x10xf32, #tpu.memory_space<vmem>>, vector<2x10xf32>
    tpu.vector_store %arg22[%c0_79, %c0_80], %144 {strides = array<i32>} : memref<2x10xf32, #tpu.memory_space<vmem>>, vector<2x10xf32>,
    return
  }
}

</mosaic_0001>

<bundles_post_ra>
// kernel: forward.4
= control target key start
LH: loop header
LB: loop body
LE: loop exit
PB: predicated region body
PF: predicated region fallthrough
CT: control target
= control target key end

     0   :  { %vm89_vm0 = vcmask 1042432   ;;  %v635_v3 = vmov 0   ;;  %vm85_vm1 = vcmask 220160   ;;  %s1018_s1 = inlined_call_operand.vmem [shape: f32[27,2048], index: 1, kind: input, shape index: {}]   ;;  %s1019_s0 = inlined_call_operand.vmem [shape: f32[8,27], index: 0, kind: input, shape index: {}]   ;;  %s1020_s2 = inlined_call_operand.vmem [shape: f32[8,1], index: 2, kind: input, shape index: {}]   ;;  %s1021_s3 = inlined_call_operand.vmem [shape: f32[8,2048], index: 3, kind: output, shape index: {}]  }
   0x1   :  { %v63_v0 = vld [vmem:[%s1018_s1 + $0x180] sm:$0x7]  ;;  %v64_v1 = vld [vmem:[%s1018_s1 + $0x188] sm:$0x7]  ;;  %v65_v2 = vld [vmem:[%s1018_s1 + $0x190] sm:$0x7]  ;;  %630 = vset.pattern.permute.xlu0 %v635_v3 }
   0x2   :  { %596 = vmatpush.msk.msra.mxu0 %vm89_vm0, %v63_v0  ;;  %598 = vmatpush.msk.msra.mxu1 %vm89_vm0, %v64_v1  ;;  %v66_v4 = vld [vmem:[%s1018_s1 + $0x198] sm:$0x7]  ;;  %v47_v5 = vld [vmem:[%s1018_s1 + $0x100] sm:$0xff]  ;;  %v48_v6 = vld [vmem:[%s1018_s1 + $0x108] sm:$0xff] }
   0x3   :  { %600 = vmatpush.msk.msra.mxu2 %vm89_vm0, %v65_v2  ;;  %602 = vmatpush.msk.msra.mxu3 %vm89_vm0, %v66_v4  ;;  %v49_v7 = vld [vmem:[%s1018_s1 + $0x110] sm:$0xff]  ;;  %v50_v8 = vld [vmem:[%s1018_s1 + $0x118] sm:$0xff]  ;;  %v31_v9 = vld [vmem:[%s1018_s1 + $0x80] sm:$0xff] }
   0x4   :  { %151 = vmatpush.msra.mxu0 %v47_v5  ;;  %171 = vmatpush.msra.mxu1 %v48_v6  ;;  %v32_v10 = vld [vmem:[%s1018_s1 + $0x88] sm:$0xff]  ;;  %v33_v11 = vld [vmem:[%s1018_s1 + $0x90] sm:$0xff]  ;;  %v34_v12 = vld [vmem:[%s1018_s1 + $0x98] sm:$0xff] }
   0x5   :  { %191 = vmatpush.msra.mxu2 %v49_v7  ;;  %211 = vmatpush.msra.mxu3 %v50_v8  ;;  %v15_v13 = vld [vmem:[%s1018_s1] sm:$0xff]  ;;  %v16_v14 = vld [vmem:[%s1018_s1 + $0x8] sm:$0xff]  ;;  %v17_v15 = vld [vmem:[%s1018_s1 + $0x10] sm:$0xff] }
   0x6   :  { %152 = vmatpush.msra.mxu0 %v31_v9  ;;  %172 = vmatpush.msra.mxu1 %v32_v10  ;;  %v18_v16 = vld [vmem:[%s1018_s1 + $0x18] sm:$0xff]  ;;  %v712_v17 = vld [vmem:[%s1019_s0] sm:$0xff]  ;;  %v69_v18 = vld [vmem:[%s1018_s1 + $0x1b0] sm:$0x7] }
   0x7   :  { %192 = vmatpush.msra.mxu2 %v33_v11  ;;  %212 = vmatpush.msra.mxu3 %v34_v12  ;;  %v67_v19 = vld [vmem:[%s1018_s1 + $0x1a0] sm:$0x7]  ;;  %v68_v20 = vld [vmem:[%s1018_s1 + $0x1a8] sm:$0x7]  ;;  %v70_v21 = vld [vmem:[%s1018_s1 + $0x1b8] sm:$0x7] }
   0x8   :  { %153 = vmatpush.msra.mxu0 %v15_v13  ;;  %173 = vmatpush.msra.mxu1 %v16_v14  ;;  %v53_v22 = vld [vmem:[%s1018_s1 + $0x130] sm:$0xff]  ;;  %v51_v23 = vld [vmem:[%s1018_s1 + $0x120] sm:$0xff]  ;;  %v52_v24 = vld [vmem:[%s1018_s1 + $0x128] sm:$0xff] }
   0x9   :  { %193 = vmatpush.msra.mxu2 %v17_v15  ;;  %213 = vmatpush.msra.mxu3 %v18_v16  ;;  %v54_v25 = vld [vmem:[%s1018_s1 + $0x138] sm:$0xff]  ;;  %v37_v26 = vld [vmem:[%s1018_s1 + $0xb0] sm:$0xff]  ;;  %v35_v27 = vld [vmem:[%s1018_s1 + $0xa0] sm:$0xff] }
   0xa   :  { %597 = vmatmul.msk.f32.vlgmr.msra.gmra.mxu0 %vm85_vm1, %v712_v17  ;;  %599 = vmatmul.msk.f32.vlgmr.msra.gmra.mxu1 %vm85_vm1, %v712_v17  ;;  %v36_v28 = vld [vmem:[%s1018_s1 + $0xa8] sm:$0xff]  ;;  %v38_v29 = vld [vmem:[%s1018_s1 + $0xb8] sm:$0xff]  ;;  %v21_v30 = vld [vmem:[%s1018_s1 + $0x30] sm:$0xff] }
   0xb   :  { %601 = vmatmul.msk.f32.vlgmr.msra.gmra.mxu2 %vm85_vm1, %v712_v17  ;;  %603 = vmatmul.msk.f32.vlgmr.msra.gmra.mxu3 %vm85_vm1, %v712_v17  ;;  %v19_v31 = vld [vmem:[%s1018_s1 + $0x20] sm:$0xff]  ;;  %v20_v32 = vld [vmem:[%s1018_s1 + $0x28] sm:$0xff]  ;;  %v22_v33 = vld [vmem:[%s1018_s1 + $0x38] sm:$0xff] }
   0xc   :  { %608 = vmatpush.msk.msrb.mxu2 %vm89_vm0, %v69_v18  ;;  %604 = vmatpush.msk.msrb.mxu0 %vm89_vm0, %v67_v19  ;;  %v73_v34 = vld [vmem:[%s1018_s1 + $0x1d0] sm:$0x7]  ;;  %v71_v35 = vld [vmem:[%s1018_s1 + $0x1c0] sm:$0x7]  ;;  %v72_v36 = vld [vmem:[%s1018_s1 + $0x1c8] sm:$0x7] }
   0xd   :  { %606 = vmatpush.msk.msrb.mxu1 %vm89_vm0, %v68_v20  ;;  %610 = vmatpush.msk.msrb.mxu3 %vm89_vm0, %v70_v21  ;;  %v74_v37 = vld [vmem:[%s1018_s1 + $0x1d8] sm:$0x7]  ;;  %v57_v38 = vld [vmem:[%s1018_s1 + $0x150] sm:$0xff]  ;;  %v55_v39 = vld [vmem:[%s1018_s1 + $0x140] sm:$0xff] }
   0xe   :  { %271 = vmatpush.msrb.mxu2 %v53_v22  ;;  %231 = vmatpush.msrb.mxu0 %v51_v23  ;;  %v56_v40 = vld [vmem:[%s1018_s1 + $0x148] sm:$0xff]  ;;  %v58_v41 = vld [vmem:[%s1018_s1 + $0x158] sm:$0xff]  ;;  %v41_v42 = vld [vmem:[%s1018_s1 + $0xd0] sm:$0xff] }
   0xf   :  { %251 = vmatpush.msrb.mxu1 %v52_v24  ;;  %291 = vmatpush.msrb.mxu3 %v54_v25  ;;  %v79_v43 = vld [vmem:[%s1020_s2] sm:$0xff]  ;;  %v40_v45 = vld [vmem:[%s1018_s1 + $0xc8] sm:$0xff]  ;;  %v42_v46 = vld [vmem:[%s1018_s1 + $0xd8] sm:$0xff] }
  0x10   :  { %272 = vmatpush.msrb.mxu2 %v37_v26  ;;  %232 = vmatpush.msrb.mxu0 %v35_v27  ;;  %v39_v44 = vld [vmem:[%s1018_s1 + $0xc0] sm:$0xff]  ;;  %v25_v47 = vld [vmem:[%s1018_s1 + $0x50] sm:$0xff]  ;;  %v24_v49 = vld [vmem:[%s1018_s1 + $0x48] sm:$0xff] }
  0x11   :  { %252 = vmatpush.msrb.mxu1 %v36_v28  ;;  %292 = vmatpush.msrb.mxu3 %v38_v29  ;;  %v23_v48 = vld [vmem:[%s1018_s1 + $0x40] sm:$0xff]  ;;  %v26_v50 = vld [vmem:[%s1018_s1 + $0x58] sm:$0xff]  ;;  %v77_v51 = vld [vmem:[%s1018_s1 + $0x1f0] sm:$0x7] }
  0x12   :  { %273 = vmatpush.msrb.mxu2 %v21_v30  ;;  %233 = vmatpush.msrb.mxu0 %v19_v31  ;;  %v75_v52 = vld [vmem:[%s1018_s1 + $0x1e0] sm:$0x7]  ;;  %v76_v53 = vld [vmem:[%s1018_s1 + $0x1e8] sm:$0x7]  ;;  %v78_v54 = vld [vmem:[%s1018_s1 + $0x1f8] sm:$0x7] }
  0x13   :  { %253 = vmatpush.msrb.mxu1 %v20_v32  ;;  %293 = vmatpush.msrb.mxu3 %v22_v33  ;;  %v61_v55 = vld [vmem:[%s1018_s1 + $0x170] sm:$0xff]  ;;  %v59_v56 = vld [vmem:[%s1018_s1 + $0x160] sm:$0xff]  ;;  %v60_v57 = vld [vmem:[%s1018_s1 + $0x168] sm:$0xff] }
  0x14   :  { %605 = vmatmul.msk.f32.vlgmr.msrb.gmra.mxu0 %vm85_vm1, %v712_v17  ;;  %607 = vmatmul.msk.f32.vlgmr.msrb.gmra.mxu1 %vm85_vm1, %v712_v17  ;;  %v62_v58 = vld [vmem:[%s1018_s1 + $0x178] sm:$0xff]  ;;  %v45_v59 = vld [vmem:[%s1018_s1 + $0xf0] sm:$0xff]  ;;  %v43_v60 = vld [vmem:[%s1018_s1 + $0xe0] sm:$0xff] }
  0x15   :  { %609 = vmatmul.msk.f32.vlgmr.msrb.gmra.mxu2 %vm85_vm1, %v712_v17  ;;  %611 = vmatmul.msk.f32.vlgmr.msrb.gmra.mxu3 %vm85_vm1, %v712_v17  ;;  %v44_v61 = vld [vmem:[%s1018_s1 + $0xe8] sm:$0xff]  ;;  %v46_v62 = vld [vmem:[%s1018_s1 + $0xf8] sm:$0xff]  ;;  %v29_v63 = vld [vmem:[%s1018_s1 + $0x70] sm:$0xff] }
  0x16   :  { %616 = vmatpush.msk.msra.mxu2 %vm89_vm0, %v73_v34  ;;  %612 = vmatpush.msk.msra.mxu0 %vm89_vm0, %v71_v35  ;;  %v27_v0 = vld [vmem:[%s1018_s1 + $0x60] sm:$0xff]  ;;  %v28_v1 = vld [vmem:[%s1018_s1 + $0x68] sm:$0xff]  ;;  %v30_v2 = vld [vmem:[%s1018_s1 + $0x78] sm:$0xff] }
  0x17   :  { %614 = vmatpush.msk.msra.mxu1 %vm89_vm0, %v72_v36  ;;  %618 = vmatpush.msk.msra.mxu3 %vm89_vm0, %v74_v37 }
  0x18   :  { %351 = vmatpush.msra.mxu2 %v57_v38  ;;  %311 = vmatpush.msra.mxu0 %v55_v39 }
  0x19   :  { %331 = vmatpush.msra.mxu1 %v56_v40  ;;  %371 = vmatpush.msra.mxu3 %v58_v41 }
  0x1a   :  { %352 = vmatpush.msra.mxu2 %v41_v42  ;;  %82 = vperm.xlu0 %630, %v79_v43  }
  0x1b   :  { %312 = vmatpush.msra.mxu0 %v39_v44  ;;  %332 = vmatpush.msra.mxu1 %v40_v45 }
  0x1c   :  { %372 = vmatpush.msra.mxu3 %v42_v46  ;;  %353 = vmatpush.msra.mxu2 %v25_v47 }
  0x1d   :  { %313 = vmatpush.msra.mxu0 %v23_v48  ;;  %333 = vmatpush.msra.mxu1 %v24_v49 }
  0x1e   :  { %373 = vmatpush.msra.mxu3 %v26_v50  ;;  %613 = vmatmul.msk.f32.vlgmr.msra.gmra.mxu0 %vm85_vm1, %v712_v17 }
  0x1f   :  { %615 = vmatmul.msk.f32.vlgmr.msra.gmra.mxu1 %vm85_vm1, %v712_v17  ;;  %617 = vmatmul.msk.f32.vlgmr.msra.gmra.mxu2 %vm85_vm1, %v712_v17 }
  0x20   :  { %619 = vmatmul.msk.f32.vlgmr.msra.gmra.mxu3 %vm85_vm1, %v712_v17  ;;  %624 = vmatpush.msk.msrb.mxu2 %vm89_vm0, %v77_v51 }
  0x21   :  { %620 = vmatpush.msk.msrb.mxu0 %vm89_vm0, %v75_v52  ;;  %622 = vmatpush.msk.msrb.mxu1 %vm89_vm0, %v76_v53 }
  0x22   :  { %626 = vmatpush.msk.msrb.mxu3 %vm89_vm0, %v78_v54  ;;  %431 = vmatpush.msrb.mxu2 %v61_v55 }
  0x23   :  { %391 = vmatpush.msrb.mxu0 %v59_v56  ;;  %411 = vmatpush.msrb.mxu1 %v60_v57 }
  0x24   :  { %451 = vmatpush.msrb.mxu3 %v62_v58  ;;  %432 = vmatpush.msrb.mxu2 %v45_v59 }
  0x25   :  { %392 = vmatpush.msrb.mxu0 %v43_v60  ;;  %412 = vmatpush.msrb.mxu1 %v44_v61 }
  0x26   :  { %452 = vmatpush.msrb.mxu3 %v46_v62  ;;  %433 = vmatpush.msrb.mxu2 %v29_v63 }
  0x27   :  { %393 = vmatpush.msrb.mxu0 %v27_v0  ;;  %413 = vmatpush.msrb.mxu1 %v28_v1 }
  0x28   :  { %453 = vmatpush.msrb.mxu3 %v30_v2  ;;  %621 = vmatmul.msk.f32.vlgmr.msrb.gmra.mxu0 %vm85_vm1, %v712_v17 }
  0x29   :  { %623 = vmatmul.msk.f32.vlgmr.msrb.gmra.mxu1 %vm85_vm1, %v712_v17  ;;  %625 = vmatmul.msk.f32.vlgmr.msrb.gmra.mxu2 %vm85_vm1, %v712_v17 }
  0x2a   :  { %627 = vmatmul.msk.f32.vlgmr.msrb.gmra.mxu3 %vm85_vm1, %v712_v17 }
  0x87   :  { %v155_v3 = vpop.f32.mrf.mxu0  ;;  %v175_v4 = vpop.f32.mrf.mxu1 }
  0x8c   :  { %v83_v5 = vpop.permute.xlu0 %82 }
  0x8d   :  { %v905_v6 = vadd.f32 %v155_v3, %v83_v5  ;;  %v907_v7 = vadd.f32 %v175_v4, %v83_v5  ;;  %v636_v3 = vmov 2048.0  }
  0x8e   :  { %v195_v8 = vpop.f32.mrf.mxu2  ;;  %v215_v9 = vpop.f32.mrf.mxu3  ;;  %631 = vrcp.f32 %v636_v3 }
  0x8f   :  { %v909_v10 = vadd.f32 %v195_v8, %v83_v5  ;;  %v458_v11 = vmax.f32 %v905_v6, 0.0  ;;  %v459_v12 = vmax.f32 %v907_v7, 0.0  ;;  %v913_v13 = vadd.f32 %v215_v9, %v83_v5 }
  0x91   :  { %v460_v14 = vmax.f32 %v909_v10, 0.0  ;;  %v474_v15 = vadd.f32 %v459_v12, %v458_v11  ;;  %v235_v16 = vpop.f32.mrf.mxu0  ;;  %v255_v17 = vpop.f32.mrf.mxu1  ;;  %v461_v20 = vmax.f32 %v913_v13, 0.0 }
  0x92   :  { %v920_v18 = vadd.f32 %v235_v16, %v83_v5  ;;  %v925_v21 = vadd.f32 %v255_v17, %v83_v5 }
  0x93   :  { %v475_v19 = vadd.f32 %v474_v15, %v460_v14 }
  0x94   :  { %v462_v23 = vmax.f32 %v920_v18, 0.0  ;;  %v463_v25 = vmax.f32 %v925_v21, 0.0  ;;  %v632_v4 = vpop.eup %631 }
  0x95   :  { %v476_v22 = vadd.f32 %v475_v19, %v461_v20  ;;  %v492_v8 = vmul.f32 2048.0, %v632_v4  ;;  %vm496_vm2 = vweird.f32 %v632_v4 }
  0x97   :  { %v477_v24 = vadd.f32 %v476_v22, %v462_v23  ;;  %v493_v9 = vsub.f32 1.0, %v492_v8 }
  0x98   :  { %v275_v26 = vpop.f32.mrf.mxu2  ;;  %v295_v27 = vpop.f32.mrf.mxu3 }
  0x99   :  { %v478_v28 = vadd.f32 %v477_v24, %v463_v25  ;;  %v933_v29 = vadd.f32 %v275_v26, %v83_v5  ;;  %v935_v30 = vadd.f32 %v295_v27, %v83_v5  ;;  %v494_v15 = vmul.f32 %v632_v4, %v493_v9 }
  0x9b   :  { %v464_v31 = vmax.f32 %v933_v29, 0.0  ;;  %v315_v32 = vpop.f32.mrf.mxu0  ;;  %v465_v36 = vmax.f32 %v935_v30, 0.0  ;;  %v495_v16 = vadd.f32 %v632_v4, %v494_v15 }
  0x9c   :  { %v938_v33 = vadd.f32 %v315_v32, %v83_v5  ;;  %v335_v34 = vpop.f32.mrf.mxu1 }
  0x9d   :  { %v479_v35 = vadd.f32 %v478_v28, %v464_v31  ;;  %v941_v37 = vadd.f32 %v335_v34, %v83_v5  ;;  %v497_v17 = vsel %vm496_vm2, %v632_v4, %v495_v16 }
  0x9e   :  { %v466_v39 = vmax.f32 %v938_v33, 0.0 }
  0x9f   :  { %v480_v38 = vadd.f32 %v479_v35, %v465_v36  ;;  %v467_v41 = vmax.f32 %v941_v37, 0.0 }
  0xa1   :  { %v481_v40 = vadd.f32 %v480_v38, %v466_v39 }
  0xa2   :  { %v355_v42 = vpop.f32.mrf.mxu2 }
  0xa3   :  { %v482_v43 = vadd.f32 %v481_v40, %v467_v41  ;;  %v356_v44 = vadd.f32 %v355_v42, %v83_v5  ;;  %v375_v45 = vpop.f32.mrf.mxu3 }
  0xa4   :  { %v376_v46 = vadd.f32 %v375_v45, %v83_v5 }
  0xa5   :  { %v468_v47 = vmax.f32 %v356_v44, 0.0  ;;  %v395_v48 = vpop.f32.mrf.mxu0 }
  0xa6   :  { %v396_v49 = vadd.f32 %v395_v48, %v83_v5  ;;  %v415_v50 = vpop.f32.mrf.mxu1  ;;  %v469_v52 = vmax.f32 %v376_v46, 0.0 }
  0xa7   :  { %v483_v51 = vadd.f32 %v482_v43, %v468_v47  ;;  %v416_v53 = vadd.f32 %v415_v50, %v83_v5 }
  0xa8   :  { %v470_v55 = vmax.f32 %v396_v49, 0.0 }
  0xa9   :  { %v484_v54 = vadd.f32 %v483_v51, %v469_v52  ;;  %v471_v57 = vmax.f32 %v416_v53, 0.0 }
  0xab   :  { %v485_v56 = vadd.f32 %v484_v54, %v470_v55 }
  0xac   :  { %v435_v58 = vpop.f32.mrf.mxu2 }
  0xad   :  { %v486_v59 = vadd.f32 %v485_v56, %v471_v57  ;;  %v436_v60 = vadd.f32 %v435_v58, %v83_v5  ;;  %v455_v61 = vpop.f32.mrf.mxu3 }
  0xae   :  { %v456_v62 = vadd.f32 %v455_v61, %v83_v5 }
  0xaf   :  { %v472_v63 = vmax.f32 %v436_v60, 0.0 }
  0xb0   :  { %v473_v1 = vmax.f32 %v456_v62, 0.0 }
  0xb1   :  { %v487_v0 = vadd.f32 %v486_v59, %v472_v63 }
  0xb3   :  { %v488_v2 = vadd.f32 %v487_v0, %v473_v1 }
  0xb5   :  { %489 = vadd.xlane.f32.xlu0 %v488_v2 }
 0x128   :  { %v490_v18 = vpop.xlane.xlu0 %489 }
 0x129   :  { %v498_v19 = vmul.f32 %v497_v17, %v490_v18 }
 0x12b   :  { %v947_v22 = vsub.f32 %v458_v11, %v498_v19  ;;  %v951_v5 = vsub.f32 %v459_v12, %v498_v19  ;;  %v955_v24 = vsub.f32 %v460_v14, %v498_v19  ;;  %v502_v28 = vsub.f32 %v461_v20, %v498_v19 }
 0x12c   :  { %v503_v6 = vsub.f32 %v462_v23, %v498_v19  ;;  %v504_v12 = vsub.f32 %v463_v25, %v498_v19  ;;  %v505_v29 = vsub.f32 %v464_v31, %v498_v19  ;;  %v506_v33 = vsub.f32 %v465_v36, %v498_v19 }
 0x12d   :  { %v515_v26 = vmul.f32 %v947_v22, %v947_v22  ;;  %v516_v27 = vmul.f32 %v951_v5, %v951_v5  ;;  %v517_v11 = vmul.f32 %v955_v24, %v955_v24  ;;  %v518_v10 = vmul.f32 %v502_v28, %v502_v28 }
 0x12e   :  { %v519_v30 = vmul.f32 %v503_v6, %v503_v6  ;;  %v520_v34 = vmul.f32 %v504_v12, %v504_v12  ;;  %v507_v37 = vsub.f32 %v466_v39, %v498_v19  ;;  %v521_v38 = vmul.f32 %v505_v29, %v505_v29 }
 0x12f   :  { %v531_v7 = vadd.f32 %v516_v27, %v515_v26  ;;  %v508_v20 = vsub.f32 %v467_v41, %v498_v19  ;;  %v522_v23 = vmul.f32 %v506_v33, %v506_v33  ;;  %v509_v42 = vsub.f32 %v468_v47, %v498_v19 }
 0x130   :  { %v523_v43 = vmul.f32 %v507_v37, %v507_v37  ;;  %v510_v45 = vsub.f32 %v469_v52, %v498_v19  ;;  %v511_v46 = vsub.f32 %v470_v55, %v498_v19  ;;  %v512_v49 = vsub.f32 %v471_v57, %v498_v19 }
 0x131   :  { %v532_v14 = vadd.f32 %v531_v7, %v517_v11  ;;  %v524_v21 = vmul.f32 %v508_v20, %v508_v20  ;;  %v525_v48 = vmul.f32 %v509_v42, %v509_v42  ;;  %v513_v51 = vsub.f32 %v472_v63, %v498_v19 }
 0x132   :  { %v526_v50 = vmul.f32 %v510_v45, %v510_v45  ;;  %v527_v53 = vmul.f32 %v511_v46, %v511_v46  ;;  %v514_v54 = vsub.f32 %v473_v1, %v498_v19  ;;  %v528_v56 = vmul.f32 %v512_v49, %v512_v49 }
 0x133   :  { %v533_v32 = vadd.f32 %v532_v14, %v518_v10  ;;  %v529_v58 = vmul.f32 %v513_v51, %v513_v51 }
 0x134   :  { %v530_v47 = vmul.f32 %v514_v54, %v514_v54 }
 0x135   :  { %v534_v35 = vadd.f32 %v533_v32, %v519_v30 }
 0x137   :  { %v535_v13 = vadd.f32 %v534_v35, %v520_v34 }
 0x139   :  { %v536_v40 = vadd.f32 %v535_v13, %v521_v38 }
 0x13b   :  { %v537_v44 = vadd.f32 %v536_v40, %v522_v23 }
 0x13d   :  { %v538_v25 = vadd.f32 %v537_v44, %v523_v43 }
 0x13f   :  { %v539_v31 = vadd.f32 %v538_v25, %v524_v21 }
 0x141   :  { %v540_v36 = vadd.f32 %v539_v31, %v525_v48 }
 0x143   :  { %v541_v39 = vadd.f32 %v540_v36, %v526_v50 }
 0x145   :  { %v542_v41 = vadd.f32 %v541_v39, %v527_v53 }
 0x147   :  { %v543_v59 = vadd.f32 %v542_v41, %v528_v56 }
 0x149   :  { %v544_v60 = vadd.f32 %v543_v59, %v529_v58 }
 0x14b   :  { %v545_v61 = vadd.f32 %v544_v60, %v530_v47 }
 0x14d   :  { %546 = vadd.xlane.f32.xlu1 %v545_v61 }
 0x1c0   :  { %v547_v52 = vpop.xlane.xlu1 %546 }
 0x1c1   :  { %v548_v62 = vmul.f32 %v547_v52, %v497_v17 }
 0x1c3   :  { %v549_v55 = vadd.f32 1e-05, %v548_v62 }
 0x1c5   :  { %633 = vrsqrt.f32 %v549_v55  ;;  %vm556_vm4 = vweird.f32 %v549_v55 }
 0x1cb   :  { %v634_v0 = vpop.eup %633 }
 0x1cc   :  { %v551_v57 = vmul.f32 %v634_v0, %v549_v55  ;;  %vm557_vm3 = vweird.f32 %v634_v0 }
 0x1cd   :  { %vm558_vm5 = vmor %vm556_vm4, %vm557_vm3 }
 0x1ce   :  { %v552_v2 = vmul.f32 %v634_v0, %v551_v57 }
 0x1d0   :  { %v553_v3 = vmul.f32 0.5, %v552_v2 }
 0x1d2   :  { %v554_v63 = vsub.f32 1.5, %v553_v3 }
 0x1d4   :  { %v555_v4 = vmul.f32 %v634_v0, %v554_v63 }
 0x1d6   :  { %v559_v1 = vsel %vm558_vm5, %v634_v0, %v555_v4 }
 0x1d7   :  { %v560_v8 = vmul.f32 %v559_v1, %v947_v22  ;;  %v561_v9 = vmul.f32 %v559_v1, %v951_v5  ;;  %v562_v15 = vmul.f32 %v559_v1, %v955_v24  ;;  %v563_v16 = vmul.f32 %v559_v1, %v502_v28 }
 0x1d8   :  { %v564_v17 = vmul.f32 %v559_v1, %v503_v6  ;;  %v565_v18 = vmul.f32 %v559_v1, %v504_v12  ;;  %v566_v19 = vmul.f32 %v559_v1, %v505_v29  ;;  %v567_v22 = vmul.f32 %v559_v1, %v506_v33 }
 0x1d9   :  { %576 = vst [vmem:[%s1021_s3] sm:$0xff] %v560_v8  ;;  %v568_v5 = vmul.f32 %v559_v1, %v507_v37  ;;  %v569_v24 = vmul.f32 %v559_v1, %v508_v20  ;;  %v570_v26 = vmul.f32 %v559_v1, %v509_v42  ;;  %v571_v27 = vmul.f32 %v559_v1, %v510_v45 }
 0x1da   :  { %577 = vst [vmem:[%s1021_s3 + $0x8] sm:$0xff] %v561_v9  ;;  %v572_v28 = vmul.f32 %v559_v1, %v511_v46  ;;  %v573_v6 = vmul.f32 %v559_v1, %v512_v49  ;;  %v574_v11 = vmul.f32 %v559_v1, %v513_v51  ;;  %v575_v7 = vmul.f32 %v559_v1, %v514_v54 }
 0x1db   :  { %578 = vst [vmem:[%s1021_s3 + $0x10] sm:$0xff] %v562_v15 }
 0x1dc   :  { %579 = vst [vmem:[%s1021_s3 + $0x18] sm:$0xff] %v563_v16 }
 0x1dd   :  { %580 = vst [vmem:[%s1021_s3 + $0x20] sm:$0xff] %v564_v17 }
 0x1de   :  { %581 = vst [vmem:[%s1021_s3 + $0x28] sm:$0xff] %v565_v18 }
 0x1df   :  { %582 = vst [vmem:[%s1021_s3 + $0x30] sm:$0xff] %v566_v19 }
 0x1e0   :  { %583 = vst [vmem:[%s1021_s3 + $0x38] sm:$0xff] %v567_v22 }
 0x1e1   :  { %584 = vst [vmem:[%s1021_s3 + $0x40] sm:$0xff] %v568_v5 }
 0x1e2   :  { %585 = vst [vmem:[%s1021_s3 + $0x48] sm:$0xff] %v569_v24 }
 0x1e3   :  { %586 = vst [vmem:[%s1021_s3 + $0x50] sm:$0xff] %v570_v26 }
 0x1e4   :  { %587 = vst [vmem:[%s1021_s3 + $0x58] sm:$0xff] %v571_v27 }
 0x1e5   :  { %588 = vst [vmem:[%s1021_s3 + $0x60] sm:$0xff] %v572_v28 }
 0x1e6   :  { %589 = vst [vmem:[%s1021_s3 + $0x68] sm:$0xff] %v573_v6 }
 0x1e7   :  { %590 = vst [vmem:[%s1021_s3 + $0x70] sm:$0xff] %v574_v11 }
 0x1e8   :  { %591 = vst [vmem:[%s1021_s3 + $0x78] sm:$0xff] %v575_v7 }

// kernel: forward.5
= control target key start
LH: loop header
LB: loop body
LE: loop exit
PB: predicated region body
PF: predicated region fallthrough
CT: control target
= control target key end

     0   :  { %v206_v3 = vmov 0   ;;  %vm57_vm0 = vcmask 588800   ;;  %v207_v55 = vmov 512.0   ;;  %s354_s1 = inlined_call_operand.vmem [shape: f32[72,512], index: 1, kind: input, shape index: {}]   ;;  %s355_s0 = inlined_call_operand.vmem [shape: f32[8,72], index: 0, kind: input, shape index: {}]   ;;  %s356_s2 = inlined_call_operand.vmem [shape: f32[8,1], index: 2, kind: input, shape index: {}]   ;;  %s357_s3 = inlined_call_operand.vmem [shape: f32[8,512], index: 3, kind: output, shape index: {}]  }
   0x1   :  { %v49_v0 = vld [vmem:[%s354_s1 + $0x110] sm:$0xff]  ;;  %v50_v1 = vld [vmem:[%s354_s1 + $0x118] sm:$0xff]  ;;  %201 = vset.pattern.permute.xlu0 %v206_v3  ;;  %v47_v5 = vld [vmem:[%s354_s1 + $0x100] sm:$0xff]  ;;  %202 = vrcp.f32 %v207_v55 }
   0x2   :  { %v45_v2 = vld [vmem:[%s354_s1 + $0xf0] sm:$0xff]  ;;  %108 = vmatpush.msra.mxu2 %v49_v0  ;;  %128 = vmatpush.msra.mxu3 %v50_v1  ;;  %v46_v4 = vld [vmem:[%s354_s1 + $0xf8] sm:$0xff]  ;;  %v48_v6 = vld [vmem:[%s354_s1 + $0x108] sm:$0xff] }
   0x3   :  { %68 = vmatpush.msra.mxu0 %v47_v5  ;;  %88 = vmatpush.msra.mxu1 %v48_v6  ;;  %v41_v7 = vld [vmem:[%s354_s1 + $0xd0] sm:$0xff]  ;;  %v42_v8 = vld [vmem:[%s354_s1 + $0xd8] sm:$0xff]  ;;  %v43_v9 = vld [vmem:[%s354_s1 + $0xe0] sm:$0xff] }
   0x4   :  { %109 = vmatpush.msra.mxu2 %v45_v2  ;;  %129 = vmatpush.msra.mxu3 %v46_v4  ;;  %v44_v10 = vld [vmem:[%s354_s1 + $0xe8] sm:$0xff]  ;;  %v37_v11 = vld [vmem:[%s354_s1 + $0xb0] sm:$0xff]  ;;  %v38_v12 = vld [vmem:[%s354_s1 + $0xb8] sm:$0xff] }
   0x5   :  { %69 = vmatpush.msra.mxu0 %v43_v9  ;;  %89 = vmatpush.msra.mxu1 %v44_v10  ;;  %v39_v13 = vld [vmem:[%s354_s1 + $0xc0] sm:$0xff]  ;;  %v40_v14 = vld [vmem:[%s354_s1 + $0xc8] sm:$0xff]  ;;  %v33_v17 = vld [vmem:[%s354_s1 + $0x90] sm:$0xff] }
   0x6   :  { %110 = vmatpush.msra.mxu2 %v41_v7  ;;  %130 = vmatpush.msra.mxu3 %v42_v8  ;;  %v35_v15 = vld [vmem:[%s354_s1 + $0xa0] sm:$0xff]  ;;  %v36_v16 = vld [vmem:[%s354_s1 + $0xa8] sm:$0xff]  ;;  %v34_v18 = vld [vmem:[%s354_s1 + $0x98] sm:$0xff] }
   0x7   :  { %70 = vmatpush.msra.mxu0 %v39_v13  ;;  %90 = vmatpush.msra.mxu1 %v40_v14  ;;  %v31_v19 = vld [vmem:[%s354_s1 + $0x80] sm:$0xff]  ;;  %v32_v20 = vld [vmem:[%s354_s1 + $0x88] sm:$0xff]  ;;  %v29_v21 = vld [vmem:[%s354_s1 + $0x70] sm:$0xff]  ;;  %v203_v56 = vpop.eup %202 }
   0x8   :  { %111 = vmatpush.msra.mxu2 %v37_v11  ;;  %131 = vmatpush.msra.mxu3 %v38_v12  ;;  %v30_v22 = vld [vmem:[%s354_s1 + $0x78] sm:$0xff]  ;;  %v27_v23 = vld [vmem:[%s354_s1 + $0x60] sm:$0xff]  ;;  %v28_v24 = vld [vmem:[%s354_s1 + $0x68] sm:$0xff]  ;;  %v151_v57 = vmul.f32 512.0, %v203_v56  ;;  %vm155_vm1 = vweird.f32 %v203_v56 }
   0x9   :  { %71 = vmatpush.msra.mxu0 %v35_v15  ;;  %91 = vmatpush.msra.mxu1 %v36_v16  ;;  %v25_v25 = vld [vmem:[%s354_s1 + $0x50] sm:$0xff]  ;;  %v26_v26 = vld [vmem:[%s354_s1 + $0x58] sm:$0xff]  ;;  %v23_v27 = vld [vmem:[%s354_s1 + $0x40] sm:$0xff] }
   0xa   :  { %112 = vmatpush.msra.mxu2 %v33_v17  ;;  %132 = vmatpush.msra.mxu3 %v34_v18  ;;  %v24_v28 = vld [vmem:[%s354_s1 + $0x48] sm:$0xff]  ;;  %v21_v29 = vld [vmem:[%s354_s1 + $0x30] sm:$0xff]  ;;  %v22_v30 = vld [vmem:[%s354_s1 + $0x38] sm:$0xff]  ;;  %v152_v58 = vsub.f32 1.0, %v151_v57 }
   0xb   :  { %72 = vmatpush.msra.mxu0 %v31_v19  ;;  %92 = vmatpush.msra.mxu1 %v32_v20  ;;  %v19_v31 = vld [vmem:[%s354_s1 + $0x20] sm:$0xff]  ;;  %v20_v32 = vld [vmem:[%s354_s1 + $0x28] sm:$0xff]  ;;  %v17_v33 = vld [vmem:[%s354_s1 + $0x10] sm:$0xff] }
   0xc   :  { %113 = vmatpush.msra.mxu2 %v29_v21  ;;  %133 = vmatpush.msra.mxu3 %v30_v22  ;;  %v18_v34 = vld [vmem:[%s354_s1 + $0x18] sm:$0xff]  ;;  %v14_v35 = vld [vmem:[%s355_s0] sm:$0xff]  ;;  %v16_v37 = vld [vmem:[%s354_s1 + $0x8] sm:$0xff]  ;;  %v153_v59 = vmul.f32 %v203_v56, %v152_v58 }
   0xd   :  { %73 = vmatpush.msra.mxu0 %v27_v23  ;;  %93 = vmatpush.msra.mxu1 %v28_v24  ;;  %v15_v36 = vld [vmem:[%s354_s1] sm:$0xff] }
   0xe   :  { %114 = vmatpush.msra.mxu2 %v25_v25  ;;  %134 = vmatpush.msra.mxu3 %v26_v26  ;;  %v51_v38 = vld [vmem:[%s356_s2] sm:$0xff]  ;;  %v154_v60 = vadd.f32 %v203_v56, %v153_v59 }
   0xf   :  { %74 = vmatpush.msra.mxu0 %v23_v27  ;;  %94 = vmatpush.msra.mxu1 %v24_v28 }
  0x10   :  { %115 = vmatpush.msra.mxu2 %v21_v29  ;;  %135 = vmatpush.msra.mxu3 %v22_v30  ;;  %v156_v61 = vsel %vm155_vm1, %v203_v56, %v154_v60 }
  0x11   :  { %75 = vmatpush.msra.mxu0 %v19_v31  ;;  %95 = vmatpush.msra.mxu1 %v20_v32 }
  0x12   :  { %116 = vmatpush.msra.mxu2 %v17_v33  ;;  %136 = vmatpush.msra.mxu3 %v18_v34 }
  0x13   :  { %197 = vmatmul.msk.f32.vlgmr.msra.gmra.mxu2 %vm57_vm0, %v14_v35  ;;  %198 = vmatmul.msk.f32.vlgmr.msra.gmra.mxu3 %vm57_vm0, %v14_v35 }
  0x14   :  { %76 = vmatpush.msra.mxu0 %v15_v36  ;;  %96 = vmatpush.msra.mxu1 %v16_v37 }
  0x15   :  { %195 = vmatmul.msk.f32.vlgmr.msra.gmra.mxu0 %vm57_vm0, %v14_v35  ;;  %196 = vmatmul.msk.f32.vlgmr.msra.gmra.mxu1 %vm57_vm0, %v14_v35 }
  0x16   :  { %54 = vperm.xlu0 %201, %v51_v38  }
  0x88   :  { %v55_v39 = vpop.permute.xlu0 %54 }
  0x92   :  { %v78_v40 = vpop.f32.mrf.mxu0  ;;  %v98_v41 = vpop.f32.mrf.mxu1 }
  0x93   :  { %v79_v42 = vadd.f32 %v78_v40, %v55_v39  ;;  %v99_v43 = vadd.f32 %v98_v41, %v55_v39 }
  0x95   :  { %v141_v44 = vmax.f32 %v79_v42, 0.0  ;;  %v142_v45 = vmax.f32 %v99_v43, 0.0 }
  0x96   :  { %v118_v46 = vpop.f32.mrf.mxu2  ;;  %v138_v47 = vpop.f32.mrf.mxu3 }
  0x97   :  { %v145_v48 = vadd.f32 %v142_v45, %v141_v44  ;;  %v119_v49 = vadd.f32 %v118_v46, %v55_v39  ;;  %v139_v50 = vadd.f32 %v138_v47, %v55_v39 }
  0x99   :  { %v143_v51 = vmax.f32 %v119_v49, 0.0  ;;  %v144_v53 = vmax.f32 %v139_v50, 0.0 }
  0x9b   :  { %v146_v52 = vadd.f32 %v145_v48, %v143_v51 }
  0x9d   :  { %v147_v54 = vadd.f32 %v146_v52, %v144_v53 }
  0x9f   :  { %148 = vadd.xlane.f32.xlu0 %v147_v54 }
 0x112   :  { %v149_v62 = vpop.xlane.xlu0 %148 }
 0x113   :  { %v157_v63 = vmul.f32 %v156_v61, %v149_v62 }
 0x115   :  { %v158_v0 = vsub.f32 %v141_v44, %v157_v63  ;;  %v159_v1 = vsub.f32 %v142_v45, %v157_v63  ;;  %v160_v2 = vsub.f32 %v143_v51, %v157_v63  ;;  %v161_v3 = vsub.f32 %v144_v53, %v157_v63 }
 0x117   :  { %v162_v4 = vmul.f32 %v158_v0, %v158_v0  ;;  %v163_v5 = vmul.f32 %v159_v1, %v159_v1  ;;  %v164_v6 = vmul.f32 %v160_v2, %v160_v2  ;;  %v165_v8 = vmul.f32 %v161_v3, %v161_v3 }
 0x119   :  { %v166_v7 = vadd.f32 %v163_v5, %v162_v4 }
 0x11b   :  { %v167_v9 = vadd.f32 %v166_v7, %v164_v6 }
 0x11d   :  { %v168_v10 = vadd.f32 %v167_v9, %v165_v8 }
 0x11f   :  { %169 = vadd.xlane.f32.xlu1 %v168_v10 }
 0x192   :  { %v170_v11 = vpop.xlane.xlu1 %169 }
 0x193   :  { %v171_v12 = vmul.f32 %v170_v11, %v156_v61 }
 0x195   :  { %v172_v13 = vadd.f32 1e-05, %v171_v12 }
 0x197   :  { %204 = vrsqrt.f32 %v172_v13  ;;  %vm179_vm3 = vweird.f32 %v172_v13 }
 0x19d   :  { %v205_v14 = vpop.eup %204 }
 0x19e   :  { %v174_v15 = vmul.f32 %v205_v14, %v172_v13  ;;  %vm180_vm2 = vweird.f32 %v205_v14 }
 0x19f   :  { %vm181_vm4 = vmor %vm179_vm3, %vm180_vm2 }
 0x1a0   :  { %v175_v16 = vmul.f32 %v205_v14, %v174_v15 }
 0x1a2   :  { %v176_v17 = vmul.f32 0.5, %v175_v16 }
 0x1a4   :  { %v177_v18 = vsub.f32 1.5, %v176_v17 }
 0x1a6   :  { %v178_v19 = vmul.f32 %v205_v14, %v177_v18 }
 0x1a8   :  { %v182_v20 = vsel %vm181_vm4, %v205_v14, %v178_v19 }
 0x1a9   :  { %v183_v21 = vmul.f32 %v182_v20, %v158_v0  ;;  %v184_v22 = vmul.f32 %v182_v20, %v159_v1  ;;  %v185_v23 = vmul.f32 %v182_v20, %v160_v2  ;;  %v186_v24 = vmul.f32 %v182_v20, %v161_v3 }
 0x1ab   :  { %187 = vst [vmem:[%s357_s3] sm:$0xff] %v183_v21 }
 0x1ac   :  { %188 = vst [vmem:[%s357_s3 + $0x8] sm:$0xff] %v184_v22 }
 0x1ad   :  { %189 = vst [vmem:[%s357_s3 + $0x10] sm:$0xff] %v185_v23 }
 0x1ae   :  { %190 = vst [vmem:[%s357_s3 + $0x18] sm:$0xff] %v186_v24 }

// kernel: forward.6
= control target key start
LH: loop header
LB: loop body
LE: loop exit
PB: predicated region body
PF: predicated region fallthrough
CT: control target
= control target key end

     0   :  { %v264_v2 = vmov 0   ;;  %vm41_vm0 = vcmask 588800   ;;  %vm117_vm1 = vcmask 130048   ;;  %v265_v27 = vmov 128.0   ;;  %s389_s1 = inlined_call_operand.vmem [shape: f32[72,128], index: 1, kind: input, shape index: {}]   ;;  %s390_s2 = inlined_call_operand.vmem [shape: f32[8,1], index: 2, kind: input, shape index: {}]   ;;  %s391_s0 = inlined_call_operand.vmem [shape: f32[8,72], index: 0, kind: input, shape index: {}]   ;;  %s392_s4 = inlined_call_operand.vmem [shape: f32[16,576], index: 4, kind: input, shape index: {}]   ;;  %s393_s3 = inlined_call_operand.vmem [shape: f32[2,16], index: 3, kind: input, shape index: {}]   ;;  %s394_s5 = inlined_call_operand.vmem [shape: f32[1,576], index: 5, kind: input, shape index: {}]   ;;  %s395_s7 = inlined_call_operand.vmem [shape: f32[2,576], index: 7, kind: output, shape index: {1}]   ;;  %s396_s6 = inlined_call_operand.vmem [shape: f32[8,128], index: 6, kind: output, shape index: {0}]  }
   0x1   :  { %v34_v0 = vld [vmem:[%s389_s1 + $0x40] sm:$0xff]  ;;  %v33_v1 = vld [vmem:[%s389_s1 + $0x38] sm:$0xff]  ;;  %259 = vset.pattern.permute.xlu0 %v264_v2  ;;  %v32_v3 = vld [vmem:[%s389_s1 + $0x30] sm:$0xff]  ;;  %260 = vrcp.f32 %v265_v27  ;;  %vm233_vm3 = vcmask 1041408   ;;  %vm235_vm4 = vcmask 1045508   ;;  %vm237_vm5 = vcmask 1043456  }
   0x2   :  { %52 = vmatpush.msra.mxu0 %v34_v0  ;;  %v35_v4 = vld [vmem:[%s390_s2] sm:$0xff]  ;;  %v31_v5 = vld [vmem:[%s389_s1 + $0x28] sm:$0xff]  ;;  %v29_v7 = vld [vmem:[%s389_s1 + $0x18] sm:$0xff]  ;;  %vm241_vm6 = vcmask 517120  }
   0x3   :  { %38 = vperm.xlu0 %259, %v35_v4   ;;  %v30_v6 = vld [vmem:[%s389_s1 + $0x20] sm:$0xff]  ;;  %v28_v8 = vld [vmem:[%s389_s1 + $0x10] sm:$0xff]  ;;  %v27_v9 = vld [vmem:[%s389_s1 + $0x8] sm:$0xff] }
   0x4   :  { %53 = vmatpush.msra.mxu0 %v33_v1  ;;  %v26_v10 = vld [vmem:[%s389_s1] sm:$0xff]  ;;  %v100_v12 = vld [vmem:[%s392_s4 + $0x28] sm:$0xff]  ;;  %v101_v14 = vld [vmem:[%s392_s4 + $0x30] sm:$0xff] }
   0x5   :  { %v25_v11 = vld [vmem:[%s391_s0] sm:$0xff]  ;;  %135 = vmatpush.msra.mxu1 %v100_v12  ;;  %155 = vmatpush.msra.mxu2 %v101_v14  ;;  %v102_v15 = vld [vmem:[%s392_s4 + $0x38] sm:$0xff]  ;;  %v96_v17 = vld [vmem:[%s392_s4 + $0x8] sm:$0xff] }
   0x6   :  { %54 = vmatpush.msra.mxu0 %v32_v3  ;;  %v95_v13 = vld [vmem:[%s392_s4] sm:$0xff]  ;;  %175 = vmatpush.msra.mxu3 %v102_v15  ;;  %v97_v18 = vld [vmem:[%s392_s4 + $0x10] sm:$0xff]  ;;  %v98_v24 = vld [vmem:[%s392_s4 + $0x18] sm:$0xff] }
   0x7   :  { %v94_v16 = vld [vmem:[%s393_s3] sm:$0x3]  ;;  %136 = vmatpush.msra.mxu1 %v95_v13  ;;  %156 = vmatpush.msra.mxu2 %v96_v17  ;;  %v104_v25 = vld [vmem:[%s392_s4 + $0x48] sm:$0xff]  ;;  %v261_v28 = vpop.eup %260 }
   0x8   :  { %55 = vmatpush.msra.mxu0 %v31_v5  ;;  %v103_v19 = vld [vmem:[%s392_s4 + $0x40] sm:$0xff]  ;;  %252 = vmatmul.msk.f32.vlgmr.msra.gmra.mxu1 %vm117_vm1, %v94_v16  ;;  %v69_v29 = vmul.f32 128.0, %v261_v28  ;;  %vm73_vm2 = vweird.f32 %v261_v28 }
   0x9   :  { %176 = vmatpush.msra.mxu3 %v97_v18  ;;  %253 = vmatmul.msk.f32.vlgmr.msra.gmra.mxu2 %vm117_vm1, %v94_v16  ;;  %v99_v26 = vld [vmem:[%s392_s4 + $0x20] sm:$0xff] }
   0xa   :  { %56 = vmatpush.msra.mxu0 %v30_v6  ;;  %254 = vmatmul.msk.f32.vlgmr.msra.gmra.mxu3 %vm117_vm1, %v94_v16  ;;  %v70_v30 = vsub.f32 1.0, %v69_v29  ;;  %v105_v39 = vld [vmem:[%s394_s5] sm:$0x1f] }
   0xb   :  { %195 = vmatpush.msrb.mxu1 %v103_v19  ;;  %215 = vmatpush.msrb.mxu2 %v104_v25  ;;  %v107_v40 = vperm.slane %v105_v39, 0  ;;  %v108_v42 = vperm.slane %v105_v39, 1  ;;  %v109_v43 = vperm.slane %v105_v39, 2  ;;  %v110_v44 = vperm.slane %v105_v39, 3 }
   0xc   :  { %57 = vmatpush.msra.mxu0 %v29_v7  ;;  %v71_v31 = vmul.f32 %v261_v28, %v70_v30  ;;  %v111_v61 = vperm.slane %v105_v39, 4 }
   0xd   :  { %196 = vmatpush.msrb.mxu1 %v98_v24  ;;  %216 = vmatpush.msrb.mxu2 %v99_v26 }
   0xe   :  { %58 = vmatpush.msra.mxu0 %v28_v8  ;;  %v72_v32 = vadd.f32 %v261_v28, %v71_v31 }
  0x10   :  { %59 = vmatpush.msra.mxu0 %v27_v9  ;;  %255 = vmatmul.msk.f32.vlgmr.msrb.gmra.mxu1 %vm117_vm1, %v94_v16  ;;  %v74_v33 = vsel %vm73_vm2, %v261_v28, %v72_v32 }
  0x11   :  { %256 = vmatmul.msk.f32.vlgmr.msrb.gmra.mxu2 %vm117_vm1, %v94_v16 }
  0x12   :  { %60 = vmatpush.msra.mxu0 %v26_v10 }
  0x13   :  { %251 = vmatmul.msk.f32.vlgmr.msra.gmra.mxu0 %vm41_vm0, %v25_v11 }
  0x75   :  { %v39_v20 = vpop.permute.xlu0 %38 }
  0x85   :  { %v138_v38 = vpop.f32.mrf.mxu1 }
  0x86   :  { %v139_v41 = vadd.f32 %v138_v38, %v107_v40 }
  0x88   :  { %v221_v51 = vmax.f32 %v139_v41, 0.0 }
  0x8c   :  { %v158_v45 = vpop.f32.mrf.mxu2 }
  0x8d   :  { %v178_v46 = vpop.f32.mrf.mxu3  ;;  %v159_v47 = vadd.f32 %v158_v45, %v108_v42  ;;  %v198_v49 = vpop.f32.mrf.mxu1 }
  0x8e   :  { %v179_v48 = vadd.f32 %v178_v46, %v109_v43  ;;  %v199_v50 = vadd.f32 %v198_v49, %v110_v44 }
  0x8f   :  { %v222_v52 = vmax.f32 %v159_v47, 0.0 }
  0x90   :  { %v62_v21 = vpop.f32.mrf.mxu0  ;;  %v223_v53 = vmax.f32 %v179_v48, 0.0  ;;  %v224_v54 = vmax.f32 %v199_v50, 0.0 }
  0x91   :  { %v63_v22 = vadd.f32 %v62_v21, %v39_v20  ;;  %v230_v55 = vrot.slane %v222_v52, 6 }
  0x92   :  { %v231_v56 = vrot.slane %v223_v53, 4  ;;  %v232_v57 = vrot.slane %v224_v54, 2 }
  0x93   :  { %v65_v23 = vmax.f32 %v63_v22, 0.0  ;;  %v234_v58 = vsel %vm233_vm3, %v221_v51, %v230_v55 }
  0x94   :  { %v236_v59 = vsel %vm235_vm4, %v231_v56, %v232_v57  ;;  %v218_v62 = vpop.f32.mrf.mxu2 }
  0x95   :  { %66 = vadd.xlane.f32.xlu0 %v65_v23  ;;  %v238_v60 = vsel %vm237_vm5, %v234_v58, %v236_v59  ;;  %v219_v63 = vadd.f32 %v218_v62, %v111_v61 }
  0x96   :  { %240 = vst [vmem:[%s395_s7] sm:$0xff] %v238_v60 }
  0x97   :  { %v225_v0 = vmax.f32 %v219_v63, 0.0 }
  0x99   :  { %242 = vst.msk [vmem:[%s395_s7 + $0x8] sm:$0x3] %vm241_vm6, %v225_v0 }
 0x108   :  { %v67_v34 = vpop.xlane.xlu0 %66 }
 0x109   :  { %v75_v35 = vmul.f32 %v74_v33, %v67_v34 }
 0x10b   :  { %v76_v36 = vsub.f32 %v65_v23, %v75_v35 }
 0x10d   :  { %v77_v37 = vmul.f32 %v76_v36, %v76_v36 }
 0x10f   :  { %78 = vadd.xlane.f32.xlu1 %v77_v37 }
 0x182   :  { %v79_v1 = vpop.xlane.xlu1 %78 }
 0x183   :  { %v80_v2 = vmul.f32 %v79_v1, %v74_v33 }
 0x185   :  { %v81_v3 = vadd.f32 1e-05, %v80_v2 }
 0x187   :  { %262 = vrsqrt.f32 %v81_v3  ;;  %vm88_vm8 = vweird.f32 %v81_v3 }
 0x18d   :  { %v263_v4 = vpop.eup %262 }
 0x18e   :  { %v83_v5 = vmul.f32 %v263_v4, %v81_v3  ;;  %vm89_vm7 = vweird.f32 %v263_v4 }
 0x18f   :  { %vm90_vm9 = vmor %vm88_vm8, %vm89_vm7 }
 0x190   :  { %v84_v6 = vmul.f32 %v263_v4, %v83_v5 }
 0x192   :  { %v85_v7 = vmul.f32 0.5, %v84_v6 }
 0x194   :  { %v86_v8 = vsub.f32 1.5, %v85_v7 }
 0x196   :  { %v87_v9 = vmul.f32 %v263_v4, %v86_v8 }
 0x198   :  { %v91_v10 = vsel %vm90_vm9, %v263_v4, %v87_v9 }
 0x199   :  { %v92_v11 = vmul.f32 %v91_v10, %v76_v36 }
 0x19b   :  { %93 = vst [vmem:[%s396_s6] sm:$0xff] %v92_v11 }

// kernel: forward.7
= control target key start
LH: loop header
LB: loop body
LE: loop exit
PB: predicated region body
PF: predicated region fallthrough
CT: control target
= control target key end

     0   :  { %s9602_s0 = inlined_call_operand.vmem [shape: f32[2,16], index: 0, kind: input, shape index: {}]   ;;  %s9603_s1 = inlined_call_operand.vmem [shape: f32[2,72,8], index: 1, kind: input, shape index: {}]   ;;  %s9604_s2 = inlined_call_operand.vmem [shape: f32[2,16,72], index: 2, kind: input, shape index: {}]   ;;  %s9605_s3 = inlined_call_operand.vmem [shape: f32[16,2], index: 3, kind: input, shape index: {}]   ;;  %s9606_s4 = inlined_call_operand.vmem [shape: f32[16,16], index: 4, kind: input, shape index: {}]   ;;  %s9607_s5 = inlined_call_operand.vmem [shape: f32[1,16], index: 5, kind: input, shape index: {}]   ;;  %s9608_s6 = inlined_call_operand.vmem [shape: f32[10,256], index: 6, kind: input, shape index: {}]   ;;  %s9609_s7 = inlined_call_operand.vmem [shape: f32[10,256], index: 7, kind: input, shape index: {}]   ;;  %s9610_s8 = inlined_call_operand.vmem [shape: f32[16,256], index: 8, kind: input, shape index: {}]   ;;  %s9611_s9 = inlined_call_operand.vmem [shape: f32[1,256], index: 9, kind: input, shape index: {}]   ;;  %s9612_s10 = inlined_call_operand.vmem [shape: bf16[256,256], index: 10, kind: input, shape index: {}]   ;;  %s9613_s11 = inlined_call_operand.vmem [shape: f32[1,256], index: 11, kind: input, shape index: {}]   ;;  %s9614_s12 = inlined_call_operand.vmem [shape: bf16[256,256], index: 12, kind: input, shape index: {}]   ;;  %s9615_s13 = inlined_call_operand.vmem [shape: f32[1,256], index: 13, kind: input, shape index: {}]   ;;  %s9616_s14 = inlined_call_operand.vmem [shape: bf16[256,256], index: 14, kind: input, shape index: {}]   ;;  %s9617_s15 = inlined_call_operand.vmem [shape: f32[1,256], index: 15, kind: input, shape index: {}]   ;;  %s9618_s16 = inlined_call_operand.vmem [shape: bf16[256,256], index: 16, kind: input, shape index: {}]   ;;  %s9619_s17 = inlined_call_operand.vmem [shape: f32[1,256], index: 17, kind: input, shape index: {}]   ;;  %s9620_s18 = inlined_call_operand.vmem [shape: bf16[256,256], index: 18, kind: input, shape index: {}]   ;;  %s9621_s19 = inlined_call_operand.vmem [shape: f32[1,256], index: 19, kind: input, shape index: {}]   ;;  %s9622_s20 = inlined_call_operand.vmem [shape: f32[256,10], index: 20, kind: input, shape index: {}]   ;;  %s9623_s21 = inlined_call_operand.vmem [shape: f32[1,10], index: 21, kind: input, shape index: {}]   ;;  %s9624_s22 = inlined_call_operand.hbm [shape: f32[2,10], index: 22, kind: output, shape index: {}]  }
   0x1   :  { %9694 = sst [smem:[#allocation27_spill]] %s9602_s0 }
   0x2   :  { %9695 = sst [smem:[#allocation28_spill]] %s9603_s1 }
   0x3   :  { %9696 = sst [smem:[#allocation29_spill]] %s9604_s2 }
   0x4   :  { %9697 = sst [smem:[#allocation30_spill]] %s9605_s3 }
   0x5   :  { %9698 = sst [smem:[#allocation31_spill]] %s9606_s4 }
   0x6   :  { %9699 = sst [smem:[#allocation32_spill]] %s9607_s5 }
   0x7   :  { %9700 = sst [smem:[#allocation33_spill]] %s9608_s6 }
   0x8   :  { %s9701_s29 = sld [smem:[#allocation28_spill]]  ;;  %s5912_s27 = smov 8   ;;  %vm239_vm0 = vcmask 130048  }
   0x9   :  { %s9702_s2 = sld [smem:[#allocation30_spill]] }
   0xa   :  { %s9703_s30 = sld [smem:[#allocation31_spill]] }
   0xb   :  { %s9704_s5 = sld [smem:[#allocation27_spill]] }
   0xe   :  { %v82_v0 = vld [vmem:[%s9701_s29 + $0x40] sm:$0xff]  ;;  %v81_v1 = vld [vmem:[%s9701_s29 + $0x38] sm:$0xff]  ;;  %v5047_v2 = vld [vmem:[%s9701_s29 + $0x88] sm:$0xff] }
   0xf   :  { %97 = vmatpush.msra.mxu0 %v82_v0  ;;  %v5046_v3 = vld [vmem:[%s9701_s29 + $0x80] sm:$0xff]  ;;  %v80_v4 = vld [vmem:[%s9701_s29 + $0x30] sm:$0xff]  ;;  %141 = vmatpush.msra.mxu1 %v5047_v2  ;;  %v5045_v5 = vld [vmem:[%s9701_s29 + $0x78] sm:$0xff] }
  0x10   :  { %v79_v6 = vld [vmem:[%s9701_s29 + $0x28] sm:$0xff]  ;;  %v5044_v7 = vld [vmem:[%s9701_s29 + $0x70] sm:$0xff]  ;;  %v78_v8 = vld [vmem:[%s9701_s29 + $0x20] sm:$0xff] }
  0x11   :  { %98 = vmatpush.msra.mxu0 %v81_v1  ;;  %142 = vmatpush.msra.mxu1 %v5046_v3  ;;  %v77_v9 = vld [vmem:[%s9701_s29 + $0x18] sm:$0xff]  ;;  %v5043_v10 = vld [vmem:[%s9701_s29 + $0x68] sm:$0xff]  ;;  %v5042_v11 = vld [vmem:[%s9701_s29 + $0x60] sm:$0xff] }
  0x12   :  { %v218_v12 = vld [vmem:[%s9702_s2] sm:$0xff]  ;;  %v234_v13 = vld [vmem:[%s9703_s30 + $0x8] sm:$0xff] }
  0x13   :  { %99 = vmatpush.msra.mxu0 %v80_v4  ;;  %143 = vmatpush.msra.mxu1 %v5045_v5  ;;  %v233_v14 = vld [vmem:[%s9703_s30] sm:$0xff] }
  0x14   :  { %222 = vrot.lane.b32.xlu0 %v218_v12, %s5912_s27  ;;  %v232_v15 = vld [vmem:[%s9704_s5] sm:$0x3]  ;;  %257 = vmatpush.msra.mxu2 %v234_v13 }
  0x15   :  { %100 = vmatpush.msra.mxu0 %v79_v6  ;;  %144 = vmatpush.msra.mxu1 %v5044_v7 }
  0x17   :  { %101 = vmatpush.msra.mxu0 %v78_v8 }
  0x18   :  { %27 = vsyncpa [#allocation3], 0  ;;  %v76_v16 = vld [vmem:[%s9701_s29 + $0x10] sm:$0xff]  ;;  %145 = vmatpush.msra.mxu1 %v5043_v10  ;;  %v5041_v17 = vld [vmem:[%s9701_s29 + $0x58] sm:$0xff]  ;;  %258 = vmatpush.msra.mxu2 %v233_v14  ;;  %s9705_s25 = sld [smem:[#allocation29_spill]]  ;;  %vm83_vm1 = vcmask 588800  }
  0x19   :  { %102 = vmatpush.msra.mxu0 %v77_v9  ;;  %v75_v18 = vld [vmem:[%s9701_s29 + $0x8] sm:$0xff]  ;;  %5050 = vmatmul.msk.f32.vlgmr.msra.gmra.mxu2 %vm239_vm0, %v232_v15  ;;  %v5040_v19 = vld [vmem:[%s9701_s29 + $0x50] sm:$0xff]  ;;  %v74_v21 = vld [vmem:[%s9701_s29] sm:$0xff]  ;;  %v5913_v29 = vmov 32.0   ;;  %vm159_vm2 = vcmask 64512   ;;  %s9706_s1 = sld [smem:[#allocation33_spill]] }
  0x1a   :  { %146 = vmatpush.msra.mxu1 %v5042_v11  ;;  %v219_v20 = vld [vmem:[%s9702_s2 + $0x8] sm:$0xff]  ;;  %5878 = vrcp.f32 %v5913_v29  ;;  %vm281_vm4 = vcmask 1041408   ;;  %v348_v11 = vld [vmem:[%s9609_s7 + $0x10] sm:$0x3]  ;;  %v349_v12 = vld [vmem:[%s9609_s7 + $0x18] sm:$0x3] }
  0x1b   :  { %103 = vmatpush.msra.mxu0 %v76_v16  ;;  %v5039_v23 = vld [vmem:[%s9701_s29 + $0x48] sm:$0xff]  ;;  %v346_v15 = vld [vmem:[%s9609_s7] sm:$0xff]  ;;  %vm268_vm8 = vcmask 80896   ;;  %s9707_s30 = sld [smem:[#allocation32_spill]]  ;;  %vm438_vm9 = vcmask 1045509   ;;  %vm441_vm10 = vcmask 1046534  }
  0x1c   :  { %147 = vmatpush.msra.mxu1 %v5041_v17  ;;  %224 = vrot.lane.b32.xlu0 %v219_v20, %s5912_s27  ;;  %v347_v17 = vld [vmem:[%s9609_s7 + $0x8] sm:$0xff]  ;;  %v416_v20 = vld [vmem:[%s9610_s8 + $0x10] sm:$0xff]  ;;  %vm444_vm11 = vcmask 1046528   ;;  %vm426_vm12 = vcmask 1041409   ;;  %vm429_vm13 = vcmask 1042434   ;;  %vm424_vm14 = vcmask 1040384  }
  0x1d   :  { %104 = vmatpush.msra.mxu0 %v75_v18  ;;  %vm435_vm15 = vcmask 1044484   ;;  %s5026_s5 = sshll.u32 %s9624_s22, 4  ;;  %s5027_s5 = int_to_ptr.hbm [resolvable:$true] %s5026_s5 }
  0x1e   :  { %v72_v22 = vld [vmem:[%s9705_s25] sm:$0xff]  ;;  %148 = vmatpush.msra.mxu1 %v5040_v19  ;;  %v5037_v24 = vld [vmem:[%s9705_s25 + $0x10] sm:$0xff]  ;;  %v73_v25 = vld [vmem:[%s9705_s25 + $0x8] sm:$0xff] }
  0x1f   :  { %105 = vmatpush.msra.mxu0 %v74_v21  ;;  %v5038_v26 = vld [vmem:[%s9705_s25 + $0x18] sm:$0xff]  ;;  %v266_v9 = vld [vmem:[%s9706_s1 + $0x10] sm:$0x3]  ;;  %v265_v13 = vld [vmem:[%s9706_s1 + $0x8] sm:$0xff] }
  0x20   :  { %5035 = vmatmul.msk.f32.vlgmr.msra.gmra.mxu0 %vm83_vm1, %v72_v22  ;;  %149 = vmatpush.msra.mxu1 %v5039_v23  ;;  %v5879_v31 = vpop.eup %5878  ;;  %v267_v8 = vld [vmem:[%s9706_s1 + $0x18] sm:$0x3]  ;;  %v264_v14 = vld [vmem:[%s9706_s1] sm:$0xff] }
  0x21   :  { %5048 = vmatmul.msk.f32.vlgmr.msra.gmra.mxu1 %vm83_vm1, %v5037_v24  ;;  %v174_v39 = vmul.f32 32.0, %v5879_v31  ;;  %vm178_vm3 = vweird.f32 %v5879_v31  ;;  %5056 = vmatpush.msk.msrb.mxu2 %vm281_vm4, %v267_v8  ;;  %v417_v19 = vld [vmem:[%s9610_s8 + $0x18] sm:$0xff]  ;;  %v5115_v8 = vld [vmem:[%s9612_s10 + $0x50] sm:$0xf] }
  0x22   :  { %5051 = vmatpush.msk.msra.mxu3 %vm281_vm4, %v266_v9  ;;  %5061 = vmatpush.msk.msrb.mxu0 %vm281_vm4, %v348_v11  ;;  %v5724_v9 = vld [vmem:[%s9612_s10 + $0x54] sm:$0xf0] }
  0x23   :  { %v175_v44 = vsub.f32 1.0, %v174_v39  ;;  %5066 = vmatpush.msk.msrb.mxu1 %vm281_vm4, %v349_v12  ;;  %332 = vmatpush.msrb.mxu2 %v265_v13  ;;  %v5116_v11 = vor.u32 %v5724_v9, %v5115_v8  ;;  %v5740_v12 = vld [vmem:[%s9612_s10 + $0xd4] sm:$0xf0]  ;;  %v5723_v13 = vld [vmem:[%s9612_s10 + $0x54] sm:$0xf] }
  0x24   :  { %303 = vmatpush.msra.mxu3 %v264_v14  ;;  %371 = vmatpush.msrb.mxu0 %v346_v15  ;;  %v5117_v14 = vld [vmem:[%s9612_s10 + $0x58] sm:$0xf0]  ;;  %v5731_v9 = vld [vmem:[%s9612_s10 + $0x94] sm:$0xf] }
  0x25   :  { %v176_v47 = vmul.f32 %v5879_v31, %v175_v44  ;;  %400 = vmatpush.msrb.mxu1 %v347_v17  ;;  %797 = vmatpush.msra.mxu2 %v417_v19  ;;  %v5739_v17 = vld [vmem:[%s9612_s10 + $0xd4] sm:$0xf] }
  0x26   :  { %777 = vmatpush.msrb.mxu3 %v416_v20  ;;  %v5107_v20 = vld [vmem:[%s9612_s10 + $0x40] sm:$0xf] }
  0x27   :  { %v177_v50 = vadd.f32 %v5879_v31, %v176_v47 }
  0x28   :  { %5036 = vmatmul.msk.f32.gmra.mxu0 %vm83_vm1, %v73_v25 }
  0x29   :  { %5049 = vmatmul.msk.f32.gmra.mxu1 %vm83_vm1, %v5038_v26  ;;  %v179_v53 = vsel %vm178_vm3, %v5879_v31, %v177_v50  ;;  %v415_v26 = vld [vmem:[%s9610_s8 + $0x8] sm:$0xff]  ;;  %v5195_v50 = vld [vmem:[%s9612_s10 + $0xf0] sm:$0xf]  ;;  %vm5005_vm1 = vcmask 74752  }
  0x2a   :  { %798 = vmatpush.msra.mxu2 %v415_v26  ;;  %v5109_v26 = vld [vmem:[%s9612_s10 + $0x48] sm:$0xf0] }
  0x9c   :  { %v260_v44 = vpop.f32.mrf.mxu2 }
  0x9d   :  { %v107_v27 = vpop.f32.mrf.mxu0 }
  0x9e   :  { %v151_v28 = vpop.f32.mrf.mxu1  ;;  %v113_v30 = vmax.f32 %v107_v27, 0.0  ;;  %v414_v27 = vld [vmem:[%s9610_s8] sm:$0xff] }
  0x9f   :  { %v157_v33 = vmax.f32 %v151_v28, 0.0  ;;  %778 = vmatpush.msrb.mxu3 %v414_v27 }
  0xa0   :  { %v160_v37 = vsel %vm159_vm2, %v113_v30, 0.0 }
  0xa1   :  { %v163_v41 = vsel %vm159_vm2, %v157_v33, 0.0 }
  0xa5   :  { %v110_v32 = vpop.f32.mrf.mxu0 }
  0xa6   :  { %v114_v34 = vmax.f32 %v110_v32, 0.0  ;;  %v154_v35 = vpop.f32.mrf.mxu1 }
  0xa7   :  { %v158_v36 = vmax.f32 %v154_v35, 0.0 }
  0xa8   :  { %v161_v38 = vsel %vm159_vm2, %v114_v34, 0.0 }
  0xa9   :  { %v162_v40 = vadd.f32 %v161_v38, %v160_v37  ;;  %v165_v42 = vsel %vm159_vm2, %v158_v36, 0.0 }
  0xab   :  { %v164_v43 = vadd.f32 %v163_v41, %v162_v40 }
  0xad   :  { %v166_v45 = vadd.f32 %v165_v42, %v164_v43  ;;  %v5876_v43 = vld [vmem:[%s9707_s30] ss:$0 sm:$0xff] }
  0xaf   :  { %v167_v46 = vrot.slane %v166_v45, 4 }
  0xb1   :  { %v168_v48 = vadd.f32 %v167_v46, %v166_v45  ;;  %v261_v46 = vadd.f32 %v5876_v43, %v260_v44  ;;  %v5735_v43 = vld [vmem:[%s9612_s10 + $0xb4] sm:$0xf]  ;;  %v5165_v44 = vld [vmem:[%s9612_s10 + $0xb8] sm:$0xf0] }
  0xb3   :  { %v169_v49 = vrot.slane %v168_v48, 2  ;;  %v263_v47 = vmax.f32 %v261_v46, 0.0 }
  0xb5   :  { %v170_v51 = vadd.f32 %v169_v49, %v168_v48  ;;  %v5131_v48 = vld [vmem:[%s9612_s10 + $0x70] sm:$0xf]  ;;  %v5728_v49 = vld [vmem:[%s9612_s10 + $0x74] sm:$0xf0] }
  0xb7   :  { %v171_v52 = vrot.slane %v170_v51, 1 }
  0xb9   :  { %v172_v54 = vadd.f32 %v171_v52, %v170_v51  ;;  %v5132_v51 = vor.u32 %v5728_v49, %v5131_v48  ;;  %v5744_v52 = vld [vmem:[%s9612_s10 + $0xf4] sm:$0xf0]  ;;  %v5091_v49 = vld [vmem:[%s9612_s10 + $0x20] sm:$0xf] }
  0xbb   :  { %v180_v55 = vmul.f32 %v179_v53, %v172_v54  ;;  %v5133_v54 = vld [vmem:[%s9612_s10 + $0x78] sm:$0xf0]  ;;  %1335 = vmatpush.bf16.msra.mxu0 %v5132_v51  ;;  %v5155_v51 = vld [vmem:[%s9612_s10 + $0xa0] sm:$0xf] }
  0xbd   :  { %v181_v56 = vsub.f32 %v113_v30, %v180_v55  ;;  %v6116_v57 = vsub.f32 %v114_v34, %v180_v55  ;;  %v6118_v58 = vsub.f32 %v157_v33, %v180_v55  ;;  %v6120_v59 = vsub.f32 %v158_v36, %v180_v55  ;;  %v223_v33 = vpop.permute.xlu0 %222 }
  0xbe   :  { %v5196_v55 = vor.u32 %v5744_v52, %v5195_v50  ;;  %v5718_v50 = vld [vmem:[%s9612_s10 + $0x24] sm:$0xf0] }
  0xbf   :  { %v185_v60 = vmul.f32 %v181_v56, %v181_v56  ;;  %v186_v61 = vmul.f32 %v6116_v57, %v6116_v57  ;;  %v187_v62 = vmul.f32 %v6118_v58, %v6118_v58  ;;  %v188_v63 = vmul.f32 %v6120_v59, %v6120_v59 }
  0xc0   :  { %1504 = vmatpush.bf16.msra.mxu1 %v5196_v55  ;;  %v5717_v55 = vld [vmem:[%s9612_s10 + $0x24] sm:$0xf] }
  0xc1   :  { %v189_v0 = vsel %vm159_vm2, %v185_v60, 0.0  ;;  %v190_v1 = vsel %vm159_vm2, %v186_v61, 0.0  ;;  %v192_v3 = vsel %vm159_vm2, %v187_v62, 0.0  ;;  %v194_v5 = vsel %vm159_vm2, %v188_v63, 0.0  ;;  %v5123_v60 = vld [vmem:[%s9612_s10 + $0x60] sm:$0xf] }
  0xc2   :  { %v191_v2 = vadd.f32 %v190_v1, %v189_v0  ;;  %v5726_v61 = vld [vmem:[%s9612_s10 + $0x64] sm:$0xf0]  ;;  %v5187_v62 = vld [vmem:[%s9612_s10 + $0xe0] sm:$0xf]  ;;  %v5725_v1 = vld [vmem:[%s9612_s10 + $0x64] sm:$0xf] }
  0xc3   :  { %v5124_v63 = vor.u32 %v5726_v61, %v5123_v60  ;;  %v5742_v0 = vld [vmem:[%s9612_s10 + $0xe4] sm:$0xf0]  ;;  %v5733_v61 = vld [vmem:[%s9612_s10 + $0xa4] sm:$0xf] }
  0xc4   :  { %v193_v4 = vadd.f32 %v192_v3, %v191_v2  ;;  %v5125_v2 = vld [vmem:[%s9612_s10 + $0x68] sm:$0xf0]  ;;  %v5188_v3 = vor.u32 %v5742_v0, %v5187_v62  ;;  %v5083_v0 = vld [vmem:[%s9612_s10 + $0x10] sm:$0xf] }
  0xc5   :  { %v225_v38 = vpop.permute.xlu0 %224  ;;  %1336 = vmatpush.bf16.msra.mxu0 %v5124_v63  ;;  %v5157_v62 = vld [vmem:[%s9612_s10 + $0xa8] sm:$0xf0] }
  0xc6   :  { %v195_v6 = vadd.f32 %v194_v5, %v193_v4  ;;  %v5128_v4 = vor.u32 %v5725_v1, %v5125_v2  ;;  %v5741_v5 = vld [vmem:[%s9612_s10 + $0xe4] sm:$0xf]  ;;  %1505 = vmatpush.bf16.msra.mxu1 %v5188_v3  ;;  %v5160_v63 = vor.u32 %v5733_v61, %v5157_v62  ;;  %v5716_v1 = vld [vmem:[%s9612_s10 + $0x14] sm:$0xf0]  ;;  %v5147_v2 = vld [vmem:[%s9612_s10 + $0x90] sm:$0xf] }
  0xc7   :  { %v5084_v3 = vor.u32 %v5716_v1, %v5083_v0 }
  0xc8   :  { %v196_v7 = vrot.slane %v195_v6, 4 }
  0xc9   :  { %1337 = vmatpush.bf16.msra.mxu0 %v5116_v11 }
  0xca   :  { %v197_v10 = vadd.f32 %v196_v7, %v195_v6  ;;  %v5189_v6 = vld [vmem:[%s9612_s10 + $0xe8] sm:$0xf0] }
  0xcb   :  { %v5192_v7 = vor.u32 %v5741_v5, %v5189_v6  ;;  %v5715_v5 = vld [vmem:[%s9612_s10 + $0x14] sm:$0xf]  ;;  %v5085_v6 = vld [vmem:[%s9612_s10 + $0x18] sm:$0xf0] }
  0xcc   :  { %v198_v16 = vrot.slane %v197_v10, 2  ;;  %v5088_v8 = vor.u32 %v5715_v5, %v5085_v6 }
  0xce   :  { %v199_v18 = vadd.f32 %v198_v16, %v197_v10  ;;  %v5179_v10 = vld [vmem:[%s9612_s10 + $0xd0] sm:$0xf]  ;;  %v5120_v16 = vor.u32 %v5723_v13, %v5117_v14  ;;  %v5075_v14 = vld [vmem:[%s9612_s10] sm:$0xf] }
  0xcf   :  { %v5180_v15 = vor.u32 %v5740_v12, %v5179_v10  ;;  %v5149_v10 = vld [vmem:[%s9612_s10 + $0x98] sm:$0xf0] }
  0xd0   :  { %v200_v21 = vrot.slane %v199_v18, 1  ;;  %v5152_v13 = vor.u32 %v5731_v9, %v5149_v10 }
  0xd1   :  { %1506 = vmatpush.bf16.msra.mxu1 %v5180_v15  ;;  %v5714_v15 = vld [vmem:[%s9612_s10 + $0x4] sm:$0xf0] }
  0xd2   :  { %v201_v22 = vadd.f32 %v200_v21, %v199_v18  ;;  %v5181_v18 = vld [vmem:[%s9612_s10 + $0xd8] sm:$0xf0]  ;;  %v5722_v21 = vld [vmem:[%s9612_s10 + $0x44] sm:$0xf0] }
  0xd3   :  { %v5184_v19 = vor.u32 %v5739_v17, %v5181_v18  ;;  %v5076_v17 = vor.u32 %v5714_v15, %v5075_v14  ;;  %v5730_v18 = vld [vmem:[%s9612_s10 + $0x84] sm:$0xf0] }
  0xd4   :  { %v202_v23 = vmul.f32 %v201_v22, %v179_v53  ;;  %v5727_v53 = vld [vmem:[%s9612_s10 + $0x74] sm:$0xf]  ;;  %v5171_v22 = vld [vmem:[%s9612_s10 + $0xc0] sm:$0xf] }
  0xd6   :  { %v203_v24 = vadd.f32 1e-05, %v202_v23  ;;  %v5108_v23 = vor.u32 %v5722_v21, %v5107_v20  ;;  %v5077_v20 = vld [vmem:[%s9612_s10 + $0x8] sm:$0xf0] }
  0xd8   :  { %5880 = vrsqrt.f32 %v203_v24  ;;  %vm210_vm6 = vweird.f32 %v203_v24  ;;  %1338 = vmatpush.bf16.msra.mxu0 %v5108_v23  ;;  %v5729_v23 = vld [vmem:[%s9612_s10 + $0x84] sm:$0xf] }
  0xde   :  { %v5881_v25 = vpop.eup %5880 }
  0xdf   :  { %v205_v28 = vmul.f32 %v5881_v25, %v203_v24  ;;  %vm211_vm5 = vweird.f32 %v5881_v25  ;;  %v5738_v24 = vld [vmem:[%s9612_s10 + $0xc4] sm:$0xf0] }
  0xe0   :  { %vm212_vm7 = vmor %vm210_vm6, %vm211_vm5  ;;  %v5172_v27 = vor.u32 %v5738_v24, %v5171_v22  ;;  %v5141_v24 = vld [vmem:[%s9612_s10 + $0x88] sm:$0xf0] }
  0xe1   :  { %v206_v29 = vmul.f32 %v5881_v25, %v205_v28 }
  0xe2   :  { %1507 = vmatpush.bf16.msra.mxu1 %v5172_v27 }
  0xe3   :  { %v207_v30 = vmul.f32 0.5, %v206_v29  ;;  %v5737_v29 = vld [vmem:[%s9612_s10 + $0xc4] sm:$0xf] }
  0xe5   :  { %v208_v31 = vsub.f32 1.5, %v207_v30  ;;  %v5173_v30 = vld [vmem:[%s9612_s10 + $0xc8] sm:$0xf0] }
  0xe7   :  { %v209_v32 = vmul.f32 %v5881_v25, %v208_v31  ;;  %v5099_v31 = vld [vmem:[%s9612_s10 + $0x30] sm:$0xf] }
  0xe9   :  { %v213_v34 = vsel %vm212_vm7, %v5881_v25, %v209_v32  ;;  %v5721_v25 = vld [vmem:[%s9612_s10 + $0x44] sm:$0xf] }
  0xea   :  { %v214_v35 = vmul.f32 %v213_v34, %v181_v56  ;;  %v215_v37 = vmul.f32 %v213_v34, %v6116_v57  ;;  %v216_v40 = vmul.f32 %v213_v34, %v6118_v58  ;;  %v217_v42 = vmul.f32 %v213_v34, %v6120_v59  ;;  %v5743_v57 = vld [vmem:[%s9612_s10 + $0xf4] sm:$0xf]  ;;  %v5197_v58 = vld [vmem:[%s9612_s10 + $0xf8] sm:$0xf0]  ;;  %v5720_v34 = vld [vmem:[%s9612_s10 + $0x34] sm:$0xf0] }
  0xeb   :  { %v5136_v56 = vor.u32 %v5727_v53, %v5133_v54  ;;  %v5200_v59 = vor.u32 %v5743_v57, %v5197_v58  ;;  %v5112_v28 = vor.u32 %v5721_v25, %v5109_v26  ;;  %v5092_v53 = vor.u32 %v5718_v50, %v5091_v49  ;;  %v5734_v54 = vld [vmem:[%s9612_s10 + $0xa4] sm:$0xf0] }
  0xec   :  { %v228_v36 = vsel %vm159_vm2, %v214_v35, %v223_v33  ;;  %v229_v39 = vsel %vm159_vm2, %v215_v37, %v225_v38  ;;  %v230_v41 = vsel %vm159_vm2, %v216_v40, %v223_v33  ;;  %v231_v45 = vsel %vm159_vm2, %v217_v42, %v225_v38  ;;  %v5163_v35 = vld [vmem:[%s9612_s10 + $0xb0] sm:$0xf]  ;;  %v5719_v38 = vld [vmem:[%s9612_s10 + $0x34] sm:$0xf] }
  0xed   :  { %5052 = vmatmul.msk.f32.vlgmr.msra.gmra.mxu3 %vm268_vm8, %v228_v36  ;;  %5057 = vmatmul.msk.f32.vlgmr.msrb.gmra.mxu2 %vm268_vm8, %v228_v36  ;;  %v5176_v33 = vor.u32 %v5737_v29, %v5173_v30  ;;  %v5100_v37 = vor.u32 %v5720_v34, %v5099_v31  ;;  %v5144_v25 = vor.u32 %v5729_v23, %v5141_v24  ;;  %v5759_v29 = vld [vmem:[%s9614_s12 + $0x74] sm:$0xf]  ;;  %v5261_v30 = vld [vmem:[%s9614_s12 + $0x78] sm:$0xf0] }
  0xee   :  { %5062 = vmatmul.msk.f32.vlgmr.msrb.gmra.mxu0 %vm268_vm8, %v228_v36  ;;  %5067 = vmatmul.msk.f32.vlgmr.msrb.gmra.mxu1 %vm268_vm8, %v228_v36  ;;  %v5736_v36 = vld [vmem:[%s9612_s10 + $0xb4] sm:$0xf0]  ;;  %v5775_v31 = vld [vmem:[%s9614_s12 + $0xf4] sm:$0xf]  ;;  %v5264_v34 = vor.u32 %v5759_v29, %v5261_v30 }
  0xef   :  { %1673 = vmatpush.bf16.msra.mxu3 %v5136_v56  ;;  %1842 = vmatpush.bf16.msrb.mxu2 %v5200_v59  ;;  %v5093_v56 = vld [vmem:[%s9612_s10 + $0x28] sm:$0xf0]  ;;  %v5156_v59 = vor.u32 %v5734_v54, %v5155_v51 }
  0xf0   :  { %1339 = vmatpush.bf16.msra.mxu0 %v5100_v37  ;;  %v5096_v60 = vor.u32 %v5717_v55, %v5093_v56  ;;  %v5760_v37 = vld [vmem:[%s9614_s12 + $0x74] sm:$0xf0] }
  0xf3   :  { %1674 = vmatpush.bf16.msra.mxu3 %v5128_v4  ;;  %1843 = vmatpush.bf16.msrb.mxu2 %v5192_v7  ;;  %v5732_v4 = vld [vmem:[%s9612_s10 + $0x94] sm:$0xf0] }
  0xf4   :  { %1340 = vmatpush.bf16.msra.mxu0 %v5092_v53  ;;  %v5148_v7 = vor.u32 %v5732_v4, %v5147_v2  ;;  %v754_v4 = vld [vmem:[%s9611_s9] sm:$0x3] }
  0xf5   :  { %5053 = vmatmul.msk.f32.gmra.mxu3 %vm268_vm8, %v229_v39  ;;  %5058 = vmatmul.msk.f32.gmra.mxu2 %vm268_vm8, %v229_v39  ;;  %v756_v15 = vperm.slane %v754_v4, 0 }
  0xf6   :  { %5063 = vmatmul.msk.f32.gmra.mxu0 %vm268_vm8, %v229_v39  ;;  %5068 = vmatmul.msk.f32.gmra.mxu1 %vm268_vm8, %v229_v39  ;;  %v5101_v39 = vld [vmem:[%s9612_s10 + $0x38] sm:$0xf0] }
  0xf7   :  { %1675 = vmatpush.bf16.msra.mxu3 %v5120_v16  ;;  %1844 = vmatpush.bf16.msrb.mxu2 %v5184_v19  ;;  %v5104_v42 = vor.u32 %v5719_v38, %v5101_v39  ;;  %v5139_v16 = vld [vmem:[%s9612_s10 + $0x80] sm:$0xf]  ;;  %v5713_v19 = vld [vmem:[%s9612_s10 + $0x4] sm:$0xf] }
  0xf8   :  { %1341 = vmatpush.bf16.msra.mxu0 %v5084_v3  ;;  %v5140_v21 = vor.u32 %v5730_v18, %v5139_v16  ;;  %v5080_v22 = vor.u32 %v5713_v19, %v5077_v20  ;;  %v757_v16 = vperm.slane %v754_v4, 1 }
  0xfb   :  { %1676 = vmatpush.bf16.msra.mxu3 %v5112_v28  ;;  %1845 = vmatpush.bf16.msrb.mxu2 %v5176_v33 }
  0xfc   :  { %1342 = vmatpush.bf16.msra.mxu0 %v5076_v17 }
  0xfd   :  { %5054 = vmatmul.msk.f32.gmra.mxu3 %vm268_vm8, %v230_v41  ;;  %5059 = vmatmul.msk.f32.gmra.mxu2 %vm268_vm8, %v230_v41 }
  0xfe   :  { %5064 = vmatmul.msk.f32.gmra.mxu0 %vm268_vm8, %v230_v41  ;;  %5069 = vmatmul.msk.f32.gmra.mxu1 %vm268_vm8, %v230_v41  ;;  %v5164_v41 = vor.u32 %v5736_v36, %v5163_v35  ;;  %v5325_v35 = vld [vmem:[%s9614_s12 + $0xf8] sm:$0xf0]  ;;  %v5259_v36 = vld [vmem:[%s9614_s12 + $0x70] sm:$0xf] }
  0xff   :  { %1677 = vmatpush.bf16.msra.mxu3 %v5104_v42  ;;  %v5328_v38 = vor.u32 %v5775_v31, %v5325_v35  ;;  %v5260_v39 = vor.u32 %v5760_v37, %v5259_v36  ;;  %v5776_v42 = vld [vmem:[%s9614_s12 + $0xf4] sm:$0xf0] }
 0x100   :  { %1508 = vmatpush.bf16.msra.mxu1 %v5164_v41  ;;  %v5323_v41 = vld [vmem:[%s9614_s12 + $0xf0] sm:$0xf] }
 0x101   :  { %2401 = vmatpush.bf16.msrb.mxu0 %v5260_v39 }
 0x103   :  { %1678 = vmatpush.bf16.msra.mxu3 %v5096_v60 }
 0x104   :  { %1509 = vmatpush.bf16.msra.mxu1 %v5156_v59 }
 0x105   :  { %5055 = vmatmul.msk.f32.gmra.mxu3 %vm268_vm8, %v231_v45  ;;  %5060 = vmatmul.msk.f32.gmra.mxu2 %vm268_vm8, %v231_v45 }
 0x106   :  { %5065 = vmatmul.msk.f32.gmra.mxu0 %vm268_vm8, %v231_v45  ;;  %5070 = vmatmul.msk.f32.gmra.mxu1 %vm268_vm8, %v231_v45  ;;  %v5168_v45 = vor.u32 %v5735_v43, %v5165_v44 }
 0x107   :  { %1679 = vmatpush.bf16.msra.mxu3 %v5088_v8 }
 0x108   :  { %1846 = vmatpush.bf16.msrb.mxu2 %v5168_v45  ;;  %1510 = vmatpush.bf16.msra.mxu1 %v5148_v7  ;;  %v5324_v45 = vor.u32 %v5776_v42, %v5323_v41 }
 0x10b   :  { %1680 = vmatpush.bf16.msra.mxu3 %v5080_v22 }
 0x10c   :  { %1847 = vmatpush.bf16.msrb.mxu2 %v5160_v63  ;;  %1511 = vmatpush.bf16.msra.mxu1 %v5140_v21 }
 0x10d   :  { %5071 = vmatmul.msk.f32.vlgmr.msrb.gmra.mxu3 %vm239_vm0, %v263_v47  ;;  %5072 = vmatmul.msk.f32.vlgmr.msra.gmra.mxu2 %vm239_vm0, %v263_v47  ;;  %vm432_vm0 = vcmask 1043459  }
 0x10f   :  { %2739 = vmatpush.bf16.msrb.mxu3 %v5264_v34 }
 0x110   :  { %1848 = vmatpush.bf16.msrb.mxu2 %v5152_v13  ;;  %2570 = vmatpush.bf16.msrb.mxu1 %v5324_v45 }
 0x114   :  { %1849 = vmatpush.bf16.msrb.mxu2 %v5144_v25 }
 0x118   :  { %2908 = vmatpush.bf16.msra.mxu2 %v5328_v38 }
 0x16b   :  { %v402_v32 = vpop.f32.mrf.mxu1  ;;  %v6318_v46 = vpop.f32.mrf.mxu0 }
 0x16c   :  { %v6310_v40 = vrot.slane %v402_v32, 7 }
 0x16e   :  { %v6336_v52 = vsel %vm438_vm9, %v6318_v46, %v6310_v40  ;;  %v6350_v57 = vsel %vm441_vm10, %v6318_v46, %v6310_v40  ;;  %v6355_v58 = vsel %vm444_vm11, %v6310_v40, %v6318_v46  ;;  %v427_v53 = vsel %vm426_vm12, %v6318_v46, %v6310_v40 }
 0x16f   :  { %v440_v26 = vrot.slane %v6336_v52, 5  ;;  %v443_v27 = vrot.slane %v6350_v57, 6  ;;  %v446_v50 = vrot.slane %v6355_v58, 7  ;;  %v430_v54 = vsel %vm429_vm13, %v6318_v46, %v6310_v40 }
 0x170   :  { %v6320_v47 = vpop.f32.mrf.mxu3  ;;  %v6322_v48 = vpop.f32.mrf.mxu2  ;;  %v425_v61 = vsel %vm424_vm14, %v6318_v46, %v6310_v40  ;;  %v428_v62 = vrot.slane %v427_v53, 1  ;;  %v431_v63 = vrot.slane %v430_v54, 2  ;;  %v6499_v10 = vsel %vm435_vm15, %v6318_v46, %v6310_v40 }
 0x171   :  { %v6447_v43 = vperm.slane %v440_v26, 0  ;;  %v6453_v49 = vperm.slane %v443_v27, 0  ;;  %v6474_v59 = vperm.slane %v446_v50, 0  ;;  %v462_v5 = vperm.slane %v425_v61, 0 }
 0x172   :  { %v463_v6 = vperm.slane %v425_v61, 1  ;;  %v464_v7 = vperm.slane %v428_v62, 0  ;;  %v465_v8 = vperm.slane %v428_v62, 1  ;;  %v466_v9 = vperm.slane %v431_v63, 0 }
 0x173   :  { %v405_v28 = vpop.f32.mrf.mxu1  ;;  %v6470_v56 = vpop.f32.mrf.mxu0  ;;  %v467_v13 = vperm.slane %v431_v63, 1  ;;  %v6508_v17 = vsel %vm432_vm0, %v6318_v46, %v6310_v40  ;;  %v526_v18 = vadd.f32 %v462_v5, %v6320_v47  ;;  %v9630_v19 = vrot.slane %v6499_v10, 4 }
 0x174   :  { %v6449_v44 = vrot.slane %v405_v28, 7  ;;  %v527_v22 = vadd.f32 %v463_v6, %v6322_v48  ;;  %v6524_v23 = vadd.f32 %v464_v7, %v6320_v47  ;;  %v6527_v40 = vadd.f32 %v465_v8, %v6322_v48 }
 0x175   :  { %v6530_v46 = vadd.f32 %v466_v9, %v6320_v47  ;;  %v6533_v28 = vadd.f32 %v467_v13, %v6322_v48  ;;  %v434_v29 = vrot.slane %v6508_v17, 3  ;;  %v470_v39 = vperm.slane %v9630_v19, 0 }
 0x176   :  { %v6479_v60 = vsel %vm438_vm9, %v6470_v56, %v6449_v44  ;;  %v6515_v20 = vsel %vm441_vm10, %v6470_v56, %v6449_v44  ;;  %v6520_v21 = vsel %vm444_vm11, %v6449_v44, %v6470_v56  ;;  %v6539_v30 = vsel %vm424_vm14, %v6470_v56, %v6449_v44 }
 0x177   :  { %v9633_v3 = vrot.slane %v6479_v60, 5  ;;  %v6548_v35 = vsel %vm426_vm12, %v6470_v56, %v6449_v44  ;;  %v9632_v36 = vrot.slane %v6515_v20, 6  ;;  %v9631_v37 = vrot.slane %v6520_v21, 7 }
 0x178   :  { %v6387_v11 = vpop.f32.mrf.mxu3  ;;  %v6389_v12 = vpop.f32.mrf.mxu2  ;;  %v6558_v41 = vsel %vm429_vm13, %v6470_v56, %v6449_v44  ;;  %v6563_v42 = vsel %vm432_vm0, %v6470_v56, %v6449_v44  ;;  %v475_v19 = vperm.slane %v443_v27, 1 }
 0x179   :  { %v6458_v51 = vadd.f32 %v6447_v43, %v6387_v11  ;;  %v6468_v55 = vadd.f32 %v6453_v49, %v6387_v11  ;;  %v6486_v0 = vadd.f32 %v6474_v59, %v6387_v11  ;;  %v6503_v14 = vperm.slane %v9633_v3, 0  ;;  %9712 = vst [vmem:[#allocation9_spill] sm:$0xff] %v6558_v41 }
 0x17a   :  { %v528_v38 = vadd.f32 %v462_v5, %v6387_v11  ;;  %9713 = vst [vmem:[#allocation10_spill] sm:$0xff] %v6563_v42  ;;  %v6567_v54 = vperm.slane %v9632_v36, 0  ;;  %v6571_v61 = vperm.slane %v9631_v37, 0  ;;  %v529_v62 = vadd.f32 %v463_v6, %v6389_v12 }
 0x17b   :  { %v6543_v31 = vadd.f32 %v6503_v14, %v6387_v11  ;;  %v532_v63 = vadd.f32 %v464_v7, %v6387_v11  ;;  %v533_v4 = vadd.f32 %v465_v8, %v6389_v12  ;;  %v6577_v5 = vadd.f32 %v466_v9, %v6387_v11 }
 0x17c   :  { %v6584_v17 = vadd.f32 %v467_v13, %v6389_v12  ;;  %v6594_v8 = vperm.slane %v434_v29, 0  ;;  %v542_v9 = vadd.f32 %v470_v39, %v6320_v47  ;;  %v6603_v13 = vsel %vm435_vm15, %v6470_v56, %v6449_v44 }
 0x17d   :  { %9715 = vst [vmem:[#allocation12_spill] sm:$0xff] %v6603_v13  ;;  %v546_v44 = vadd.f32 %v6447_v43, %v6320_v47  ;;  %v478_v56 = vperm.slane %v6539_v30, 0  ;;  %v550_v43 = vadd.f32 %v6453_v49, %v6320_v47 }
 0x17f   :  { %v558_v58 = vadd.f32 %v478_v56, %v6320_v47 }
 0x180   :  { %v6426_v32 = vpop.f32.mrf.mxu3  ;;  %v6428_v33 = vpop.f32.mrf.mxu2 }
 0x181   :  { %9708 = vst [vmem:[#allocation5_spill] sm:$0xff] %v6426_v32 }
 0x182   :  { %9709 = vst [vmem:[#allocation6_spill] sm:$0xff] %v6428_v33 }
 0x188   :  { %v6488_v1 = vpop.f32.mrf.mxu3  ;;  %v6490_v2 = vpop.f32.mrf.mxu2 }
 0x189   :  { %9710 = vst [vmem:[#allocation7_spill] sm:$0xff] %v6488_v1 }
 0x18a   :  { %9711 = vst [vmem:[#allocation8_spill] sm:$0xff] %v6490_v2 }
 0x190   :  { %v780_v24 = vpop.f32.mrf.mxu3  ;;  %v800_v25 = vpop.f32.mrf.mxu2 }
 0x191   :  { %v801_v34 = vadd.f32 %v800_v25, %v757_v16  ;;  %v781_v45 = vadd.f32 %v780_v24, %v756_v15  ;;  %v6588_v24 = vadd.f32 %v6567_v54, %v6387_v11  ;;  %v544_v25 = vadd.f32 %v470_v39, %v6387_v11 }
 0x193   :  { %v805_v53 = vrot.slane %v801_v34, 7  ;;  %v473_v34 = vperm.slane %v440_v26, 1 }
 0x195   :  { %v806_v15 = vsel %vm424_vm14, %v781_v45, %v805_v53  ;;  %v6581_v16 = vsel %vm426_vm12, %v781_v45, %v805_v53  ;;  %v6607_v45 = vadd.f32 %v6571_v61, %v6387_v11  ;;  %v547_v27 = vadd.f32 %v473_v34, %v6322_v48 }
 0x196   :  { %9714 = vst [vmem:[#allocation11_spill] sm:$0xff] %v6581_v16  ;;  %v6590_v6 = vperm.slane %v806_v15, 0  ;;  %v6592_v7 = vperm.slane %v806_v15, 1 }
 0x198   :  { %v817_v53 = vadd.f32 %v6590_v6, %v526_v18  ;;  %v819_v15 = vadd.f32 %v6590_v6, %v528_v38  ;;  %v818_v52 = vadd.f32 %v6592_v7, %v527_v22  ;;  %v820_v26 = vadd.f32 %v6592_v7, %v529_v62 }
 0x199   :  { %v9635_v38 = vrot.slane %v6563_v42, 3  ;;  %v477_v22 = vperm.slane %v446_v50, 1  ;;  %v549_v62 = vadd.f32 %v473_v34, %v6389_v12  ;;  %v551_v18 = vadd.f32 %v475_v19, %v6322_v48 }
 0x19a   :  { %v945_v37 = vmax.f32 %v817_v53, 0.0  ;;  %v947_v36 = vmax.f32 %v819_v15, 0.0  ;;  %v946_v3 = vmax.f32 %v818_v52, 0.0  ;;  %v948_v57 = vmax.f32 %v820_v26, 0.0 }
 0x19b   :  { %v9716_v53 = vrot.slane %v6548_v35, 1  ;;  %v553_v52 = vadd.f32 %v475_v19, %v6389_v12  ;;  %v9639_v26 = vrot.slane %v6603_v13, 4  ;;  %v560_v50 = vadd.f32 %v478_v56, %v6387_v11 }
 0x19c   :  { %v1073_v39 = vpack.c.bf16 %v947_v36, %v945_v37  ;;  %v1074_v2 = vpack.c.bf16 %v948_v57, %v946_v3  ;;  %v9717_v36 = vrot.slane %v6558_v41, 2  ;;  %v484_v49 = vperm.slane %v9635_v38, 0 }
 0x19d   :  { %v480_v15 = vperm.slane %v9716_v53, 0  ;;  %v6638_v3 = vperm.slane %v434_v29, 1  ;;  %v554_v19 = vadd.f32 %v6474_v59, %v6320_v47  ;;  %v555_v34 = vadd.f32 %v477_v22, %v6322_v48 }
 0x19e   :  { %1343 = vmatmul.bf16.vlgmr.msra.gmra.mxu0 %v1073_v39  ;;  %1681 = vmatmul.bf16.vlgmr.msra.gmra.mxu3 %v1073_v39  ;;  %v482_v37 = vperm.slane %v9717_v36, 0  ;;  %v557_v39 = vadd.f32 %v477_v22, %v6389_v12  ;;  %v821_v56 = vadd.f32 %v6590_v6, %v6524_v23  ;;  %v823_v57 = vadd.f32 %v6590_v6, %v532_v63 }
 0x19f   :  { %1512 = vmatmul.bf16.vlgmr.msra.gmra.mxu1 %v1074_v2  ;;  %1850 = vmatmul.bf16.vlgmr.msrb.gmra.mxu2 %v1074_v2  ;;  %v833_v53 = vadd.f32 %v6590_v6, %v542_v9  ;;  %v562_v36 = vadd.f32 %v480_v15, %v6320_v47  ;;  %v822_v2 = vadd.f32 %v6592_v7, %v6527_v40  ;;  %v486_v38 = vperm.slane %v9639_v26, 0 }
 0x1a0   :  { %v835_v29 = vadd.f32 %v6590_v6, %v544_v25  ;;  %v564_v59 = vadd.f32 %v480_v15, %v6387_v11  ;;  %v566_v33 = vadd.f32 %v482_v37, %v6320_v47  ;;  %v568_v23 = vadd.f32 %v482_v37, %v6387_v11 }
 0x1a1   :  { %v961_v22 = vmax.f32 %v833_v53, 0.0  ;;  %v6658_v63 = vadd.f32 %v484_v49, %v6320_v47  ;;  %v824_v9 = vadd.f32 %v6592_v7, %v533_v4  ;;  %v837_v40 = vadd.f32 %v6590_v6, %v546_v44 }
 0x1a2   :  { %v963_v1 = vmax.f32 %v835_v29, 0.0  ;;  %v6663_v25 = vadd.f32 %v484_v49, %v6387_v11  ;;  %v949_v15 = vmax.f32 %v821_v56, 0.0  ;;  %v951_v32 = vmax.f32 %v823_v57, 0.0 }
 0x1a3   :  { %v839_v53 = vadd.f32 %v6590_v6, %v6458_v51  ;;  %v838_v26 = vadd.f32 %v6592_v7, %v547_v27  ;;  %v950_v16 = vmax.f32 %v822_v2, 0.0  ;;  %v965_v13 = vmax.f32 %v837_v40, 0.0 }
 0x1a4   :  { %v6668_v37 = vpack.c.bf16 %v963_v1, %v961_v22  ;;  %v840_v42 = vadd.f32 %v6592_v7, %v549_v62  ;;  %v841_v44 = vadd.f32 %v6590_v6, %v550_v43  ;;  %v843_v49 = vadd.f32 %v6590_v6, %v6468_v55 }
 0x1a5   :  { %v967_v4 = vmax.f32 %v839_v53, 0.0  ;;  %v966_v29 = vmax.f32 %v838_v26, 0.0  ;;  %v952_v56 = vmax.f32 %v824_v9, 0.0  ;;  %v842_v41 = vadd.f32 %v6592_v7, %v551_v18 }
 0x1a6   :  { %v968_v57 = vmax.f32 %v840_v42, 0.0  ;;  %v844_v51 = vadd.f32 %v6592_v7, %v553_v52  ;;  %v969_v1 = vmax.f32 %v841_v44, 0.0  ;;  %v971_v2 = vmax.f32 %v843_v49, 0.0 }
 0x1a7   :  { %v6676_v27 = vpack.c.bf16 %v967_v4, %v965_v13  ;;  %v845_v22 = vadd.f32 %v6590_v6, %v554_v19  ;;  %v970_v26 = vmax.f32 %v842_v41, 0.0  ;;  %v847_v43 = vadd.f32 %v6590_v6, %v6486_v0 }
 0x1a8   :  { %v6679_v62 = vpack.c.bf16 %v968_v57, %v966_v29  ;;  %v972_v40 = vmax.f32 %v844_v51, 0.0  ;;  %v6683_v55 = vpack.c.bf16 %v971_v2, %v969_v1  ;;  %v846_v18 = vadd.f32 %v6592_v7, %v555_v34 }
 0x1a9   :  { %v973_v42 = vmax.f32 %v845_v22, 0.0  ;;  %v848_v52 = vadd.f32 %v6592_v7, %v557_v39  ;;  %v975_v9 = vmax.f32 %v847_v43, 0.0  ;;  %v849_v53 = vadd.f32 %v6590_v6, %v558_v58 }
 0x1aa   :  { %v6687_v13 = vpack.c.bf16 %v972_v40, %v970_v26  ;;  %v851_v19 = vadd.f32 %v6590_v6, %v560_v50  ;;  %v1075_v4 = vpack.c.bf16 %v951_v32, %v949_v15  ;;  %v1076_v41 = vpack.c.bf16 %v952_v56, %v950_v16 }
 0x1ab   :  { %v974_v29 = vmax.f32 %v846_v18, 0.0  ;;  %v976_v44 = vmax.f32 %v848_v52, 0.0  ;;  %v6691_v49 = vpack.c.bf16 %v975_v9, %v973_v42  ;;  %v977_v0 = vmax.f32 %v849_v53, 0.0 }
 0x1ac   :  { %v979_v57 = vmax.f32 %v851_v19, 0.0  ;;  %v853_v51 = vadd.f32 %v6590_v6, %v562_v36  ;;  %v855_v39 = vadd.f32 %v6590_v6, %v564_v59  ;;  %v574_v58 = vadd.f32 %v486_v38, %v6320_v47 }
 0x1ad   :  { %v6694_v34 = vpack.c.bf16 %v976_v44, %v974_v29  ;;  %v9718_v50 = vrot.slane %v6479_v60, 5  ;;  %v825_v16 = vadd.f32 %v6590_v6, %v6530_v46  ;;  %v576_v36 = vadd.f32 %v486_v38, %v6387_v11 }
 0x1ae   :  { %1348 = vmatmul.bf16.gmra.mxu0 %v1075_v4  ;;  %1686 = vmatmul.bf16.gmra.mxu3 %v1075_v4  ;;  %v6702_v15 = vpack.c.bf16 %v979_v57, %v977_v0  ;;  %v981_v56 = vmax.f32 %v853_v51, 0.0  ;;  %v827_v1 = vadd.f32 %v6590_v6, %v6577_v5  ;;  %v983_v2 = vmax.f32 %v855_v39, 0.0 }
 0x1af   :  { %v489_v32 = vperm.slane %v9718_v50, 1  ;;  %1517 = vmatmul.bf16.gmra.mxu1 %v1076_v41  ;;  %1855 = vmatmul.bf16.gmra.mxu2 %v1076_v41  ;;  %v857_v59 = vadd.f32 %v6590_v6, %v566_v33  ;;  %v859_v22 = vadd.f32 %v6590_v6, %v568_v23  ;;  %v826_v60 = vadd.f32 %v6592_v7, %v6533_v28 }
 0x1b0   :  { %v828_v26 = vadd.f32 %v6592_v7, %v6584_v17  ;;  %v578_v46 = vadd.f32 %v6503_v14, %v6320_v47  ;;  %v9719_v40 = vrot.slane %v6515_v20, 6  ;;  %v6717_v43 = vpack.c.bf16 %v983_v2, %v981_v56 }
 0x1b1   :  { %v985_v5 = vmax.f32 %v857_v59, 0.0  ;;  %v987_v42 = vmax.f32 %v859_v22, 0.0  ;;  %v861_v33 = vadd.f32 %v6590_v6, %v6658_v63  ;;  %v863_v23 = vadd.f32 %v6590_v6, %v6663_v25 }
 0x1b2   :  { %v491_v38 = vperm.slane %v9719_v40, 1  ;;  %v579_v28 = vadd.f32 %v489_v32, %v6322_v48  ;;  %v581_v17 = vadd.f32 %v489_v32, %v6389_v12  ;;  %v9720_v18 = vrot.slane %v6520_v21, 7 }
 0x1b3   :  { %v953_v52 = vmax.f32 %v825_v16, 0.0  ;;  %v955_v20 = vmax.f32 %v827_v1, 0.0  ;;  %v6727_v9 = vpack.c.bf16 %v987_v42, %v985_v5  ;;  %v989_v53 = vmax.f32 %v861_v33, 0.0 }
 0x1b4   :  { %v493_v14 = vperm.slane %v9720_v18, 1  ;;  %v991_v19 = vmax.f32 %v863_v23, 0.0  ;;  %v865_v4 = vadd.f32 %v6590_v6, %v574_v58  ;;  %v867_v63 = vadd.f32 %v6590_v6, %v576_v36 }
 0x1b5   :  { %v582_v25 = vadd.f32 %v6567_v54, %v6320_v47  ;;  %v954_v41 = vmax.f32 %v826_v60, 0.0  ;;  %v956_v29 = vmax.f32 %v828_v26, 0.0  ;;  %v583_v44 = vadd.f32 %v491_v38, %v6322_v48 }
 0x1b6   :  { %v585_v21 = vadd.f32 %v491_v38, %v6389_v12  ;;  %v6735_v0 = vpack.c.bf16 %v991_v19, %v989_v53  ;;  %v993_v57 = vmax.f32 %v865_v4, 0.0  ;;  %v995_v51 = vmax.f32 %v867_v63, 0.0  ;;  %v5757_v53 = vld [vmem:[%s9614_s12 + $0x64] sm:$0xf]  ;;  %v5253_v19 = vld [vmem:[%s9614_s12 + $0x68] sm:$0xf0] }
 0x1b7   :  { %v869_v39 = vadd.f32 %v6590_v6, %v578_v46  ;;  %v1077_v50 = vpack.c.bf16 %v955_v20, %v953_v52  ;;  %v871_v58 = vadd.f32 %v6590_v6, %v6543_v31  ;;  %v586_v32 = vadd.f32 %v6571_v61, %v6320_v47 }
 0x1b8   :  { %v587_v54 = vadd.f32 %v493_v14, %v6322_v48  ;;  %v6743_v16 = vpack.c.bf16 %v995_v51, %v993_v57  ;;  %v870_v36 = vadd.f32 %v6592_v7, %v579_v28  ;;  %v872_v1 = vadd.f32 %v6592_v7, %v581_v17  ;;  %v5315_v57 = vld [vmem:[%s9614_s12 + $0xe0] sm:$0xf]  ;;  %v5774_v51 = vld [vmem:[%s9614_s12 + $0xe4] sm:$0xf0] }
 0x1b9   :  { %v997_v56 = vmax.f32 %v869_v39, 0.0  ;;  %v1078_v2 = vpack.c.bf16 %v956_v29, %v954_v41  ;;  %v999_v59 = vmax.f32 %v871_v58, 0.0  ;;  %v873_v22 = vadd.f32 %v6590_v6, %v582_v25  ;;  %v5251_v25 = vld [vmem:[%s9614_s12 + $0x60] sm:$0xf]  ;;  %v5758_v41 = vld [vmem:[%s9614_s12 + $0x64] sm:$0xf0] }
 0x1ba   :  { %v875_v60 = vadd.f32 %v6590_v6, %v6588_v24  ;;  %v998_v31 = vmax.f32 %v870_v36, 0.0  ;;  %v1000_v26 = vmax.f32 %v872_v1, 0.0  ;;  %v874_v61 = vadd.f32 %v6592_v7, %v583_v44 }
 0x1bb   :  { %v876_v46 = vadd.f32 %v6592_v7, %v585_v21  ;;  %v6752_v40 = vpack.c.bf16 %v999_v59, %v997_v56  ;;  %v1001_v38 = vmax.f32 %v873_v22, 0.0  ;;  %v877_v42 = vadd.f32 %v6590_v6, %v586_v32 }
 0x1bc   :  { %v1003_v5 = vmax.f32 %v875_v60, 0.0  ;;  %v6755_v33 = vpack.c.bf16 %v1000_v26, %v998_v31  ;;  %v1002_v23 = vmax.f32 %v874_v61, 0.0  ;;  %v879_v17 = vadd.f32 %v6590_v6, %v6607_v45  ;;  %v5773_v45 = vld [vmem:[%s9614_s12 + $0xe4] sm:$0xf] }
 0x1bd   :  { %v1004_v28 = vmax.f32 %v876_v46, 0.0  ;;  %v1005_v18 = vmax.f32 %v877_v42, 0.0  ;;  %v589_v52 = vadd.f32 %v493_v14, %v6389_v12  ;;  %v878_v20 = vadd.f32 %v6592_v7, %v587_v54  ;;  %v5317_v14 = vld [vmem:[%s9614_s12 + $0xe8] sm:$0xf0] }
 0x1be   :  { %1353 = vmatmul.bf16.gmra.mxu0 %v1077_v50  ;;  %1691 = vmatmul.bf16.gmra.mxu3 %v1077_v50  ;;  %v6759_v24 = vpack.c.bf16 %v1003_v5, %v1001_v38  ;;  %v5256_v63 = vor.u32 %v5757_v53, %v5253_v19  ;;  %v5320_v44 = vor.u32 %v5773_v45, %v5317_v14  ;;  %v1007_v39 = vmax.f32 %v879_v17, 0.0  ;;  %v5756_v53 = vld [vmem:[%s9614_s12 + $0x54] sm:$0xf0]  ;;  %v6840_v45 = vpop.f32.mrf.mxu0  ;;  %v5307_v14 = vld [vmem:[%s9614_s12 + $0xd0] sm:$0xf] }
 0x1bf   :  { %1522 = vmatmul.bf16.gmra.mxu1 %v1078_v2  ;;  %1860 = vmatmul.bf16.gmra.mxu2 %v1078_v2  ;;  %v6772_v4 = vpack.c.bf16 %v1004_v28, %v1002_v23  ;;  %v880_v29 = vadd.f32 %v6592_v7, %v589_v52  ;;  %v5252_v21 = vor.u32 %v5758_v41, %v5251_v25  ;;  %v1006_v50 = vmax.f32 %v878_v20, 0.0  ;;  %v5772_v25 = vld [vmem:[%s9614_s12 + $0xd4] sm:$0xf0] }
 0x1c0   :  { %v538_v58 = vadd.f32 %v6594_v8, %v6320_v47  ;;  %v540_v32 = vadd.f32 %v6594_v8, %v6387_v11  ;;  %2740 = vmatpush.bf16.msrb.mxu3 %v5256_v63  ;;  %v5316_v54 = vor.u32 %v5774_v51, %v5315_v57  ;;  %v539_v36 = vadd.f32 %v6638_v3, %v6322_v48  ;;  %v6842_v63 = vpop.f32.mrf.mxu1 }
 0x1c1   :  { %v1008_v56 = vmax.f32 %v880_v29, 0.0  ;;  %v541_v1 = vadd.f32 %v6638_v3, %v6389_v12  ;;  %2909 = vmatpush.bf16.msra.mxu2 %v5320_v44  ;;  %2402 = vmatpush.bf16.msrb.mxu0 %v5252_v21  ;;  %v6798_v2 = vpack.c.bf16 %v1007_v39, %v1005_v18  ;;  %v9721_v38 = vrot.slane %v6499_v10, 4  ;;  %v5755_v10 = vld [vmem:[%s9614_s12 + $0x54] sm:$0xf]  ;;  %v1169_v39 = vld [vmem:[%s9613_s11] sm:$0x3] }
 0x1c2   :  { %v829_v59 = vadd.f32 %v6590_v6, %v538_v58  ;;  %v831_v47 = vadd.f32 %v6590_v6, %v540_v32  ;;  %2571 = vmatpush.bf16.msrb.mxu1 %v5316_v54  ;;  %v830_v11 = vadd.f32 %v6592_v7, %v539_v36  ;;  %v5308_v41 = vor.u32 %v5772_v25, %v5307_v14  ;;  %v9723_v25 = vld [vmem:[#allocation9_spill] sm:$0xff] }
 0x1c3   :  { %v6802_v22 = vpack.c.bf16 %v1008_v56, %v1006_v50  ;;  %v832_v8 = vadd.f32 %v6592_v7, %v541_v1  ;;  %v471_v6 = vperm.slane %v9721_v38, 1  ;;  %v479_v29 = vperm.slane %v6539_v30, 1 }
 0x1c4   :  { %v957_v60 = vmax.f32 %v829_v59, 0.0  ;;  %v959_v31 = vmax.f32 %v831_v47, 0.0  ;;  %v958_v26 = vmax.f32 %v830_v11, 0.0  ;;  %v6866_v58 = vperm.slane %v1169_v39, 0 }
 0x1c5   :  { %v960_v61 = vmax.f32 %v832_v8, 0.0  ;;  %v543_v5 = vadd.f32 %v471_v6, %v6322_v48  ;;  %v545_v42 = vadd.f32 %v471_v6, %v6389_v12  ;;  %v559_v21 = vadd.f32 %v479_v29, %v6322_v48 }
 0x1c6   :  { %v1079_v3 = vpack.c.bf16 %v959_v31, %v957_v60  ;;  %2572 = vmatpush.bf16.msrb.mxu1 %v5308_v41  ;;  %v6855_v44 = vpop.f32.mrf.mxu0  ;;  %v561_v57 = vadd.f32 %v479_v29, %v6389_v12  ;;  %v6871_v59 = vperm.slane %v1169_v39, 1  ;;  %v9722_v47 = vrot.slane %v6548_v35, 1 }
 0x1c7   :  { %v1080_v46 = vpack.c.bf16 %v960_v61, %v958_v26  ;;  %v834_v23 = vadd.f32 %v6592_v7, %v543_v5  ;;  %v836_v28 = vadd.f32 %v6592_v7, %v545_v42  ;;  %v9724_v41 = vrot.slane %v9723_v25, 2 }
 0x1c8   :  { %v6859_v51 = vpop.f32.mrf.mxu1  ;;  %v852_v50 = vadd.f32 %v6592_v7, %v561_v57  ;;  %v481_v11 = vperm.slane %v9722_v47, 1 }
 0x1c9   :  { %v962_v17 = vmax.f32 %v834_v23, 0.0  ;;  %v964_v18 = vmax.f32 %v836_v28, 0.0  ;;  %v483_v29 = vperm.slane %v9724_v41, 1 }
 0x1ca   :  { %v980_v30 = vmax.f32 %v852_v50, 0.0  ;;  %v563_v61 = vadd.f32 %v481_v11, %v6322_v48 }
 0x1cb   :  { %v1082_v52 = vpack.c.bf16 %v964_v18, %v962_v17 }
 0x1cc   :  { %v854_v6 = vadd.f32 %v6592_v7, %v563_v61 }
 0x1ce   :  { %1358 = vmatmul.bf16.gmra.mxu0 %v1079_v3  ;;  %1696 = vmatmul.bf16.gmra.mxu3 %v1079_v3  ;;  %v565_v3 = vadd.f32 %v481_v11, %v6389_v12  ;;  %v982_v17 = vmax.f32 %v854_v6, 0.0  ;;  %v9725_v6 = vld [vmem:[#allocation10_spill] sm:$0xff] }
 0x1cf   :  { %1527 = vmatmul.bf16.gmra.mxu1 %v1080_v46  ;;  %1865 = vmatmul.bf16.gmra.mxu2 %v1080_v46 }
 0x1d0   :  { %v856_v5 = vadd.f32 %v6592_v7, %v565_v3 }
 0x1d2   :  { %v984_v18 = vmax.f32 %v856_v5, 0.0  ;;  %v9726_v5 = vrot.slane %v9725_v6, 3 }
 0x1de   :  { %1363 = vmatmul.bf16.gmra.mxu0 %v6668_v37  ;;  %1701 = vmatmul.bf16.gmra.mxu3 %v6668_v37  ;;  %v5245_v37 = vld [vmem:[%s9614_s12 + $0x58] sm:$0xf0] }
 0x1df   :  { %1532 = vmatmul.bf16.gmra.mxu1 %v1082_v52  ;;  %1870 = vmatmul.bf16.gmra.mxu2 %v1082_v52 }
 0x1ee   :  { %1368 = vmatmul.bf16.gmra.mxu0 %v6676_v27  ;;  %1706 = vmatmul.bf16.gmra.mxu3 %v6676_v27  ;;  %v5771_v27 = vld [vmem:[%s9614_s12 + $0xd4] sm:$0xf] }
 0x1ef   :  { %1537 = vmatmul.bf16.gmra.mxu1 %v6679_v62  ;;  %1875 = vmatmul.bf16.gmra.mxu2 %v6679_v62  ;;  %v5248_v62 = vor.u32 %v5755_v10, %v5245_v37 }
 0x1f1   :  { %2741 = vmatpush.bf16.msrb.mxu3 %v5248_v62 }
 0x1fe   :  { %1373 = vmatmul.bf16.gmra.mxu0 %v6683_v55  ;;  %1711 = vmatmul.bf16.gmra.mxu3 %v6683_v55  ;;  %v5309_v55 = vld [vmem:[%s9614_s12 + $0xd8] sm:$0xf0] }
 0x1ff   :  { %1542 = vmatmul.bf16.gmra.mxu1 %v6687_v13  ;;  %1880 = vmatmul.bf16.gmra.mxu2 %v6687_v13  ;;  %v5312_v20 = vor.u32 %v5771_v27, %v5309_v55  ;;  %v5243_v13 = vld [vmem:[%s9614_s12 + $0x50] sm:$0xf] }
 0x200   :  { %v5244_v19 = vor.u32 %v5756_v53, %v5243_v13  ;;  %v1092_v13 = vpack.c.bf16 %v984_v18, %v982_v17  ;;  %v5769_v18 = vld [vmem:[%s9614_s12 + $0xc4] sm:$0xf] }
 0x201   :  { %2910 = vmatpush.bf16.msra.mxu2 %v5312_v20 }
 0x202   :  { %2403 = vmatpush.bf16.msrb.mxu0 %v5244_v19 }
 0x20e   :  { %1378 = vmatmul.bf16.gmra.mxu0 %v6691_v49  ;;  %1716 = vmatmul.bf16.gmra.mxu3 %v6691_v49  ;;  %v850_v49 = vadd.f32 %v6592_v7, %v559_v21 }
 0x20f   :  { %1547 = vmatmul.bf16.gmra.mxu1 %v6694_v34  ;;  %1885 = vmatmul.bf16.gmra.mxu2 %v6694_v34 }
 0x210   :  { %v978_v34 = vmax.f32 %v850_v49, 0.0 }
 0x212   :  { %v1090_v36 = vpack.c.bf16 %v980_v30, %v978_v34  ;;  %v567_v34 = vadd.f32 %v483_v29, %v6322_v48  ;;  %v569_v30 = vadd.f32 %v483_v29, %v6389_v12 }
 0x21b   :  { %v1344_v32 = vpop.f32.mrf.mxu0 }
 0x21c   :  { %v1345_v54 = vadd.f32 %v1344_v32, %v6866_v58  ;;  %v1513_v56 = vpop.f32.mrf.mxu1 }
 0x21e   :  { %v1514_v1 = vadd.f32 %v1513_v56, %v1345_v54  ;;  %1383 = vmatmul.bf16.gmra.mxu0 %v6702_v15  ;;  %1721 = vmatmul.bf16.gmra.mxu3 %v6702_v15  ;;  %v858_v56 = vadd.f32 %v6592_v7, %v567_v34  ;;  %v5770_v34 = vld [vmem:[%s9614_s12 + $0xc4] sm:$0xf0] }
 0x21f   :  { %1552 = vmatmul.bf16.gmra.mxu1 %v1090_v36  ;;  %1890 = vmatmul.bf16.gmra.mxu2 %v1090_v36  ;;  %v860_v36 = vadd.f32 %v6592_v7, %v569_v30 }
 0x220   :  { %v2011_v35 = vmax.f32 %v1514_v1, 0.0  ;;  %v986_v11 = vmax.f32 %v858_v56, 0.0 }
 0x221   :  { %v1682_v8 = vpop.f32.mrf.mxu3 }
 0x222   :  { %v1683_v60 = vadd.f32 %v1682_v8, %v6871_v59  ;;  %v1851_v31 = vpop.f32.mrf.mxu2  ;;  %v988_v8 = vmax.f32 %v860_v36, 0.0 }
 0x223   :  { %v1346_v26 = vpop.f32.mrf.mxu0 }
 0x224   :  { %v1852_v46 = vadd.f32 %v1851_v31, %v1683_v60  ;;  %v1347_v38 = vadd.f32 %v1346_v26, %v6866_v58  ;;  %v1515_v15 = vpop.f32.mrf.mxu1 }
 0x226   :  { %v1516_v42 = vadd.f32 %v1515_v15, %v1347_v38  ;;  %v2012_v53 = vmax.f32 %v1852_v46, 0.0  ;;  %v1094_v38 = vpack.c.bf16 %v988_v8, %v986_v11 }
 0x228   :  { %v2013_v23 = vmax.f32 %v1516_v42, 0.0  ;;  %v485_v42 = vperm.slane %v9726_v5, 1 }
 0x229   :  { %v1684_v28 = vpop.f32.mrf.mxu3 }
 0x22a   :  { %v6881_v52 = vpack.c.bf16 %v2013_v23, %v2011_v35  ;;  %v1685_v10 = vadd.f32 %v1684_v28, %v6871_v59  ;;  %v1853_v37 = vpop.f32.mrf.mxu2  ;;  %v5753_v35 = vld [vmem:[%s9614_s12 + $0x44] sm:$0xf]  ;;  %v5237_v23 = vld [vmem:[%s9614_s12 + $0x48] sm:$0xf0] }
 0x22b   :  { %v1349_v27 = vpop.f32.mrf.mxu0  ;;  %v5240_v17 = vor.u32 %v5753_v35, %v5237_v23 }
 0x22c   :  { %v1854_v62 = vadd.f32 %v1853_v37, %v1685_v10  ;;  %v1350_v55 = vadd.f32 %v1349_v27, %v6866_v58  ;;  %v1518_v20 = vpop.f32.mrf.mxu1 }
 0x22d   :  { %2742 = vmatpush.bf16.msrb.mxu3 %v5240_v17 }
 0x22e   :  { %v2014_v19 = vmax.f32 %v1854_v62, 0.0  ;;  %v6885_v14 = vadd.f32 %v1518_v20, %v1350_v55  ;;  %1388 = vmatmul.bf16.gmra.mxu0 %v6717_v43  ;;  %1726 = vmatmul.bf16.gmra.mxu3 %v6717_v43  ;;  %v571_v55 = vadd.f32 %v485_v42, %v6322_v48  ;;  %v573_v20 = vadd.f32 %v485_v42, %v6389_v12 }
 0x22f   :  { %1557 = vmatmul.bf16.gmra.mxu1 %v1092_v13  ;;  %1895 = vmatmul.bf16.gmra.mxu2 %v1092_v13 }
 0x230   :  { %v6891_v21 = vpack.c.bf16 %v2014_v19, %v2012_v53  ;;  %v862_v25 = vadd.f32 %v6592_v7, %v571_v55  ;;  %v864_v41 = vadd.f32 %v6592_v7, %v573_v20 }
 0x231   :  { %v1687_v57 = vpop.f32.mrf.mxu3 }
 0x232   :  { %v1688_v39 = vadd.f32 %v1687_v57, %v6871_v59  ;;  %v1856_v49 = vpop.f32.mrf.mxu2  ;;  %v5235_v57 = vld [vmem:[%s9614_s12 + $0x40] sm:$0xf] }
 0x233   :  { %v1351_v50 = vpop.f32.mrf.mxu0 }
 0x234   :  { %v6896_v32 = vadd.f32 %v1856_v49, %v1688_v39  ;;  %v1352_v43 = vadd.f32 %v1351_v50, %v6866_v58  ;;  %v1520_v54 = vpop.f32.mrf.mxu1  ;;  %v5754_v39 = vld [vmem:[%s9614_s12 + $0x44] sm:$0xf0]  ;;  %v5299_v50 = vld [vmem:[%s9614_s12 + $0xc0] sm:$0xf] }
 0x235   :  { %v5236_v49 = vor.u32 %v5754_v39, %v5235_v57  ;;  %v5300_v56 = vor.u32 %v5770_v34, %v5299_v50 }
 0x236   :  { %v6901_v1 = vadd.f32 %v1520_v54, %v1352_v43  ;;  %v990_v43 = vmax.f32 %v862_v25, 0.0  ;;  %v992_v54 = vmax.f32 %v864_v41, 0.0 }
 0x237   :  { %2404 = vmatpush.bf16.msrb.mxu0 %v5236_v49  ;;  %2573 = vmatpush.bf16.msrb.mxu1 %v5300_v56 }
 0x239   :  { %v1689_v47 = vpop.f32.mrf.mxu3 }
 0x23a   :  { %v1690_v60 = vadd.f32 %v1689_v47, %v6871_v59  ;;  %v1858_v31 = vpop.f32.mrf.mxu2 }
 0x23b   :  { %v1354_v26 = vpop.f32.mrf.mxu0 }
 0x23c   :  { %v6904_v61 = vadd.f32 %v1858_v31, %v1690_v60  ;;  %v1355_v3 = vadd.f32 %v1354_v26, %v6866_v58  ;;  %v1523_v46 = vpop.f32.mrf.mxu1  ;;  %v1096_v26 = vpack.c.bf16 %v992_v54, %v990_v43 }
 0x23e   :  { %v6907_v15 = vadd.f32 %v1523_v46, %v1355_v3  ;;  %1393 = vmatmul.bf16.gmra.mxu0 %v6727_v9  ;;  %1731 = vmatmul.bf16.gmra.mxu3 %v6727_v9  ;;  %v5301_v9 = vld [vmem:[%s9614_s12 + $0xc8] sm:$0xf0]  ;;  %v9727_v46 = vld [vmem:[#allocation12_spill] sm:$0xff] }
 0x23f   :  { %1562 = vmatmul.bf16.gmra.mxu1 %v1094_v38  ;;  %1900 = vmatmul.bf16.gmra.mxu2 %v1094_v38  ;;  %v5304_v27 = vor.u32 %v5769_v18, %v5301_v9  ;;  %v9728_v38 = vrot.slane %v9727_v46, 4 }
 0x241   :  { %v1692_v28 = vpop.f32.mrf.mxu3  ;;  %2911 = vmatpush.bf16.msra.mxu2 %v5304_v27  ;;  %v487_v6 = vperm.slane %v9728_v38, 1 }
 0x242   :  { %v1693_v10 = vadd.f32 %v1692_v28, %v6871_v59  ;;  %v1861_v37 = vpop.f32.mrf.mxu2 }
 0x243   :  { %v1356_v62 = vpop.f32.mrf.mxu0  ;;  %v575_v28 = vadd.f32 %v487_v6, %v6322_v48  ;;  %v577_v17 = vadd.f32 %v487_v6, %v6389_v12 }
 0x244   :  { %v6928_v13 = vadd.f32 %v1861_v37, %v1693_v10  ;;  %v1357_v53 = vadd.f32 %v1356_v62, %v6866_v58  ;;  %v1525_v19 = vpop.f32.mrf.mxu1 }
 0x245   :  { %v868_v37 = vadd.f32 %v6592_v7, %v577_v17 }
 0x246   :  { %v6933_v29 = vadd.f32 %v1525_v19, %v1357_v53 }
 0x247   :  { %v996_v20 = vmax.f32 %v868_v37, 0.0 }
 0x249   :  { %v1694_v30 = vpop.f32.mrf.mxu3 }
 0x24a   :  { %v1695_v36 = vadd.f32 %v1694_v30, %v6871_v59  ;;  %v1863_v47 = vpop.f32.mrf.mxu2 }
 0x24b   :  { %v1359_v11 = vpop.f32.mrf.mxu0 }
 0x24c   :  { %v6948_v8 = vadd.f32 %v1863_v47, %v1695_v36  ;;  %v1360_v60 = vadd.f32 %v1359_v11, %v6866_v58  ;;  %v1528_v31 = vpop.f32.mrf.mxu1 }
 0x24e   :  { %v6951_v3 = vadd.f32 %v1528_v31, %v1360_v60  ;;  %1398 = vmatmul.bf16.gmra.mxu0 %v6735_v0  ;;  %1736 = vmatmul.bf16.gmra.mxu3 %v6735_v0  ;;  %v866_v0 = vadd.f32 %v6592_v7, %v575_v28 }
 0x24f   :  { %1567 = vmatmul.bf16.gmra.mxu1 %v1096_v26  ;;  %1905 = vmatmul.bf16.gmra.mxu2 %v1096_v26 }
 0x250   :  { %v994_v55 = vmax.f32 %v866_v0, 0.0 }
 0x251   :  { %v1697_v5 = vpop.f32.mrf.mxu3 }
 0x252   :  { %v1698_v42 = vadd.f32 %v1697_v5, %v6871_v59  ;;  %v1866_v35 = vpop.f32.mrf.mxu2  ;;  %v1098_v57 = vpack.c.bf16 %v996_v20, %v994_v55  ;;  %v5751_v20 = vld [vmem:[%s9614_s12 + $0x34] sm:$0xf] }
 0x253   :  { %v1361_v23 = vpop.f32.mrf.mxu0 }
 0x254   :  { %v6960_v18 = vadd.f32 %v1866_v35, %v1698_v42  ;;  %v1362_v9 = vadd.f32 %v1361_v23, %v6866_v58  ;;  %v1530_v10 = vpop.f32.mrf.mxu1 }
 0x256   :  { %v6965_v27 = vadd.f32 %v1530_v10, %v1362_v9 }
 0x259   :  { %v1699_v62 = vpop.f32.mrf.mxu3 }
 0x25a   :  { %v1700_v53 = vadd.f32 %v1699_v62, %v6871_v59  ;;  %v1868_v19 = vpop.f32.mrf.mxu2 }
 0x25b   :  { %v1364_v48 = vpop.f32.mrf.mxu0 }
 0x25c   :  { %v6968_v25 = vadd.f32 %v1868_v19, %v1700_v53  ;;  %v1365_v12 = vadd.f32 %v1364_v48, %v6866_v58  ;;  %v1533_v41 = vpop.f32.mrf.mxu1  ;;  %v5229_v53 = vld [vmem:[%s9614_s12 + $0x38] sm:$0xf0] }
 0x25d   :  { %v5232_v48 = vor.u32 %v5751_v20, %v5229_v53 }
 0x25e   :  { %v6971_v39 = vadd.f32 %v1533_v41, %v1365_v12  ;;  %1403 = vmatmul.bf16.gmra.mxu0 %v6743_v16  ;;  %1741 = vmatmul.bf16.gmra.mxu3 %v6743_v16  ;;  %v5767_v12 = vld [vmem:[%s9614_s12 + $0xb4] sm:$0xf] }
 0x25f   :  { %1572 = vmatmul.bf16.gmra.mxu1 %v1098_v57  ;;  %1910 = vmatmul.bf16.gmra.mxu2 %v1098_v57 }
 0x260   :  { %2743 = vmatpush.bf16.msrb.mxu3 %v5232_v48 }
 0x261   :  { %v1702_v7 = vpop.f32.mrf.mxu3 }
 0x262   :  { %v1703_v49 = vadd.f32 %v1702_v7, %v6871_v59  ;;  %v1871_v50 = vpop.f32.mrf.mxu2 }
 0x263   :  { %v1366_v34 = vpop.f32.mrf.mxu0 }
 0x264   :  { %v6976_v30 = vadd.f32 %v1871_v50, %v1703_v49  ;;  %v1367_v43 = vadd.f32 %v1366_v34, %v6866_v58  ;;  %v1535_v54 = vpop.f32.mrf.mxu1 }
 0x266   :  { %v6979_v56 = vadd.f32 %v1535_v54, %v1367_v43  ;;  %v5227_v54 = vld [vmem:[%s9614_s12 + $0x30] sm:$0xf] }
 0x269   :  { %v1704_v36 = vpop.f32.mrf.mxu3 }
 0x26a   :  { %v1705_v47 = vadd.f32 %v1704_v36, %v6871_v59  ;;  %v1873_v11 = vpop.f32.mrf.mxu2  ;;  %v5752_v36 = vld [vmem:[%s9614_s12 + $0x34] sm:$0xf0] }
 0x26b   :  { %v1369_v60 = vpop.f32.mrf.mxu0 }
 0x26c   :  { %v6982_v16 = vadd.f32 %v1873_v11, %v1705_v47  ;;  %v1370_v31 = vadd.f32 %v1369_v60, %v6866_v58  ;;  %v1538_v26 = vpop.f32.mrf.mxu1  ;;  %v7032_v47 = vrot.slane %v6842_v63, 7  ;;  %v5228_v11 = vor.u32 %v5752_v36, %v5227_v54  ;;  %v5291_v60 = vld [vmem:[%s9614_s12 + $0xb0] sm:$0xf] }
 0x26e   :  { %v6985_v46 = vadd.f32 %v1538_v26, %v1370_v31  ;;  %1408 = vmatmul.bf16.gmra.mxu0 %v6752_v40  ;;  %1746 = vmatmul.bf16.gmra.mxu3 %v6752_v40  ;;  %v5768_v31 = vld [vmem:[%s9614_s12 + $0xb4] sm:$0xf0]  ;;  %v596_v63 = vsel %vm424_vm14, %v6840_v45, %v7032_v47 }
 0x26f   :  { %1577 = vmatmul.bf16.gmra.mxu1 %v6755_v33  ;;  %1915 = vmatmul.bf16.gmra.mxu2 %v6755_v33 }
 0x270   :  { %2405 = vmatpush.bf16.msrb.mxu0 %v5228_v11 }
 0x271   :  { %v1707_v38 = vpop.f32.mrf.mxu3 }
 0x272   :  { %v1708_v6 = vadd.f32 %v1707_v38, %v6871_v59  ;;  %v1876_v5 = vpop.f32.mrf.mxu2  ;;  %v5292_v38 = vor.u32 %v5768_v31, %v5291_v60 }
 0x273   :  { %v1371_v42 = vpop.f32.mrf.mxu0 }
 0x274   :  { %v6992_v35 = vadd.f32 %v1876_v5, %v1708_v6  ;;  %v1372_v23 = vadd.f32 %v1371_v42, %v6866_v58  ;;  %v1540_v28 = vpop.f32.mrf.mxu1  ;;  %2574 = vmatpush.bf16.msrb.mxu1 %v5292_v38 }
 0x276   :  { %v6995_v17 = vadd.f32 %v1540_v28, %v1372_v23  ;;  %v9729_v23 = vld [vmem:[#allocation11_spill] sm:$0xff] }
 0x277   :  { %v808_v28 = vrot.slane %v9729_v23, 1 }
 0x279   :  { %v1709_v9 = vpop.f32.mrf.mxu3  ;;  %v7054_v20 = vperm.slane %v808_v28, 0  ;;  %v7056_v53 = vperm.slane %v808_v28, 1 }
 0x27a   :  { %v1710_v10 = vadd.f32 %v1709_v9, %v6871_v59  ;;  %v1878_v40 = vpop.f32.mrf.mxu2 }
 0x27b   :  { %v1374_v0 = vpop.f32.mrf.mxu0 }
 0x27c   :  { %v6998_v37 = vadd.f32 %v1878_v40, %v1710_v10  ;;  %v1375_v33 = vadd.f32 %v1374_v0, %v6866_v58  ;;  %v1543_v62 = vpop.f32.mrf.mxu1 }
 0x27e   :  { %v7001_v55 = vadd.f32 %v1543_v62, %v1375_v33  ;;  %1413 = vmatmul.bf16.gmra.mxu0 %v6759_v24  ;;  %1751 = vmatmul.bf16.gmra.mxu3 %v6759_v24  ;;  %v5293_v24 = vld [vmem:[%s9614_s12 + $0xb8] sm:$0xf0]  ;;  %v626_v33 = vperm.slane %v596_v63, 0  ;;  %v627_v62 = vperm.slane %v596_v63, 1  ;;  %v597_v63 = vsel %vm426_vm12, %v6840_v45, %v7032_v47 }
 0x27f   :  { %1582 = vmatmul.bf16.gmra.mxu1 %v6772_v4  ;;  %1920 = vmatmul.bf16.gmra.mxu2 %v6772_v4  ;;  %v5296_v57 = vor.u32 %v5767_v12, %v5293_v24  ;;  %v9730_v24 = vld [vmem:[#allocation5_spill] sm:$0xff] }
 0x281   :  { %v1712_v19 = vpop.f32.mrf.mxu3  ;;  %2912 = vmatpush.bf16.msra.mxu2 %v5296_v57 }
 0x282   :  { %v1713_v4 = vadd.f32 %v1712_v19, %v6871_v59  ;;  %v1881_v41 = vpop.f32.mrf.mxu2 }
 0x283   :  { %v1376_v7 = vpop.f32.mrf.mxu0 }
 0x284   :  { %v7020_v49 = vadd.f32 %v1881_v41, %v1713_v4  ;;  %v1377_v50 = vadd.f32 %v1376_v7, %v6866_v58  ;;  %v1545_v34 = vpop.f32.mrf.mxu1  ;;  %v690_v4 = vadd.f32 %v626_v33, %v9730_v24  ;;  %v9731_v41 = vld [vmem:[#allocation7_spill] sm:$0xff] }
 0x285   :  { %v692_v57 = vadd.f32 %v626_v33, %v9731_v41 }
 0x286   :  { %v7023_v43 = vadd.f32 %v1545_v34, %v1377_v50  ;;  %v9733_v34 = vld [vmem:[#allocation8_spill] sm:$0xff]  ;;  %v881_v60 = vadd.f32 %v7054_v20, %v690_v4 }
 0x287   :  { %v693_v54 = vadd.f32 %v627_v62, %v9733_v34  ;;  %v883_v31 = vadd.f32 %v7054_v20, %v692_v57 }
 0x288   :  { %v1009_v23 = vmax.f32 %v881_v60, 0.0 }
 0x289   :  { %v1714_v26 = vpop.f32.mrf.mxu3  ;;  %v1011_v28 = vmax.f32 %v883_v31, 0.0 }
 0x28a   :  { %v1715_v6 = vadd.f32 %v1714_v26, %v6871_v59  ;;  %v1883_v5 = vpop.f32.mrf.mxu2  ;;  %v2017_v26 = vmax.f32 %v6901_v1, 0.0 }
 0x28b   :  { %v1379_v42 = vpop.f32.mrf.mxu0 }
 0x28c   :  { %v7045_v9 = vadd.f32 %v1883_v5, %v1715_v6  ;;  %v1380_v10 = vadd.f32 %v1379_v42, %v6866_v58  ;;  %v1548_v40 = vpop.f32.mrf.mxu1  ;;  %v884_v6 = vadd.f32 %v7056_v53, %v693_v54  ;;  %v2015_v42 = vmax.f32 %v6885_v14, 0.0 }
 0x28d   :  { %v2016_v54 = vmax.f32 %v6896_v32, 0.0 }
 0x28e   :  { %v7048_v0 = vadd.f32 %v1548_v40, %v1380_v10  ;;  %1418 = vmatmul.bf16.gmra.mxu0 %v6798_v2  ;;  %1756 = vmatmul.bf16.gmra.mxu3 %v6798_v2  ;;  %v9732_v2 = vld [vmem:[#allocation6_spill] sm:$0xff]  ;;  %v1012_v33 = vmax.f32 %v884_v6, 0.0 }
 0x28f   :  { %1587 = vmatmul.bf16.gmra.mxu1 %v6802_v22  ;;  %1925 = vmatmul.bf16.gmra.mxu2 %v6802_v22  ;;  %v691_v50 = vadd.f32 %v627_v62, %v9732_v2  ;;  %v7077_v62 = vpack.c.bf16 %v2017_v26, %v2015_v42 }
 0x291   :  { %v1717_v19 = vpop.f32.mrf.mxu3  ;;  %v882_v38 = vadd.f32 %v7056_v53, %v691_v50  ;;  %v1105_v50 = vpack.c.bf16 %v1011_v28, %v1009_v23 }
 0x292   :  { %v1718_v48 = vadd.f32 %v1717_v19, %v6871_v59  ;;  %v1886_v12 = vpop.f32.mrf.mxu2 }
 0x293   :  { %v1381_v7 = vpop.f32.mrf.mxu0  ;;  %v1010_v40 = vmax.f32 %v882_v38, 0.0 }
 0x294   :  { %v7063_v36 = vadd.f32 %v1886_v12, %v1718_v48  ;;  %v1382_v22 = vadd.f32 %v1381_v7, %v6866_v58  ;;  %v1550_v11 = vpop.f32.mrf.mxu1  ;;  %v598_v48 = vrot.slane %v597_v63, 1  ;;  %v2018_v12 = vmax.f32 %v6904_v61, 0.0 }
 0x296   :  { %v7071_v5 = vadd.f32 %v1550_v11, %v1382_v22  ;;  %v1106_v22 = vpack.c.bf16 %v1012_v33, %v1010_v40  ;;  %v628_v60 = vperm.slane %v598_v48, 0  ;;  %v629_v31 = vperm.slane %v598_v48, 1 }
 0x297   :  { %v7087_v26 = vpack.c.bf16 %v2018_v12, %v2016_v54  ;;  %v2021_v48 = vmax.f32 %v6933_v29, 0.0 }
 0x298   :  { %v694_v42 = vadd.f32 %v628_v60, %v9730_v24  ;;  %v696_v63 = vadd.f32 %v628_v60, %v9731_v41  ;;  %v695_v23 = vadd.f32 %v629_v31, %v9732_v2  ;;  %v697_v28 = vadd.f32 %v629_v31, %v9733_v34 }
 0x299   :  { %v1719_v10 = vpop.f32.mrf.mxu3  ;;  %9734 = vst [vmem:[#allocation9_spill] sm:$0xff] %v7087_v26 }
 0x29a   :  { %v1720_v1 = vadd.f32 %v1719_v10, %v6871_v59  ;;  %v1888_v19 = vpop.f32.mrf.mxu2  ;;  %v886_v12 = vadd.f32 %v7056_v53, %v695_v23 }
 0x29b   :  { %v1384_v4 = vpop.f32.mrf.mxu0 }
 0x29c   :  { %v7081_v57 = vadd.f32 %v1888_v19, %v1720_v1  ;;  %v1385_v14 = vadd.f32 %v1384_v4, %v6866_v58  ;;  %v1553_v7 = vpop.f32.mrf.mxu1  ;;  %v885_v1 = vadd.f32 %v7054_v20, %v694_v42  ;;  %v887_v19 = vadd.f32 %v7054_v20, %v696_v63 }
 0x29d   :  { %v888_v4 = vadd.f32 %v7056_v53, %v697_v28  ;;  %v1014_v31 = vmax.f32 %v886_v12, 0.0  ;;  %v2022_v63 = vmax.f32 %v6948_v8, 0.0 }
 0x29e   :  { %v7085_v11 = vadd.f32 %v1553_v7, %v1385_v14  ;;  %1423 = vmatmul.bf16.gmra.mxu0 %v1105_v50  ;;  %1761 = vmatmul.bf16.gmra.mxu3 %v1105_v50  ;;  %v2019_v7 = vmax.f32 %v6907_v15, 0.0  ;;  %v599_v50 = vsel %vm429_vm13, %v6840_v45, %v7032_v47  ;;  %v1013_v54 = vmax.f32 %v885_v1, 0.0 }
 0x29f   :  { %1592 = vmatmul.bf16.gmra.mxu1 %v1106_v22  ;;  %1930 = vmatmul.bf16.gmra.mxu2 %v1106_v22  ;;  %v1015_v22 = vmax.f32 %v887_v19, 0.0  ;;  %v600_v42 = vrot.slane %v599_v50, 2 }
 0x2a1   :  { %v1722_v61 = vpop.f32.mrf.mxu3  ;;  %v631_v12 = vperm.slane %v600_v42, 1 }
 0x2a2   :  { %v1723_v38 = vadd.f32 %v1722_v61, %v6871_v59  ;;  %v1891_v6 = vpop.f32.mrf.mxu2  ;;  %v1016_v61 = vmax.f32 %v888_v4, 0.0 }
 0x2a3   :  { %v1386_v32 = vpop.f32.mrf.mxu0 }
 0x2a4   :  { %v7094_v10 = vadd.f32 %v1891_v6, %v1723_v38  ;;  %v1387_v40 = vadd.f32 %v1386_v32, %v6866_v58  ;;  %v1555_v33 = vpop.f32.mrf.mxu1  ;;  %v7108_v38 = vpack.c.bf16 %v2021_v48, %v2019_v7  ;;  %v1108_v1 = vpack.c.bf16 %v1016_v61, %v1014_v31 }
 0x2a5   :  { %v630_v48 = vperm.slane %v600_v42, 0  ;;  %v701_v31 = vadd.f32 %v631_v12, %v9733_v34 }
 0x2a6   :  { %v7102_v14 = vadd.f32 %v1555_v33, %v1387_v40  ;;  %9735 = vst [vmem:[#allocation10_spill] sm:$0xff] %v7108_v38  ;;  %v1107_v40 = vpack.c.bf16 %v1015_v22, %v1013_v54  ;;  %v2020_v33 = vmax.f32 %v6928_v13, 0.0  ;;  %v699_v22 = vadd.f32 %v631_v12, %v9732_v2 }
 0x2a7   :  { %v700_v54 = vadd.f32 %v630_v48, %v9731_v41 }
 0x2a8   :  { %v7118_v4 = vpack.c.bf16 %v2022_v63, %v2020_v33  ;;  %v2023_v33 = vmax.f32 %v6951_v3, 0.0 }
 0x2a9   :  { %v1724_v60 = vpop.f32.mrf.mxu3  ;;  %v891_v63 = vadd.f32 %v7054_v20, %v700_v54 }
 0x2aa   :  { %v1725_v29 = vadd.f32 %v1724_v60, %v6871_v59  ;;  %v1893_v6 = vpop.f32.mrf.mxu2  ;;  %9736 = vst [vmem:[#allocation12_spill] sm:$0xff] %v7118_v4  ;;  %v698_v60 = vadd.f32 %v630_v48, %v9730_v24 }
 0x2ab   :  { %v1389_v32 = vpop.f32.mrf.mxu0  ;;  %v1019_v12 = vmax.f32 %v891_v63, 0.0 }
 0x2ac   :  { %v7112_v23 = vadd.f32 %v1893_v6, %v1725_v29  ;;  %v1390_v15 = vadd.f32 %v1389_v32, %v6866_v58  ;;  %v1558_v28 = vpop.f32.mrf.mxu1  ;;  %v889_v42 = vadd.f32 %v7054_v20, %v698_v60  ;;  %v2025_v32 = vmax.f32 %v6965_v27, 0.0 }
 0x2ae   :  { %v7116_v19 = vadd.f32 %v1558_v28, %v1390_v15  ;;  %1428 = vmatmul.bf16.gmra.mxu0 %v1107_v40  ;;  %1766 = vmatmul.bf16.gmra.mxu3 %v1107_v40  ;;  %v890_v15 = vadd.f32 %v7056_v53, %v699_v22  ;;  %v892_v28 = vadd.f32 %v7056_v53, %v701_v31  ;;  %v1017_v48 = vmax.f32 %v889_v42, 0.0 }
 0x2af   :  { %1597 = vmatmul.bf16.gmra.mxu1 %v1108_v1  ;;  %1935 = vmatmul.bf16.gmra.mxu2 %v1108_v1  ;;  %v601_v1 = vsel %vm432_vm0, %v6840_v45, %v7032_v47  ;;  %v7139_v60 = vpack.c.bf16 %v2025_v32, %v2023_v33  ;;  %v2026_v22 = vmax.f32 %v6968_v25, 0.0  ;;  %v2024_v42 = vmax.f32 %v6960_v18, 0.0  ;;  %v5749_v25 = vld [vmem:[%s9614_s12 + $0x24] sm:$0xf] }
 0x2b0   :  { %v1109_v4 = vpack.c.bf16 %v1019_v12, %v1017_v48  ;;  %v5285_v12 = vld [vmem:[%s9614_s12 + $0xa8] sm:$0xf0] }
 0x2b1   :  { %v1727_v8 = vpop.f32.mrf.mxu3  ;;  %9737 = vst [vmem:[#allocation11_spill] sm:$0xff] %v7139_v60  ;;  %v7149_v33 = vpack.c.bf16 %v2026_v22, %v2024_v42 }
 0x2b2   :  { %v1728_v7 = vadd.f32 %v1727_v8, %v6871_v59  ;;  %v1896_v50 = vpop.f32.mrf.mxu2 }
 0x2b3   :  { %v1391_v13 = vpop.f32.mrf.mxu0  ;;  %9738 = vst [vmem:[#allocation5_spill] sm:$0xff] %v7149_v33 }
 0x2b4   :  { %v7125_v61 = vadd.f32 %v1896_v50, %v1728_v7  ;;  %v1392_v29 = vadd.f32 %v1391_v13, %v6866_v58  ;;  %v1560_v6 = vpop.f32.mrf.mxu1  ;;  %v1018_v7 = vmax.f32 %v890_v15, 0.0  ;;  %v1020_v50 = vmax.f32 %v892_v28, 0.0 }
 0x2b5   :  { %v602_v13 = vrot.slane %v601_v1, 3  ;;  %v5221_v1 = vld [vmem:[%s9614_s12 + $0x28] sm:$0xf0] }
 0x2b6   :  { %v7133_v40 = vadd.f32 %v1560_v6, %v1392_v29  ;;  %v1110_v63 = vpack.c.bf16 %v1020_v50, %v1018_v7  ;;  %v5224_v48 = vor.u32 %v5749_v25, %v5221_v1  ;;  %v2029_v1 = vmax.f32 %v6979_v56, 0.0 }
 0x2b7   :  { %v632_v32 = vperm.slane %v602_v13, 0  ;;  %v633_v28 = vperm.slane %v602_v13, 1  ;;  %v603_v56 = vsel %vm435_vm15, %v6840_v45, %v7032_v47 }
 0x2b8   :  { %2744 = vmatpush.bf16.msrb.mxu3 %v5224_v48  ;;  %v5750_v48 = vld [vmem:[%s9614_s12 + $0x24] sm:$0xf0] }
 0x2b9   :  { %v1729_v8 = vpop.f32.mrf.mxu3  ;;  %v702_v50 = vadd.f32 %v632_v32, %v9730_v24  ;;  %v703_v22 = vadd.f32 %v633_v28, %v9732_v2 }
 0x2ba   :  { %v1730_v27 = vadd.f32 %v1729_v8, %v6871_v59  ;;  %v1898_v54 = vpop.f32.mrf.mxu2 }
 0x2bb   :  { %v1394_v31 = vpop.f32.mrf.mxu0 }
 0x2bc   :  { %v7143_v29 = vadd.f32 %v1898_v54, %v1730_v27  ;;  %v1395_v3 = vadd.f32 %v1394_v31, %v6866_v58  ;;  %v1563_v6 = vpop.f32.mrf.mxu1  ;;  %v704_v27 = vadd.f32 %v632_v32, %v9731_v41  ;;  %v705_v31 = vadd.f32 %v633_v28, %v9733_v34  ;;  %v5219_v28 = vld [vmem:[%s9614_s12 + $0x20] sm:$0xf] }
 0x2bd   :  { %v894_v32 = vadd.f32 %v7056_v53, %v703_v22 }
 0x2be   :  { %v7147_v15 = vadd.f32 %v1563_v6, %v1395_v3  ;;  %1433 = vmatmul.bf16.gmra.mxu0 %v1109_v4  ;;  %1771 = vmatmul.bf16.gmra.mxu3 %v1109_v4  ;;  %v5765_v4 = vld [vmem:[%s9614_s12 + $0xa4] sm:$0xf]  ;;  %v895_v25 = vadd.f32 %v7054_v20, %v704_v27  ;;  %v5283_v27 = vld [vmem:[%s9614_s12 + $0xa0] sm:$0xf] }
 0x2bf   :  { %1602 = vmatmul.bf16.gmra.mxu1 %v1110_v63  ;;  %1940 = vmatmul.bf16.gmra.mxu2 %v1110_v63  ;;  %v5288_v54 = vor.u32 %v5765_v4, %v5285_v12  ;;  %v893_v63 = vadd.f32 %v7054_v20, %v702_v50  ;;  %v2027_v12 = vmax.f32 %v6971_v39, 0.0  ;;  %v1022_v22 = vmax.f32 %v894_v32, 0.0 }
 0x2c0   :  { %v1023_v50 = vmax.f32 %v895_v25, 0.0  ;;  %v2030_v25 = vmax.f32 %v6982_v16, 0.0  ;;  %v2028_v32 = vmax.f32 %v6976_v30, 0.0 }
 0x2c1   :  { %v1732_v18 = vpop.f32.mrf.mxu3  ;;  %2913 = vmatpush.bf16.msra.mxu2 %v5288_v54  ;;  %v5766_v54 = vld [vmem:[%s9614_s12 + $0xa4] sm:$0xf0] }
 0x2c2   :  { %v1733_v8 = vadd.f32 %v1732_v18, %v6871_v59  ;;  %v1901_v7 = vpop.f32.mrf.mxu2  ;;  %v896_v18 = vadd.f32 %v7056_v53, %v705_v31  ;;  %v5284_v39 = vor.u32 %v5766_v54, %v5283_v27  ;;  %v7204_v16 = vpack.c.bf16 %v2030_v25, %v2028_v32 }
 0x2c3   :  { %v1396_v13 = vpop.f32.mrf.mxu0  ;;  %v605_v32 = vsel %vm438_vm9, %v6840_v45, %v7032_v47 }
 0x2c4   :  { %v7168_v3 = vadd.f32 %v1901_v7, %v1733_v8  ;;  %v1397_v6 = vadd.f32 %v1396_v13, %v6866_v58  ;;  %v1565_v42 = vpop.f32.mrf.mxu1  ;;  %v5220_v8 = vor.u32 %v5750_v48, %v5219_v28  ;;  %v1021_v7 = vmax.f32 %v893_v63, 0.0  ;;  %2575 = vmatpush.bf16.msrb.mxu1 %v5284_v39 }
 0x2c5   :  { %v1024_v31 = vmax.f32 %v896_v18, 0.0  ;;  %v604_v63 = vrot.slane %v603_v56, 4 }
 0x2c6   :  { %v7176_v4 = vadd.f32 %v1565_v42, %v1397_v6  ;;  %2406 = vmatpush.bf16.msrb.mxu0 %v5220_v8  ;;  %v7194_v6 = vpack.c.bf16 %v2029_v1, %v2027_v12  ;;  %v1111_v26 = vpack.c.bf16 %v1023_v50, %v1021_v7 }
 0x2c7   :  { %v1112_v18 = vpack.c.bf16 %v1024_v31, %v1022_v22  ;;  %v634_v1 = vperm.slane %v604_v63, 0  ;;  %v635_v12 = vperm.slane %v604_v63, 1 }
 0x2c9   :  { %v1734_v13 = vpop.f32.mrf.mxu3  ;;  %v708_v7 = vadd.f32 %v634_v1, %v9731_v41 }
 0x2ca   :  { %v1735_v42 = vadd.f32 %v1734_v13, %v6871_v59  ;;  %v1903_v28 = vpop.f32.mrf.mxu2  ;;  %v706_v13 = vadd.f32 %v634_v1, %v9730_v24 }
 0x2cb   :  { %v1399_v48 = vpop.f32.mrf.mxu0  ;;  %v899_v39 = vadd.f32 %v7054_v20, %v708_v7  ;;  %v606_v7 = vrot.slane %v605_v32, 5 }
 0x2cc   :  { %v7198_v33 = vadd.f32 %v1903_v28, %v1735_v42  ;;  %v1400_v60 = vadd.f32 %v1399_v48, %v6866_v58  ;;  %v1568_v38 = vpop.f32.mrf.mxu1  ;;  %v897_v31 = vadd.f32 %v7054_v20, %v706_v13  ;;  %v2033_v42 = vmax.f32 %v6995_v17, 0.0 }
 0x2cd   :  { %v2031_v48 = vmax.f32 %v6985_v46, 0.0  ;;  %v1027_v1 = vmax.f32 %v899_v39, 0.0 }
 0x2ce   :  { %v7202_v8 = vadd.f32 %v1568_v38, %v1400_v60  ;;  %1438 = vmatmul.bf16.gmra.mxu0 %v1111_v26  ;;  %1776 = vmatmul.bf16.gmra.mxu3 %v1111_v26  ;;  %v707_v38 = vadd.f32 %v635_v12, %v9732_v2  ;;  %v709_v60 = vadd.f32 %v635_v12, %v9733_v34 }
 0x2cf   :  { %1607 = vmatmul.bf16.gmra.mxu1 %v1112_v18  ;;  %1945 = vmatmul.bf16.gmra.mxu2 %v1112_v18  ;;  %v1025_v18 = vmax.f32 %v897_v31, 0.0  ;;  %v2032_v31 = vmax.f32 %v6992_v35, 0.0 }
 0x2d0   :  { %v898_v28 = vadd.f32 %v7056_v53, %v707_v38  ;;  %v900_v63 = vadd.f32 %v7056_v53, %v709_v60 }
 0x2d1   :  { %v1737_v56 = vpop.f32.mrf.mxu3 }
 0x2d2   :  { %v1738_v27 = vadd.f32 %v1737_v56, %v6871_v59  ;;  %v1906_v54 = vpop.f32.mrf.mxu2  ;;  %v1026_v56 = vmax.f32 %v898_v28, 0.0 }
 0x2d3   :  { %v1401_v30 = vpop.f32.mrf.mxu0 }
 0x2d4   :  { %v7211_v26 = vadd.f32 %v1906_v54, %v1738_v27  ;;  %v1402_v50 = vadd.f32 %v1401_v30, %v6866_v58  ;;  %v1570_v22 = vpop.f32.mrf.mxu1  ;;  %v1028_v27 = vmax.f32 %v900_v63, 0.0  ;;  %v7225_v54 = vpack.c.bf16 %v2033_v42, %v2031_v48 }
 0x2d5   :  { %v2034_v30 = vmax.f32 %v6998_v37, 0.0  ;;  %v636_v42 = vperm.slane %v606_v7, 0  ;;  %v637_v63 = vperm.slane %v606_v7, 1 }
 0x2d6   :  { %v7219_v25 = vadd.f32 %v1570_v22, %v1402_v50  ;;  %9739 = vst [vmem:[#allocation7_spill] sm:$0xff] %v7225_v54  ;;  %v1113_v22 = vpack.c.bf16 %v1027_v1, %v1025_v18  ;;  %v1114_v39 = vpack.c.bf16 %v1028_v27, %v1026_v56 }
 0x2d7   :  { %v7235_v48 = vpack.c.bf16 %v2034_v30, %v2032_v31  ;;  %v712_v18 = vadd.f32 %v636_v42, %v9731_v41  ;;  %v711_v1 = vadd.f32 %v637_v63, %v9732_v2  ;;  %v713_v56 = vadd.f32 %v637_v63, %v9733_v34 }
 0x2d9   :  { %v1739_v12 = vpop.f32.mrf.mxu3  ;;  %9740 = vst [vmem:[#allocation6_spill] sm:$0xff] %v7235_v48 }
 0x2da   :  { %v1740_v17 = vadd.f32 %v1739_v12, %v6871_v59  ;;  %v1908_v13 = vpop.f32.mrf.mxu2 }
 0x2db   :  { %v1404_v38 = vpop.f32.mrf.mxu0 }
 0x2dc   :  { %v7229_v60 = vadd.f32 %v1908_v13, %v1740_v17  ;;  %v1405_v46 = vadd.f32 %v1404_v38, %v6866_v58  ;;  %v1573_v50 = vpop.f32.mrf.mxu1  ;;  %v710_v17 = vadd.f32 %v636_v42, %v9730_v24  ;;  %v903_v38 = vadd.f32 %v7054_v20, %v712_v18 }
 0x2dd   :  { %v607_v42 = vsel %vm441_vm10, %v6840_v45, %v7032_v47 }
 0x2de   :  { %v7233_v28 = vadd.f32 %v1573_v50, %v1405_v46  ;;  %1443 = vmatmul.bf16.gmra.mxu0 %v1113_v22  ;;  %1781 = vmatmul.bf16.gmra.mxu3 %v1113_v22  ;;  %v901_v30 = vadd.f32 %v7054_v20, %v710_v17  ;;  %v2037_v46 = vmax.f32 %v7023_v43, 0.0  ;;  %v902_v50 = vadd.f32 %v7056_v53, %v711_v1 }
 0x2df   :  { %1612 = vmatmul.bf16.gmra.mxu1 %v1114_v39  ;;  %1950 = vmatmul.bf16.gmra.mxu2 %v1114_v39  ;;  %v904_v22 = vadd.f32 %v7056_v53, %v713_v56  ;;  %v2035_v39 = vmax.f32 %v7001_v55, 0.0  ;;  %v608_v1 = vrot.slane %v607_v42, 6  ;;  %v2038_v56 = vmax.f32 %v7045_v9, 0.0 }
 0x2e0   :  { %v1029_v63 = vmax.f32 %v901_v30, 0.0  ;;  %v2036_v30 = vmax.f32 %v7020_v49, 0.0 }
 0x2e1   :  { %v1742_v37 = vpop.f32.mrf.mxu3  ;;  %v1032_v17 = vmax.f32 %v904_v22, 0.0  ;;  %v7256_v18 = vpack.c.bf16 %v2037_v46, %v2035_v39  ;;  %v638_v46 = vperm.slane %v608_v1, 0  ;;  %v639_v22 = vperm.slane %v608_v1, 1 }
 0x2e2   :  { %v1743_v32 = vadd.f32 %v1742_v37, %v6871_v59  ;;  %v1911_v12 = vpop.f32.mrf.mxu2  ;;  %v1031_v37 = vmax.f32 %v903_v38, 0.0  ;;  %v7266_v39 = vpack.c.bf16 %v2038_v56, %v2036_v30  ;;  %v2041_v56 = vmax.f32 %v7071_v5, 0.0 }
 0x2e3   :  { %v1406_v35 = vpop.f32.mrf.mxu0  ;;  %9741 = vst [vmem:[#allocation8_spill] sm:$0xff] %v7256_v18 }
 0x2e4   :  { %v7242_v27 = vadd.f32 %v1911_v12, %v1743_v32  ;;  %v1407_v13 = vadd.f32 %v1406_v35, %v6866_v58  ;;  %v1575_v7 = vpop.f32.mrf.mxu1  ;;  %v1030_v12 = vmax.f32 %v902_v50, 0.0  ;;  %v1115_v54 = vpack.c.bf16 %v1031_v37, %v1029_v63  ;;  %9742 = vst [vmem:[#allocation13_spill] sm:$0xff] %v7266_v39 }
 0x2e5   :  { %v716_v63 = vadd.f32 %v638_v46, %v9731_v41  ;;  %v717_v37 = vadd.f32 %v639_v22, %v9733_v34 }
 0x2e6   :  { %v7250_v31 = vadd.f32 %v1575_v7, %v1407_v13  ;;  %v1116_v38 = vpack.c.bf16 %v1032_v17, %v1030_v12 }
 0x2e7   :  { %v907_v1 = vadd.f32 %v7054_v20, %v716_v63 }
 0x2e9   :  { %v1744_v32 = vpop.f32.mrf.mxu3 }
 0x2ea   :  { %v1745_v43 = vadd.f32 %v1744_v32, %v6871_v59  ;;  %v1913_v35 = vpop.f32.mrf.mxu2 }
 0x2eb   :  { %v1409_v13 = vpop.f32.mrf.mxu0 }
 0x2ec   :  { %v7260_v7 = vadd.f32 %v1913_v35, %v1745_v43  ;;  %v1410_v55 = vadd.f32 %v1409_v13, %v6866_v58  ;;  %v1578_v48 = vpop.f32.mrf.mxu1  ;;  %v714_v43 = vadd.f32 %v638_v46, %v9730_v24  ;;  %v609_v46 = vsel %vm444_vm11, %v7032_v47, %v6840_v45 }
 0x2ed   :  { %v2040_v47 = vmax.f32 %v7063_v36, 0.0 }
 0x2ee   :  { %v7264_v50 = vadd.f32 %v1578_v48, %v1410_v55  ;;  %1448 = vmatmul.bf16.gmra.mxu0 %v1115_v54  ;;  %1786 = vmatmul.bf16.gmra.mxu3 %v1115_v54  ;;  %v715_v48 = vadd.f32 %v639_v22, %v9732_v2  ;;  %v905_v35 = vadd.f32 %v7054_v20, %v714_v43 }
 0x2ef   :  { %1617 = vmatmul.bf16.gmra.mxu1 %v1116_v38  ;;  %1955 = vmatmul.bf16.gmra.mxu2 %v1116_v38  ;;  %v908_v55 = vadd.f32 %v7056_v53, %v717_v37  ;;  %v2039_v38 = vmax.f32 %v7048_v0, 0.0  ;;  %v2042_v37 = vmax.f32 %v7081_v57, 0.0  ;;  %v5747_v57 = vld [vmem:[%s9614_s12 + $0x14] sm:$0xf] }
 0x2f0   :  { %v906_v13 = vadd.f32 %v7056_v53, %v715_v48  ;;  %v1033_v22 = vmax.f32 %v905_v35, 0.0  ;;  %v610_v48 = vrot.slane %v609_v46, 7 }
 0x2f1   :  { %v1747_v9 = vpop.f32.mrf.mxu3  ;;  %v1036_v43 = vmax.f32 %v908_v55, 0.0  ;;  %v7287_v63 = vpack.c.bf16 %v2041_v56, %v2039_v38  ;;  %v7297_v55 = vpack.c.bf16 %v2042_v37, %v2040_v47  ;;  %v5213_v38 = vld [vmem:[%s9614_s12 + $0x18] sm:$0xf0] }
 0x2f2   :  { %v1748_v42 = vadd.f32 %v1747_v9, %v6871_v59  ;;  %v1916_v32 = vpop.f32.mrf.mxu2  ;;  %v1035_v9 = vmax.f32 %v907_v1, 0.0  ;;  %v640_v56 = vperm.slane %v610_v48, 0  ;;  %v5216_v46 = vor.u32 %v5747_v57, %v5213_v38 }
 0x2f3   :  { %v1411_v49 = vpop.f32.mrf.mxu0  ;;  %9743 = vst [vmem:[#allocation14_spill] sm:$0xff] %v7287_v63  ;;  %v2045_v57 = vmax.f32 %v7102_v14, 0.0 }
 0x2f4   :  { %v7273_v54 = vadd.f32 %v1916_v32, %v1748_v42  ;;  %v1412_v12 = vadd.f32 %v1411_v49, %v6866_v58  ;;  %v1580_v17 = vpop.f32.mrf.mxu1  ;;  %v1034_v32 = vmax.f32 %v906_v13, 0.0  ;;  %v1117_v45 = vpack.c.bf16 %v1035_v9, %v1033_v22  ;;  %9744 = vst [vmem:[#allocation15_spill] sm:$0xff] %v7297_v55  ;;  %v5277_v22 = vld [vmem:[%s9614_s12 + $0x98] sm:$0xf0]  ;;  %2745 = vmatpush.bf16.msrb.mxu3 %v5216_v46  ;;  %v5748_v46 = vld [vmem:[%s9614_s12 + $0x14] sm:$0xf0] }
 0x2f5   :  { %v641_v13 = vperm.slane %v610_v48, 1 }
 0x2f6   :  { %v7281_v30 = vadd.f32 %v1580_v17, %v1412_v12  ;;  %v1118_v35 = vpack.c.bf16 %v1036_v43, %v1034_v32  ;;  %v718_v32 = vadd.f32 %v640_v56, %v9730_v24  ;;  %v720_v43 = vadd.f32 %v640_v56, %v9731_v41 }
 0x2f7   :  { %v719_v48 = vadd.f32 %v641_v13, %v9732_v2  ;;  %v721_v37 = vadd.f32 %v641_v13, %v9733_v34  ;;  %v5211_v13 = vld [vmem:[%s9614_s12 + $0x10] sm:$0xf] }
 0x2f8   :  { %v909_v47 = vadd.f32 %v7054_v20, %v718_v32  ;;  %v5212_v14 = vor.u32 %v5748_v46, %v5211_v13  ;;  %v5275_v32 = vld [vmem:[%s9614_s12 + $0x90] sm:$0xf] }
 0x2f9   :  { %v1749_v42 = vpop.f32.mrf.mxu3  ;;  %v910_v56 = vadd.f32 %v7056_v53, %v719_v48  ;;  %v912_v38 = vadd.f32 %v7056_v53, %v721_v37 }
 0x2fa   :  { %v1750_v5 = vadd.f32 %v1749_v42, %v6871_v59  ;;  %v1918_v49 = vpop.f32.mrf.mxu2  ;;  %2407 = vmatpush.bf16.msrb.mxu0 %v5212_v14 }
 0x2fb   :  { %v1414_v12 = vpop.f32.mrf.mxu0  ;;  %v1040_v48 = vmax.f32 %v912_v38, 0.0 }
 0x2fc   :  { %v7291_v17 = vadd.f32 %v1918_v49, %v1750_v5  ;;  %v1415_v0 = vadd.f32 %v1414_v12, %v6866_v58  ;;  %v1583_v39 = vpop.f32.mrf.mxu1 }
 0x2fe   :  { %v7295_v1 = vadd.f32 %v1583_v39, %v1415_v0  ;;  %1453 = vmatmul.bf16.gmra.mxu0 %v1117_v45  ;;  %1791 = vmatmul.bf16.gmra.mxu3 %v1117_v45  ;;  %v5763_v39 = vld [vmem:[%s9614_s12 + $0x94] sm:$0xf] }
 0x2ff   :  { %1622 = vmatmul.bf16.gmra.mxu1 %v1118_v35  ;;  %1960 = vmatmul.bf16.gmra.mxu2 %v1118_v35  ;;  %v5280_v5 = vor.u32 %v5763_v39, %v5277_v22  ;;  %v911_v35 = vadd.f32 %v7054_v20, %v720_v43  ;;  %v7333_v39 = vrot.slane %v6859_v51, 7  ;;  %v2043_v22 = vmax.f32 %v7085_v11, 0.0  ;;  %v5764_v43 = vld [vmem:[%s9614_s12 + $0x94] sm:$0xf0] }
 0x300   :  { %v5276_v37 = vor.u32 %v5764_v43, %v5275_v32 }
 0x301   :  { %v1752_v36 = vpop.f32.mrf.mxu3  ;;  %2914 = vmatpush.bf16.msra.mxu2 %v5280_v5  ;;  %v7342_v51 = vpack.c.bf16 %v2045_v57, %v2043_v22  ;;  %v2044_v57 = vmax.f32 %v7094_v10, 0.0 }
 0x302   :  { %v1753_v9 = vadd.f32 %v1752_v36, %v6871_v59  ;;  %v1921_v42 = vpop.f32.mrf.mxu2  ;;  %2576 = vmatpush.bf16.msrb.mxu1 %v5276_v37 }
 0x303   :  { %v1416_v49 = vpop.f32.mrf.mxu0  ;;  %9745 = vst [vmem:[#allocation16_spill] sm:$0xff] %v7342_v51 }
 0x304   :  { %v7316_v12 = vadd.f32 %v1921_v42, %v1753_v9  ;;  %v1417_v0 = vadd.f32 %v1416_v49, %v6866_v58  ;;  %v1585_v45 = vpop.f32.mrf.mxu1  ;;  %v1037_v9 = vmax.f32 %v909_v47, 0.0  ;;  %v1039_v42 = vmax.f32 %v911_v35, 0.0 }
 0x305   :  { %v1038_v49 = vmax.f32 %v910_v56, 0.0  ;;  %v611_v35 = vsel %vm424_vm14, %v6855_v44, %v7333_v39 }
 0x306   :  { %v7324_v36 = vadd.f32 %v1585_v45, %v1417_v0  ;;  %v2046_v45 = vmax.f32 %v7112_v23, 0.0  ;;  %v1119_v46 = vpack.c.bf16 %v1039_v42, %v1037_v9  ;;  %v642_v23 = vperm.slane %v611_v35, 0 }
 0x307   :  { %v1120_v22 = vpack.c.bf16 %v1040_v48, %v1038_v49  ;;  %v643_v32 = vperm.slane %v611_v35, 1 }
 0x308   :  { %v7355_v43 = vpack.c.bf16 %v2046_v45, %v2044_v57  ;;  %v724_v9 = vadd.f32 %v642_v23, %v9731_v41 }
 0x309   :  { %v1754_v5 = vpop.f32.mrf.mxu3  ;;  %v723_v42 = vadd.f32 %v643_v32, %v9732_v2  ;;  %v725_v49 = vadd.f32 %v643_v32, %v9733_v34  ;;  %v612_v32 = vsel %vm426_vm12, %v6855_v44, %v7333_v39 }
 0x30a   :  { %v1755_v11 = vadd.f32 %v1754_v5, %v6871_v59  ;;  %v1923_v0 = vpop.f32.mrf.mxu2  ;;  %9746 = vst [vmem:[#allocation17_spill] sm:$0xff] %v7355_v43  ;;  %v613_v43 = vrot.slane %v612_v32, 1 }
 0x30b   :  { %v1419_v47 = vpop.f32.mrf.mxu0  ;;  %v916_v57 = vadd.f32 %v7056_v53, %v725_v49  ;;  %v2050_v49 = vmax.f32 %v7143_v29, 0.0 }
 0x30c   :  { %v7349_v13 = vadd.f32 %v1923_v0, %v1755_v11  ;;  %v1420_v56 = vadd.f32 %v1419_v47, %v6866_v58  ;;  %v1588_v38 = vpop.f32.mrf.mxu1  ;;  %v722_v0 = vadd.f32 %v642_v23, %v9730_v24  ;;  %v2047_v23 = vmax.f32 %v7116_v19, 0.0 }
 0x30e   :  { %v7353_v14 = vadd.f32 %v1588_v38, %v1420_v56  ;;  %1458 = vmatmul.bf16.gmra.mxu0 %v1119_v46  ;;  %1796 = vmatmul.bf16.gmra.mxu3 %v1119_v46  ;;  %v913_v45 = vadd.f32 %v7054_v20, %v722_v0  ;;  %v915_v56 = vadd.f32 %v7054_v20, %v724_v9  ;;  %v2049_v38 = vmax.f32 %v7133_v40, 0.0 }
 0x30f   :  { %1627 = vmatmul.bf16.gmra.mxu1 %v1120_v22  ;;  %1965 = vmatmul.bf16.gmra.mxu2 %v1120_v22  ;;  %v914_v46 = vadd.f32 %v7056_v53, %v723_v42 }
 0x310   :  { %v7376_v9 = vpack.c.bf16 %v2049_v38, %v2047_v23  ;;  %v644_v38 = vperm.slane %v613_v43, 0 }
 0x311   :  { %v1757_v5 = vpop.f32.mrf.mxu3  ;;  %v1042_v0 = vmax.f32 %v914_v46, 0.0 }
 0x312   :  { %v1758_v37 = vadd.f32 %v1757_v5, %v6871_v59  ;;  %v1926_v11 = vpop.f32.mrf.mxu2  ;;  %v1041_v5 = vmax.f32 %v913_v45, 0.0  ;;  %9747 = vst [vmem:[#allocation18_spill] sm:$0xff] %v7376_v9  ;;  %v2048_v45 = vmax.f32 %v7125_v61, 0.0 }
 0x313   :  { %v1421_v10 = vpop.f32.mrf.mxu0 }
 0x314   :  { %v7362_v48 = vadd.f32 %v1926_v11, %v1758_v37  ;;  %v1422_v47 = vadd.f32 %v1421_v10, %v6866_v58  ;;  %v1590_v35 = vpop.f32.mrf.mxu1  ;;  %v1043_v37 = vmax.f32 %v915_v56, 0.0  ;;  %v1044_v10 = vmax.f32 %v916_v57, 0.0 }
 0x315   :  { %v645_v57 = vperm.slane %v613_v43, 1  ;;  %v7386_v23 = vpack.c.bf16 %v2050_v49, %v2048_v45  ;;  %v2053_v49 = vmax.f32 %v7176_v4, 0.0 }
 0x316   :  { %v7370_v22 = vadd.f32 %v1590_v35, %v1422_v47  ;;  %v1121_v55 = vpack.c.bf16 %v1043_v37, %v1041_v5  ;;  %v1122_v56 = vpack.c.bf16 %v1044_v10, %v1042_v0  ;;  %v728_v5 = vadd.f32 %v644_v38, %v9731_v41 }
 0x317   :  { %9748 = vst [vmem:[#allocation19_spill] sm:$0xff] %v7386_v23  ;;  %v729_v37 = vadd.f32 %v645_v57, %v9733_v34 }
 0x319   :  { %v1759_v11 = vpop.f32.mrf.mxu3 }
 0x31a   :  { %v1760_v40 = vadd.f32 %v1759_v11, %v6871_v59  ;;  %v1928_v42 = vpop.f32.mrf.mxu2 }
 0x31b   :  { %v1424_v47 = vpop.f32.mrf.mxu0 }
 0x31c   :  { %v7380_v35 = vadd.f32 %v1928_v42, %v1760_v40  ;;  %v1425_v19 = vadd.f32 %v1424_v47, %v6866_v58  ;;  %v1593_v51 = vpop.f32.mrf.mxu1  ;;  %v726_v40 = vadd.f32 %v644_v38, %v9730_v24  ;;  %v919_v42 = vadd.f32 %v7054_v20, %v728_v5 }
 0x31d   :  { %v614_v38 = vsel %vm429_vm13, %v6855_v44, %v7333_v39 }
 0x31e   :  { %v7384_v46 = vadd.f32 %v1593_v51, %v1425_v19  ;;  %1463 = vmatmul.bf16.gmra.mxu0 %v1121_v55  ;;  %1801 = vmatmul.bf16.gmra.mxu3 %v1121_v55  ;;  %v727_v51 = vadd.f32 %v645_v57, %v9732_v2  ;;  %v917_v10 = vadd.f32 %v7054_v20, %v726_v40 }
 0x31f   :  { %1632 = vmatmul.bf16.gmra.mxu1 %v1122_v56  ;;  %1970 = vmatmul.bf16.gmra.mxu2 %v1122_v56  ;;  %v920_v19 = vadd.f32 %v7056_v53, %v729_v37  ;;  %v2051_v56 = vmax.f32 %v7147_v15, 0.0  ;;  %v2054_v37 = vmax.f32 %v7198_v33, 0.0 }
 0x320   :  { %v918_v47 = vadd.f32 %v7056_v53, %v727_v51  ;;  %v1045_v57 = vmax.f32 %v917_v10, 0.0  ;;  %v615_v51 = vrot.slane %v614_v38, 2  ;;  %v2052_v10 = vmax.f32 %v7168_v3, 0.0 }
 0x321   :  { %v1762_v29 = vpop.f32.mrf.mxu3  ;;  %v1048_v40 = vmax.f32 %v920_v19, 0.0  ;;  %v7407_v5 = vpack.c.bf16 %v2053_v49, %v2051_v56 }
 0x322   :  { %v1763_v32 = vadd.f32 %v1762_v29, %v6871_v59  ;;  %v1931_v11 = vpop.f32.mrf.mxu2  ;;  %v1047_v29 = vmax.f32 %v919_v42, 0.0  ;;  %v646_v49 = vperm.slane %v615_v51, 0  ;;  %v647_v19 = vperm.slane %v615_v51, 1 }
 0x323   :  { %v1426_v61 = vpop.f32.mrf.mxu0  ;;  %9749 = vst [vmem:[#allocation20_spill] sm:$0xff] %v7407_v5  ;;  %v7417_v56 = vpack.c.bf16 %v2054_v37, %v2052_v10  ;;  %v2057_v37 = vmax.f32 %v7219_v25, 0.0 }
 0x324   :  { %v7393_v55 = vadd.f32 %v1931_v11, %v1763_v32  ;;  %v1427_v0 = vadd.f32 %v1426_v61, %v6866_v58  ;;  %v1595_v43 = vpop.f32.mrf.mxu1  ;;  %v1046_v11 = vmax.f32 %v918_v47, 0.0  ;;  %v1123_v9 = vpack.c.bf16 %v1047_v29, %v1045_v57 }
 0x325   :  { %9750 = vst [vmem:[#allocation21_spill] sm:$0xff] %v7417_v56  ;;  %v732_v57 = vadd.f32 %v646_v49, %v9731_v41  ;;  %v733_v29 = vadd.f32 %v647_v19, %v9733_v34 }
 0x326   :  { %v7401_v45 = vadd.f32 %v1595_v43, %v1427_v0  ;;  %v1124_v42 = vpack.c.bf16 %v1048_v40, %v1046_v11 }
 0x327   :  { %v923_v51 = vadd.f32 %v7054_v20, %v732_v57 }
 0x329   :  { %v1764_v32 = vpop.f32.mrf.mxu3 }
 0x32a   :  { %v1765_v4 = vadd.f32 %v1764_v32, %v6871_v59  ;;  %v1933_v61 = vpop.f32.mrf.mxu2 }
 0x32b   :  { %v1429_v0 = vpop.f32.mrf.mxu0 }
 0x32c   :  { %v7411_v43 = vadd.f32 %v1933_v61, %v1765_v4  ;;  %v1430_v15 = vadd.f32 %v1429_v0, %v6866_v58  ;;  %v1598_v23 = vpop.f32.mrf.mxu1  ;;  %v730_v4 = vadd.f32 %v646_v49, %v9730_v24  ;;  %v616_v49 = vsel %vm432_vm0, %v6855_v44, %v7333_v39 }
 0x32e   :  { %v7415_v47 = vadd.f32 %v1598_v23, %v1430_v15  ;;  %1468 = vmatmul.bf16.gmra.mxu0 %v1123_v9  ;;  %1806 = vmatmul.bf16.gmra.mxu3 %v1123_v9  ;;  %v731_v23 = vadd.f32 %v647_v19, %v9732_v2  ;;  %v921_v61 = vadd.f32 %v7054_v20, %v730_v4 }
 0x32f   :  { %1637 = vmatmul.bf16.gmra.mxu1 %v1124_v42  ;;  %1975 = vmatmul.bf16.gmra.mxu2 %v1124_v42  ;;  %v924_v15 = vadd.f32 %v7056_v53, %v733_v29  ;;  %v2055_v42 = vmax.f32 %v7202_v8, 0.0  ;;  %v2058_v29 = vmax.f32 %v7229_v60, 0.0  ;;  %v5745_v60 = vld [vmem:[%s9614_s12 + $0x4] sm:$0xf] }
 0x330   :  { %v922_v0 = vadd.f32 %v7056_v53, %v731_v23  ;;  %v1049_v19 = vmax.f32 %v921_v61, 0.0  ;;  %v617_v23 = vrot.slane %v616_v49, 3  ;;  %v2056_v61 = vmax.f32 %v7211_v26, 0.0  ;;  %v5205_v49 = vld [vmem:[%s9614_s12 + $0x8] sm:$0xf0] }
 0x331   :  { %v1767_v33 = vpop.f32.mrf.mxu3  ;;  %v1052_v4 = vmax.f32 %v924_v15, 0.0  ;;  %v7438_v57 = vpack.c.bf16 %v2057_v37, %v2055_v42 }
 0x332   :  { %v1768_v38 = vadd.f32 %v1767_v33, %v6871_v59  ;;  %v1936_v32 = vpop.f32.mrf.mxu2  ;;  %v1051_v33 = vmax.f32 %v923_v51, 0.0  ;;  %v648_v37 = vperm.slane %v617_v23, 0  ;;  %v649_v15 = vperm.slane %v617_v23, 1 }
 0x333   :  { %v1431_v3 = vpop.f32.mrf.mxu0  ;;  %9751 = vst [vmem:[#allocation22_spill] sm:$0xff] %v7438_v57  ;;  %v7448_v42 = vpack.c.bf16 %v2058_v29, %v2056_v61 }
 0x334   :  { %v7424_v9 = vadd.f32 %v1936_v32, %v1768_v38  ;;  %v1432_v11 = vadd.f32 %v1431_v3, %v6866_v58  ;;  %v1600_v40 = vpop.f32.mrf.mxu1  ;;  %v1050_v32 = vmax.f32 %v922_v0, 0.0  ;;  %v1125_v5 = vpack.c.bf16 %v1051_v33, %v1049_v19 }
 0x335   :  { %9752 = vst [vmem:[#allocation23_spill] sm:$0xff] %v7448_v42  ;;  %v5208_v19 = vor.u32 %v5745_v60, %v5205_v49  ;;  %v735_v23 = vadd.f32 %v649_v15, %v9732_v2  ;;  %v737_v29 = vadd.f32 %v649_v15, %v9733_v34  ;;  %v2061_v49 = vmax.f32 %v7250_v31, 0.0  ;;  %v5203_v15 = vld [vmem:[%s9614_s12] sm:$0xf] }
 0x336   :  { %v7432_v10 = vadd.f32 %v1600_v40, %v1432_v11  ;;  %v1126_v51 = vpack.c.bf16 %v1052_v4, %v1050_v32  ;;  %v734_v32 = vadd.f32 %v648_v37, %v9730_v24  ;;  %v736_v4 = vadd.f32 %v648_v37, %v9731_v41 }
 0x337   :  { %2746 = vmatpush.bf16.msrb.mxu3 %v5208_v19  ;;  %v926_v37 = vadd.f32 %v7056_v53, %v735_v23  ;;  %v5746_v19 = vld [vmem:[%s9614_s12 + $0x4] sm:$0xf0]  ;;  %v618_v31 = vsel %vm435_vm15, %v6855_v44, %v7333_v39 }
 0x338   :  { %v927_v60 = vadd.f32 %v7054_v20, %v736_v4  ;;  %v5267_v4 = vld [vmem:[%s9614_s12 + $0x80] sm:$0xf] }
 0x339   :  { %v1769_v38 = vpop.f32.mrf.mxu3  ;;  %v1054_v23 = vmax.f32 %v926_v37, 0.0  ;;  %v2060_v37 = vmax.f32 %v7242_v27, 0.0 }
 0x33a   :  { %v1770_v25 = vadd.f32 %v1769_v38, %v6871_v59  ;;  %v1938_v3 = vpop.f32.mrf.mxu2 }
 0x33b   :  { %v1434_v11 = vpop.f32.mrf.mxu0 }
 0x33c   :  { %v7442_v40 = vadd.f32 %v1938_v3, %v1770_v25  ;;  %v1435_v8 = vadd.f32 %v1434_v11, %v6866_v58  ;;  %v1603_v56 = vpop.f32.mrf.mxu1 }
 0x33e   :  { %v7446_v0 = vadd.f32 %v1603_v56, %v1435_v8  ;;  %1473 = vmatmul.bf16.gmra.mxu0 %v1125_v5  ;;  %1811 = vmatmul.bf16.gmra.mxu3 %v1125_v5  ;;  %v5761_v5 = vld [vmem:[%s9614_s12 + $0x84] sm:$0xf]  ;;  %v5269_v56 = vld [vmem:[%s9614_s12 + $0x88] sm:$0xf0] }
 0x33f   :  { %1642 = vmatmul.bf16.gmra.mxu1 %v1126_v51  ;;  %1980 = vmatmul.bf16.gmra.mxu2 %v1126_v51  ;;  %v5272_v25 = vor.u32 %v5761_v5, %v5269_v56  ;;  %v925_v51 = vadd.f32 %v7054_v20, %v734_v32  ;;  %v2059_v56 = vmax.f32 %v7233_v28, 0.0  ;;  %v1055_v32 = vmax.f32 %v927_v60, 0.0 }
 0x340   :  { %v2062_v60 = vmax.f32 %v7260_v7, 0.0 }
 0x341   :  { %v1772_v26 = vpop.f32.mrf.mxu3  ;;  %2915 = vmatpush.bf16.msra.mxu2 %v5272_v25  ;;  %v5762_v25 = vld [vmem:[%s9614_s12 + $0x84] sm:$0xf0] }
 0x342   :  { %v1773_v33 = vadd.f32 %v1772_v26, %v6871_v59  ;;  %v1941_v38 = vpop.f32.mrf.mxu2  ;;  %v928_v26 = vadd.f32 %v7056_v53, %v737_v29  ;;  %v5268_v28 = vor.u32 %v5762_v25, %v5267_v4  ;;  %v7503_v7 = vpack.c.bf16 %v2062_v60, %v2060_v37 }
 0x343   :  { %v1436_v3 = vpop.f32.mrf.mxu0  ;;  %v620_v37 = vsel %vm438_vm9, %v6855_v44, %v7333_v39 }
 0x344   :  { %v7467_v11 = vadd.f32 %v1941_v38, %v1773_v33  ;;  %v1437_v8 = vadd.f32 %v1436_v3, %v6866_v58  ;;  %v1605_v61 = vpop.f32.mrf.mxu1  ;;  %v5204_v33 = vor.u32 %v5746_v19, %v5203_v15  ;;  %v1053_v38 = vmax.f32 %v925_v51, 0.0  ;;  %2577 = vmatpush.bf16.msrb.mxu1 %v5268_v28 }
 0x345   :  { %v1056_v29 = vmax.f32 %v928_v26, 0.0  ;;  %v619_v51 = vrot.slane %v618_v31, 4 }
 0x346   :  { %v7475_v5 = vadd.f32 %v1605_v61, %v1437_v8  ;;  %2408 = vmatpush.bf16.msrb.mxu0 %v5204_v33  ;;  %v7493_v8 = vpack.c.bf16 %v2061_v49, %v2059_v56  ;;  %v1127_v18 = vpack.c.bf16 %v1055_v32, %v1053_v38 }
 0x347   :  { %v1128_v26 = vpack.c.bf16 %v1056_v29, %v1054_v23  ;;  %v650_v49 = vperm.slane %v619_v51, 0  ;;  %v651_v56 = vperm.slane %v619_v51, 1 }
 0x349   :  { %v1774_v3 = vpop.f32.mrf.mxu3  ;;  %v740_v38 = vadd.f32 %v650_v49, %v9731_v41 }
 0x34a   :  { %v1775_v61 = vadd.f32 %v1774_v3, %v6871_v59  ;;  %v1943_v15 = vpop.f32.mrf.mxu2  ;;  %v738_v3 = vadd.f32 %v650_v49, %v9730_v24 }
 0x34b   :  { %v1439_v19 = vpop.f32.mrf.mxu0  ;;  %v931_v28 = vadd.f32 %v7054_v20, %v740_v38  ;;  %v621_v38 = vrot.slane %v620_v37, 5 }
 0x34c   :  { %v7497_v42 = vadd.f32 %v1943_v15, %v1775_v61  ;;  %v1440_v57 = vadd.f32 %v1439_v19, %v6866_v58  ;;  %v1608_v63 = vpop.f32.mrf.mxu1  ;;  %v929_v29 = vadd.f32 %v7054_v20, %v738_v3  ;;  %v2065_v61 = vmax.f32 %v7281_v30, 0.0 }
 0x34d   :  { %v2063_v19 = vmax.f32 %v7264_v50, 0.0  ;;  %v1059_v49 = vmax.f32 %v931_v28, 0.0 }
 0x34e   :  { %v7501_v33 = vadd.f32 %v1608_v63, %v1440_v57  ;;  %1478 = vmatmul.bf16.gmra.mxu0 %v1127_v18  ;;  %1816 = vmatmul.bf16.gmra.mxu3 %v1127_v18  ;;  %v739_v63 = vadd.f32 %v651_v56, %v9732_v2  ;;  %v741_v57 = vadd.f32 %v651_v56, %v9733_v34 }
 0x34f   :  { %1647 = vmatmul.bf16.gmra.mxu1 %v1128_v26  ;;  %1985 = vmatmul.bf16.gmra.mxu2 %v1128_v26  ;;  %v1057_v26 = vmax.f32 %v929_v29, 0.0  ;;  %v2064_v29 = vmax.f32 %v7273_v54, 0.0 }
 0x350   :  { %v930_v15 = vadd.f32 %v7056_v53, %v739_v63  ;;  %v932_v51 = vadd.f32 %v7056_v53, %v741_v57 }
 0x351   :  { %v1777_v31 = vpop.f32.mrf.mxu3 }
 0x352   :  { %v1778_v4 = vadd.f32 %v1777_v31, %v6871_v59  ;;  %v1946_v25 = vpop.f32.mrf.mxu2  ;;  %v1058_v31 = vmax.f32 %v930_v15, 0.0 }
 0x353   :  { %v1441_v27 = vpop.f32.mrf.mxu0 }
 0x354   :  { %v7510_v18 = vadd.f32 %v1946_v25, %v1778_v4  ;;  %v1442_v32 = vadd.f32 %v1441_v27, %v6866_v58  ;;  %v1610_v23 = vpop.f32.mrf.mxu1  ;;  %v1060_v4 = vmax.f32 %v932_v51, 0.0  ;;  %v7524_v25 = vpack.c.bf16 %v2065_v61, %v2063_v19 }
 0x355   :  { %v2066_v27 = vmax.f32 %v7291_v17, 0.0  ;;  %v652_v61 = vperm.slane %v621_v38, 0  ;;  %v653_v51 = vperm.slane %v621_v38, 1 }
 0x356   :  { %v7518_v60 = vadd.f32 %v1610_v23, %v1442_v32  ;;  %9753 = vst [vmem:[#allocation24_spill] sm:$0xff] %v7524_v25  ;;  %v1129_v23 = vpack.c.bf16 %v1059_v49, %v1057_v26  ;;  %v1130_v28 = vpack.c.bf16 %v1060_v4, %v1058_v31 }
 0x357   :  { %v7534_v19 = vpack.c.bf16 %v2066_v27, %v2064_v29  ;;  %v744_v26 = vadd.f32 %v652_v61, %v9731_v41  ;;  %v743_v49 = vadd.f32 %v653_v51, %v9732_v2  ;;  %v745_v31 = vadd.f32 %v653_v51, %v9733_v34 }
 0x359   :  { %v1779_v56 = vpop.f32.mrf.mxu3  ;;  %9754 = vst [vmem:[#allocation25_spill] sm:$0xff] %v7534_v19 }
 0x35a   :  { %v1780_v30 = vadd.f32 %v1779_v56, %v6871_v59  ;;  %v1948_v3 = vpop.f32.mrf.mxu2 }
 0x35b   :  { %v1444_v63 = vpop.f32.mrf.mxu0 }
 0x35c   :  { %v7528_v57 = vadd.f32 %v1948_v3, %v1780_v30  ;;  %v1445_v50 = vadd.f32 %v1444_v63, %v6866_v58  ;;  %v1613_v32 = vpop.f32.mrf.mxu1  ;;  %v742_v30 = vadd.f32 %v652_v61, %v9730_v24  ;;  %v935_v63 = vadd.f32 %v7054_v20, %v744_v26 }
 0x35d   :  { %v622_v61 = vsel %vm441_vm10, %v6855_v44, %v7333_v39 }
 0x35e   :  { %v7532_v15 = vadd.f32 %v1613_v32, %v1445_v50  ;;  %1483 = vmatmul.bf16.gmra.mxu0 %v1129_v23  ;;  %1821 = vmatmul.bf16.gmra.mxu3 %v1129_v23  ;;  %v933_v27 = vadd.f32 %v7054_v20, %v742_v30  ;;  %v2069_v50 = vmax.f32 %v7324_v36, 0.0  ;;  %v934_v32 = vadd.f32 %v7056_v53, %v743_v49 }
 0x35f   :  { %1652 = vmatmul.bf16.gmra.mxu1 %v1130_v28  ;;  %1990 = vmatmul.bf16.gmra.mxu2 %v1130_v28  ;;  %v936_v23 = vadd.f32 %v7056_v53, %v745_v31  ;;  %v2067_v28 = vmax.f32 %v7295_v1, 0.0  ;;  %v623_v49 = vrot.slane %v622_v61, 6  ;;  %v2070_v31 = vmax.f32 %v7349_v13, 0.0 }
 0x360   :  { %v1061_v51 = vmax.f32 %v933_v27, 0.0  ;;  %v2068_v27 = vmax.f32 %v7316_v12, 0.0 }
 0x361   :  { %v1782_v17 = vpop.f32.mrf.mxu3  ;;  %v1064_v30 = vmax.f32 %v936_v23, 0.0  ;;  %v7555_v26 = vpack.c.bf16 %v2069_v50, %v2067_v28  ;;  %v654_v50 = vperm.slane %v623_v49, 0  ;;  %v655_v23 = vperm.slane %v623_v49, 1 }
 0x362   :  { %v1783_v37 = vadd.f32 %v1782_v17, %v6871_v59  ;;  %v1951_v56 = vpop.f32.mrf.mxu2  ;;  %v1063_v17 = vmax.f32 %v935_v63, 0.0  ;;  %v7565_v28 = vpack.c.bf16 %v2070_v31, %v2068_v27  ;;  %v2073_v31 = vmax.f32 %v7370_v22, 0.0 }
 0x363   :  { %v1446_v54 = vpop.f32.mrf.mxu0 }
 0x364   :  { %v7541_v4 = vadd.f32 %v1951_v56, %v1783_v37  ;;  %v1447_v3 = vadd.f32 %v1446_v54, %v6866_v58  ;;  %v1615_v38 = vpop.f32.mrf.mxu1  ;;  %v1062_v56 = vmax.f32 %v934_v32, 0.0  ;;  %v1131_v25 = vpack.c.bf16 %v1063_v17, %v1061_v51  ;;  %9755 = vst [vmem:[#allocation26_spill] sm:$0xff] %v7565_v28 }
 0x365   :  { %v748_v51 = vadd.f32 %v654_v50, %v9731_v41  ;;  %v749_v17 = vadd.f32 %v655_v23, %v9733_v34 }
 0x366   :  { %v7549_v29 = vadd.f32 %v1615_v38, %v1447_v3  ;;  %v1132_v63 = vpack.c.bf16 %v1064_v30, %v1062_v56 }
 0x367   :  { %v939_v49 = vadd.f32 %v7054_v20, %v748_v51 }
 0x369   :  { %v1784_v37 = vpop.f32.mrf.mxu3 }
 0x36a   :  { %v1785_v36 = vadd.f32 %v1784_v37, %v6871_v59  ;;  %v1953_v54 = vpop.f32.mrf.mxu2 }
 0x36b   :  { %v1449_v3 = vpop.f32.mrf.mxu0 }
 0x36c   :  { %v7559_v38 = vadd.f32 %v1953_v54, %v1785_v36  ;;  %v1450_v1 = vadd.f32 %v1449_v3, %v6866_v58  ;;  %v1618_v19 = vpop.f32.mrf.mxu1  ;;  %v746_v36 = vadd.f32 %v654_v50, %v9730_v24  ;;  %v624_v50 = vsel %vm444_vm11, %v7333_v39, %v6855_v44 }
 0x36d   :  { %v2072_v39 = vmax.f32 %v7362_v48, 0.0 }
 0x36e   :  { %v7563_v32 = vadd.f32 %v1618_v19, %v1450_v1  ;;  %1488 = vmatmul.bf16.gmra.mxu0 %v1131_v25  ;;  %1826 = vmatmul.bf16.gmra.mxu3 %v1131_v25  ;;  %v747_v19 = vadd.f32 %v655_v23, %v9732_v2  ;;  %v937_v54 = vadd.f32 %v7054_v20, %v746_v36 }
 0x36f   :  { %1657 = vmatmul.bf16.gmra.mxu1 %v1132_v63  ;;  %1995 = vmatmul.bf16.gmra.mxu2 %v1132_v63  ;;  %v940_v1 = vadd.f32 %v7056_v53, %v749_v17  ;;  %v2071_v63 = vmax.f32 %v7353_v14, 0.0  ;;  %v2074_v17 = vmax.f32 %v7380_v35, 0.0  ;;  %v5791_v35 = vld [vmem:[%s9616_s14 + $0x74] sm:$0xf] }
 0x370   :  { %v938_v3 = vadd.f32 %v7056_v53, %v747_v19  ;;  %v1065_v23 = vmax.f32 %v937_v54, 0.0  ;;  %v625_v19 = vrot.slane %v624_v50, 7 }
 0x371   :  { %v1787_v13 = vpop.f32.mrf.mxu3  ;;  %v1068_v36 = vmax.f32 %v940_v1, 0.0  ;;  %v7586_v51 = vpack.c.bf16 %v2073_v31, %v2071_v63  ;;  %v7596_v1 = vpack.c.bf16 %v2074_v17, %v2072_v39  ;;  %v5389_v63 = vld [vmem:[%s9616_s14 + $0x78] sm:$0xf0] }
 0x372   :  { %v1788_v61 = vadd.f32 %v1787_v13, %v6871_v59  ;;  %v1956_v37 = vpop.f32.mrf.mxu2  ;;  %v1067_v13 = vmax.f32 %v939_v49, 0.0  ;;  %v656_v31 = vperm.slane %v625_v19, 0  ;;  %v5392_v50 = vor.u32 %v5791_v35, %v5389_v63 }
 0x373   :  { %v1451_v12 = vpop.f32.mrf.mxu0  ;;  %v2075_v35 = vmax.f32 %v7384_v46, 0.0 }
 0x374   :  { %v7572_v25 = vadd.f32 %v1956_v37, %v1788_v61  ;;  %v1452_v56 = vadd.f32 %v1451_v12, %v6866_v58  ;;  %v1620_v30 = vpop.f32.mrf.mxu1  ;;  %v1066_v37 = vmax.f32 %v938_v3, 0.0  ;;  %v1133_v44 = vpack.c.bf16 %v1067_v13, %v1065_v23  ;;  %v5453_v23 = vld [vmem:[%s9616_s14 + $0xf8] sm:$0xf0]  ;;  %3805 = vmatpush.bf16.msra.mxu3 %v5392_v50 }
 0x375   :  { %v657_v3 = vperm.slane %v625_v19, 1 }
 0x376   :  { %v7580_v27 = vadd.f32 %v1620_v30, %v1452_v56  ;;  %v1134_v54 = vpack.c.bf16 %v1068_v36, %v1066_v37  ;;  %v750_v37 = vadd.f32 %v656_v31, %v9730_v24  ;;  %v752_v36 = vadd.f32 %v656_v31, %v9731_v41 }
 0x377   :  { %v751_v19 = vadd.f32 %v657_v3, %v9732_v2  ;;  %v753_v17 = vadd.f32 %v657_v3, %v9733_v34  ;;  %v2077_v24 = vmax.f32 %v7401_v45, 0.0  ;;  %v5387_v34 = vld [vmem:[%s9616_s14 + $0x70] sm:$0xf]  ;;  %v5792_v3 = vld [vmem:[%s9616_s14 + $0x74] sm:$0xf0] }
 0x378   :  { %v941_v39 = vadd.f32 %v7054_v20, %v750_v37  ;;  %v5451_v45 = vld [vmem:[%s9616_s14 + $0xf0] sm:$0xf] }
 0x379   :  { %v1789_v61 = vpop.f32.mrf.mxu3  ;;  %v942_v41 = vadd.f32 %v7056_v53, %v751_v19  ;;  %v944_v31 = vadd.f32 %v7056_v53, %v753_v17  ;;  %v5808_v53 = vld [vmem:[%s9616_s14 + $0xf4] sm:$0xf0] }
 0x37a   :  { %v1790_v22 = vadd.f32 %v1789_v61, %v6871_v59  ;;  %v1958_v12 = vpop.f32.mrf.mxu2  ;;  %v1069_v63 = vmax.f32 %v941_v39, 0.0 }
 0x37b   :  { %v1454_v56 = vpop.f32.mrf.mxu0 }
 0x37c   :  { %v7590_v30 = vadd.f32 %v1958_v12, %v1790_v22  ;;  %v1455_v14 = vadd.f32 %v1454_v56, %v6866_v58  ;;  %v1623_v28 = vpop.f32.mrf.mxu1 }
 0x37e   :  { %v7594_v49 = vadd.f32 %v1623_v28, %v1455_v14  ;;  %1493 = vmatmul.bf16.gmra.mxu0 %v1133_v44  ;;  %1831 = vmatmul.bf16.gmra.mxu3 %v1133_v44  ;;  %v5807_v28 = vld [vmem:[%s9616_s14 + $0xf4] sm:$0xf] }
 0x37f   :  { %1662 = vmatmul.bf16.gmra.mxu1 %v1134_v54  ;;  %2000 = vmatmul.bf16.gmra.mxu2 %v1134_v54  ;;  %v5456_v22 = vor.u32 %v5807_v28, %v5453_v23  ;;  %v943_v54 = vadd.f32 %v7054_v20, %v752_v36  ;;  %v5388_v20 = vor.u32 %v5792_v3, %v5387_v34  ;;  %v1070_v28 = vmax.f32 %v942_v41, 0.0 }
 0x380   :  { %v1072_v23 = vmax.f32 %v944_v31, 0.0  ;;  %v2078_v36 = vmax.f32 %v7411_v43, 0.0 }
 0x381   :  { %v1792_v48 = vpop.f32.mrf.mxu3  ;;  %3974 = vmatpush.bf16.msrb.mxu2 %v5456_v22  ;;  %3467 = vmatpush.bf16.msra.mxu0 %v5388_v20 }
 0x382   :  { %v1793_v13 = vadd.f32 %v1792_v48, %v6871_v59  ;;  %v1961_v61 = vpop.f32.mrf.mxu2  ;;  %v1071_v48 = vmax.f32 %v943_v54, 0.0  ;;  %v1136_v39 = vpack.c.bf16 %v1072_v23, %v1070_v28  ;;  %v2082_v23 = vmax.f32 %v7442_v40, 0.0 }
 0x383   :  { %v1456_v12 = vpop.f32.mrf.mxu0 }
 0x384   :  { %v7615_v56 = vadd.f32 %v1961_v61, %v1793_v13  ;;  %v1457_v14 = vadd.f32 %v1456_v12, %v6866_v58  ;;  %v1625_v44 = vpop.f32.mrf.mxu1  ;;  %v5452_v13 = vor.u32 %v5808_v53, %v5451_v45  ;;  %v7638_v61 = vpack.c.bf16 %v2077_v24, %v2075_v35 }
 0x386   :  { %v7623_v2 = vadd.f32 %v1625_v44, %v1457_v14  ;;  %3636 = vmatpush.bf16.msra.mxu1 %v5452_v13  ;;  %v1135_v14 = vpack.c.bf16 %v1071_v48, %v1069_v63  ;;  %v2076_v44 = vmax.f32 %v7393_v55, 0.0  ;;  %v2081_v55 = vmax.f32 %v7432_v10, 0.0 }
 0x387   :  { %v2079_v48 = vmax.f32 %v7415_v47, 0.0  ;;  %v2080_v10 = vmax.f32 %v7424_v9, 0.0 }
 0x388   :  { %v7648_v24 = vpack.c.bf16 %v2078_v36, %v2076_v44 }
 0x389   :  { %v1794_v50 = vpop.f32.mrf.mxu3  ;;  %v7658_v53 = vpack.c.bf16 %v2081_v55, %v2079_v48  ;;  %v7672_v47 = vpack.c.bf16 %v2082_v23, %v2080_v10 }
 0x38a   :  { %v1795_v46 = vadd.f32 %v1794_v50, %v6871_v59  ;;  %v1963_v37 = vpop.f32.mrf.mxu2 }
 0x38b   :  { %v1459_v22 = vpop.f32.mrf.mxu0 }
 0x38c   :  { %v7642_v12 = vadd.f32 %v1963_v37, %v1795_v46  ;;  %v1460_v19 = vadd.f32 %v1459_v22, %v6866_v58  ;;  %v1628_v17 = vpop.f32.mrf.mxu1 }
 0x38e   :  { %v7646_v54 = vadd.f32 %v1628_v17, %v1460_v19  ;;  %1498 = vmatmul.bf16.gmra.mxu0 %v1135_v14  ;;  %1836 = vmatmul.bf16.gmra.mxu3 %v1135_v14 }
 0x38f   :  { %1667 = vmatmul.bf16.gmra.mxu1 %v1136_v39  ;;  %2005 = vmatmul.bf16.gmra.mxu2 %v1136_v39 }
 0x391   :  { %v1797_v43 = vpop.f32.mrf.mxu3 }
 0x392   :  { %v1798_v41 = vadd.f32 %v1797_v43, %v6871_v59  ;;  %v1966_v31 = vpop.f32.mrf.mxu2  ;;  %v2085_v43 = vmax.f32 %v7475_v5, 0.0  ;;  %v2084_v5 = vmax.f32 %v7467_v11, 0.0 }
 0x393   :  { %v1461_v34 = vpop.f32.mrf.mxu0 }
 0x394   :  { %v7651_v3 = vadd.f32 %v1966_v31, %v1798_v41  ;;  %v1462_v35 = vadd.f32 %v1461_v34, %v6866_v58  ;;  %v1630_v20 = vpop.f32.mrf.mxu1 }
 0x396   :  { %v7655_v63 = vadd.f32 %v1630_v20, %v1462_v35  ;;  %v2086_v20 = vmax.f32 %v7497_v42, 0.0 }
 0x398   :  { %v7696_v23 = vpack.c.bf16 %v2086_v20, %v2084_v5 }
 0x399   :  { %v1799_v45 = vpop.f32.mrf.mxu3 }
 0x39a   :  { %v1800_v50 = vadd.f32 %v1799_v45, %v6871_v59  ;;  %v1968_v28 = vpop.f32.mrf.mxu2 }
 0x39b   :  { %v1464_v13 = vpop.f32.mrf.mxu0 }
 0x39c   :  { %v7662_v46 = vadd.f32 %v1968_v28, %v1800_v50  ;;  %v1465_v37 = vadd.f32 %v1464_v13, %v6866_v58  ;;  %v1633_v36 = vpop.f32.mrf.mxu1 }
 0x39e   :  { %v7666_v22 = vadd.f32 %v1633_v36, %v1465_v37  ;;  %2409 = vmatmul.bf16.vlgmr.msrb.gmra.mxu0 %v6881_v52  ;;  %2747 = vmatmul.bf16.vlgmr.msrb.gmra.mxu3 %v6881_v52  ;;  %v2083_v52 = vmax.f32 %v7446_v0, 0.0  ;;  %v9756_v0 = vld [vmem:[#allocation9_spill] sm:$0xff] }
 0x39f   :  { %2578 = vmatmul.bf16.vlgmr.msrb.gmra.mxu1 %v6891_v21  ;;  %2916 = vmatmul.bf16.vlgmr.msra.gmra.mxu2 %v6891_v21 }
 0x3a0   :  { %v7682_v21 = vpack.c.bf16 %v2085_v43, %v2083_v52  ;;  %v2090_v52 = vmax.f32 %v7528_v57, 0.0  ;;  %v5789_v57 = vld [vmem:[%s9616_s14 + $0x64] sm:$0xf] }
 0x3a1   :  { %v1802_v40 = vpop.f32.mrf.mxu3 }
 0x3a2   :  { %v1803_v19 = vadd.f32 %v1802_v40, %v6871_v59  ;;  %v1971_v17 = vpop.f32.mrf.mxu2 }
 0x3a3   :  { %v1466_v14 = vpop.f32.mrf.mxu0 }
 0x3a4   :  { %v7675_v44 = vadd.f32 %v1971_v17, %v1803_v19  ;;  %v1467_v9 = vadd.f32 %v1466_v14, %v6866_v58  ;;  %v1635_v39 = vpop.f32.mrf.mxu1  ;;  %v2089_v19 = vmax.f32 %v7518_v60, 0.0  ;;  %v2088_v60 = vmax.f32 %v7510_v18, 0.0  ;;  %v5381_v18 = vld [vmem:[%s9616_s14 + $0x68] sm:$0xf0] }
 0x3a6   :  { %v7679_v41 = vadd.f32 %v1635_v39, %v1467_v9 }
 0x3a9   :  { %v1804_v31 = vpop.f32.mrf.mxu3 }
 0x3aa   :  { %v1805_v34 = vadd.f32 %v1804_v31, %v6871_v59  ;;  %v1973_v35 = vpop.f32.mrf.mxu2 }
 0x3ab   :  { %v1469_v55 = vpop.f32.mrf.mxu0 }
 0x3ac   :  { %v7686_v48 = vadd.f32 %v1973_v35, %v1805_v34  ;;  %v1470_v45 = vadd.f32 %v1469_v55, %v6866_v58  ;;  %v1638_v50 = vpop.f32.mrf.mxu1 }
 0x3ae   :  { %v7690_v28 = vadd.f32 %v1638_v50, %v1470_v45  ;;  %2414 = vmatmul.bf16.gmra.mxu0 %v7077_v62  ;;  %2752 = vmatmul.bf16.gmra.mxu3 %v7077_v62  ;;  %v2087_v62 = vmax.f32 %v7501_v33, 0.0  ;;  %v9757_v45 = vld [vmem:[#allocation10_spill] sm:$0xff]  ;;  %v9758_v33 = vld [vmem:[#allocation12_spill] sm:$0xff]  ;;  %v7720_v50 = vpack.c.bf16 %v2090_v52, %v2088_v60 }
 0x3af   :  { %2583 = vmatmul.bf16.gmra.mxu1 %v9756_v0  ;;  %2921 = vmatmul.bf16.gmra.mxu2 %v9756_v0  ;;  %v5384_v0 = vor.u32 %v5789_v57, %v5381_v18  ;;  %v5379_v52 = vld [vmem:[%s9616_s14 + $0x60] sm:$0xf] }
 0x3b0   :  { %v7706_v9 = vpack.c.bf16 %v2089_v19, %v2087_v62  ;;  %v5443_v60 = vld [vmem:[%s9616_s14 + $0xe0] sm:$0xf] }
 0x3b1   :  { %v1807_v42 = vpop.f32.mrf.mxu3  ;;  %3806 = vmatpush.bf16.msra.mxu3 %v5384_v0  ;;  %v2094_v0 = vmax.f32 %v7559_v38, 0.0 }
 0x3b2   :  { %v1808_v13 = vadd.f32 %v1807_v42, %v6871_v59  ;;  %v1976_v37 = vpop.f32.mrf.mxu2  ;;  %v5805_v42 = vld [vmem:[%s9616_s14 + $0xe4] sm:$0xf] }
 0x3b3   :  { %v1471_v36 = vpop.f32.mrf.mxu0 }
 0x3b4   :  { %v7699_v10 = vadd.f32 %v1976_v37, %v1808_v13  ;;  %v1472_v11 = vadd.f32 %v1471_v36, %v6866_v58  ;;  %v1640_v40 = vpop.f32.mrf.mxu1  ;;  %v5445_v13 = vld [vmem:[%s9616_s14 + $0xe8] sm:$0xf0] }
 0x3b6   :  { %v7703_v17 = vadd.f32 %v1640_v40, %v1472_v11  ;;  %v5448_v11 = vor.u32 %v5805_v42, %v5445_v13 }
 0x3b8   :  { %3975 = vmatpush.bf16.msrb.mxu2 %v5448_v11 }
 0x3b9   :  { %v1809_v14 = vpop.f32.mrf.mxu3 }
 0x3ba   :  { %v1810_v39 = vadd.f32 %v1809_v14, %v6871_v59  ;;  %v1978_v43 = vpop.f32.mrf.mxu2 }
 0x3bb   :  { %v1474_v31 = vpop.f32.mrf.mxu0 }
 0x3bc   :  { %v7710_v34 = vadd.f32 %v1978_v43, %v1810_v39  ;;  %v1475_v35 = vadd.f32 %v1474_v31, %v6866_v58  ;;  %v1643_v20 = vpop.f32.mrf.mxu1  ;;  %v2093_v39 = vmax.f32 %v7549_v29, 0.0  ;;  %v5790_v31 = vld [vmem:[%s9616_s14 + $0x64] sm:$0xf0] }
 0x3bd   :  { %v5806_v29 = vld [vmem:[%s9616_s14 + $0xe4] sm:$0xf0] }
 0x3be   :  { %v7714_v55 = vadd.f32 %v1643_v20, %v1475_v35  ;;  %2419 = vmatmul.bf16.gmra.mxu0 %v9757_v45  ;;  %2757 = vmatmul.bf16.gmra.mxu3 %v9757_v45  ;;  %v2091_v35 = vmax.f32 %v7532_v15, 0.0  ;;  %v5380_v20 = vor.u32 %v5790_v31, %v5379_v52 }
 0x3bf   :  { %2588 = vmatmul.bf16.gmra.mxu1 %v9758_v33  ;;  %2926 = vmatmul.bf16.gmra.mxu2 %v9758_v33  ;;  %v5444_v33 = vor.u32 %v5806_v29, %v5443_v60  ;;  %v2097_v60 = vmax.f32 %v7580_v27, 0.0  ;;  %v2096_v27 = vmax.f32 %v7572_v25, 0.0 }
 0x3c0   :  { %3468 = vmatpush.bf16.msra.mxu0 %v5380_v20  ;;  %v7754_v57 = vpack.c.bf16 %v2093_v39, %v2091_v35 }
 0x3c1   :  { %v1812_v5 = vpop.f32.mrf.mxu3  ;;  %3637 = vmatpush.bf16.msra.mxu1 %v5444_v33 }
 0x3c2   :  { %v1813_v37 = vadd.f32 %v1812_v5, %v6871_v59  ;;  %v1981_v36 = vpop.f32.mrf.mxu2 }
 0x3c3   :  { %v1476_v40 = vpop.f32.mrf.mxu0 }
 0x3c4   :  { %v7735_v19 = vadd.f32 %v1981_v36, %v1813_v37  ;;  %v1477_v62 = vadd.f32 %v1476_v40, %v6866_v58  ;;  %v1645_v14 = vpop.f32.mrf.mxu1  ;;  %v2092_v36 = vmax.f32 %v7541_v4, 0.0  ;;  %v9759_v40 = vld [vmem:[#allocation11_spill] sm:$0xff] }
 0x3c6   :  { %v7739_v43 = vadd.f32 %v1645_v14, %v1477_v62  ;;  %v9760_v62 = vld [vmem:[#allocation5_spill] sm:$0xff]  ;;  %v7768_v38 = vpack.c.bf16 %v2094_v0, %v2092_v36 }
 0x3c9   :  { %v1814_v45 = vpop.f32.mrf.mxu3 }
 0x3ca   :  { %v1815_v18 = vadd.f32 %v1814_v45, %v6871_v59  ;;  %v1983_v5 = vpop.f32.mrf.mxu2  ;;  %v2095_v45 = vmax.f32 %v7563_v32, 0.0 }
 0x3cb   :  { %v1479_v15 = vpop.f32.mrf.mxu0 }
 0x3cc   :  { %v7758_v42 = vadd.f32 %v1983_v5, %v1815_v18  ;;  %v1480_v13 = vadd.f32 %v1479_v15, %v6866_v58  ;;  %v1648_v37 = vpop.f32.mrf.mxu1  ;;  %v7778_v18 = vpack.c.bf16 %v2097_v60, %v2095_v45  ;;  %v2098_v15 = vmax.f32 %v7590_v30, 0.0 }
 0x3ce   :  { %v7762_v11 = vadd.f32 %v1648_v37, %v1480_v13  ;;  %2424 = vmatmul.bf16.gmra.mxu0 %v9759_v40  ;;  %2762 = vmatmul.bf16.gmra.mxu3 %v9759_v40  ;;  %v7792_v32 = vpack.c.bf16 %v2098_v15, %v2096_v27 }
 0x3cf   :  { %2593 = vmatmul.bf16.gmra.mxu1 %v9760_v62  ;;  %2931 = vmatmul.bf16.gmra.mxu2 %v9760_v62 }
 0x3d1   :  { %v1817_v14 = vpop.f32.mrf.mxu3 }
 0x3d2   :  { %v1818_v39 = vadd.f32 %v1817_v14, %v6871_v59  ;;  %v1986_v52 = vpop.f32.mrf.mxu2 }
 0x3d3   :  { %v1481_v31 = vpop.f32.mrf.mxu0 }
 0x3d4   :  { %v7771_v35 = vadd.f32 %v1986_v52, %v1818_v39  ;;  %v1482_v4 = vadd.f32 %v1481_v31, %v6866_v58  ;;  %v1650_v20 = vpop.f32.mrf.mxu1 }
 0x3d6   :  { %v7775_v29 = vadd.f32 %v1650_v20, %v1482_v4  ;;  %v2101_v20 = vmax.f32 %v7623_v2, 0.0  ;;  %v2100_v2 = vmax.f32 %v7615_v56, 0.0 }
 0x3d9   :  { %v1819_v33 = vpop.f32.mrf.mxu3 }
 0x3da   :  { %v1820_v5 = vadd.f32 %v1819_v33, %v6871_v59  ;;  %v1988_v0 = vpop.f32.mrf.mxu2 }
 0x3db   :  { %v1484_v13 = vpop.f32.mrf.mxu0 }
 0x3dc   :  { %v7782_v37 = vadd.f32 %v1988_v0, %v1820_v5  ;;  %v1485_v36 = vadd.f32 %v1484_v13, %v6866_v58  ;;  %v1653_v40 = vpop.f32.mrf.mxu1  ;;  %v2102_v0 = vmax.f32 %v7642_v12, 0.0 }
 0x3de   :  { %v7786_v62 = vadd.f32 %v1653_v40, %v1485_v36  ;;  %2429 = vmatmul.bf16.gmra.mxu0 %v7194_v6  ;;  %2767 = vmatmul.bf16.gmra.mxu3 %v7194_v6  ;;  %v2099_v6 = vmax.f32 %v7594_v49, 0.0  ;;  %v9762_v49 = vld [vmem:[#allocation6_spill] sm:$0xff] }
 0x3df   :  { %2598 = vmatmul.bf16.gmra.mxu1 %v7204_v16  ;;  %2936 = vmatmul.bf16.gmra.mxu2 %v7204_v16 }
 0x3e0   :  { %v7802_v16 = vpack.c.bf16 %v2101_v20, %v2099_v6  ;;  %v2105_v6 = vmax.f32 %v7655_v63, 0.0  ;;  %v2104_v63 = vmax.f32 %v7651_v3, 0.0  ;;  %v5373_v3 = vld [vmem:[%s9616_s14 + $0x58] sm:$0xf0] }
 0x3e1   :  { %v1822_v30 = vpop.f32.mrf.mxu3 }
 0x3e2   :  { %v1823_v14 = vadd.f32 %v1822_v30, %v6871_v59  ;;  %v1991_v39 = vpop.f32.mrf.mxu2  ;;  %v9761_v30 = vld [vmem:[#allocation7_spill] sm:$0xff] }
 0x3e3   :  { %v1486_v52 = vpop.f32.mrf.mxu0 }
 0x3e4   :  { %v7795_v31 = vadd.f32 %v1991_v39, %v1823_v14  ;;  %v1487_v25 = vadd.f32 %v1486_v52, %v6866_v58  ;;  %v1655_v4 = vpop.f32.mrf.mxu1  ;;  %v7816_v14 = vpack.c.bf16 %v2102_v0, %v2100_v2 }
 0x3e6   :  { %v7799_v60 = vadd.f32 %v1655_v4, %v1487_v25 }
 0x3e9   :  { %v1824_v45 = vpop.f32.mrf.mxu3 }
 0x3ea   :  { %v1825_v33 = vadd.f32 %v1824_v45, %v6871_v59  ;;  %v1993_v5 = vpop.f32.mrf.mxu2 }
 0x3eb   :  { %v1489_v15 = vpop.f32.mrf.mxu0 }
 0x3ec   :  { %v7806_v13 = vadd.f32 %v1993_v5, %v1825_v33  ;;  %v1490_v36 = vadd.f32 %v1489_v15, %v6866_v58  ;;  %v1658_v40 = vpop.f32.mrf.mxu1  ;;  %v2103_v33 = vmax.f32 %v7646_v54, 0.0  ;;  %v9764_v54 = vld [vmem:[#allocation13_spill] sm:$0xff] }
 0x3ee   :  { %v7810_v27 = vadd.f32 %v1658_v40, %v1490_v36  ;;  %2434 = vmatmul.bf16.gmra.mxu0 %v9761_v30  ;;  %2772 = vmatmul.bf16.gmra.mxu3 %v9761_v30  ;;  %v7826_v15 = vpack.c.bf16 %v2105_v6, %v2103_v33  ;;  %v2106_v40 = vmax.f32 %v7662_v46, 0.0  ;;  %v5787_v46 = vld [vmem:[%s9616_s14 + $0x54] sm:$0xf]  ;;  %v5437_v33 = vld [vmem:[%s9616_s14 + $0xd8] sm:$0xf0] }
 0x3ef   :  { %2603 = vmatmul.bf16.gmra.mxu1 %v9762_v49  ;;  %2941 = vmatmul.bf16.gmra.mxu2 %v9762_v49  ;;  %v5803_v6 = vld [vmem:[%s9616_s14 + $0xd4] sm:$0xf] }
 0x3f1   :  { %v1827_v12 = vpop.f32.mrf.mxu3 }
 0x3f2   :  { %v1828_v39 = vadd.f32 %v1827_v12, %v6871_v59  ;;  %v1996_v52 = vpop.f32.mrf.mxu2 }
 0x3f3   :  { %v1491_v25 = vpop.f32.mrf.mxu0 }
 0x3f4   :  { %v7819_v4 = vadd.f32 %v1996_v52, %v1828_v39  ;;  %v1492_v56 = vadd.f32 %v1491_v25, %v6866_v58  ;;  %v1660_v20 = vpop.f32.mrf.mxu1  ;;  %v9763_v52 = vld [vmem:[#allocation8_spill] sm:$0xff]  ;;  %v7840_v25 = vpack.c.bf16 %v2106_v40, %v2104_v63  ;;  %v2109_v63 = vmax.f32 %v7679_v41, 0.0 }
 0x3f6   :  { %v7823_v45 = vadd.f32 %v1660_v20, %v1492_v56  ;;  %9765 = vst [vmem:[#allocation9_spill] sm:$0xff] %v7840_v25  ;;  %v5376_v20 = vor.u32 %v5787_v46, %v5373_v3  ;;  %v5788_v46 = vld [vmem:[%s9616_s14 + $0x54] sm:$0xf0]  ;;  %v2107_v3 = vmax.f32 %v7666_v22, 0.0 }
 0x3f8   :  { %3807 = vmatpush.bf16.msra.mxu3 %v5376_v20 }
 0x3f9   :  { %v1829_v5 = vpop.f32.mrf.mxu3 }
 0x3fa   :  { %v1830_v0 = vadd.f32 %v1829_v5, %v6871_v59  ;;  %v1998_v36 = vpop.f32.mrf.mxu2 }
 0x3fb   :  { %v1494_v2 = vpop.f32.mrf.mxu0 }
 0x3fc   :  { %v7830_v30 = vadd.f32 %v1998_v36, %v1830_v0  ;;  %v1495_v49 = vadd.f32 %v1494_v2, %v6866_v58  ;;  %v1663_v12 = vpop.f32.mrf.mxu1  ;;  %v5440_v36 = vor.u32 %v5803_v6, %v5437_v33  ;;  %v7868_v6 = vpack.c.bf16 %v2109_v63, %v2107_v3  ;;  %v9767_v3 = vld [vmem:[#allocation14_spill] sm:$0xff] }
 0x3fe   :  { %v7834_v39 = vadd.f32 %v1663_v12, %v1495_v49  ;;  %2439 = vmatmul.bf16.gmra.mxu0 %v9763_v52  ;;  %2777 = vmatmul.bf16.gmra.mxu3 %v9763_v52  ;;  %9766 = vst [vmem:[#allocation10_spill] sm:$0xff] %v7868_v6 }
 0x3ff   :  { %2608 = vmatmul.bf16.gmra.mxu1 %v9764_v54  ;;  %2946 = vmatmul.bf16.gmra.mxu2 %v9764_v54  ;;  %v5371_v54 = vld [vmem:[%s9616_s14 + $0x50] sm:$0xf] }
 0x400   :  { %3976 = vmatpush.bf16.msrb.mxu2 %v5440_v36  ;;  %v2110_v36 = vmax.f32 %v7686_v48, 0.0 }
 0x401   :  { %v1832_v56 = vpop.f32.mrf.mxu3 }
 0x402   :  { %v1833_v5 = vadd.f32 %v1832_v56, %v6871_v59  ;;  %v2001_v0 = vpop.f32.mrf.mxu2  ;;  %v5372_v56 = vor.u32 %v5788_v46, %v5371_v54  ;;  %v2108_v54 = vmax.f32 %v7675_v44, 0.0 }
 0x403   :  { %v1496_v40 = vpop.f32.mrf.mxu0 }
 0x404   :  { %v7855_v2 = vadd.f32 %v2001_v0, %v1833_v5  ;;  %v1497_v49 = vadd.f32 %v1496_v40, %v6866_v58  ;;  %v1665_v12 = vpop.f32.mrf.mxu1  ;;  %3469 = vmatpush.bf16.msra.mxu0 %v5372_v56  ;;  %v5435_v5 = vld [vmem:[%s9616_s14 + $0xd0] sm:$0xf]  ;;  %v5804_v0 = vld [vmem:[%s9616_s14 + $0xd4] sm:$0xf0]  ;;  %v7888_v48 = vpack.c.bf16 %v2110_v36, %v2108_v54  ;;  %v2111_v36 = vmax.f32 %v7690_v28, 0.0 }
 0x405   :  { %v5436_v22 = vor.u32 %v5804_v0, %v5435_v5  ;;  %v9768_v56 = vld [vmem:[#allocation15_spill] sm:$0xff]  ;;  %v9771_v28 = vld [vmem:[#allocation16_spill] sm:$0xff] }
 0x406   :  { %v7859_v52 = vadd.f32 %v1665_v12, %v1497_v49  ;;  %9769 = vst [vmem:[#allocation12_spill] sm:$0xff] %v7888_v48 }
 0x407   :  { %3638 = vmatpush.bf16.msra.mxu1 %v5436_v22  ;;  %v2113_v22 = vmax.f32 %v7703_v17, 0.0 }
 0x409   :  { %v1834_v20 = vpop.f32.mrf.mxu3 }
 0x40a   :  { %v1835_v33 = vadd.f32 %v1834_v20, %v6871_v59  ;;  %v2003_v41 = vpop.f32.mrf.mxu2 }
 0x40b   :  { %v1499_v40 = vpop.f32.mrf.mxu0 }
 0x40c   :  { %v7878_v49 = vadd.f32 %v2003_v41, %v1835_v33  ;;  %v1500_v12 = vadd.f32 %v1499_v40, %v6866_v58  ;;  %v1668_v63 = vpop.f32.mrf.mxu1 }
 0x40e   :  { %v7882_v46 = vadd.f32 %v1668_v63, %v1500_v12  ;;  %2444 = vmatmul.bf16.gmra.mxu0 %v9767_v3  ;;  %2782 = vmatmul.bf16.gmra.mxu3 %v9767_v3  ;;  %v2235_v12 = vld [vmem:[%s9615_s13] sm:$0x3] }
 0x40f   :  { %2613 = vmatmul.bf16.gmra.mxu1 %v9768_v56  ;;  %2951 = vmatmul.bf16.gmra.mxu2 %v9768_v56  ;;  %v7901_v54 = vperm.slane %v2235_v12, 0  ;;  %v7903_v56 = vpack.c.bf16 %v2113_v22, %v2111_v36  ;;  %v7913_v22 = vperm.slane %v2235_v12, 1  ;;  %v9772_v36 = vld [vmem:[#allocation17_spill] sm:$0xff]  ;;  %v2115_v12 = vmax.f32 %v7714_v55, 0.0 }
 0x411   :  { %v1837_v20 = vpop.f32.mrf.mxu3  ;;  %9770 = vst [vmem:[#allocation11_spill] sm:$0xff] %v7903_v56 }
 0x412   :  { %v1838_v33 = vadd.f32 %v1837_v20, %v6871_v59  ;;  %v2006_v41 = vpop.f32.mrf.mxu2 }
 0x413   :  { %v1501_v5 = vpop.f32.mrf.mxu0 }
 0x414   :  { %v7891_v0 = vadd.f32 %v2006_v41, %v1838_v33  ;;  %v1502_v44 = vadd.f32 %v1501_v5, %v6866_v58  ;;  %v1670_v40 = vpop.f32.mrf.mxu1  ;;  %v2114_v58 = vmax.f32 %v7710_v34, 0.0 }
 0x416   :  { %v7898_v63 = vadd.f32 %v1670_v40, %v1502_v44  ;;  %v2112_v44 = vmax.f32 %v7699_v10, 0.0 }
 0x419   :  { %v1839_v3 = vpop.f32.mrf.mxu3 }
 0x41a   :  { %v1840_v20 = vadd.f32 %v1839_v3, %v6871_v59  ;;  %v2008_v33 = vpop.f32.mrf.mxu2  ;;  %v7917_v59 = vpack.c.bf16 %v2114_v58, %v2112_v44 }
 0x41b   :  { %v2410_v41 = vpop.f32.mrf.mxu0 }
 0x41c   :  { %v7907_v17 = vadd.f32 %v2008_v33, %v1840_v20  ;;  %v2411_v5 = vadd.f32 %v2410_v41, %v7901_v54  ;;  %v2579_v48 = vpop.f32.mrf.mxu1  ;;  %9773 = vst [vmem:[#allocation5_spill] sm:$0xff] %v7917_v59 }
 0x41e   :  { %v2580_v40 = vadd.f32 %v2579_v48, %v2411_v5  ;;  %2449 = vmatmul.bf16.gmra.mxu0 %v9771_v28  ;;  %2787 = vmatmul.bf16.gmra.mxu3 %v9771_v28  ;;  %v2117_v5 = vmax.f32 %v7739_v43, 0.0 }
 0x41f   :  { %2618 = vmatmul.bf16.gmra.mxu1 %v9772_v36  ;;  %2956 = vmatmul.bf16.gmra.mxu2 %v9772_v36 }
 0x420   :  { %v3077_v56 = vmax.f32 %v2580_v40, 0.0  ;;  %v7923_v36 = vpack.c.bf16 %v2117_v5, %v2115_v12  ;;  %v9775_v5 = vld [vmem:[#allocation18_spill] sm:$0xff] }
 0x421   :  { %v2748_v34 = vpop.f32.mrf.mxu3 }
 0x422   :  { %v2749_v3 = vadd.f32 %v2748_v34, %v7913_v22  ;;  %v2917_v20 = vpop.f32.mrf.mxu2 }
 0x423   :  { %v2412_v33 = vpop.f32.mrf.mxu0 }
 0x424   :  { %v2918_v41 = vadd.f32 %v2917_v20, %v2749_v3  ;;  %v2413_v10 = vadd.f32 %v2412_v33, %v7901_v54  ;;  %v2581_v48 = vpop.f32.mrf.mxu1  ;;  %v2118_v3 = vmax.f32 %v7758_v42, 0.0 }
 0x426   :  { %v2582_v28 = vadd.f32 %v2581_v48, %v2413_v10  ;;  %v2116_v10 = vmax.f32 %v7735_v19, 0.0  ;;  %v3078_v55 = vmax.f32 %v2918_v41, 0.0 }
 0x428   :  { %v3079_v6 = vmax.f32 %v2582_v28, 0.0  ;;  %v7937_v42 = vpack.c.bf16 %v2118_v3, %v2116_v10 }
 0x429   :  { %v2750_v25 = vpop.f32.mrf.mxu3 }
 0x42a   :  { %v7925_v58 = vpack.c.bf16 %v3079_v6, %v3077_v56  ;;  %v2751_v44 = vadd.f32 %v2750_v25, %v7913_v22  ;;  %v2919_v34 = vpop.f32.mrf.mxu2  ;;  %v9776_v6 = vld [vmem:[#allocation19_spill] sm:$0xff] }
 0x42b   :  { %v2415_v20 = vpop.f32.mrf.mxu0 }
 0x42c   :  { %9774 = vst [vmem:[#allocation7_spill] sm:$0xff] %v7925_v58  ;;  %v2920_v33 = vadd.f32 %v2919_v34, %v2751_v44  ;;  %v2416_v59 = vadd.f32 %v2415_v20, %v7901_v54  ;;  %v2584_v43 = vpop.f32.mrf.mxu1  ;;  %v2121_v34 = vmax.f32 %v7775_v29, 0.0  ;;  %v2120_v29 = vmax.f32 %v7771_v35, 0.0  ;;  %v5365_v35 = vld [vmem:[%s9616_s14 + $0x48] sm:$0xf0] }
 0x42e   :  { %v3080_v40 = vmax.f32 %v2920_v33, 0.0  ;;  %v7931_v48 = vadd.f32 %v2584_v43, %v2416_v59  ;;  %2454 = vmatmul.bf16.gmra.mxu0 %v9775_v5  ;;  %2792 = vmatmul.bf16.gmra.mxu3 %v9775_v5  ;;  %v2119_v33 = vmax.f32 %v7762_v11, 0.0  ;;  %v9779_v11 = vld [vmem:[#allocation21_spill] sm:$0xff] }
 0x42f   :  { %2623 = vmatmul.bf16.gmra.mxu1 %v9776_v6  ;;  %2961 = vmatmul.bf16.gmra.mxu2 %v9776_v6 }
 0x430   :  { %v7939_v25 = vpack.c.bf16 %v3080_v40, %v3078_v55  ;;  %v7949_v43 = vpack.c.bf16 %v2121_v34, %v2119_v33  ;;  %v2122_v40 = vmax.f32 %v7782_v37, 0.0  ;;  %v5785_v37 = vld [vmem:[%s9616_s14 + $0x44] sm:$0xf] }
 0x431   :  { %v2753_v56 = vpop.f32.mrf.mxu3  ;;  %v5368_v34 = vor.u32 %v5785_v37, %v5365_v35  ;;  %v5801_v33 = vld [vmem:[%s9616_s14 + $0xc4] sm:$0xf]  ;;  %v5363_v37 = vld [vmem:[%s9616_s14 + $0x40] sm:$0xf]  ;;  %v5786_v35 = vld [vmem:[%s9616_s14 + $0x44] sm:$0xf0] }
 0x432   :  { %9777 = vst [vmem:[#allocation6_spill] sm:$0xff] %v7939_v25  ;;  %v2754_v28 = vadd.f32 %v2753_v56, %v7913_v22  ;;  %v2922_v19 = vpop.f32.mrf.mxu2  ;;  %v2124_v25 = vmax.f32 %v7795_v31, 0.0 }
 0x433   :  { %v2417_v41 = vpop.f32.mrf.mxu0  ;;  %3808 = vmatpush.bf16.msra.mxu3 %v5368_v34  ;;  %v5364_v34 = vor.u32 %v5786_v35, %v5363_v37 }
 0x434   :  { %v7942_v12 = vadd.f32 %v2922_v19, %v2754_v28  ;;  %v2418_v59 = vadd.f32 %v2417_v41, %v7901_v54  ;;  %v2586_v44 = vpop.f32.mrf.mxu1  ;;  %v9778_v41 = vld [vmem:[#allocation20_spill] sm:$0xff] }
 0x435   :  { %3470 = vmatpush.bf16.msra.mxu0 %v5364_v34  ;;  %v9780_v34 = vld [vmem:[#allocation22_spill] sm:$0xff] }
 0x436   :  { %v7946_v20 = vadd.f32 %v2586_v44, %v2418_v59  ;;  %v7963_v59 = vpack.c.bf16 %v2122_v40, %v2120_v29 }
 0x439   :  { %v2755_v3 = vpop.f32.mrf.mxu3 }
 0x43a   :  { %v2756_v10 = vadd.f32 %v2755_v3, %v7913_v22  ;;  %v2924_v55 = vpop.f32.mrf.mxu2  ;;  %v5429_v3 = vld [vmem:[%s9616_s14 + $0xc8] sm:$0xf0] }
 0x43b   :  { %v2420_v5 = vpop.f32.mrf.mxu0  ;;  %v5432_v40 = vor.u32 %v5801_v33, %v5429_v3  ;;  %v5427_v33 = vld [vmem:[%s9616_s14 + $0xc0] sm:$0xf] }
 0x43c   :  { %v7953_v6 = vadd.f32 %v2924_v55, %v2756_v10  ;;  %v2421_v56 = vadd.f32 %v2420_v5, %v7901_v54  ;;  %v2589_v28 = vpop.f32.mrf.mxu1 }
 0x43d   :  { %3977 = vmatpush.bf16.msrb.mxu2 %v5432_v40 }
 0x43e   :  { %v7957_v19 = vadd.f32 %v2589_v28, %v2421_v56  ;;  %2459 = vmatmul.bf16.gmra.mxu0 %v9778_v41  ;;  %2797 = vmatmul.bf16.gmra.mxu3 %v9778_v41  ;;  %v2125_v41 = vmax.f32 %v7799_v60, 0.0  ;;  %v5802_v60 = vld [vmem:[%s9616_s14 + $0xc4] sm:$0xf0] }
 0x43f   :  { %2628 = vmatmul.bf16.gmra.mxu1 %v9779_v11  ;;  %2966 = vmatmul.bf16.gmra.mxu2 %v9779_v11 }
 0x441   :  { %v2758_v44 = vpop.f32.mrf.mxu3 }
 0x442   :  { %v2759_v10 = vadd.f32 %v2758_v44, %v7913_v22  ;;  %v2927_v55 = vpop.f32.mrf.mxu2  ;;  %v2123_v44 = vmax.f32 %v7786_v62, 0.0 }
 0x443   :  { %v2422_v5 = vpop.f32.mrf.mxu0 }
 0x444   :  { %v7978_v56 = vadd.f32 %v2927_v55, %v2759_v10  ;;  %v2423_v28 = vadd.f32 %v2422_v5, %v7901_v54  ;;  %v2591_v29 = vpop.f32.mrf.mxu1  ;;  %v5428_v10 = vor.u32 %v5802_v60, %v5427_v33  ;;  %v7997_v55 = vpack.c.bf16 %v2125_v41, %v2123_v44  ;;  %v9781_v41 = vld [vmem:[#allocation23_spill] sm:$0xff] }
 0x446   :  { %v7982_v11 = vadd.f32 %v2591_v29, %v2423_v28  ;;  %v2126_v28 = vmax.f32 %v7806_v13, 0.0  ;;  %3639 = vmatpush.bf16.msra.mxu1 %v5428_v10 }
 0x448   :  { %v8011_v13 = vpack.c.bf16 %v2126_v28, %v2124_v25 }
 0x449   :  { %v2760_v3 = vpop.f32.mrf.mxu3 }
 0x44a   :  { %v2761_v40 = vadd.f32 %v2760_v3, %v7913_v22  ;;  %v2929_v5 = vpop.f32.mrf.mxu2 }
 0x44b   :  { %v2425_v62 = vpop.f32.mrf.mxu0 }
 0x44c   :  { %v8001_v29 = vadd.f32 %v2929_v5, %v2761_v40  ;;  %v2426_v37 = vadd.f32 %v2425_v62, %v7901_v54  ;;  %v2594_v35 = vpop.f32.mrf.mxu1  ;;  %v2129_v5 = vmax.f32 %v7823_v45, 0.0  ;;  %v2128_v45 = vmax.f32 %v7819_v4, 0.0 }
 0x44e   :  { %v8005_v58 = vadd.f32 %v2594_v35, %v2426_v37  ;;  %2464 = vmatmul.bf16.gmra.mxu0 %v9780_v34  ;;  %2802 = vmatmul.bf16.gmra.mxu3 %v9780_v34  ;;  %v2127_v37 = vmax.f32 %v7810_v27, 0.0 }
 0x44f   :  { %2633 = vmatmul.bf16.gmra.mxu1 %v9781_v41  ;;  %2971 = vmatmul.bf16.gmra.mxu2 %v9781_v41  ;;  %v2130_v41 = vmax.f32 %v7830_v30, 0.0 }
 0x450   :  { %v8021_v34 = vpack.c.bf16 %v2129_v5, %v2127_v37 }
 0x451   :  { %v2763_v44 = vpop.f32.mrf.mxu3  ;;  %v8035_v27 = vpack.c.bf16 %v2130_v41, %v2128_v45  ;;  %v2134_v45 = vmax.f32 %v7878_v49, 0.0 }
 0x452   :  { %v2764_v33 = vadd.f32 %v2763_v44, %v7913_v22  ;;  %v2932_v60 = vpop.f32.mrf.mxu2 }
 0x453   :  { %v2427_v3 = vpop.f32.mrf.mxu0  ;;  %9782 = vst [vmem:[#allocation8_spill] sm:$0xff] %v8035_v27 }
 0x454   :  { %v8014_v10 = vadd.f32 %v2932_v60, %v2764_v33  ;;  %v2428_v31 = vadd.f32 %v2427_v3, %v7901_v54  ;;  %v2596_v40 = vpop.f32.mrf.mxu1 }
 0x456   :  { %v8018_v62 = vadd.f32 %v2596_v40, %v2428_v31 }
 0x459   :  { %v2765_v35 = vpop.f32.mrf.mxu3 }
 0x45a   :  { %v2766_v25 = vadd.f32 %v2765_v35, %v7913_v22  ;;  %v2934_v28 = vpop.f32.mrf.mxu2 }
 0x45b   :  { %v2430_v44 = vpop.f32.mrf.mxu0 }
 0x45c   :  { %v8025_v33 = vadd.f32 %v2934_v28, %v2766_v25  ;;  %v2431_v60 = vadd.f32 %v2430_v44, %v7901_v54  ;;  %v2599_v3 = vpop.f32.mrf.mxu1  ;;  %v2133_v28 = vmax.f32 %v7859_v52, 0.0  ;;  %v2132_v52 = vmax.f32 %v7855_v2, 0.0 }
 0x45e   :  { %v8029_v31 = vadd.f32 %v2599_v3, %v2431_v60  ;;  %2469 = vmatmul.bf16.gmra.mxu0 %v7493_v8  ;;  %2807 = vmatmul.bf16.gmra.mxu3 %v7493_v8  ;;  %v2131_v8 = vmax.f32 %v7834_v39, 0.0  ;;  %v9785_v39 = vld [vmem:[#allocation25_spill] sm:$0xff] }
 0x45f   :  { %2638 = vmatmul.bf16.gmra.mxu1 %v7503_v7  ;;  %2976 = vmatmul.bf16.gmra.mxu2 %v7503_v7 }
 0x460   :  { %v8045_v7 = vpack.c.bf16 %v2133_v28, %v2131_v8  ;;  %v8059_v28 = vpack.c.bf16 %v2134_v45, %v2132_v52 }
 0x461   :  { %v2768_v30 = vpop.f32.mrf.mxu3 }
 0x462   :  { %v2769_v40 = vadd.f32 %v2768_v30, %v7913_v22  ;;  %v2937_v5 = vpop.f32.mrf.mxu2  ;;  %9783 = vst [vmem:[#allocation13_spill] sm:$0xff] %v8045_v7 }
 0x463   :  { %v2432_v37 = vpop.f32.mrf.mxu0  ;;  %9786 = vst [vmem:[#allocation14_spill] sm:$0xff] %v8059_v28 }
 0x464   :  { %v8038_v35 = vadd.f32 %v2937_v5, %v2769_v40  ;;  %v2433_v4 = vadd.f32 %v2432_v37, %v7901_v54  ;;  %v2601_v25 = vpop.f32.mrf.mxu1 }
 0x466   :  { %v8042_v44 = vadd.f32 %v2601_v25, %v2433_v4  ;;  %v9784_v25 = vld [vmem:[#allocation24_spill] sm:$0xff] }
 0x469   :  { %v2770_v60 = vpop.f32.mrf.mxu3 }
 0x46a   :  { %v2771_v41 = vadd.f32 %v2770_v60, %v7913_v22  ;;  %v2939_v3 = vpop.f32.mrf.mxu2 }
 0x46b   :  { %v2435_v30 = vpop.f32.mrf.mxu0 }
 0x46c   :  { %v8049_v40 = vadd.f32 %v2939_v3, %v2771_v41  ;;  %v2436_v5 = vadd.f32 %v2435_v30, %v7901_v54  ;;  %v2604_v37 = vpop.f32.mrf.mxu1 }
 0x46e   :  { %v8053_v4 = vadd.f32 %v2604_v37, %v2436_v5  ;;  %2474 = vmatmul.bf16.gmra.mxu0 %v9784_v25  ;;  %2812 = vmatmul.bf16.gmra.mxu3 %v9784_v25  ;;  %v2137_v5 = vmax.f32 %v7898_v63, 0.0  ;;  %v2135_v25 = vmax.f32 %v7882_v46, 0.0  ;;  %v2136_v63 = vmax.f32 %v7891_v0, 0.0  ;;  %v9788_v46 = vld [vmem:[#allocation26_spill] sm:$0xff]  ;;  %v5357_v0 = vld [vmem:[%s9616_s14 + $0x38] sm:$0xf0] }
 0x46f   :  { %2643 = vmatmul.bf16.gmra.mxu1 %v9785_v39  ;;  %2981 = vmatmul.bf16.gmra.mxu2 %v9785_v39 }
 0x470   :  { %v8069_v39 = vpack.c.bf16 %v2137_v5, %v2135_v25  ;;  %v5421_v5 = vld [vmem:[%s9616_s14 + $0xb8] sm:$0xf0] }
 0x471   :  { %v2773_v49 = vpop.f32.mrf.mxu3 }
 0x472   :  { %v2774_v8 = vadd.f32 %v2773_v49, %v7913_v22  ;;  %v2942_v60 = vpop.f32.mrf.mxu2  ;;  %9787 = vst [vmem:[#allocation15_spill] sm:$0xff] %v8069_v39  ;;  %v2138_v49 = vmax.f32 %v7907_v17, 0.0  ;;  %v5783_v17 = vld [vmem:[%s9616_s14 + $0x34] sm:$0xf] }
 0x473   :  { %v2437_v41 = vpop.f32.mrf.mxu0 }
 0x474   :  { %v8062_v3 = vadd.f32 %v2942_v60, %v2774_v8  ;;  %v2438_v2 = vadd.f32 %v2437_v41, %v7901_v54  ;;  %v2606_v30 = vpop.f32.mrf.mxu1 }
 0x476   :  { %v8066_v37 = vadd.f32 %v2606_v30, %v2438_v2  ;;  %v5360_v30 = vor.u32 %v5783_v17, %v5357_v0  ;;  %v5355_v17 = vld [vmem:[%s9616_s14 + $0x30] sm:$0xf]  ;;  %v5784_v0 = vld [vmem:[%s9616_s14 + $0x34] sm:$0xf0] }
 0x478   :  { %3809 = vmatpush.bf16.msra.mxu3 %v5360_v30  ;;  %v5419_v30 = vld [vmem:[%s9616_s14 + $0xb0] sm:$0xf] }
 0x479   :  { %v2775_v7 = vpop.f32.mrf.mxu3 }
 0x47a   :  { %v2776_v45 = vadd.f32 %v2775_v7, %v7913_v22  ;;  %v2944_v52 = vpop.f32.mrf.mxu2  ;;  %v8083_v7 = vpack.c.bf16 %v2138_v49, %v2136_v63 }
 0x47b   :  { %v2440_v28 = vpop.f32.mrf.mxu0 }
 0x47c   :  { %v8073_v8 = vadd.f32 %v2944_v52, %v2776_v45  ;;  %v2441_v60 = vadd.f32 %v2440_v28, %v7901_v54  ;;  %v2609_v41 = vpop.f32.mrf.mxu1  ;;  %9789 = vst [vmem:[#allocation16_spill] sm:$0xff] %v8083_v7 }
 0x47e   :  { %v8077_v2 = vadd.f32 %v2609_v41, %v2441_v60  ;;  %2479 = vmatmul.bf16.gmra.mxu0 %v7555_v26  ;;  %2817 = vmatmul.bf16.gmra.mxu3 %v7555_v26  ;;  %v5799_v26 = vld [vmem:[%s9616_s14 + $0xb4] sm:$0xf] }
 0x47f   :  { %2648 = vmatmul.bf16.gmra.mxu1 %v9788_v46  ;;  %2986 = vmatmul.bf16.gmra.mxu2 %v9788_v46  ;;  %v5424_v52 = vor.u32 %v5799_v26, %v5421_v5  ;;  %v5800_v26 = vld [vmem:[%s9616_s14 + $0xb4] sm:$0xf0] }
 0x481   :  { %v2778_v28 = vpop.f32.mrf.mxu3  ;;  %3978 = vmatpush.bf16.msrb.mxu2 %v5424_v52 }
 0x482   :  { %v2779_v25 = vadd.f32 %v2778_v28, %v7913_v22  ;;  %v2947_v45 = vpop.f32.mrf.mxu2  ;;  %v5356_v28 = vor.u32 %v5784_v0, %v5355_v17 }
 0x483   :  { %v2442_v49 = vpop.f32.mrf.mxu0 }
 0x484   :  { %v8098_v60 = vadd.f32 %v2947_v45, %v2779_v25  ;;  %v2443_v41 = vadd.f32 %v2442_v49, %v7901_v54  ;;  %v2611_v63 = vpop.f32.mrf.mxu1  ;;  %3471 = vmatpush.bf16.msra.mxu0 %v5356_v28  ;;  %v5420_v25 = vor.u32 %v5800_v26, %v5419_v30 }
 0x486   :  { %v8101_v46 = vadd.f32 %v2611_v63, %v2443_v41  ;;  %3640 = vmatpush.bf16.msra.mxu1 %v5420_v25 }
 0x489   :  { %v2780_v5 = vpop.f32.mrf.mxu3 }
 0x48a   :  { %v2781_v45 = vadd.f32 %v2780_v5, %v7913_v22  ;;  %v2949_v52 = vpop.f32.mrf.mxu2 }
 0x48b   :  { %v2445_v49 = vpop.f32.mrf.mxu0 }
 0x48c   :  { %v8116_v41 = vadd.f32 %v2949_v52, %v2781_v45  ;;  %v2446_v63 = vadd.f32 %v2445_v49, %v7901_v54  ;;  %v2614_v17 = vpop.f32.mrf.mxu1  ;;  %v3083_v49 = vmax.f32 %v7946_v20, 0.0  ;;  %v3082_v20 = vmax.f32 %v7942_v12, 0.0 }
 0x48e   :  { %v8119_v0 = vadd.f32 %v2614_v17, %v2446_v63  ;;  %2484 = vmatmul.bf16.gmra.mxu0 %v7586_v51  ;;  %2822 = vmatmul.bf16.gmra.mxu3 %v7586_v51  ;;  %v3081_v51 = vmax.f32 %v7931_v48, 0.0 }
 0x48f   :  { %2653 = vmatmul.bf16.gmra.mxu1 %v7596_v1  ;;  %2991 = vmatmul.bf16.gmra.mxu2 %v7596_v1 }
 0x490   :  { %v8133_v7 = vpack.c.bf16 %v3083_v49, %v3081_v51 }
 0x491   :  { %v2783_v28 = vpop.f32.mrf.mxu3 }
 0x492   :  { %v2784_v30 = vadd.f32 %v2783_v28, %v7913_v22  ;;  %v2952_v26 = vpop.f32.mrf.mxu2  ;;  %v3084_v28 = vmax.f32 %v7953_v6, 0.0 }
 0x493   :  { %v2447_v5 = vpop.f32.mrf.mxu0 }
 0x494   :  { %v8126_v25 = vadd.f32 %v2952_v26, %v2784_v30  ;;  %v2448_v45 = vadd.f32 %v2447_v5, %v7901_v54  ;;  %v2616_v52 = vpop.f32.mrf.mxu1  ;;  %v8147_v48 = vpack.c.bf16 %v3084_v28, %v3082_v20  ;;  %v3088_v20 = vmax.f32 %v8001_v29, 0.0 }
 0x496   :  { %v8130_v63 = vadd.f32 %v2616_v52, %v2448_v45 }
 0x499   :  { %v2785_v17 = vpop.f32.mrf.mxu3 }
 0x49a   :  { %v2786_v1 = vadd.f32 %v2785_v17, %v7913_v22  ;;  %v2954_v39 = vpop.f32.mrf.mxu2  ;;  %v3087_v17 = vmax.f32 %v7982_v11, 0.0  ;;  %v3086_v11 = vmax.f32 %v7978_v56, 0.0 }
 0x49b   :  { %v2450_v27 = vpop.f32.mrf.mxu0 }
 0x49c   :  { %v8137_v30 = vadd.f32 %v2954_v39, %v2786_v1  ;;  %v2451_v26 = vadd.f32 %v2450_v27, %v7901_v54  ;;  %v2619_v5 = vpop.f32.mrf.mxu1 }
 0x49e   :  { %v8141_v45 = vadd.f32 %v2619_v5, %v2451_v26  ;;  %2489 = vmatmul.bf16.gmra.mxu0 %v7638_v61  ;;  %2827 = vmatmul.bf16.gmra.mxu3 %v7638_v61  ;;  %v3085_v61 = vmax.f32 %v7957_v19, 0.0  ;;  %v8171_v19 = vpack.c.bf16 %v3088_v20, %v3086_v11  ;;  %v3092_v11 = vmax.f32 %v8025_v33, 0.0  ;;  %v5781_v33 = vld [vmem:[%s9616_s14 + $0x24] sm:$0xf] }
 0x49f   :  { %2658 = vmatmul.bf16.gmra.mxu1 %v7648_v24  ;;  %2996 = vmatmul.bf16.gmra.mxu2 %v7648_v24 }
 0x4a0   :  { %v8157_v24 = vpack.c.bf16 %v3087_v17, %v3085_v61 }
 0x4a1   :  { %v2788_v6 = vpop.f32.mrf.mxu3 }
 0x4a2   :  { %v2789_v39 = vadd.f32 %v2788_v6, %v7913_v22  ;;  %v2957_v52 = vpop.f32.mrf.mxu2 }
 0x4a3   :  { %v2452_v27 = vpop.f32.mrf.mxu0 }
 0x4a4   :  { %v8150_v49 = vadd.f32 %v2957_v52, %v2789_v39  ;;  %v2453_v12 = vadd.f32 %v2452_v27, %v7901_v54  ;;  %v2621_v51 = vpop.f32.mrf.mxu1 }
 0x4a6   :  { %v8154_v1 = vadd.f32 %v2621_v51, %v2453_v12 }
 0x4a9   :  { %v2790_v26 = vpop.f32.mrf.mxu3 }
 0x4aa   :  { %v2791_v28 = vadd.f32 %v2790_v26, %v7913_v22  ;;  %v2959_v5 = vpop.f32.mrf.mxu2 }
 0x4ab   :  { %v2455_v6 = vpop.f32.mrf.mxu0 }
 0x4ac   :  { %v8161_v39 = vadd.f32 %v2959_v5, %v2791_v28  ;;  %v2456_v52 = vadd.f32 %v2455_v6, %v7901_v54  ;;  %v2624_v27 = vpop.f32.mrf.mxu1  ;;  %v3091_v5 = vmax.f32 %v8018_v62, 0.0  ;;  %v3090_v62 = vmax.f32 %v8014_v10, 0.0  ;;  %v5349_v10 = vld [vmem:[%s9616_s14 + $0x28] sm:$0xf0] }
 0x4ae   :  { %v8165_v12 = vadd.f32 %v2624_v27, %v2456_v52  ;;  %2494 = vmatmul.bf16.gmra.mxu0 %v7658_v53  ;;  %2832 = vmatmul.bf16.gmra.mxu3 %v7658_v53  ;;  %v3089_v53 = vmax.f32 %v8005_v58, 0.0  ;;  %v8195_v58 = vpack.c.bf16 %v3092_v11, %v3090_v62 }
 0x4af   :  { %2663 = vmatmul.bf16.gmra.mxu1 %v7672_v47  ;;  %3001 = vmatmul.bf16.gmra.mxu2 %v7672_v47 }
 0x4b0   :  { %v8181_v47 = vpack.c.bf16 %v3091_v5, %v3089_v53  ;;  %9791 = vst [vmem:[#allocation18_spill] sm:$0xff] %v8195_v58  ;;  %v5352_v5 = vor.u32 %v5781_v33, %v5349_v10  ;;  %v5347_v33 = vld [vmem:[%s9616_s14 + $0x20] sm:$0xf]  ;;  %v5782_v10 = vld [vmem:[%s9616_s14 + $0x24] sm:$0xf0]  ;;  %v3094_v58 = vmax.f32 %v8038_v35, 0.0 }
 0x4b1   :  { %v2793_v29 = vpop.f32.mrf.mxu3 }
 0x4b2   :  { %v2794_v51 = vadd.f32 %v2793_v29, %v7913_v22  ;;  %v2962_v17 = vpop.f32.mrf.mxu2  ;;  %9790 = vst [vmem:[#allocation17_spill] sm:$0xff] %v8181_v47  ;;  %3810 = vmatpush.bf16.msra.mxu3 %v5352_v5  ;;  %v5348_v5 = vor.u32 %v5782_v10, %v5347_v33 }
 0x4b3   :  { %v2457_v61 = vpop.f32.mrf.mxu0 }
 0x4b4   :  { %v8174_v26 = vadd.f32 %v2962_v17, %v2794_v51  ;;  %v2458_v56 = vadd.f32 %v2457_v61, %v7901_v54  ;;  %v2626_v28 = vpop.f32.mrf.mxu1  ;;  %3472 = vmatpush.bf16.msra.mxu0 %v5348_v5 }
 0x4b6   :  { %v8178_v6 = vadd.f32 %v2626_v28, %v2458_v56 }
 0x4b9   :  { %v2795_v52 = vpop.f32.mrf.mxu3 }
 0x4ba   :  { %v2796_v20 = vadd.f32 %v2795_v52, %v7913_v22  ;;  %v2964_v27 = vpop.f32.mrf.mxu2 }
 0x4bb   :  { %v2460_v29 = vpop.f32.mrf.mxu0 }
 0x4bc   :  { %v8185_v51 = vadd.f32 %v2964_v27, %v2796_v20  ;;  %v2461_v17 = vadd.f32 %v2460_v29, %v7901_v54  ;;  %v2629_v61 = vpop.f32.mrf.mxu1 }
 0x4be   :  { %v8189_v56 = vadd.f32 %v2629_v61, %v2461_v17  ;;  %2499 = vmatmul.bf16.gmra.mxu0 %v7682_v21  ;;  %2837 = vmatmul.bf16.gmra.mxu3 %v7682_v21  ;;  %v5797_v21 = vld [vmem:[%s9616_s14 + $0xa4] sm:$0xf]  ;;  %v3095_v61 = vmax.f32 %v8042_v44, 0.0  ;;  %v5798_v44 = vld [vmem:[%s9616_s14 + $0xa4] sm:$0xf0] }
 0x4bf   :  { %2668 = vmatmul.bf16.gmra.mxu1 %v7696_v23  ;;  %3006 = vmatmul.bf16.gmra.mxu2 %v7696_v23  ;;  %v5413_v23 = vld [vmem:[%s9616_s14 + $0xa8] sm:$0xf0] }
 0x4c0   :  { %v5416_v20 = vor.u32 %v5797_v21, %v5413_v23  ;;  %v5411_v21 = vld [vmem:[%s9616_s14 + $0xa0] sm:$0xf] }
 0x4c1   :  { %v2798_v28 = vpop.f32.mrf.mxu3 }
 0x4c2   :  { %v2799_v53 = vadd.f32 %v2798_v28, %v7913_v22  ;;  %v2967_v52 = vpop.f32.mrf.mxu2  ;;  %3979 = vmatpush.bf16.msrb.mxu2 %v5416_v20  ;;  %v3093_v28 = vmax.f32 %v8029_v31, 0.0 }
 0x4c3   :  { %v2462_v27 = vpop.f32.mrf.mxu0 }
 0x4c4   :  { %v8210_v11 = vadd.f32 %v2967_v52, %v2799_v53  ;;  %v2463_v29 = vadd.f32 %v2462_v27, %v7901_v54  ;;  %v2631_v17 = vpop.f32.mrf.mxu1  ;;  %v5412_v53 = vor.u32 %v5798_v44, %v5411_v21  ;;  %v8229_v52 = vpack.c.bf16 %v3095_v61, %v3093_v28 }
 0x4c6   :  { %v8214_v62 = vadd.f32 %v2631_v17, %v2463_v29  ;;  %v3096_v29 = vmax.f32 %v8049_v40, 0.0  ;;  %3641 = vmatpush.bf16.msra.mxu1 %v5412_v53  ;;  %v3099_v53 = vmax.f32 %v8066_v37, 0.0  ;;  %v3098_v37 = vmax.f32 %v8062_v3, 0.0 }
 0x4c8   :  { %v8243_v40 = vpack.c.bf16 %v3096_v29, %v3094_v58 }
 0x4c9   :  { %v2800_v23 = vpop.f32.mrf.mxu3 }
 0x4ca   :  { %v2801_v20 = vadd.f32 %v2800_v23, %v7913_v22  ;;  %v2969_v27 = vpop.f32.mrf.mxu2 }
 0x4cb   :  { %v2465_v31 = vpop.f32.mrf.mxu0 }
 0x4cc   :  { %v8233_v17 = vadd.f32 %v2969_v27, %v2801_v20  ;;  %v2466_v33 = vadd.f32 %v2465_v31, %v7901_v54  ;;  %v2634_v10 = vpop.f32.mrf.mxu1  ;;  %v3100_v31 = vmax.f32 %v8073_v8, 0.0 }
 0x4ce   :  { %v8237_v47 = vadd.f32 %v2634_v10, %v2466_v33  ;;  %2504 = vmatmul.bf16.gmra.mxu0 %v7706_v9  ;;  %2842 = vmatmul.bf16.gmra.mxu3 %v7706_v9  ;;  %v3097_v9 = vmax.f32 %v8053_v4, 0.0  ;;  %v8267_v4 = vpack.c.bf16 %v3100_v31, %v3098_v37 }
 0x4cf   :  { %2673 = vmatmul.bf16.gmra.mxu1 %v7720_v50  ;;  %3011 = vmatmul.bf16.gmra.mxu2 %v7720_v50 }
 0x4d0   :  { %v8253_v50 = vpack.c.bf16 %v3099_v53, %v3097_v9 }
 0x4d1   :  { %v2803_v61 = vpop.f32.mrf.mxu3 }
 0x4d2   :  { %v2804_v28 = vadd.f32 %v2803_v61, %v7913_v22  ;;  %v2972_v5 = vpop.f32.mrf.mxu2 }
 0x4d3   :  { %v2467_v21 = vpop.f32.mrf.mxu0 }
 0x4d4   :  { %v8246_v44 = vadd.f32 %v2972_v5, %v2804_v28  ;;  %v2468_v35 = vadd.f32 %v2467_v21, %v7901_v54  ;;  %v2636_v23 = vpop.f32.mrf.mxu1 }
 0x4d6   :  { %v8250_v20 = vadd.f32 %v2636_v23, %v2468_v35 }
 0x4d9   :  { %v2805_v27 = vpop.f32.mrf.mxu3 }
 0x4da   :  { %v2806_v58 = vadd.f32 %v2805_v27, %v7913_v22  ;;  %v2974_v29 = vpop.f32.mrf.mxu2  ;;  %v3103_v27 = vmax.f32 %v8101_v46, 0.0  ;;  %v3102_v46 = vmax.f32 %v8098_v60, 0.0 }
 0x4db   :  { %v2470_v33 = vpop.f32.mrf.mxu0 }
 0x4dc   :  { %v8257_v10 = vadd.f32 %v2974_v29, %v2806_v58  ;;  %v2471_v61 = vadd.f32 %v2470_v33, %v7901_v54  ;;  %v2639_v28 = vpop.f32.mrf.mxu1 }
 0x4de   :  { %v8261_v5 = vadd.f32 %v2639_v28, %v2471_v61  ;;  %2509 = vmatmul.bf16.gmra.mxu0 %v7754_v57  ;;  %2847 = vmatmul.bf16.gmra.mxu3 %v7754_v57  ;;  %v3101_v57 = vmax.f32 %v8077_v2, 0.0  ;;  %v3104_v61 = vmax.f32 %v8116_v41, 0.0 }
 0x4df   :  { %2678 = vmatmul.bf16.gmra.mxu1 %v7768_v38  ;;  %3016 = vmatmul.bf16.gmra.mxu2 %v7768_v38 }
 0x4e0   :  { %v8277_v38 = vpack.c.bf16 %v3103_v27, %v3101_v57  ;;  %v8291_v2 = vpack.c.bf16 %v3104_v61, %v3102_v46 }
 0x4e1   :  { %v2808_v8 = vpop.f32.mrf.mxu3 }
 0x4e2   :  { %v2809_v21 = vadd.f32 %v2808_v8, %v7913_v22  ;;  %v2977_v35 = vpop.f32.mrf.mxu2 }
 0x4e3   :  { %v2472_v23 = vpop.f32.mrf.mxu0 }
 0x4e4   :  { %v8270_v53 = vadd.f32 %v2977_v35, %v2809_v21  ;;  %v2473_v3 = vadd.f32 %v2472_v23, %v7901_v54  ;;  %v2641_v9 = vpop.f32.mrf.mxu1 }
 0x4e6   :  { %v8274_v58 = vadd.f32 %v2641_v9, %v2473_v3 }
 0x4e9   :  { %v2810_v29 = vpop.f32.mrf.mxu3 }
 0x4ea   :  { %v2811_v31 = vadd.f32 %v2810_v29, %v7913_v22  ;;  %v2979_v33 = vpop.f32.mrf.mxu2  ;;  %v3107_v29 = vmax.f32 %v8130_v63, 0.0  ;;  %v3106_v63 = vmax.f32 %v8126_v25, 0.0  ;;  %v5341_v25 = vld [vmem:[%s9616_s14 + $0x18] sm:$0xf0] }
 0x4eb   :  { %v2475_v28 = vpop.f32.mrf.mxu0 }
 0x4ec   :  { %v8281_v37 = vadd.f32 %v2979_v33, %v2811_v31  ;;  %v2476_v8 = vadd.f32 %v2475_v28, %v7901_v54  ;;  %v2644_v21 = vpop.f32.mrf.mxu1 }
 0x4ee   :  { %v8285_v35 = vadd.f32 %v2644_v21, %v2476_v8  ;;  %2514 = vmatmul.bf16.gmra.mxu0 %v7778_v18  ;;  %2852 = vmatmul.bf16.gmra.mxu3 %v7778_v18  ;;  %v3105_v18 = vmax.f32 %v8119_v0, 0.0  ;;  %v3108_v8 = vmax.f32 %v8137_v30, 0.0  ;;  %v5779_v30 = vld [vmem:[%s9616_s14 + $0x14] sm:$0xf] }
 0x4ef   :  { %2683 = vmatmul.bf16.gmra.mxu1 %v7792_v32  ;;  %3021 = vmatmul.bf16.gmra.mxu2 %v7792_v32 }
 0x4f0   :  { %v8301_v32 = vpack.c.bf16 %v3107_v29, %v3105_v18  ;;  %v8315_v0 = vpack.c.bf16 %v3108_v8, %v3106_v63  ;;  %v5780_v63 = vld [vmem:[%s9616_s14 + $0x14] sm:$0xf0] }
 0x4f1   :  { %v2813_v41 = vpop.f32.mrf.mxu3 }
 0x4f2   :  { %v2814_v23 = vadd.f32 %v2813_v41, %v7913_v22  ;;  %v2982_v3 = vpop.f32.mrf.mxu2 }
 0x4f3   :  { %v2477_v9 = vpop.f32.mrf.mxu0 }
 0x4f4   :  { %v8294_v27 = vadd.f32 %v2982_v3, %v2814_v23  ;;  %v2478_v60 = vadd.f32 %v2477_v9, %v7901_v54  ;;  %v2646_v57 = vpop.f32.mrf.mxu1 }
 0x4f6   :  { %v8298_v31 = vadd.f32 %v2646_v57, %v2478_v60  ;;  %v5344_v60 = vor.u32 %v5779_v30, %v5341_v25  ;;  %v3109_v30 = vmax.f32 %v8141_v45, 0.0 }
 0x4f8   :  { %3811 = vmatpush.bf16.msra.mxu3 %v5344_v60 }
 0x4f9   :  { %v2815_v33 = vpop.f32.mrf.mxu3 }
 0x4fa   :  { %v2816_v61 = vadd.f32 %v2815_v33, %v7913_v22  ;;  %v2984_v28 = vpop.f32.mrf.mxu2 }
 0x4fb   :  { %v2480_v21 = vpop.f32.mrf.mxu0 }
 0x4fc   :  { %v8305_v46 = vadd.f32 %v2984_v28, %v2816_v61  ;;  %v2481_v41 = vadd.f32 %v2480_v21, %v7901_v54  ;;  %v2649_v23 = vpop.f32.mrf.mxu1  ;;  %v3111_v21 = vmax.f32 %v8154_v1, 0.0  ;;  %v5796_v1 = vld [vmem:[%s9616_s14 + $0x94] sm:$0xf0] }
 0x4fe   :  { %v8309_v3 = vadd.f32 %v2649_v23, %v2481_v41  ;;  %2519 = vmatmul.bf16.gmra.mxu0 %v7802_v16  ;;  %2857 = vmatmul.bf16.gmra.mxu3 %v7802_v16  ;;  %v5795_v16 = vld [vmem:[%s9616_s14 + $0x94] sm:$0xf]  ;;  %v5339_v23 = vld [vmem:[%s9616_s14 + $0x10] sm:$0xf] }
 0x4ff   :  { %2688 = vmatmul.bf16.gmra.mxu1 %v7816_v14  ;;  %3026 = vmatmul.bf16.gmra.mxu2 %v7816_v14  ;;  %v5405_v14 = vld [vmem:[%s9616_s14 + $0x98] sm:$0xf0]  ;;  %v5340_v25 = vor.u32 %v5780_v63, %v5339_v23  ;;  %v3110_v23 = vmax.f32 %v8150_v49, 0.0 }
 0x500   :  { %v5408_v18 = vor.u32 %v5795_v16, %v5405_v14  ;;  %v8349_v14 = vpack.c.bf16 %v3111_v21, %v3109_v30  ;;  %v9792_v21 = vld [vmem:[#allocation9_spill] sm:$0xff] }
 0x501   :  { %v2818_v9 = vpop.f32.mrf.mxu3  ;;  %3473 = vmatpush.bf16.msra.mxu0 %v5340_v25 }
 0x502   :  { %v2819_v57 = vadd.f32 %v2818_v9, %v7913_v22  ;;  %v2987_v29 = vpop.f32.mrf.mxu2  ;;  %3980 = vmatpush.bf16.msrb.mxu2 %v5408_v18  ;;  %v5403_v9 = vld [vmem:[%s9616_s14 + $0x90] sm:$0xf]  ;;  %v3112_v18 = vmax.f32 %v8161_v39, 0.0 }
 0x503   :  { %v2482_v33 = vpop.f32.mrf.mxu0  ;;  %v5404_v16 = vor.u32 %v5796_v1, %v5403_v9 }
 0x504   :  { %v8330_v61 = vadd.f32 %v2987_v29, %v2819_v57  ;;  %v2483_v28 = vadd.f32 %v2482_v33, %v7901_v54  ;;  %v2651_v8 = vpop.f32.mrf.mxu1  ;;  %v8363_v39 = vpack.c.bf16 %v3112_v18, %v3110_v23  ;;  %v3116_v23 = vmax.f32 %v8185_v51, 0.0 }
 0x505   :  { %3642 = vmatpush.bf16.msra.mxu1 %v5404_v16 }
 0x506   :  { %v8334_v41 = vadd.f32 %v2651_v8, %v2483_v28 }
 0x509   :  { %v2820_v60 = vpop.f32.mrf.mxu3 }
 0x50a   :  { %v2821_v57 = vadd.f32 %v2820_v60, %v7913_v22  ;;  %v2989_v29 = vpop.f32.mrf.mxu2 }
 0x50b   :  { %v2485_v45 = vpop.f32.mrf.mxu0 }
 0x50c   :  { %v8353_v33 = vadd.f32 %v2989_v29, %v2821_v57  ;;  %v2486_v28 = vadd.f32 %v2485_v45, %v7901_v54  ;;  %v2654_v8 = vpop.f32.mrf.mxu1  ;;  %v3115_v57 = vmax.f32 %v8178_v6, 0.0  ;;  %v3114_v6 = vmax.f32 %v8174_v26, 0.0 }
 0x50e   :  { %v8357_v63 = vadd.f32 %v2654_v8, %v2486_v28  ;;  %2524 = vmatmul.bf16.gmra.mxu0 %v7826_v15  ;;  %2862 = vmatmul.bf16.gmra.mxu3 %v7826_v15  ;;  %v3113_v15 = vmax.f32 %v8165_v12, 0.0  ;;  %v9794_v12 = vld [vmem:[#allocation12_spill] sm:$0xff] }
 0x50f   :  { %2693 = vmatmul.bf16.gmra.mxu1 %v9792_v21  ;;  %3031 = vmatmul.bf16.gmra.mxu2 %v9792_v21 }
 0x510   :  { %v8373_v28 = vpack.c.bf16 %v3115_v57, %v3113_v15 }
 0x511   :  { %v2823_v30 = vpop.f32.mrf.mxu3 }
 0x512   :  { %v2824_v25 = vadd.f32 %v2823_v30, %v7913_v22  ;;  %v2992_v9 = vpop.f32.mrf.mxu2 }
 0x513   :  { %v2487_v1 = vpop.f32.mrf.mxu0 }
 0x514   :  { %v8366_v60 = vadd.f32 %v2992_v9, %v2824_v25  ;;  %v2488_v49 = vadd.f32 %v2487_v1, %v7901_v54  ;;  %v2656_v16 = vpop.f32.mrf.mxu1 }
 0x516   :  { %v8370_v29 = vadd.f32 %v2656_v16, %v2488_v49  ;;  %v9793_v49 = vld [vmem:[#allocation10_spill] sm:$0xff]  ;;  %v8387_v16 = vpack.c.bf16 %v3116_v23, %v3114_v6 }
 0x518   :  { %9795 = vst [vmem:[#allocation19_spill] sm:$0xff] %v8387_v16 }
 0x519   :  { %v2825_v45 = vpop.f32.mrf.mxu3 }
 0x51a   :  { %v2826_v18 = vadd.f32 %v2825_v45, %v7913_v22  ;;  %v2994_v8 = vpop.f32.mrf.mxu2 }
 0x51b   :  { %v2490_v21 = vpop.f32.mrf.mxu0 }
 0x51c   :  { %v8377_v30 = vadd.f32 %v2994_v8, %v2826_v18  ;;  %v2491_v25 = vadd.f32 %v2490_v21, %v7901_v54  ;;  %v2659_v9 = vpop.f32.mrf.mxu1  ;;  %v3119_v21 = vmax.f32 %v8214_v62, 0.0  ;;  %v3118_v62 = vmax.f32 %v8210_v11, 0.0 }
 0x51e   :  { %v8381_v1 = vadd.f32 %v2659_v9, %v2491_v25  ;;  %2529 = vmatmul.bf16.gmra.mxu0 %v9793_v49  ;;  %2867 = vmatmul.bf16.gmra.mxu3 %v9793_v49  ;;  %v3117_v9 = vmax.f32 %v8189_v56, 0.0  ;;  %v9798_v56 = vld [vmem:[#allocation5_spill] sm:$0xff] }
 0x51f   :  { %2698 = vmatmul.bf16.gmra.mxu1 %v9794_v12  ;;  %3036 = vmatmul.bf16.gmra.mxu2 %v9794_v12 }
 0x520   :  { %v8397_v12 = vpack.c.bf16 %v3119_v21, %v3117_v9 }
 0x521   :  { %v2828_v51 = vpop.f32.mrf.mxu3 }
 0x522   :  { %v2829_v57 = vadd.f32 %v2828_v51, %v7913_v22  ;;  %v2997_v15 = vpop.f32.mrf.mxu2  ;;  %9796 = vst [vmem:[#allocation20_spill] sm:$0xff] %v8397_v12  ;;  %v3120_v51 = vmax.f32 %v8233_v17, 0.0 }
 0x523   :  { %v2492_v45 = vpop.f32.mrf.mxu0 }
 0x524   :  { %v8390_v18 = vadd.f32 %v2997_v15, %v2829_v57  ;;  %v2493_v26 = vadd.f32 %v2492_v45, %v7901_v54  ;;  %v2661_v8 = vpop.f32.mrf.mxu1  ;;  %v8411_v21 = vpack.c.bf16 %v3120_v51, %v3118_v62 }
 0x526   :  { %v8394_v25 = vadd.f32 %v2661_v8, %v2493_v26  ;;  %v9797_v8 = vld [vmem:[#allocation11_spill] sm:$0xff]  ;;  %9799 = vst [vmem:[#allocation21_spill] sm:$0xff] %v8411_v21 }
 0x529   :  { %v2830_v49 = vpop.f32.mrf.mxu3 }
 0x52a   :  { %v2831_v23 = vadd.f32 %v2830_v49, %v7913_v22  ;;  %v2999_v6 = vpop.f32.mrf.mxu2 }
 0x52b   :  { %v2495_v16 = vpop.f32.mrf.mxu0 }
 0x52c   :  { %v8401_v57 = vadd.f32 %v2999_v6, %v2831_v23  ;;  %v2496_v15 = vadd.f32 %v2495_v16, %v7901_v54  ;;  %v2664_v45 = vpop.f32.mrf.mxu1 }
 0x52e   :  { %v8405_v26 = vadd.f32 %v2664_v45, %v2496_v15  ;;  %2534 = vmatmul.bf16.gmra.mxu0 %v9797_v8  ;;  %2872 = vmatmul.bf16.gmra.mxu3 %v9797_v8  ;;  %v3123_v15 = vmax.f32 %v8250_v20, 0.0  ;;  %v3121_v8 = vmax.f32 %v8237_v47, 0.0  ;;  %v3122_v20 = vmax.f32 %v8246_v44, 0.0  ;;  %v5333_v44 = vld [vmem:[%s9616_s14 + $0x8] sm:$0xf0] }
 0x52f   :  { %2703 = vmatmul.bf16.gmra.mxu1 %v9798_v56  ;;  %3041 = vmatmul.bf16.gmra.mxu2 %v9798_v56 }
 0x530   :  { %v8421_v56 = vpack.c.bf16 %v3123_v15, %v3121_v8 }
 0x531   :  { %v2833_v17 = vpop.f32.mrf.mxu3 }
 0x532   :  { %v2834_v9 = vadd.f32 %v2833_v17, %v7913_v22  ;;  %v3002_v49 = vpop.f32.mrf.mxu2  ;;  %9800 = vst [vmem:[#allocation22_spill] sm:$0xff] %v8421_v56  ;;  %v3124_v17 = vmax.f32 %v8257_v10, 0.0  ;;  %v5777_v10 = vld [vmem:[%s9616_s14 + $0x4] sm:$0xf] }
 0x533   :  { %v2497_v16 = vpop.f32.mrf.mxu0 }
 0x534   :  { %v8414_v23 = vadd.f32 %v3002_v49, %v2834_v9  ;;  %v2498_v11 = vadd.f32 %v2497_v16, %v7901_v54  ;;  %v2666_v6 = vpop.f32.mrf.mxu1  ;;  %v8435_v47 = vpack.c.bf16 %v3124_v17, %v3122_v20 }
 0x536   :  { %v8418_v45 = vadd.f32 %v2666_v6, %v2498_v11  ;;  %9801 = vst [vmem:[#allocation23_spill] sm:$0xff] %v8435_v47  ;;  %v3126_v47 = vmax.f32 %v8270_v53, 0.0 }
 0x539   :  { %v2835_v12 = vpop.f32.mrf.mxu3 }
 0x53a   :  { %v2836_v51 = vadd.f32 %v2835_v12, %v7913_v22  ;;  %v3004_v62 = vpop.f32.mrf.mxu2 }
 0x53b   :  { %v2500_v21 = vpop.f32.mrf.mxu0 }
 0x53c   :  { %v8425_v9 = vadd.f32 %v3004_v62, %v2836_v51  ;;  %v2501_v49 = vadd.f32 %v2500_v21, %v7901_v54  ;;  %v2669_v16 = vpop.f32.mrf.mxu1  ;;  %v5336_v21 = vor.u32 %v5777_v10, %v5333_v44  ;;  %v5331_v10 = vld [vmem:[%s9616_s14] sm:$0xf]  ;;  %v5778_v44 = vld [vmem:[%s9616_s14 + $0x4] sm:$0xf0] }
 0x53e   :  { %v8429_v11 = vadd.f32 %v2669_v16, %v2501_v49  ;;  %2539 = vmatmul.bf16.gmra.mxu0 %v7923_v36  ;;  %2877 = vmatmul.bf16.gmra.mxu3 %v7923_v36  ;;  %v5793_v36 = vld [vmem:[%s9616_s14 + $0x84] sm:$0xf]  ;;  %v3127_v16 = vmax.f32 %v8274_v58, 0.0  ;;  %v5794_v58 = vld [vmem:[%s9616_s14 + $0x84] sm:$0xf0] }
 0x53f   :  { %2708 = vmatmul.bf16.gmra.mxu1 %v7937_v42  ;;  %3046 = vmatmul.bf16.gmra.mxu2 %v7937_v42  ;;  %v5397_v42 = vld [vmem:[%s9616_s14 + $0x88] sm:$0xf0] }
 0x540   :  { %v5400_v8 = vor.u32 %v5793_v36, %v5397_v42  ;;  %3812 = vmatpush.bf16.msra.mxu3 %v5336_v21  ;;  %v5332_v21 = vor.u32 %v5778_v44, %v5331_v10  ;;  %v5395_v36 = vld [vmem:[%s9616_s14 + $0x80] sm:$0xf] }
 0x541   :  { %v2838_v12 = vpop.f32.mrf.mxu3 }
 0x542   :  { %v2839_v6 = vadd.f32 %v2838_v12, %v7913_v22  ;;  %v3007_v15 = vpop.f32.mrf.mxu2  ;;  %3981 = vmatpush.bf16.msrb.mxu2 %v5400_v8  ;;  %v3125_v12 = vmax.f32 %v8261_v5, 0.0  ;;  %3474 = vmatpush.bf16.msra.mxu0 %v5332_v21 }
 0x543   :  { %v2502_v51 = vpop.f32.mrf.mxu0 }
 0x544   :  { %v8450_v62 = vadd.f32 %v3007_v15, %v2839_v6  ;;  %v2503_v17 = vadd.f32 %v2502_v51, %v7901_v54  ;;  %v2671_v49 = vpop.f32.mrf.mxu1  ;;  %v5396_v6 = vor.u32 %v5794_v58, %v5395_v36  ;;  %v8469_v15 = vpack.c.bf16 %v3127_v16, %v3125_v12 }
 0x546   :  { %v8454_v20 = vadd.f32 %v2671_v49, %v2503_v17  ;;  %v3128_v17 = vmax.f32 %v8281_v37, 0.0  ;;  %3643 = vmatpush.bf16.msra.mxu1 %v5396_v6  ;;  %v3131_v6 = vmax.f32 %v8298_v31, 0.0  ;;  %v3130_v31 = vmax.f32 %v8294_v27, 0.0 }
 0x548   :  { %v8483_v37 = vpack.c.bf16 %v3128_v17, %v3126_v47 }
 0x549   :  { %v2840_v42 = vpop.f32.mrf.mxu3 }
 0x54a   :  { %v2841_v8 = vadd.f32 %v2840_v42, %v7913_v22  ;;  %v3009_v51 = vpop.f32.mrf.mxu2 }
 0x54b   :  { %v2505_v5 = vpop.f32.mrf.mxu0 }
 0x54c   :  { %v8473_v49 = vadd.f32 %v3009_v51, %v2841_v8  ;;  %v2506_v10 = vadd.f32 %v2505_v5, %v7901_v54  ;;  %v2674_v44 = vpop.f32.mrf.mxu1  ;;  %v3132_v5 = vmax.f32 %v8305_v46, 0.0 }
 0x54e   :  { %v8477_v56 = vadd.f32 %v2674_v44, %v2506_v10  ;;  %2544 = vmatmul.bf16.gmra.mxu0 %v7949_v43  ;;  %2882 = vmatmul.bf16.gmra.mxu3 %v7949_v43  ;;  %v3129_v43 = vmax.f32 %v8285_v35, 0.0  ;;  %v8507_v35 = vpack.c.bf16 %v3132_v5, %v3130_v31 }
 0x54f   :  { %2713 = vmatmul.bf16.gmra.mxu1 %v7963_v59  ;;  %3051 = vmatmul.bf16.gmra.mxu2 %v7963_v59 }
 0x550   :  { %v8493_v59 = vpack.c.bf16 %v3131_v6, %v3129_v43 }
 0x551   :  { %v2843_v16 = vpop.f32.mrf.mxu3 }
 0x552   :  { %v2844_v12 = vadd.f32 %v2843_v16, %v7913_v22  ;;  %v3012_v21 = vpop.f32.mrf.mxu2 }
 0x553   :  { %v2507_v36 = vpop.f32.mrf.mxu0 }
 0x554   :  { %v8486_v58 = vadd.f32 %v3012_v21, %v2844_v12  ;;  %v2508_v53 = vadd.f32 %v2507_v36, %v7901_v54  ;;  %v2676_v42 = vpop.f32.mrf.mxu1 }
 0x556   :  { %v8490_v8 = vadd.f32 %v2676_v42, %v2508_v53 }
 0x559   :  { %v2845_v51 = vpop.f32.mrf.mxu3 }
 0x55a   :  { %v2846_v47 = vadd.f32 %v2845_v51, %v7913_v22  ;;  %v3014_v17 = vpop.f32.mrf.mxu2  ;;  %v3135_v51 = vmax.f32 %v8334_v41, 0.0  ;;  %v3134_v41 = vmax.f32 %v8330_v61, 0.0 }
 0x55b   :  { %v2510_v10 = vpop.f32.mrf.mxu0 }
 0x55c   :  { %v8497_v44 = vadd.f32 %v3014_v17, %v2846_v47  ;;  %v2511_v16 = vadd.f32 %v2510_v10, %v7901_v54  ;;  %v2679_v12 = vpop.f32.mrf.mxu1 }
 0x55e   :  { %v8501_v21 = vadd.f32 %v2679_v12, %v2511_v16  ;;  %2549 = vmatmul.bf16.gmra.mxu0 %v7997_v55  ;;  %2887 = vmatmul.bf16.gmra.mxu3 %v7997_v55  ;;  %v3133_v55 = vmax.f32 %v8309_v3, 0.0  ;;  %v3136_v16 = vmax.f32 %v8353_v33, 0.0  ;;  %v9802_v3 = vld [vmem:[#allocation8_spill] sm:$0xff] }
 0x55f   :  { %2718 = vmatmul.bf16.gmra.mxu1 %v8011_v13  ;;  %3056 = vmatmul.bf16.gmra.mxu2 %v8011_v13 }
 0x560   :  { %v8517_v13 = vpack.c.bf16 %v3135_v51, %v3133_v55 }
 0x561   :  { %v2848_v46 = vpop.f32.mrf.mxu3 }
 0x562   :  { %v2849_v36 = vadd.f32 %v2848_v46, %v7913_v22  ;;  %v3017_v53 = vpop.f32.mrf.mxu2 }
 0x563   :  { %v2512_v42 = vpop.f32.mrf.mxu0 }
 0x564   :  { %v8510_v6 = vadd.f32 %v3017_v53, %v2849_v36  ;;  %v2513_v27 = vadd.f32 %v2512_v42, %v7901_v54  ;;  %v2681_v43 = vpop.f32.mrf.mxu1  ;;  %v8531_v42 = vpack.c.bf16 %v3136_v16, %v3134_v41  ;;  %v3140_v41 = vmax.f32 %v8377_v30, 0.0 }
 0x566   :  { %v8514_v47 = vadd.f32 %v2681_v43, %v2513_v27 }
 0x569   :  { %v2850_v17 = vpop.f32.mrf.mxu3 }
 0x56a   :  { %v2851_v5 = vadd.f32 %v2850_v17, %v7913_v22  ;;  %v3019_v10 = vpop.f32.mrf.mxu2 }
 0x56b   :  { %v2515_v12 = vpop.f32.mrf.mxu0 }
 0x56c   :  { %v8521_v31 = vadd.f32 %v3019_v10, %v2851_v5  ;;  %v2516_v46 = vadd.f32 %v2515_v12, %v7901_v54  ;;  %v2684_v36 = vpop.f32.mrf.mxu1  ;;  %v3139_v5 = vmax.f32 %v8370_v29, 0.0  ;;  %v3138_v29 = vmax.f32 %v8366_v60, 0.0 }
 0x56e   :  { %v8525_v53 = vadd.f32 %v2684_v36, %v2516_v46  ;;  %2554 = vmatmul.bf16.gmra.mxu0 %v8021_v34  ;;  %2892 = vmatmul.bf16.gmra.mxu3 %v8021_v34  ;;  %v3137_v34 = vmax.f32 %v8357_v63, 0.0  ;;  %v9804_v63 = vld [vmem:[#allocation14_spill] sm:$0xff] }
 0x56f   :  { %2723 = vmatmul.bf16.gmra.mxu1 %v9802_v3  ;;  %3061 = vmatmul.bf16.gmra.mxu2 %v9802_v3 }
 0x570   :  { %v8541_v46 = vpack.c.bf16 %v3139_v5, %v3137_v34 }
 0x571   :  { %v2853_v33 = vpop.f32.mrf.mxu3 }
 0x572   :  { %v2854_v27 = vadd.f32 %v2853_v33, %v7913_v22  ;;  %v3022_v43 = vpop.f32.mrf.mxu2 }
 0x573   :  { %v2517_v51 = vpop.f32.mrf.mxu0 }
 0x574   :  { %v8534_v55 = vadd.f32 %v3022_v43, %v2854_v27  ;;  %v2518_v61 = vadd.f32 %v2517_v51, %v7901_v54  ;;  %v2686_v17 = vpop.f32.mrf.mxu1 }
 0x576   :  { %v8538_v10 = vadd.f32 %v2686_v17, %v2518_v61  ;;  %v9803_v61 = vld [vmem:[#allocation13_spill] sm:$0xff]  ;;  %v8555_v17 = vpack.c.bf16 %v3140_v41, %v3138_v29 }
 0x578   :  { %9805 = vst [vmem:[#allocation24_spill] sm:$0xff] %v8555_v17 }
 0x579   :  { %v2855_v12 = vpop.f32.mrf.mxu3 }
 0x57a   :  { %v2856_v16 = vadd.f32 %v2855_v12, %v7913_v22  ;;  %v3024_v36 = vpop.f32.mrf.mxu2 }
 0x57b   :  { %v2520_v3 = vpop.f32.mrf.mxu0 }
 0x57c   :  { %v8545_v33 = vadd.f32 %v3024_v36, %v2856_v16  ;;  %v2521_v27 = vadd.f32 %v2520_v3, %v7901_v54  ;;  %v2689_v43 = vpop.f32.mrf.mxu1  ;;  %v3143_v3 = vmax.f32 %v8394_v25, 0.0  ;;  %v3142_v25 = vmax.f32 %v8390_v18, 0.0 }
 0x57e   :  { %v8549_v51 = vadd.f32 %v2689_v43, %v2521_v27  ;;  %2559 = vmatmul.bf16.gmra.mxu0 %v9803_v61  ;;  %2897 = vmatmul.bf16.gmra.mxu3 %v9803_v61  ;;  %v3141_v43 = vmax.f32 %v8381_v1, 0.0  ;;  %v9808_v1 = vld [vmem:[#allocation16_spill] sm:$0xff] }
 0x57f   :  { %2728 = vmatmul.bf16.gmra.mxu1 %v9804_v63  ;;  %3066 = vmatmul.bf16.gmra.mxu2 %v9804_v63 }
 0x580   :  { %v8565_v63 = vpack.c.bf16 %v3143_v3, %v3141_v43 }
 0x581   :  { %v2858_v30 = vpop.f32.mrf.mxu3 }
 0x582   :  { %v2859_v5 = vadd.f32 %v2858_v30, %v7913_v22  ;;  %v3027_v34 = vpop.f32.mrf.mxu2  ;;  %9806 = vst [vmem:[#allocation25_spill] sm:$0xff] %v8565_v63  ;;  %v3144_v30 = vmax.f32 %v8401_v57, 0.0 }
 0x583   :  { %v2522_v12 = vpop.f32.mrf.mxu0 }
 0x584   :  { %v8558_v16 = vadd.f32 %v3027_v34, %v2859_v5  ;;  %v2523_v60 = vadd.f32 %v2522_v12, %v7901_v54  ;;  %v2691_v36 = vpop.f32.mrf.mxu1  ;;  %v8579_v3 = vpack.c.bf16 %v3144_v30, %v3142_v25 }
 0x586   :  { %v8562_v27 = vadd.f32 %v2691_v36, %v2523_v60  ;;  %v9807_v36 = vld [vmem:[#allocation15_spill] sm:$0xff]  ;;  %9809 = vst [vmem:[#allocation26_spill] sm:$0xff] %v8579_v3 }
 0x589   :  { %v2860_v61 = vpop.f32.mrf.mxu3 }
 0x58a   :  { %v2861_v41 = vadd.f32 %v2860_v61, %v7913_v22  ;;  %v3029_v29 = vpop.f32.mrf.mxu2 }
 0x58b   :  { %v2525_v17 = vpop.f32.mrf.mxu0 }
 0x58c   :  { %v8569_v5 = vadd.f32 %v3029_v29, %v2861_v41  ;;  %v2526_v34 = vadd.f32 %v2525_v17, %v7901_v54  ;;  %v2694_v12 = vpop.f32.mrf.mxu1 }
 0x58e   :  { %v8573_v60 = vadd.f32 %v2694_v12, %v2526_v34  ;;  %2564 = vmatmul.bf16.gmra.mxu0 %v9807_v36  ;;  %2902 = vmatmul.bf16.gmra.mxu3 %v9807_v36  ;;  %v3147_v34 = vmax.f32 %v8418_v45, 0.0  ;;  %v3145_v36 = vmax.f32 %v8405_v26, 0.0  ;;  %v3146_v45 = vmax.f32 %v8414_v23, 0.0  ;;  %v9812_v26 = vld [vmem:[#allocation6_spill] sm:$0xff] }
 0x58f   :  { %2733 = vmatmul.bf16.gmra.mxu1 %v9808_v1  ;;  %3071 = vmatmul.bf16.gmra.mxu2 %v9808_v1 }
 0x590   :  { %v8589_v1 = vpack.c.bf16 %v3147_v34, %v3145_v36 }
 0x591   :  { %v2863_v57 = vpop.f32.mrf.mxu3 }
 0x592   :  { %v2864_v43 = vadd.f32 %v2863_v57, %v7913_v22  ;;  %v3032_v61 = vpop.f32.mrf.mxu2  ;;  %9810 = vst [vmem:[#allocation9_spill] sm:$0xff] %v8589_v1  ;;  %v3148_v57 = vmax.f32 %v8425_v9, 0.0 }
 0x593   :  { %v2527_v17 = vpop.f32.mrf.mxu0 }
 0x594   :  { %v8582_v41 = vadd.f32 %v3032_v61, %v2864_v43  ;;  %v2528_v18 = vadd.f32 %v2527_v17, %v7901_v54  ;;  %v2696_v29 = vpop.f32.mrf.mxu1 }
 0x596   :  { %v8586_v12 = vadd.f32 %v2696_v29, %v2528_v18  ;;  %v9811_v29 = vld [vmem:[#allocation7_spill] sm:$0xff] }
 0x599   :  { %v2865_v63 = vpop.f32.mrf.mxu3 }
 0x59a   :  { %v2866_v30 = vadd.f32 %v2865_v63, %v7913_v22  ;;  %v3034_v25 = vpop.f32.mrf.mxu2  ;;  %v8603_v63 = vpack.c.bf16 %v3148_v57, %v3146_v45 }
 0x59b   :  { %v2530_v3 = vpop.f32.mrf.mxu0 }
 0x59c   :  { %v8593_v43 = vadd.f32 %v3034_v25, %v2866_v30  ;;  %v2531_v61 = vadd.f32 %v2530_v3, %v7901_v54  ;;  %v2699_v17 = vpop.f32.mrf.mxu1  ;;  %9813 = vst [vmem:[#allocation10_spill] sm:$0xff] %v8603_v63 }
 0x59e   :  { %v8597_v18 = vadd.f32 %v2699_v17, %v2531_v61  ;;  %3475 = vmatmul.bf16.vlgmr.msra.gmra.mxu0 %v9811_v29  ;;  %3813 = vmatmul.bf16.vlgmr.msra.gmra.mxu3 %v9811_v29  ;;  %v3151_v61 = vmax.f32 %v8454_v20, 0.0  ;;  %v3149_v29 = vmax.f32 %v8429_v11, 0.0  ;;  %v3150_v20 = vmax.f32 %v8450_v62, 0.0 }
 0x59f   :  { %3644 = vmatmul.bf16.vlgmr.msra.gmra.mxu1 %v9812_v26  ;;  %3982 = vmatmul.bf16.vlgmr.msrb.gmra.mxu2 %v9812_v26 }
 0x5a0   :  { %v8613_v26 = vpack.c.bf16 %v3151_v61, %v3149_v29 }
 0x5a1   :  { %v2868_v9 = vpop.f32.mrf.mxu3 }
 0x5a2   :  { %v2869_v34 = vadd.f32 %v2868_v9, %v7913_v22  ;;  %v3037_v36 = vpop.f32.mrf.mxu2  ;;  %v3152_v9 = vmax.f32 %v8473_v49, 0.0 }
 0x5a3   :  { %v2532_v3 = vpop.f32.mrf.mxu0 }
 0x5a4   :  { %v8606_v30 = vadd.f32 %v3037_v36, %v2869_v34  ;;  %v2533_v23 = vadd.f32 %v2532_v3, %v7901_v54  ;;  %v2701_v25 = vpop.f32.mrf.mxu1  ;;  %v8627_v11 = vpack.c.bf16 %v3152_v9, %v3150_v20  ;;  %v3156_v20 = vmax.f32 %v8497_v44, 0.0 }
 0x5a6   :  { %v8610_v17 = vadd.f32 %v2701_v25, %v2533_v23 }
 0x5a9   :  { %v2870_v1 = vpop.f32.mrf.mxu3 }
 0x5aa   :  { %v2871_v57 = vadd.f32 %v2870_v1, %v7913_v22  ;;  %v3039_v45 = vpop.f32.mrf.mxu2 }
 0x5ab   :  { %v2535_v63 = vpop.f32.mrf.mxu0 }
 0x5ac   :  { %v8617_v34 = vadd.f32 %v3039_v45, %v2871_v57  ;;  %v2536_v36 = vadd.f32 %v2535_v63, %v7901_v54  ;;  %v2704_v3 = vpop.f32.mrf.mxu1  ;;  %v3155_v57 = vmax.f32 %v8490_v8, 0.0  ;;  %v3154_v8 = vmax.f32 %v8486_v58, 0.0 }
 0x5ae   :  { %v8621_v23 = vadd.f32 %v2704_v3, %v2536_v36  ;;  %3480 = vmatmul.bf16.gmra.mxu0 %v8133_v7  ;;  %3818 = vmatmul.bf16.gmra.mxu3 %v8133_v7  ;;  %v3153_v7 = vmax.f32 %v8477_v56, 0.0  ;;  %v8651_v56 = vpack.c.bf16 %v3156_v20, %v3154_v8  ;;  %v3160_v8 = vmax.f32 %v8521_v31, 0.0 }
 0x5af   :  { %3649 = vmatmul.bf16.gmra.mxu1 %v8147_v48  ;;  %3987 = vmatmul.bf16.gmra.mxu2 %v8147_v48 }
 0x5b0   :  { %v8637_v48 = vpack.c.bf16 %v3155_v57, %v3153_v7 }
 0x5b1   :  { %v2873_v49 = vpop.f32.mrf.mxu3 }
 0x5b2   :  { %v2874_v1 = vadd.f32 %v2873_v49, %v7913_v22  ;;  %v3042_v25 = vpop.f32.mrf.mxu2 }
 0x5b3   :  { %v2537_v63 = vpop.f32.mrf.mxu0 }
 0x5b4   :  { %v8630_v61 = vadd.f32 %v3042_v25, %v2874_v1  ;;  %v2538_v62 = vadd.f32 %v2537_v63, %v7901_v54  ;;  %v2706_v29 = vpop.f32.mrf.mxu1 }
 0x5b6   :  { %v8634_v45 = vadd.f32 %v2706_v29, %v2538_v62 }
 0x5b9   :  { %v2875_v36 = vpop.f32.mrf.mxu3 }
 0x5ba   :  { %v2876_v9 = vadd.f32 %v2875_v36, %v7913_v22  ;;  %v3044_v3 = vpop.f32.mrf.mxu2 }
 0x5bb   :  { %v2540_v49 = vpop.f32.mrf.mxu0 }
 0x5bc   :  { %v8641_v1 = vadd.f32 %v3044_v3, %v2876_v9  ;;  %v2541_v25 = vadd.f32 %v2540_v49, %v7901_v54  ;;  %v2709_v63 = vpop.f32.mrf.mxu1  ;;  %v3159_v3 = vmax.f32 %v8514_v47, 0.0  ;;  %v3158_v47 = vmax.f32 %v8510_v6, 0.0 }
 0x5be   :  { %v8645_v62 = vadd.f32 %v2709_v63, %v2541_v25  ;;  %3485 = vmatmul.bf16.gmra.mxu0 %v8157_v24  ;;  %3823 = vmatmul.bf16.gmra.mxu3 %v8157_v24  ;;  %v3157_v24 = vmax.f32 %v8501_v21, 0.0  ;;  %v9816_v21 = vld [vmem:[#allocation18_spill] sm:$0xff] }
 0x5bf   :  { %3654 = vmatmul.bf16.gmra.mxu1 %v8171_v19  ;;  %3992 = vmatmul.bf16.gmra.mxu2 %v8171_v19 }
 0x5c0   :  { %v8661_v19 = vpack.c.bf16 %v3159_v3, %v3157_v24  ;;  %v8675_v3 = vpack.c.bf16 %v3160_v8, %v3158_v47 }
 0x5c1   :  { %v2878_v44 = vpop.f32.mrf.mxu3 }
 0x5c2   :  { %v2879_v29 = vadd.f32 %v2878_v44, %v7913_v22  ;;  %v3047_v57 = vpop.f32.mrf.mxu2  ;;  %9814 = vst [vmem:[#allocation12_spill] sm:$0xff] %v8661_v19 }
 0x5c3   :  { %v2542_v7 = vpop.f32.mrf.mxu0  ;;  %9817 = vst [vmem:[#allocation11_spill] sm:$0xff] %v8675_v3 }
 0x5c4   :  { %v8654_v36 = vadd.f32 %v3047_v57, %v2879_v29  ;;  %v2543_v58 = vadd.f32 %v2542_v7, %v7901_v54  ;;  %v2711_v9 = vpop.f32.mrf.mxu1 }
 0x5c6   :  { %v8658_v49 = vadd.f32 %v2711_v9, %v2543_v58  ;;  %v9815_v9 = vld [vmem:[#allocation17_spill] sm:$0xff] }
 0x5c9   :  { %v2880_v25 = vpop.f32.mrf.mxu3 }
 0x5ca   :  { %v2881_v20 = vadd.f32 %v2880_v25, %v7913_v22  ;;  %v3049_v63 = vpop.f32.mrf.mxu2 }
 0x5cb   :  { %v2545_v44 = vpop.f32.mrf.mxu0 }
 0x5cc   :  { %v8665_v29 = vadd.f32 %v3049_v63, %v2881_v20  ;;  %v2546_v57 = vadd.f32 %v2545_v44, %v7901_v54  ;;  %v2714_v7 = vpop.f32.mrf.mxu1 }
 0x5ce   :  { %v8669_v58 = vadd.f32 %v2714_v7, %v2546_v57  ;;  %3490 = vmatmul.bf16.gmra.mxu0 %v9815_v9  ;;  %3828 = vmatmul.bf16.gmra.mxu3 %v9815_v9  ;;  %v3163_v57 = vmax.f32 %v8538_v10, 0.0  ;;  %v3161_v9 = vmax.f32 %v8525_v53, 0.0  ;;  %v3162_v10 = vmax.f32 %v8534_v55, 0.0 }
 0x5cf   :  { %3659 = vmatmul.bf16.gmra.mxu1 %v9816_v21  ;;  %3997 = vmatmul.bf16.gmra.mxu2 %v9816_v21 }
 0x5d0   :  { %v8685_v21 = vpack.c.bf16 %v3163_v57, %v3161_v9 }
 0x5d1   :  { %v2883_v31 = vpop.f32.mrf.mxu3 }
 0x5d2   :  { %v2884_v24 = vadd.f32 %v2883_v31, %v7913_v22  ;;  %v3052_v25 = vpop.f32.mrf.mxu2  ;;  %v3164_v31 = vmax.f32 %v8545_v33, 0.0 }
 0x5d3   :  { %v2547_v20 = vpop.f32.mrf.mxu0 }
 0x5d4   :  { %v8678_v63 = vadd.f32 %v3052_v25, %v2884_v24  ;;  %v2548_v6 = vadd.f32 %v2547_v20, %v7901_v54  ;;  %v2716_v44 = vpop.f32.mrf.mxu1  ;;  %v8699_v53 = vpack.c.bf16 %v3164_v31, %v3162_v10  ;;  %v3168_v10 = vmax.f32 %v8569_v5, 0.0 }
 0x5d6   :  { %v8682_v7 = vadd.f32 %v2716_v44, %v2548_v6 }
 0x5d9   :  { %v2885_v19 = vpop.f32.mrf.mxu3 }
 0x5da   :  { %v2886_v8 = vadd.f32 %v2885_v19, %v7913_v22  ;;  %v3054_v47 = vpop.f32.mrf.mxu2 }
 0x5db   :  { %v2550_v3 = vpop.f32.mrf.mxu0 }
 0x5dc   :  { %v8689_v24 = vadd.f32 %v3054_v47, %v2886_v8  ;;  %v2551_v25 = vadd.f32 %v2550_v3, %v7901_v54  ;;  %v2719_v20 = vpop.f32.mrf.mxu1  ;;  %v3167_v8 = vmax.f32 %v8562_v27, 0.0  ;;  %v3166_v27 = vmax.f32 %v8558_v16, 0.0 }
 0x5de   :  { %v8693_v6 = vadd.f32 %v2719_v20, %v2551_v25  ;;  %3495 = vmatmul.bf16.gmra.mxu0 %v8229_v52  ;;  %3833 = vmatmul.bf16.gmra.mxu3 %v8229_v52  ;;  %v3165_v52 = vmax.f32 %v8549_v51, 0.0  ;;  %v8723_v51 = vpack.c.bf16 %v3168_v10, %v3166_v27  ;;  %v3172_v27 = vmax.f32 %v8593_v43, 0.0 }
 0x5df   :  { %3664 = vmatmul.bf16.gmra.mxu1 %v8243_v40  ;;  %4002 = vmatmul.bf16.gmra.mxu2 %v8243_v40 }
 0x5e0   :  { %v8709_v40 = vpack.c.bf16 %v3167_v8, %v3165_v52 }
 0x5e1   :  { %v2888_v33 = vpop.f32.mrf.mxu3 }
 0x5e2   :  { %v2889_v19 = vadd.f32 %v2888_v33, %v7913_v22  ;;  %v3057_v44 = vpop.f32.mrf.mxu2 }
 0x5e3   :  { %v2552_v3 = vpop.f32.mrf.mxu0 }
 0x5e4   :  { %v8702_v57 = vadd.f32 %v3057_v44, %v2889_v19  ;;  %v2553_v55 = vadd.f32 %v2552_v3, %v7901_v54  ;;  %v2721_v9 = vpop.f32.mrf.mxu1 }
 0x5e6   :  { %v8706_v47 = vadd.f32 %v2721_v9, %v2553_v55 }
 0x5e9   :  { %v2890_v25 = vpop.f32.mrf.mxu3 }
 0x5ea   :  { %v2891_v31 = vadd.f32 %v2890_v25, %v7913_v22  ;;  %v3059_v20 = vpop.f32.mrf.mxu2 }
 0x5eb   :  { %v2555_v33 = vpop.f32.mrf.mxu0 }
 0x5ec   :  { %v8713_v19 = vadd.f32 %v3059_v20, %v2891_v31  ;;  %v2556_v44 = vadd.f32 %v2555_v33, %v7901_v54  ;;  %v2724_v3 = vpop.f32.mrf.mxu1  ;;  %v3171_v20 = vmax.f32 %v8586_v12, 0.0  ;;  %v3170_v12 = vmax.f32 %v8582_v41, 0.0 }
 0x5ee   :  { %v8717_v55 = vadd.f32 %v2724_v3, %v2556_v44  ;;  %3500 = vmatmul.bf16.gmra.mxu0 %v8253_v50  ;;  %3838 = vmatmul.bf16.gmra.mxu3 %v8253_v50  ;;  %v3169_v50 = vmax.f32 %v8573_v60, 0.0  ;;  %v8747_v60 = vpack.c.bf16 %v3172_v27, %v3170_v12  ;;  %v3176_v12 = vmax.f32 %v8617_v34, 0.0 }
 0x5ef   :  { %3669 = vmatmul.bf16.gmra.mxu1 %v8267_v4  ;;  %4007 = vmatmul.bf16.gmra.mxu2 %v8267_v4 }
 0x5f0   :  { %v8733_v4 = vpack.c.bf16 %v3171_v20, %v3169_v50 }
 0x5f1   :  { %v2893_v5 = vpop.f32.mrf.mxu3 }
 0x5f2   :  { %v2894_v9 = vadd.f32 %v2893_v5, %v7913_v22  ;;  %v3062_v8 = vpop.f32.mrf.mxu2 }
 0x5f3   :  { %v2557_v52 = vpop.f32.mrf.mxu0 }
 0x5f4   :  { %v8726_v25 = vadd.f32 %v3062_v8, %v2894_v9  ;;  %v2558_v16 = vadd.f32 %v2557_v52, %v7901_v54  ;;  %v2726_v31 = vpop.f32.mrf.mxu1 }
 0x5f6   :  { %v8730_v33 = vadd.f32 %v2726_v31, %v2558_v16 }
 0x5f9   :  { %v2895_v44 = vpop.f32.mrf.mxu3 }
 0x5fa   :  { %v2896_v10 = vadd.f32 %v2895_v44, %v7913_v22  ;;  %v3064_v3 = vpop.f32.mrf.mxu2 }
 0x5fb   :  { %v2560_v5 = vpop.f32.mrf.mxu0 }
 0x5fc   :  { %v8737_v9 = vadd.f32 %v3064_v3, %v2896_v10  ;;  %v2561_v8 = vadd.f32 %v2560_v5, %v7901_v54  ;;  %v2729_v52 = vpop.f32.mrf.mxu1  ;;  %v3175_v3 = vmax.f32 %v8610_v17, 0.0  ;;  %v3174_v17 = vmax.f32 %v8606_v30, 0.0  ;;  %v5823_v30 = vld [vmem:[%s9618_s16 + $0x74] sm:$0xf] }
 0x5fe   :  { %v8741_v16 = vadd.f32 %v2729_v52, %v2561_v8  ;;  %3505 = vmatmul.bf16.gmra.mxu0 %v8277_v38  ;;  %3843 = vmatmul.bf16.gmra.mxu3 %v8277_v38  ;;  %v3173_v38 = vmax.f32 %v8597_v18, 0.0  ;;  %v8771_v18 = vpack.c.bf16 %v3176_v12, %v3174_v17  ;;  %v3179_v12 = vmax.f32 %v8634_v45, 0.0 }
 0x5ff   :  { %3674 = vmatmul.bf16.gmra.mxu1 %v8291_v2  ;;  %4012 = vmatmul.bf16.gmra.mxu2 %v8291_v2 }
 0x600   :  { %v8757_v2 = vpack.c.bf16 %v3175_v3, %v3173_v38  ;;  %9818 = vst [vmem:[#allocation5_spill] sm:$0xff] %v8771_v18  ;;  %v5517_v38 = vld [vmem:[%s9618_s16 + $0x78] sm:$0xf0] }
 0x601   :  { %v2898_v43 = vpop.f32.mrf.mxu3 }
 0x602   :  { %v2899_v31 = vadd.f32 %v2898_v43, %v7913_v22  ;;  %v3067_v20 = vpop.f32.mrf.mxu2 }
 0x603   :  { %v2562_v50 = vpop.f32.mrf.mxu0 }
 0x604   :  { %v8750_v44 = vadd.f32 %v3067_v20, %v2899_v31  ;;  %v2563_v41 = vadd.f32 %v2562_v50, %v7901_v54  ;;  %v2731_v10 = vpop.f32.mrf.mxu1 }
 0x606   :  { %v8754_v5 = vadd.f32 %v2731_v10, %v2563_v41 }
 0x609   :  { %v2900_v8 = vpop.f32.mrf.mxu3 }
 0x60a   :  { %v2901_v27 = vadd.f32 %v2900_v8, %v7913_v22  ;;  %v3069_v52 = vpop.f32.mrf.mxu2 }
 0x60b   :  { %v2565_v43 = vpop.f32.mrf.mxu0 }
 0x60c   :  { %v8761_v31 = vadd.f32 %v3069_v52, %v2901_v27  ;;  %v2566_v20 = vadd.f32 %v2565_v43, %v7901_v54  ;;  %v2734_v50 = vpop.f32.mrf.mxu1  ;;  %v3301_v43 = vld [vmem:[%s9617_s15] sm:$0x3] }
 0x60d   :  { %v8790_v17 = vperm.slane %v3301_v43, 0 }
 0x60e   :  { %v8765_v41 = vadd.f32 %v2734_v50, %v2566_v20  ;;  %3510 = vmatmul.bf16.gmra.mxu0 %v8301_v32  ;;  %3848 = vmatmul.bf16.gmra.mxu3 %v8301_v32  ;;  %v5520_v32 = vor.u32 %v5823_v30, %v5517_v38  ;;  %v3177_v50 = vmax.f32 %v8621_v23, 0.0  ;;  %v5515_v23 = vld [vmem:[%s9618_s16 + $0x70] sm:$0xf] }
 0x60f   :  { %3679 = vmatmul.bf16.gmra.mxu1 %v8315_v0  ;;  %4017 = vmatmul.bf16.gmra.mxu2 %v8315_v0 }
 0x610   :  { %4647 = vmatpush.bf16.msrb.mxu3 %v5520_v32  ;;  %v5579_v32 = vld [vmem:[%s9618_s16 + $0xf0] sm:$0xf] }
 0x611   :  { %v2903_v34 = vpop.f32.mrf.mxu3 }
 0x612   :  { %v2904_v10 = vadd.f32 %v2903_v34, %v7913_v22  ;;  %v3072_v3 = vpop.f32.mrf.mxu2  ;;  %v5839_v34 = vld [vmem:[%s9618_s16 + $0xf4] sm:$0xf] }
 0x613   :  { %v2567_v8 = vpop.f32.mrf.mxu0 }
 0x614   :  { %v8780_v27 = vadd.f32 %v3072_v3, %v2904_v10  ;;  %v2568_v0 = vadd.f32 %v2567_v8, %v7901_v54  ;;  %v2736_v52 = vpop.f32.mrf.mxu1  ;;  %v5581_v54 = vld [vmem:[%s9618_s16 + $0xf8] sm:$0xf0]  ;;  %v8798_v3 = vpack.c.bf16 %v3179_v12, %v3177_v50  ;;  %v5824_v8 = vld [vmem:[%s9618_s16 + $0x74] sm:$0xf0] }
 0x615   :  { %v5584_v10 = vor.u32 %v5839_v34, %v5581_v54  ;;  %v5516_v12 = vor.u32 %v5824_v8, %v5515_v23 }
 0x616   :  { %v8787_v20 = vadd.f32 %v2736_v52, %v2568_v0  ;;  %9819 = vst [vmem:[#allocation8_spill] sm:$0xff] %v8798_v3  ;;  %v3180_v0 = vmax.f32 %v8641_v1, 0.0  ;;  %v3178_v3 = vmax.f32 %v8630_v61, 0.0  ;;  %v8820_v1 = vperm.slane %v3301_v43, 1 }
 0x617   :  { %4660 = vmatpush.bf16.msra.mxu2 %v5584_v10  ;;  %4621 = vmatpush.bf16.msrb.mxu0 %v5516_v12  ;;  %v3181_v12 = vmax.f32 %v8645_v62, 0.0 }
 0x618   :  { %v8824_v10 = vpack.c.bf16 %v3180_v0, %v3178_v3 }
 0x619   :  { %v2905_v45 = vpop.f32.mrf.mxu3 }
 0x61a   :  { %v2906_v30 = vadd.f32 %v2905_v45, %v7913_v22  ;;  %v3074_v38 = vpop.f32.mrf.mxu2  ;;  %v5840_v22 = vld [vmem:[%s9618_s16 + $0xf4] sm:$0xf0]  ;;  %9820 = vst [vmem:[#allocation13_spill] sm:$0xff] %v8824_v10 }
 0x61b   :  { %v3476_v52 = vpop.f32.mrf.mxu0  ;;  %v5580_v45 = vor.u32 %v5840_v22, %v5579_v32 }
 0x61c   :  { %v8814_v50 = vadd.f32 %v3074_v38, %v2906_v30  ;;  %v3477_v34 = vadd.f32 %v3476_v52, %v8790_v17  ;;  %v3645_v54 = vpop.f32.mrf.mxu1 }
 0x61d   :  { %4634 = vmatpush.bf16.msrb.mxu1 %v5580_v45 }
 0x61e   :  { %v3646_v18 = vadd.f32 %v3645_v54, %v3477_v34  ;;  %3515 = vmatmul.bf16.gmra.mxu0 %v8349_v14  ;;  %3853 = vmatmul.bf16.gmra.mxu3 %v8349_v14  ;;  %v3183_v14 = vmax.f32 %v8658_v49, 0.0  ;;  %v3182_v49 = vmax.f32 %v8654_v36, 0.0 }
 0x61f   :  { %3684 = vmatmul.bf16.gmra.mxu1 %v8363_v39  ;;  %4022 = vmatmul.bf16.gmra.mxu2 %v8363_v39 }
 0x620   :  { %v4143_v22 = vmax.f32 %v3646_v18, 0.0  ;;  %v8830_v3 = vpack.c.bf16 %v3183_v14, %v3181_v12 }
 0x621   :  { %v3814_v30 = vpop.f32.mrf.mxu3 }
 0x622   :  { %v3815_v38 = vadd.f32 %v3814_v30, %v8820_v1  ;;  %v3983_v23 = vpop.f32.mrf.mxu2  ;;  %v3184_v30 = vmax.f32 %v8665_v29, 0.0 }
 0x623   :  { %v3478_v61 = vpop.f32.mrf.mxu0 }
 0x624   :  { %v3984_v8 = vadd.f32 %v3983_v23, %v3815_v38  ;;  %v3479_v32 = vadd.f32 %v3478_v61, %v8790_v17  ;;  %v3647_v52 = vpop.f32.mrf.mxu1  ;;  %v8840_v14 = vpack.c.bf16 %v3184_v30, %v3182_v49 }
 0x626   :  { %v3648_v43 = vadd.f32 %v3647_v52, %v3479_v32  ;;  %v4144_v32 = vmax.f32 %v3984_v8, 0.0  ;;  %v9821_v52 = vld [vmem:[#allocation19_spill] sm:$0xff] }
 0x628   :  { %v4145_v34 = vmax.f32 %v3648_v43, 0.0 }
 0x629   :  { %v3816_v39 = vpop.f32.mrf.mxu3 }
 0x62a   :  { %v4271_v0 = vadd.f32 %v4145_v34, %v4143_v22  ;;  %v3817_v54 = vadd.f32 %v3816_v39, %v8820_v1  ;;  %v3985_v45 = vpop.f32.mrf.mxu2 }
 0x62b   :  { %v3481_v38 = vpop.f32.mrf.mxu0 }
 0x62c   :  { %v3986_v23 = vadd.f32 %v3985_v45, %v3817_v54  ;;  %v3482_v61 = vadd.f32 %v3481_v38, %v8790_v17  ;;  %v3650_v10 = vpop.f32.mrf.mxu1 }
 0x62e   :  { %v4146_v62 = vmax.f32 %v3986_v23, 0.0  ;;  %v3651_v18 = vadd.f32 %v3650_v10, %v3482_v61  ;;  %3520 = vmatmul.bf16.gmra.mxu0 %v8373_v28  ;;  %3858 = vmatmul.bf16.gmra.mxu3 %v8373_v28  ;;  %v3187_v28 = vmax.f32 %v8682_v7, 0.0  ;;  %v3185_v23 = vmax.f32 %v8669_v58, 0.0 }
 0x62f   :  { %3689 = vmatmul.bf16.gmra.mxu1 %v9821_v52  ;;  %4027 = vmatmul.bf16.gmra.mxu2 %v9821_v52  ;;  %v3188_v52 = vmax.f32 %v8689_v24, 0.0 }
 0x630   :  { %v4308_v29 = vadd.f32 %v4146_v62, %v4144_v32  ;;  %v4147_v43 = vmax.f32 %v3651_v18, 0.0  ;;  %v8846_v32 = vpack.c.bf16 %v3187_v28, %v3185_v23 }
 0x631   :  { %v3819_v12 = vpop.f32.mrf.mxu3 }
 0x632   :  { %v4272_v22 = vadd.f32 %v4271_v0, %v4147_v43  ;;  %v3820_v34 = vadd.f32 %v3819_v12, %v8820_v1  ;;  %v3988_v36 = vpop.f32.mrf.mxu2 }
 0x633   :  { %v3483_v8 = vpop.f32.mrf.mxu0 }
 0x634   :  { %v3989_v39 = vadd.f32 %v3988_v36, %v3820_v34  ;;  %v3484_v10 = vadd.f32 %v3483_v8, %v8790_v17  ;;  %v3652_v54 = vpop.f32.mrf.mxu1  ;;  %v3186_v36 = vmax.f32 %v8678_v63, 0.0 }
 0x636   :  { %v4148_v45 = vmax.f32 %v3989_v39, 0.0  ;;  %v3653_v38 = vadd.f32 %v3652_v54, %v3484_v10  ;;  %v9823_v39 = vld [vmem:[#allocation21_spill] sm:$0xff] }
 0x638   :  { %v4309_v30 = vadd.f32 %v4308_v29, %v4148_v45  ;;  %v4149_v61 = vmax.f32 %v3653_v38, 0.0  ;;  %v9822_v29 = vld [vmem:[#allocation20_spill] sm:$0xff] }
 0x639   :  { %v3821_v49 = vpop.f32.mrf.mxu3 }
 0x63a   :  { %v4273_v0 = vadd.f32 %v4272_v22, %v4149_v61  ;;  %v3822_v62 = vadd.f32 %v3821_v49, %v8820_v1  ;;  %v3990_v18 = vpop.f32.mrf.mxu2  ;;  %v8856_v22 = vpack.c.bf16 %v3188_v52, %v3186_v36 }
 0x63b   :  { %v3486_v43 = vpop.f32.mrf.mxu0 }
 0x63c   :  { %v3991_v12 = vadd.f32 %v3990_v18, %v3822_v62  ;;  %v3487_v34 = vadd.f32 %v3486_v43, %v8790_v17  ;;  %v3655_v7 = vpop.f32.mrf.mxu1  ;;  %v3191_v62 = vmax.f32 %v8706_v47, 0.0 }
 0x63e   :  { %v4150_v8 = vmax.f32 %v3991_v12, 0.0  ;;  %v3656_v58 = vadd.f32 %v3655_v7, %v3487_v34  ;;  %3525 = vmatmul.bf16.gmra.mxu0 %v9822_v29  ;;  %3863 = vmatmul.bf16.gmra.mxu3 %v9822_v29  ;;  %v3189_v12 = vmax.f32 %v8693_v6, 0.0 }
 0x63f   :  { %3694 = vmatmul.bf16.gmra.mxu1 %v9823_v39  ;;  %4032 = vmatmul.bf16.gmra.mxu2 %v9823_v39 }
 0x640   :  { %v4310_v24 = vadd.f32 %v4309_v30, %v4150_v8  ;;  %v4151_v10 = vmax.f32 %v3656_v58, 0.0  ;;  %v8862_v7 = vpack.c.bf16 %v3191_v62, %v3189_v12  ;;  %v3192_v58 = vmax.f32 %v8713_v19, 0.0 }
 0x641   :  { %v3824_v54 = vpop.f32.mrf.mxu3 }
 0x642   :  { %v4274_v28 = vadd.f32 %v4273_v0, %v4151_v10  ;;  %v3825_v45 = vadd.f32 %v3824_v54, %v8820_v1  ;;  %v3993_v38 = vpop.f32.mrf.mxu2  ;;  %v3190_v54 = vmax.f32 %v8702_v57, 0.0  ;;  %v5821_v57 = vld [vmem:[%s9618_s16 + $0x64] sm:$0xf] }
 0x643   :  { %v3488_v63 = vpop.f32.mrf.mxu0 }
 0x644   :  { %v3994_v23 = vadd.f32 %v3993_v38, %v3825_v45  ;;  %v3489_v61 = vadd.f32 %v3488_v63, %v8790_v17  ;;  %v3657_v49 = vpop.f32.mrf.mxu1  ;;  %v9825_v38 = vld [vmem:[#allocation23_spill] sm:$0xff] }
 0x646   :  { %v4152_v18 = vmax.f32 %v3994_v23, 0.0  ;;  %v3658_v43 = vadd.f32 %v3657_v49, %v3489_v61 }
 0x648   :  { %v4311_v52 = vadd.f32 %v4310_v24, %v4152_v18  ;;  %v4153_v34 = vmax.f32 %v3658_v43, 0.0  ;;  %v9824_v24 = vld [vmem:[#allocation22_spill] sm:$0xff] }
 0x649   :  { %v3826_v30 = vpop.f32.mrf.mxu3  ;;  %v5509_v18 = vld [vmem:[%s9618_s16 + $0x68] sm:$0xf0] }
 0x64a   :  { %v4275_v0 = vadd.f32 %v4274_v28, %v4153_v34  ;;  %v3827_v36 = vadd.f32 %v3826_v30, %v8820_v1  ;;  %v3995_v8 = vpop.f32.mrf.mxu2  ;;  %v8872_v28 = vpack.c.bf16 %v3192_v58, %v3190_v54  ;;  %v5512_v12 = vor.u32 %v5821_v57, %v5509_v18 }
 0x64b   :  { %v3491_v29 = vpop.f32.mrf.mxu0  ;;  %v3193_v58 = vmax.f32 %v8717_v55, 0.0  ;;  %v5507_v55 = vld [vmem:[%s9618_s16 + $0x60] sm:$0xf] }
 0x64c   :  { %v3996_v39 = vadd.f32 %v3995_v8, %v3827_v36  ;;  %v3492_v10 = vadd.f32 %v3491_v29, %v8790_v17  ;;  %v3660_v47 = vpop.f32.mrf.mxu1  ;;  %v3195_v36 = vmax.f32 %v8730_v33, 0.0  ;;  %4648 = vmatpush.bf16.msrb.mxu3 %v5512_v12 }
 0x64e   :  { %v4154_v45 = vmax.f32 %v3996_v39, 0.0  ;;  %v3661_v6 = vadd.f32 %v3660_v47, %v3492_v10  ;;  %3530 = vmatmul.bf16.gmra.mxu0 %v9824_v24  ;;  %3868 = vmatmul.bf16.gmra.mxu3 %v9824_v24  ;;  %v5837_v10 = vld [vmem:[%s9618_s16 + $0xe4] sm:$0xf]  ;;  %v5573_v47 = vld [vmem:[%s9618_s16 + $0xe8] sm:$0xf0] }
 0x64f   :  { %3699 = vmatmul.bf16.gmra.mxu1 %v9825_v38  ;;  %4037 = vmatmul.bf16.gmra.mxu2 %v9825_v38 }
 0x650   :  { %v4312_v19 = vadd.f32 %v4311_v52, %v4154_v45  ;;  %v4155_v63 = vmax.f32 %v3661_v6, 0.0  ;;  %v5576_v45 = vor.u32 %v5837_v10, %v5573_v47  ;;  %v8890_v6 = vpack.c.bf16 %v3195_v36, %v3193_v58 }
 0x651   :  { %v3829_v23 = vpop.f32.mrf.mxu3 }
 0x652   :  { %v4276_v61 = vadd.f32 %v4275_v0, %v4155_v63  ;;  %v3830_v49 = vadd.f32 %v3829_v23, %v8820_v1  ;;  %v3998_v62 = vpop.f32.mrf.mxu2  ;;  %v5571_v63 = vld [vmem:[%s9618_s16 + $0xe0] sm:$0xf]  ;;  %v3196_v23 = vmax.f32 %v8737_v9, 0.0  ;;  %4661 = vmatpush.bf16.msra.mxu2 %v5576_v45 }
 0x653   :  { %v3493_v43 = vpop.f32.mrf.mxu0 }
 0x654   :  { %v3999_v34 = vadd.f32 %v3998_v62, %v3830_v49  ;;  %v3494_v30 = vadd.f32 %v3493_v43, %v8790_v17  ;;  %v3662_v52 = vpop.f32.mrf.mxu1  ;;  %v5838_v62 = vld [vmem:[%s9618_s16 + $0xe4] sm:$0xf0] }
 0x655   :  { %v5572_v12 = vor.u32 %v5838_v62, %v5571_v63 }
 0x656   :  { %v4156_v0 = vmax.f32 %v3999_v34, 0.0  ;;  %v3663_v8 = vadd.f32 %v3662_v52, %v3494_v30  ;;  %v3194_v34 = vmax.f32 %v8726_v25, 0.0 }
 0x657   :  { %4635 = vmatpush.bf16.msrb.mxu1 %v5572_v12 }
 0x658   :  { %v4313_v29 = vadd.f32 %v4312_v19, %v4156_v0  ;;  %v4157_v39 = vmax.f32 %v3663_v8, 0.0  ;;  %v5822_v19 = vld [vmem:[%s9618_s16 + $0x64] sm:$0xf0]  ;;  %v8912_v9 = vpack.c.bf16 %v3196_v23, %v3194_v34 }
 0x659   :  { %v3831_v54 = vpop.f32.mrf.mxu3 }
 0x65a   :  { %v4277_v33 = vadd.f32 %v4276_v61, %v4157_v39  ;;  %v3832_v24 = vadd.f32 %v3831_v54, %v8820_v1  ;;  %v4000_v38 = vpop.f32.mrf.mxu2  ;;  %v5508_v61 = vor.u32 %v5822_v19, %v5507_v55 }
 0x65b   :  { %v3496_v49 = vpop.f32.mrf.mxu0 }
 0x65c   :  { %v4001_v57 = vadd.f32 %v4000_v38, %v3832_v24  ;;  %v3497_v18 = vadd.f32 %v3496_v49, %v8790_v17  ;;  %v3665_v43 = vpop.f32.mrf.mxu1  ;;  %4622 = vmatpush.bf16.msrb.mxu0 %v5508_v61  ;;  %v3200_v61 = vmax.f32 %v8761_v31, 0.0 }
 0x65e   :  { %v4158_v30 = vmax.f32 %v4001_v57, 0.0  ;;  %v3666_v52 = vadd.f32 %v3665_v43, %v3497_v18  ;;  %3535 = vmatmul.bf16.gmra.mxu0 %v8469_v15  ;;  %3873 = vmatmul.bf16.gmra.mxu3 %v8469_v15  ;;  %v3199_v15 = vmax.f32 %v8754_v5, 0.0  ;;  %v3198_v43 = vmax.f32 %v8750_v44, 0.0 }
 0x65f   :  { %3704 = vmatmul.bf16.gmra.mxu1 %v8483_v37  ;;  %4042 = vmatmul.bf16.gmra.mxu2 %v8483_v37  ;;  %v3197_v37 = vmax.f32 %v8741_v16, 0.0 }
 0x660   :  { %v4314_v36 = vadd.f32 %v4313_v29, %v4158_v30  ;;  %v4159_v0 = vmax.f32 %v3666_v52, 0.0  ;;  %v8928_v34 = vpack.c.bf16 %v3200_v61, %v3198_v43 }
 0x661   :  { %v3834_v8 = vpop.f32.mrf.mxu3  ;;  %v8918_v63 = vpack.c.bf16 %v3199_v15, %v3197_v37 }
 0x662   :  { %v4278_v58 = vadd.f32 %v4277_v33, %v4159_v0  ;;  %v3835_v25 = vadd.f32 %v3834_v8, %v8820_v1  ;;  %v4003_v39 = vpop.f32.mrf.mxu2 }
 0x663   :  { %v3498_v10 = vpop.f32.mrf.mxu0 }
 0x664   :  { %v4004_v47 = vadd.f32 %v4003_v39, %v3835_v25  ;;  %v3499_v54 = vadd.f32 %v3498_v10, %v8790_v17  ;;  %v3667_v45 = vpop.f32.mrf.mxu1 }
 0x666   :  { %v4160_v24 = vmax.f32 %v4004_v47, 0.0  ;;  %v3668_v38 = vadd.f32 %v3667_v45, %v3499_v54 }
 0x668   :  { %v4315_v55 = vadd.f32 %v4314_v36, %v4160_v24  ;;  %v4161_v29 = vmax.f32 %v3668_v38, 0.0 }
 0x669   :  { %v3836_v19 = vpop.f32.mrf.mxu3 }
 0x66a   :  { %v4279_v33 = vadd.f32 %v4278_v58, %v4161_v29  ;;  %v3837_v23 = vadd.f32 %v3836_v19, %v8820_v1  ;;  %v4005_v49 = vpop.f32.mrf.mxu2  ;;  %v3204_v29 = vmax.f32 %v8814_v50, 0.0 }
 0x66b   :  { %v3501_v62 = vpop.f32.mrf.mxu0 }
 0x66c   :  { %v4006_v57 = vadd.f32 %v4005_v49, %v3837_v23  ;;  %v3502_v18 = vadd.f32 %v3501_v62, %v8790_v17  ;;  %v3670_v5 = vpop.f32.mrf.mxu1  ;;  %v3202_v49 = vmax.f32 %v8780_v27, 0.0 }
 0x66e   :  { %v4162_v12 = vmax.f32 %v4006_v57, 0.0  ;;  %v3671_v16 = vadd.f32 %v3670_v5, %v3502_v18  ;;  %3540 = vmatmul.bf16.gmra.mxu0 %v8493_v59  ;;  %3878 = vmatmul.bf16.gmra.mxu3 %v8493_v59  ;;  %v3203_v59 = vmax.f32 %v8787_v20, 0.0  ;;  %v8944_v62 = vpack.c.bf16 %v3204_v29, %v3202_v49 }
 0x66f   :  { %3709 = vmatmul.bf16.gmra.mxu1 %v8507_v35  ;;  %4047 = vmatmul.bf16.gmra.mxu2 %v8507_v35  ;;  %v3201_v35 = vmax.f32 %v8765_v41, 0.0 }
 0x670   :  { %v4316_v31 = vadd.f32 %v4315_v55, %v4162_v12  ;;  %v4163_v30 = vmax.f32 %v3671_v16, 0.0 }
 0x671   :  { %v3839_v52 = vpop.f32.mrf.mxu3  ;;  %v8934_v24 = vpack.c.bf16 %v3203_v59, %v3201_v35 }
 0x672   :  { %v4280_v36 = vadd.f32 %v4279_v33, %v4163_v30  ;;  %v3840_v0 = vadd.f32 %v3839_v52, %v8820_v1  ;;  %v4008_v8 = vpop.f32.mrf.mxu2 }
 0x673   :  { %v3503_v44 = vpop.f32.mrf.mxu0 }
 0x674   :  { %v4009_v58 = vadd.f32 %v4008_v8, %v3840_v0  ;;  %v3504_v25 = vadd.f32 %v3503_v44, %v8790_v17  ;;  %v3672_v39 = vpop.f32.mrf.mxu1 }
 0x676   :  { %v4164_v10 = vmax.f32 %v4009_v58, 0.0  ;;  %v3673_v47 = vadd.f32 %v3672_v39, %v3504_v25 }
 0x678   :  { %v4317_v54 = vadd.f32 %v4316_v31, %v4164_v10  ;;  %v4165_v45 = vmax.f32 %v3673_v47, 0.0 }
 0x679   :  { %v3841_v15 = vpop.f32.mrf.mxu3 }
 0x67a   :  { %v4281_v38 = vadd.f32 %v4280_v36, %v4165_v45  ;;  %v3842_v37 = vadd.f32 %v3841_v15, %v8820_v1  ;;  %v4010_v55 = vpop.f32.mrf.mxu2 }
 0x67b   :  { %v3506_v19 = vpop.f32.mrf.mxu0 }
 0x67c   :  { %v4011_v33 = vadd.f32 %v4010_v55, %v3842_v37  ;;  %v3507_v23 = vadd.f32 %v3506_v19, %v8790_v17  ;;  %v3675_v20 = vpop.f32.mrf.mxu1  ;;  %v5819_v19 = vld [vmem:[%s9618_s16 + $0x54] sm:$0xf] }
 0x67e   :  { %v4166_v61 = vmax.f32 %v4011_v33, 0.0  ;;  %v3676_v41 = vadd.f32 %v3675_v20, %v3507_v23  ;;  %3545 = vmatmul.bf16.gmra.mxu0 %v8517_v13  ;;  %3883 = vmatmul.bf16.gmra.mxu3 %v8517_v13  ;;  %v5501_v33 = vld [vmem:[%s9618_s16 + $0x58] sm:$0xf0] }
 0x67f   :  { %3714 = vmatmul.bf16.gmra.mxu1 %v8531_v42  ;;  %4052 = vmatmul.bf16.gmra.mxu2 %v8531_v42  ;;  %v5504_v23 = vor.u32 %v5819_v19, %v5501_v33 }
 0x680   :  { %v4318_v50 = vadd.f32 %v4317_v54, %v4166_v61  ;;  %v4167_v57 = vmax.f32 %v3676_v41, 0.0  ;;  %v9826_v54 = vld [vmem:[#allocation24_spill] sm:$0xff] }
 0x681   :  { %v3844_v18 = vpop.f32.mrf.mxu3  ;;  %4649 = vmatpush.bf16.msrb.mxu3 %v5504_v23 }
 0x682   :  { %v4282_v5 = vadd.f32 %v4281_v38, %v4167_v57  ;;  %v3845_v43 = vadd.f32 %v3844_v18, %v8820_v1  ;;  %v4013_v12 = vpop.f32.mrf.mxu2 }
 0x683   :  { %v3508_v27 = vpop.f32.mrf.mxu0 }
 0x684   :  { %v4014_v16 = vadd.f32 %v4013_v12, %v3845_v43  ;;  %v3509_v31 = vadd.f32 %v3508_v27, %v8790_v17  ;;  %v3677_v30 = vpop.f32.mrf.mxu1  ;;  %v5565_v43 = vld [vmem:[%s9618_s16 + $0xd8] sm:$0xf0] }
 0x686   :  { %v4168_v52 = vmax.f32 %v4014_v16, 0.0  ;;  %v3678_v13 = vadd.f32 %v3677_v30, %v3509_v31 }
 0x688   :  { %v4319_v36 = vadd.f32 %v4318_v50, %v4168_v52  ;;  %v4169_v0 = vmax.f32 %v3678_v13, 0.0  ;;  %v5499_v52 = vld [vmem:[%s9618_s16 + $0x50] sm:$0xf]  ;;  %v5820_v13 = vld [vmem:[%s9618_s16 + $0x54] sm:$0xf0] }
 0x689   :  { %v3846_v8 = vpop.f32.mrf.mxu3 }
 0x68a   :  { %v4283_v42 = vadd.f32 %v4282_v5, %v4169_v0  ;;  %v3847_v44 = vadd.f32 %v3846_v8, %v8820_v1  ;;  %v4015_v58 = vpop.f32.mrf.mxu2  ;;  %v5835_v5 = vld [vmem:[%s9618_s16 + $0xd4] sm:$0xf]  ;;  %v5500_v8 = vor.u32 %v5820_v13, %v5499_v52  ;;  %v9830_v52 = vld [vmem:[#allocation10_spill] sm:$0xff] }
 0x68b   :  { %v3511_v25 = vpop.f32.mrf.mxu0  ;;  %v5568_v27 = vor.u32 %v5835_v5, %v5565_v43 }
 0x68c   :  { %v4016_v39 = vadd.f32 %v4015_v58, %v3847_v44  ;;  %v3512_v59 = vadd.f32 %v3511_v25, %v8790_v17  ;;  %v3680_v10 = vpop.f32.mrf.mxu1  ;;  %4623 = vmatpush.bf16.msrb.mxu0 %v5500_v8 }
 0x68d   :  { %4662 = vmatpush.bf16.msra.mxu2 %v5568_v27 }
 0x68e   :  { %v4170_v47 = vmax.f32 %v4016_v39, 0.0  ;;  %v3681_v35 = vadd.f32 %v3680_v10, %v3512_v59  ;;  %3550 = vmatmul.bf16.gmra.mxu0 %v8541_v46  ;;  %3888 = vmatmul.bf16.gmra.mxu3 %v8541_v46 }
 0x68f   :  { %3719 = vmatmul.bf16.gmra.mxu1 %v9826_v54  ;;  %4057 = vmatmul.bf16.gmra.mxu2 %v9826_v54 }
 0x690   :  { %v4320_v45 = vadd.f32 %v4319_v36, %v4170_v47  ;;  %v4171_v15 = vmax.f32 %v3681_v35, 0.0  ;;  %v5563_v36 = vld [vmem:[%s9618_s16 + $0xd0] sm:$0xf]  ;;  %v9827_v47 = vld [vmem:[#allocation25_spill] sm:$0xff] }
 0x691   :  { %v3849_v38 = vpop.f32.mrf.mxu3  ;;  %v9828_v35 = vld [vmem:[#allocation26_spill] sm:$0xff] }
 0x692   :  { %v4284_v37 = vadd.f32 %v4283_v42, %v4171_v15  ;;  %v3850_v55 = vadd.f32 %v3849_v38, %v8820_v1  ;;  %v4018_v29 = vpop.f32.mrf.mxu2  ;;  %v5836_v42 = vld [vmem:[%s9618_s16 + $0xd4] sm:$0xf0] }
 0x693   :  { %v3513_v46 = vpop.f32.mrf.mxu0  ;;  %v5564_v39 = vor.u32 %v5836_v42, %v5563_v36 }
 0x694   :  { %v4019_v20 = vadd.f32 %v4018_v29, %v3850_v55  ;;  %v3514_v49 = vadd.f32 %v3513_v46, %v8790_v17  ;;  %v3682_v61 = vpop.f32.mrf.mxu1 }
 0x695   :  { %4636 = vmatpush.bf16.msrb.mxu1 %v5564_v39 }
 0x696   :  { %v4172_v41 = vmax.f32 %v4019_v20, 0.0  ;;  %v3683_v50 = vadd.f32 %v3682_v61, %v3514_v49 }
 0x698   :  { %v4321_v57 = vadd.f32 %v4320_v45, %v4172_v41  ;;  %v4173_v18 = vmax.f32 %v3683_v50, 0.0 }
 0x699   :  { %v3851_v12 = vpop.f32.mrf.mxu3 }
 0x69a   :  { %v4285_v16 = vadd.f32 %v4284_v37, %v4173_v18  ;;  %v3852_v31 = vadd.f32 %v3851_v12, %v8820_v1  ;;  %v4020_v30 = vpop.f32.mrf.mxu2 }
 0x69b   :  { %v3516_v0 = vpop.f32.mrf.mxu0 }
 0x69c   :  { %v4021_v44 = vadd.f32 %v4020_v30, %v3852_v31  ;;  %v3517_v58 = vadd.f32 %v3516_v0, %v8790_v17  ;;  %v3685_v25 = vpop.f32.mrf.mxu1  ;;  %v9829_v30 = vld [vmem:[#allocation9_spill] sm:$0xff] }
 0x69e   :  { %v4174_v59 = vmax.f32 %v4021_v44, 0.0  ;;  %v3686_v10 = vadd.f32 %v3685_v25, %v3517_v58  ;;  %3555 = vmatmul.bf16.gmra.mxu0 %v9827_v47  ;;  %3893 = vmatmul.bf16.gmra.mxu3 %v9827_v47 }
 0x69f   :  { %3724 = vmatmul.bf16.gmra.mxu1 %v9828_v35  ;;  %4062 = vmatmul.bf16.gmra.mxu2 %v9828_v35 }
 0x6a0   :  { %v4322_v54 = vadd.f32 %v4321_v57, %v4174_v59  ;;  %v4175_v45 = vmax.f32 %v3686_v10, 0.0 }
 0x6a1   :  { %v3854_v15 = vpop.f32.mrf.mxu3 }
 0x6a2   :  { %v4286_v38 = vadd.f32 %v4285_v16, %v4175_v45  ;;  %v3855_v37 = vadd.f32 %v3854_v15, %v8820_v1  ;;  %v4023_v55 = vpop.f32.mrf.mxu2 }
 0x6a3   :  { %v3518_v29 = vpop.f32.mrf.mxu0 }
 0x6a4   :  { %v4024_v19 = vadd.f32 %v4023_v55, %v3855_v37  ;;  %v3519_v33 = vadd.f32 %v3518_v29, %v8790_v17  ;;  %v3687_v46 = vpop.f32.mrf.mxu1 }
 0x6a6   :  { %v4176_v23 = vmax.f32 %v4024_v19, 0.0  ;;  %v3688_v20 = vadd.f32 %v3687_v46, %v3519_v33 }
 0x6a8   :  { %v4323_v49 = vadd.f32 %v4322_v54, %v4176_v23  ;;  %v4177_v61 = vmax.f32 %v3688_v20, 0.0 }
 0x6a9   :  { %v3856_v41 = vpop.f32.mrf.mxu3 }
 0x6aa   :  { %v4287_v50 = vadd.f32 %v4286_v38, %v4177_v61  ;;  %v3857_v57 = vadd.f32 %v3856_v41, %v8820_v1  ;;  %v4025_v18 = vpop.f32.mrf.mxu2 }
 0x6ab   :  { %v3521_v5 = vpop.f32.mrf.mxu0 }
 0x6ac   :  { %v4026_v43 = vadd.f32 %v4025_v18, %v3857_v57  ;;  %v3522_v12 = vadd.f32 %v3521_v5, %v8790_v17  ;;  %v3690_v27 = vpop.f32.mrf.mxu1 }
 0x6ae   :  { %v4178_v16 = vmax.f32 %v4026_v43, 0.0  ;;  %v3691_v31 = vadd.f32 %v3690_v27, %v3522_v12  ;;  %3560 = vmatmul.bf16.gmra.mxu0 %v9829_v30  ;;  %3898 = vmatmul.bf16.gmra.mxu3 %v9829_v30 }
 0x6af   :  { %3729 = vmatmul.bf16.gmra.mxu1 %v9830_v52  ;;  %4067 = vmatmul.bf16.gmra.mxu2 %v9830_v52 }
 0x6b0   :  { %v4324_v13 = vadd.f32 %v4323_v49, %v4178_v16  ;;  %v4179_v36 = vmax.f32 %v3691_v31, 0.0 }
 0x6b1   :  { %v3859_v0 = vpop.f32.mrf.mxu3 }
 0x6b2   :  { %v4288_v8 = vadd.f32 %v4287_v50, %v4179_v36  ;;  %v3860_v42 = vadd.f32 %v3859_v0, %v8820_v1  ;;  %v4028_v44 = vpop.f32.mrf.mxu2 }
 0x6b3   :  { %v3523_v58 = vpop.f32.mrf.mxu0 }
 0x6b4   :  { %v4029_v25 = vadd.f32 %v4028_v44, %v3860_v42  ;;  %v3524_v39 = vadd.f32 %v3523_v58, %v8790_v17  ;;  %v3692_v59 = vpop.f32.mrf.mxu1 }
 0x6b6   :  { %v4180_v10 = vmax.f32 %v4029_v25, 0.0  ;;  %v3693_v47 = vadd.f32 %v3692_v59, %v3524_v39 }
 0x6b8   :  { %v4325_v35 = vadd.f32 %v4324_v13, %v4180_v10  ;;  %v4181_v54 = vmax.f32 %v3693_v47, 0.0 }
 0x6b9   :  { %v3861_v45 = vpop.f32.mrf.mxu3 }
 0x6ba   :  { %v4289_v15 = vadd.f32 %v4288_v8, %v4181_v54  ;;  %v3862_v38 = vadd.f32 %v3861_v45, %v8820_v1  ;;  %v4030_v37 = vpop.f32.mrf.mxu2  ;;  %v5817_v54 = vld [vmem:[%s9618_s16 + $0x44] sm:$0xf]  ;;  %v5493_v45 = vld [vmem:[%s9618_s16 + $0x48] sm:$0xf0] }
 0x6bb   :  { %v3526_v55 = vpop.f32.mrf.mxu0 }
 0x6bc   :  { %v4031_v29 = vadd.f32 %v4030_v37, %v3862_v38  ;;  %v3527_v19 = vadd.f32 %v3526_v55, %v8790_v17  ;;  %v3695_v33 = vpop.f32.mrf.mxu1 }
 0x6be   :  { %v4182_v46 = vmax.f32 %v4031_v29, 0.0  ;;  %v3696_v23 = vadd.f32 %v3695_v33, %v3527_v19  ;;  %3565 = vmatmul.bf16.gmra.mxu0 %v8613_v26  ;;  %3903 = vmatmul.bf16.gmra.mxu3 %v8613_v26 }
 0x6bf   :  { %3734 = vmatmul.bf16.gmra.mxu1 %v8627_v11  ;;  %4072 = vmatmul.bf16.gmra.mxu2 %v8627_v11 }
 0x6c0   :  { %v4326_v20 = vadd.f32 %v4325_v35, %v4182_v46  ;;  %v4183_v49 = vmax.f32 %v3696_v23, 0.0  ;;  %v5833_v46 = vld [vmem:[%s9618_s16 + $0xc4] sm:$0xf]  ;;  %v5557_v23 = vld [vmem:[%s9618_s16 + $0xc8] sm:$0xf0] }
 0x6c1   :  { %v3864_v61 = vpop.f32.mrf.mxu3 }
 0x6c2   :  { %v4290_v41 = vadd.f32 %v4289_v15, %v4183_v49  ;;  %v3865_v50 = vadd.f32 %v3864_v61, %v8820_v1  ;;  %v4033_v57 = vpop.f32.mrf.mxu2  ;;  %v5496_v15 = vor.u32 %v5817_v54, %v5493_v45  ;;  %v5560_v49 = vor.u32 %v5833_v46, %v5557_v23 }
 0x6c3   :  { %v3528_v18 = vpop.f32.mrf.mxu0 }
 0x6c4   :  { %v4034_v5 = vadd.f32 %v4033_v57, %v3865_v50  ;;  %v3529_v43 = vadd.f32 %v3528_v18, %v8790_v17  ;;  %v3697_v12 = vpop.f32.mrf.mxu1  ;;  %4650 = vmatpush.bf16.msrb.mxu3 %v5496_v15  ;;  %v5491_v57 = vld [vmem:[%s9618_s16 + $0x40] sm:$0xf]  ;;  %v5818_v18 = vld [vmem:[%s9618_s16 + $0x44] sm:$0xf0]  ;;  %4663 = vmatpush.bf16.msra.mxu2 %v5560_v49 }
 0x6c6   :  { %v4184_v27 = vmax.f32 %v4034_v5, 0.0  ;;  %v3698_v16 = vadd.f32 %v3697_v12, %v3529_v43  ;;  %v5555_v5 = vld [vmem:[%s9618_s16 + $0xc0] sm:$0xf]  ;;  %v5492_v12 = vor.u32 %v5818_v18, %v5491_v57 }
 0x6c8   :  { %v4327_v31 = vadd.f32 %v4326_v20, %v4184_v27  ;;  %v4185_v26 = vmax.f32 %v3698_v16, 0.0  ;;  %v5834_v27 = vld [vmem:[%s9618_s16 + $0xc4] sm:$0xf0]  ;;  %4624 = vmatpush.bf16.msrb.mxu0 %v5492_v12 }
 0x6c9   :  { %v3866_v30 = vpop.f32.mrf.mxu3 }
 0x6ca   :  { %v4291_v52 = vadd.f32 %v4290_v41, %v4185_v26  ;;  %v3867_v11 = vadd.f32 %v3866_v30, %v8820_v1  ;;  %v4035_v13 = vpop.f32.mrf.mxu2  ;;  %v5556_v30 = vor.u32 %v5834_v27, %v5555_v5 }
 0x6cb   :  { %v3531_v36 = vpop.f32.mrf.mxu0 }
 0x6cc   :  { %v4036_v0 = vadd.f32 %v4035_v13, %v3867_v11  ;;  %v3532_v8 = vadd.f32 %v3531_v36, %v8790_v17  ;;  %v3700_v42 = vpop.f32.mrf.mxu1  ;;  %v9831_v13 = vld [vmem:[#allocation12_spill] sm:$0xff]  ;;  %v9832_v36 = vld [vmem:[#allocation11_spill] sm:$0xff]  ;;  %4637 = vmatpush.bf16.msrb.mxu1 %v5556_v30 }
 0x6ce   :  { %v4186_v44 = vmax.f32 %v4036_v0, 0.0  ;;  %v3701_v58 = vadd.f32 %v3700_v42, %v3532_v8  ;;  %3570 = vmatmul.bf16.gmra.mxu0 %v8637_v48  ;;  %3908 = vmatmul.bf16.gmra.mxu3 %v8637_v48 }
 0x6cf   :  { %3739 = vmatmul.bf16.gmra.mxu1 %v8651_v56  ;;  %4077 = vmatmul.bf16.gmra.mxu2 %v8651_v56 }
 0x6d0   :  { %v4328_v25 = vadd.f32 %v4327_v31, %v4186_v44  ;;  %v4187_v39 = vmax.f32 %v3701_v58, 0.0 }
 0x6d1   :  { %v3869_v59 = vpop.f32.mrf.mxu3 }
 0x6d2   :  { %v4292_v10 = vadd.f32 %v4291_v52, %v4187_v39  ;;  %v3870_v47 = vadd.f32 %v3869_v59, %v8820_v1  ;;  %v4038_v35 = vpop.f32.mrf.mxu2 }
 0x6d3   :  { %v3533_v48 = vpop.f32.mrf.mxu0 }
 0x6d4   :  { %v4039_v38 = vadd.f32 %v4038_v35, %v3870_v47  ;;  %v3534_v56 = vadd.f32 %v3533_v48, %v8790_v17  ;;  %v3702_v37 = vpop.f32.mrf.mxu1 }
 0x6d6   :  { %v4188_v55 = vmax.f32 %v4039_v38, 0.0  ;;  %v3703_v29 = vadd.f32 %v3702_v37, %v3534_v56 }
 0x6d8   :  { %v4329_v19 = vadd.f32 %v4328_v25, %v4188_v55  ;;  %v4189_v33 = vmax.f32 %v3703_v29, 0.0 }
 0x6d9   :  { %v3871_v20 = vpop.f32.mrf.mxu3 }
 0x6da   :  { %v4293_v61 = vadd.f32 %v4292_v10, %v4189_v33  ;;  %v3872_v41 = vadd.f32 %v3871_v20, %v8820_v1  ;;  %v4040_v50 = vpop.f32.mrf.mxu2 }
 0x6db   :  { %v3536_v43 = vpop.f32.mrf.mxu0 }
 0x6dc   :  { %v4041_v16 = vadd.f32 %v4040_v50, %v3872_v41  ;;  %v3537_v31 = vadd.f32 %v3536_v43, %v8790_v17  ;;  %v3705_v26 = vpop.f32.mrf.mxu1 }
 0x6de   :  { %v4190_v52 = vmax.f32 %v4041_v16, 0.0  ;;  %v3706_v11 = vadd.f32 %v3705_v26, %v3537_v31  ;;  %3575 = vmatmul.bf16.gmra.mxu0 %v9831_v13  ;;  %3913 = vmatmul.bf16.gmra.mxu3 %v9831_v13 }
 0x6df   :  { %3744 = vmatmul.bf16.gmra.mxu1 %v9832_v36  ;;  %4082 = vmatmul.bf16.gmra.mxu2 %v9832_v36 }
 0x6e0   :  { %v4330_v0 = vadd.f32 %v4329_v19, %v4190_v52  ;;  %v4191_v8 = vmax.f32 %v3706_v11, 0.0 }
 0x6e1   :  { %v3874_v42 = vpop.f32.mrf.mxu3 }
 0x6e2   :  { %v4294_v44 = vadd.f32 %v4293_v61, %v4191_v8  ;;  %v3875_v58 = vadd.f32 %v3874_v42, %v8820_v1  ;;  %v4043_v25 = vpop.f32.mrf.mxu2 }
 0x6e3   :  { %v3538_v39 = vpop.f32.mrf.mxu0 }
 0x6e4   :  { %v4044_v59 = vadd.f32 %v4043_v25, %v3875_v58  ;;  %v3539_v10 = vadd.f32 %v3538_v39, %v8790_v17  ;;  %v3707_v47 = vpop.f32.mrf.mxu1 }
 0x6e6   :  { %v4192_v35 = vmax.f32 %v4044_v59, 0.0  ;;  %v3708_v54 = vadd.f32 %v3707_v47, %v3539_v10 }
 0x6e8   :  { %v4331_v45 = vadd.f32 %v4330_v0, %v4192_v35  ;;  %v4193_v48 = vmax.f32 %v3708_v54, 0.0 }
 0x6e9   :  { %v3876_v15 = vpop.f32.mrf.mxu3 }
 0x6ea   :  { %v4295_v38 = vadd.f32 %v4294_v44, %v4193_v48  ;;  %v3877_v56 = vadd.f32 %v3876_v15, %v8820_v1  ;;  %v4045_v37 = vpop.f32.mrf.mxu2 }
 0x6eb   :  { %v3541_v55 = vpop.f32.mrf.mxu0 }
 0x6ec   :  { %v4046_v29 = vadd.f32 %v4045_v37, %v3877_v56  ;;  %v3542_v19 = vadd.f32 %v3541_v55, %v8790_v17  ;;  %v3710_v33 = vpop.f32.mrf.mxu1 }
 0x6ee   :  { %v4194_v46 = vmax.f32 %v4046_v29, 0.0  ;;  %v3711_v23 = vadd.f32 %v3710_v33, %v3542_v19  ;;  %3580 = vmatmul.bf16.gmra.mxu0 %v8685_v21  ;;  %3918 = vmatmul.bf16.gmra.mxu3 %v8685_v21 }
 0x6ef   :  { %3749 = vmatmul.bf16.gmra.mxu1 %v8699_v53  ;;  %4087 = vmatmul.bf16.gmra.mxu2 %v8699_v53 }
 0x6f0   :  { %v4332_v20 = vadd.f32 %v4331_v45, %v4194_v46  ;;  %v4195_v49 = vmax.f32 %v3711_v23, 0.0 }
 0x6f1   :  { %v3879_v61 = vpop.f32.mrf.mxu3 }
 0x6f2   :  { %v4296_v41 = vadd.f32 %v4295_v38, %v4195_v49  ;;  %v3880_v50 = vadd.f32 %v3879_v61, %v8820_v1  ;;  %v4048_v57 = vpop.f32.mrf.mxu2 }
 0x6f3   :  { %v3543_v18 = vpop.f32.mrf.mxu0 }
 0x6f4   :  { %v4049_v5 = vadd.f32 %v4048_v57, %v3880_v50  ;;  %v3544_v43 = vadd.f32 %v3543_v18, %v8790_v17  ;;  %v3712_v12 = vpop.f32.mrf.mxu1 }
 0x6f6   :  { %v4196_v27 = vmax.f32 %v4049_v5, 0.0  ;;  %v3713_v16 = vadd.f32 %v3712_v12, %v3544_v43  ;;  %v5815_v5 = vld [vmem:[%s9618_s16 + $0x34] sm:$0xf]  ;;  %v5485_v43 = vld [vmem:[%s9618_s16 + $0x38] sm:$0xf0] }
 0x6f7   :  { %v5488_v12 = vor.u32 %v5815_v5, %v5485_v43 }
 0x6f8   :  { %v4333_v31 = vadd.f32 %v4332_v20, %v4196_v27  ;;  %v4197_v21 = vmax.f32 %v3713_v16, 0.0 }
 0x6f9   :  { %v3881_v26 = vpop.f32.mrf.mxu3  ;;  %4651 = vmatpush.bf16.msrb.mxu3 %v5488_v12  ;;  %v9834_v12 = vld [vmem:[#allocation8_spill] sm:$0xff] }
 0x6fa   :  { %v4297_v30 = vadd.f32 %v4296_v41, %v4197_v21  ;;  %v3882_v53 = vadd.f32 %v3881_v26, %v8820_v1  ;;  %v4050_v52 = vpop.f32.mrf.mxu2 }
 0x6fb   :  { %v3546_v11 = vpop.f32.mrf.mxu0 }
 0x6fc   :  { %v4051_v13 = vadd.f32 %v4050_v52, %v3882_v53  ;;  %v3547_v36 = vadd.f32 %v3546_v11, %v8790_v17  ;;  %v3715_v0 = vpop.f32.mrf.mxu1  ;;  %v5831_v53 = vld [vmem:[%s9618_s16 + $0xb4] sm:$0xf]  ;;  %v5549_v52 = vld [vmem:[%s9618_s16 + $0xb8] sm:$0xf0] }
 0x6fe   :  { %v4198_v8 = vmax.f32 %v4051_v13, 0.0  ;;  %v3716_v42 = vadd.f32 %v3715_v0, %v3547_v36  ;;  %3585 = vmatmul.bf16.gmra.mxu0 %v8709_v40  ;;  %3923 = vmatmul.bf16.gmra.mxu3 %v8709_v40  ;;  %v5552_v13 = vor.u32 %v5831_v53, %v5549_v52 }
 0x6ff   :  { %3754 = vmatmul.bf16.gmra.mxu1 %v8723_v51  ;;  %4092 = vmatmul.bf16.gmra.mxu2 %v8723_v51 }
 0x700   :  { %v4334_v44 = vadd.f32 %v4333_v31, %v4198_v8  ;;  %v4199_v58 = vmax.f32 %v3716_v42, 0.0  ;;  %v5483_v42 = vld [vmem:[%s9618_s16 + $0x30] sm:$0xf]  ;;  %4664 = vmatpush.bf16.msra.mxu2 %v5552_v13 }
 0x701   :  { %v3884_v25 = vpop.f32.mrf.mxu3 }
 0x702   :  { %v4298_v39 = vadd.f32 %v4297_v30, %v4199_v58  ;;  %v3885_v59 = vadd.f32 %v3884_v25, %v8820_v1  ;;  %v4053_v10 = vpop.f32.mrf.mxu2  ;;  %v5547_v58 = vld [vmem:[%s9618_s16 + $0xb0] sm:$0xf] }
 0x703   :  { %v3548_v47 = vpop.f32.mrf.mxu0 }
 0x704   :  { %v4054_v35 = vadd.f32 %v4053_v10, %v3885_v59  ;;  %v3549_v54 = vadd.f32 %v3548_v47, %v8790_v17  ;;  %v3717_v45 = vpop.f32.mrf.mxu1  ;;  %v5832_v59 = vld [vmem:[%s9618_s16 + $0xb4] sm:$0xf0] }
 0x706   :  { %v4200_v48 = vmax.f32 %v4054_v35, 0.0  ;;  %v3718_v15 = vadd.f32 %v3717_v45, %v3549_v54  ;;  %v5548_v54 = vor.u32 %v5832_v59, %v5547_v58 }
 0x708   :  { %v4335_v38 = vadd.f32 %v4334_v44, %v4200_v48  ;;  %v4201_v40 = vmax.f32 %v3718_v15, 0.0  ;;  %v5816_v44 = vld [vmem:[%s9618_s16 + $0x34] sm:$0xf0]  ;;  %v9833_v15 = vld [vmem:[#allocation5_spill] sm:$0xff]  ;;  %4638 = vmatpush.bf16.msrb.mxu1 %v5548_v54 }
 0x709   :  { %v3886_v56 = vpop.f32.mrf.mxu3 }
 0x70a   :  { %v4299_v37 = vadd.f32 %v4298_v39, %v4201_v40  ;;  %v3887_v51 = vadd.f32 %v3886_v56, %v8820_v1  ;;  %v4055_v55 = vpop.f32.mrf.mxu2  ;;  %v5484_v39 = vor.u32 %v5816_v44, %v5483_v42 }
 0x70b   :  { %v3551_v29 = vpop.f32.mrf.mxu0 }
 0x70c   :  { %v4056_v19 = vadd.f32 %v4055_v55, %v3887_v51  ;;  %v3552_v33 = vadd.f32 %v3551_v29, %v8790_v17  ;;  %v3720_v46 = vpop.f32.mrf.mxu1  ;;  %4625 = vmatpush.bf16.msrb.mxu0 %v5484_v39 }
 0x70e   :  { %v4202_v23 = vmax.f32 %v4056_v19, 0.0  ;;  %v3721_v20 = vadd.f32 %v3720_v46, %v3552_v33  ;;  %3590 = vmatmul.bf16.gmra.mxu0 %v8733_v4  ;;  %3928 = vmatmul.bf16.gmra.mxu3 %v8733_v4 }
 0x70f   :  { %3759 = vmatmul.bf16.gmra.mxu1 %v8747_v60  ;;  %4097 = vmatmul.bf16.gmra.mxu2 %v8747_v60 }
 0x710   :  { %v4336_v49 = vadd.f32 %v4335_v38, %v4202_v23  ;;  %v4203_v61 = vmax.f32 %v3721_v20, 0.0 }
 0x711   :  { %v3889_v41 = vpop.f32.mrf.mxu3 }
 0x712   :  { %v4300_v50 = vadd.f32 %v4299_v37, %v4203_v61  ;;  %v3890_v57 = vadd.f32 %v3889_v41, %v8820_v1  ;;  %v4058_v18 = vpop.f32.mrf.mxu2 }
 0x713   :  { %v3553_v4 = vpop.f32.mrf.mxu0 }
 0x714   :  { %v4059_v27 = vadd.f32 %v4058_v18, %v3890_v57  ;;  %v3554_v60 = vadd.f32 %v3553_v4, %v8790_v17  ;;  %v3722_v16 = vpop.f32.mrf.mxu1 }
 0x716   :  { %v4204_v31 = vmax.f32 %v4059_v27, 0.0  ;;  %v3723_v21 = vadd.f32 %v3722_v16, %v3554_v60  ;;  %v9835_v27 = vld [vmem:[#allocation13_spill] sm:$0xff] }
 0x718   :  { %v4337_v26 = vadd.f32 %v4336_v49, %v4204_v31  ;;  %v4205_v30 = vmax.f32 %v3723_v21, 0.0 }
 0x719   :  { %v3891_v11 = vpop.f32.mrf.mxu3 }
 0x71a   :  { %v9080_v36 = vadd.f32 %v4300_v50, %v4205_v30  ;;  %v3892_v0 = vadd.f32 %v3891_v11, %v8820_v1  ;;  %v4060_v8 = vpop.f32.mrf.mxu2 }
 0x71b   :  { %v3556_v25 = vpop.f32.mrf.mxu0 }
 0x71c   :  { %v4061_v10 = vadd.f32 %v4060_v8, %v3892_v0  ;;  %v3557_v47 = vadd.f32 %v3556_v25, %v8790_v17  ;;  %v3725_v35 = vpop.f32.mrf.mxu1 }
 0x71e   :  { %v4206_v45 = vmax.f32 %v4061_v10, 0.0  ;;  %v3726_v48 = vadd.f32 %v3725_v35, %v3557_v47  ;;  %3595 = vmatmul.bf16.gmra.mxu0 %v8757_v2  ;;  %3933 = vmatmul.bf16.gmra.mxu3 %v8757_v2 }
 0x71f   :  { %3764 = vmatmul.bf16.gmra.mxu1 %v9833_v15  ;;  %4102 = vmatmul.bf16.gmra.mxu2 %v9833_v15 }
 0x720   :  { %v9100_v38 = vadd.f32 %v4337_v26, %v4206_v45  ;;  %v4207_v46 = vmax.f32 %v3726_v48, 0.0 }
 0x721   :  { %v3894_v40 = vpop.f32.mrf.mxu3 }
 0x722   :  { %v3895_v56 = vadd.f32 %v3894_v40, %v8820_v1  ;;  %v4063_v37 = vpop.f32.mrf.mxu2 }
 0x723   :  { %v3558_v51 = vpop.f32.mrf.mxu0 }
 0x724   :  { %v4064_v55 = vadd.f32 %v4063_v37, %v3895_v56  ;;  %v3559_v29 = vadd.f32 %v3558_v51, %v8790_v17  ;;  %v3727_v19 = vpop.f32.mrf.mxu1 }
 0x726   :  { %v3728_v33 = vadd.f32 %v3727_v19, %v3559_v29  ;;  %v4208_v5 = vmax.f32 %v4064_v55, 0.0 }
 0x728   :  { %v4209_v23 = vmax.f32 %v3728_v33, 0.0 }
 0x729   :  { %v3896_v2 = vpop.f32.mrf.mxu3 }
 0x72a   :  { %v4345_v20 = vadd.f32 %v4209_v23, %v4207_v46  ;;  %v3897_v49 = vadd.f32 %v3896_v2, %v8820_v1  ;;  %v4065_v61 = vpop.f32.mrf.mxu2 }
 0x72b   :  { %v3561_v41 = vpop.f32.mrf.mxu0 }
 0x72c   :  { %v4066_v50 = vadd.f32 %v4065_v61, %v3897_v49  ;;  %v3562_v57 = vadd.f32 %v3561_v41, %v8790_v17  ;;  %v3730_v18 = vpop.f32.mrf.mxu1 }
 0x72e   :  { %v4210_v43 = vmax.f32 %v4066_v50, 0.0  ;;  %v3731_v4 = vadd.f32 %v3730_v18, %v3562_v57  ;;  %3600 = vmatmul.bf16.gmra.mxu0 %v9834_v12  ;;  %3938 = vmatmul.bf16.gmra.mxu3 %v9834_v12 }
 0x72f   :  { %3769 = vmatmul.bf16.gmra.mxu1 %v9835_v27  ;;  %4107 = vmatmul.bf16.gmra.mxu2 %v9835_v27 }
 0x730   :  { %v4382_v60 = vadd.f32 %v4210_v43, %v4208_v5  ;;  %v4211_v16 = vmax.f32 %v3731_v4, 0.0 }
 0x731   :  { %v3899_v31 = vpop.f32.mrf.mxu3 }
 0x732   :  { %v4346_v21 = vadd.f32 %v4345_v20, %v4211_v16  ;;  %v3900_v26 = vadd.f32 %v3899_v31, %v8820_v1  ;;  %v4068_v30 = vpop.f32.mrf.mxu2 }
 0x733   :  { %v3563_v53 = vpop.f32.mrf.mxu0 }
 0x734   :  { %v4069_v52 = vadd.f32 %v4068_v30, %v3900_v26  ;;  %v3564_v11 = vadd.f32 %v3563_v53, %v8790_v17  ;;  %v3732_v13 = vpop.f32.mrf.mxu1  ;;  %v5813_v26 = vld [vmem:[%s9618_s16 + $0x24] sm:$0xf]  ;;  %v5477_v30 = vld [vmem:[%s9618_s16 + $0x28] sm:$0xf0] }
 0x735   :  { %v5480_v53 = vor.u32 %v5813_v26, %v5477_v30 }
 0x736   :  { %v4212_v0 = vmax.f32 %v4069_v52, 0.0  ;;  %v3733_v8 = vadd.f32 %v3732_v13, %v3564_v11 }
 0x737   :  { %4652 = vmatpush.bf16.msrb.mxu3 %v5480_v53 }
 0x738   :  { %v4383_v42 = vadd.f32 %v4382_v60, %v4212_v0  ;;  %v4213_v44 = vmax.f32 %v3733_v8, 0.0 }
 0x739   :  { %v3901_v58 = vpop.f32.mrf.mxu3 }
 0x73a   :  { %v4347_v25 = vadd.f32 %v4346_v21, %v4213_v44  ;;  %v3902_v39 = vadd.f32 %v3901_v58, %v8820_v1  ;;  %v4070_v59 = vpop.f32.mrf.mxu2  ;;  %v5829_v44 = vld [vmem:[%s9618_s16 + $0xa4] sm:$0xf]  ;;  %v5541_v58 = vld [vmem:[%s9618_s16 + $0xa8] sm:$0xf0] }
 0x73b   :  { %v3566_v10 = vpop.f32.mrf.mxu0 }
 0x73c   :  { %v4071_v47 = vadd.f32 %v4070_v59, %v3902_v39  ;;  %v3567_v35 = vadd.f32 %v3566_v10, %v8790_v17  ;;  %v3735_v54 = vpop.f32.mrf.mxu1  ;;  %v5544_v39 = vor.u32 %v5829_v44, %v5541_v58 }
 0x73e   :  { %v4214_v45 = vmax.f32 %v4071_v47, 0.0  ;;  %v3736_v48 = vadd.f32 %v3735_v54, %v3567_v35  ;;  %3605 = vmatmul.bf16.gmra.mxu0 %v8830_v3  ;;  %3943 = vmatmul.bf16.gmra.mxu3 %v8830_v3  ;;  %v5475_v35 = vld [vmem:[%s9618_s16 + $0x20] sm:$0xf]  ;;  %v5814_v54 = vld [vmem:[%s9618_s16 + $0x24] sm:$0xf0] }
 0x73f   :  { %3774 = vmatmul.bf16.gmra.mxu1 %v8840_v14  ;;  %4112 = vmatmul.bf16.gmra.mxu2 %v8840_v14 }
 0x740   :  { %v4384_v15 = vadd.f32 %v4383_v42, %v4214_v45  ;;  %v4215_v40 = vmax.f32 %v3736_v48, 0.0  ;;  %v5539_v45 = vld [vmem:[%s9618_s16 + $0xa0] sm:$0xf]  ;;  %4665 = vmatpush.bf16.msra.mxu2 %v5544_v39 }
 0x741   :  { %v3904_v56 = vpop.f32.mrf.mxu3 }
 0x742   :  { %v4348_v37 = vadd.f32 %v4347_v25, %v4215_v40  ;;  %v3905_v51 = vadd.f32 %v3904_v56, %v8820_v1  ;;  %v4073_v55 = vpop.f32.mrf.mxu2  ;;  %v5830_v40 = vld [vmem:[%s9618_s16 + $0xa4] sm:$0xf0] }
 0x743   :  { %v3568_v29 = vpop.f32.mrf.mxu0 }
 0x744   :  { %v4074_v19 = vadd.f32 %v4073_v55, %v3905_v51  ;;  %v3569_v33 = vadd.f32 %v3568_v29, %v8790_v17  ;;  %v3737_v46 = vpop.f32.mrf.mxu1  ;;  %v5540_v55 = vor.u32 %v5830_v40, %v5539_v45 }
 0x746   :  { %v4216_v23 = vmax.f32 %v4074_v19, 0.0  ;;  %v3738_v2 = vadd.f32 %v3737_v46, %v3569_v33  ;;  %4639 = vmatpush.bf16.msrb.mxu1 %v5540_v55 }
 0x748   :  { %v4385_v20 = vadd.f32 %v4384_v15, %v4216_v23  ;;  %v4217_v3 = vmax.f32 %v3738_v2, 0.0  ;;  %v5476_v15 = vor.u32 %v5814_v54, %v5475_v35 }
 0x749   :  { %v3906_v49 = vpop.f32.mrf.mxu3 }
 0x74a   :  { %v4349_v61 = vadd.f32 %v4348_v37, %v4217_v3  ;;  %v3907_v14 = vadd.f32 %v3906_v49, %v8820_v1  ;;  %v4075_v41 = vpop.f32.mrf.mxu2  ;;  %4626 = vmatpush.bf16.msrb.mxu0 %v5476_v15 }
 0x74b   :  { %v3571_v50 = vpop.f32.mrf.mxu0 }
 0x74c   :  { %v4076_v57 = vadd.f32 %v4075_v41, %v3907_v14  ;;  %v3572_v18 = vadd.f32 %v3571_v50, %v8790_v17  ;;  %v3740_v5 = vpop.f32.mrf.mxu1 }
 0x74e   :  { %v4218_v43 = vmax.f32 %v4076_v57, 0.0  ;;  %v3741_v4 = vadd.f32 %v3740_v5, %v3572_v18  ;;  %3610 = vmatmul.bf16.gmra.mxu0 %v8846_v32  ;;  %3948 = vmatmul.bf16.gmra.mxu3 %v8846_v32 }
 0x74f   :  { %3779 = vmatmul.bf16.gmra.mxu1 %v8856_v22  ;;  %4117 = vmatmul.bf16.gmra.mxu2 %v8856_v22 }
 0x750   :  { %v4386_v12 = vadd.f32 %v4385_v20, %v4218_v43  ;;  %v4219_v27 = vmax.f32 %v3741_v4, 0.0 }
 0x751   :  { %v3909_v60 = vpop.f32.mrf.mxu3 }
 0x752   :  { %v4350_v16 = vadd.f32 %v4349_v61, %v4219_v27  ;;  %v3910_v31 = vadd.f32 %v3909_v60, %v8820_v1  ;;  %v4078_v21 = vpop.f32.mrf.mxu2 }
 0x753   :  { %v3573_v32 = vpop.f32.mrf.mxu0 }
 0x754   :  { %v4079_v52 = vadd.f32 %v4078_v21, %v3910_v31  ;;  %v3574_v22 = vadd.f32 %v3573_v32, %v8790_v17  ;;  %v3742_v11 = vpop.f32.mrf.mxu1 }
 0x756   :  { %v4220_v13 = vmax.f32 %v4079_v52, 0.0  ;;  %v3743_v0 = vadd.f32 %v3742_v11, %v3574_v22 }
 0x758   :  { %v4387_v8 = vadd.f32 %v4386_v12, %v4220_v13  ;;  %v4221_v42 = vmax.f32 %v3743_v0, 0.0 }
 0x759   :  { %v3911_v25 = vpop.f32.mrf.mxu3 }
 0x75a   :  { %v4351_v59 = vadd.f32 %v4350_v16, %v4221_v42  ;;  %v3912_v10 = vadd.f32 %v3911_v25, %v8820_v1  ;;  %v4080_v47 = vpop.f32.mrf.mxu2 }
 0x75b   :  { %v3576_v48 = vpop.f32.mrf.mxu0 }
 0x75c   :  { %v4081_v56 = vadd.f32 %v4080_v47, %v3912_v10  ;;  %v3577_v37 = vadd.f32 %v3576_v48, %v8790_v17  ;;  %v3745_v51 = vpop.f32.mrf.mxu1 }
 0x75e   :  { %v4222_v29 = vmax.f32 %v4081_v56, 0.0  ;;  %v3746_v19 = vadd.f32 %v3745_v51, %v3577_v37  ;;  %3615 = vmatmul.bf16.gmra.mxu0 %v8862_v7  ;;  %3953 = vmatmul.bf16.gmra.mxu3 %v8862_v7 }
 0x75f   :  { %3784 = vmatmul.bf16.gmra.mxu1 %v8872_v28  ;;  %4122 = vmatmul.bf16.gmra.mxu2 %v8872_v28 }
 0x760   :  { %v4388_v33 = vadd.f32 %v4387_v8, %v4222_v29  ;;  %v4223_v46 = vmax.f32 %v3746_v19, 0.0 }
 0x761   :  { %v3914_v23 = vpop.f32.mrf.mxu3 }
 0x762   :  { %v4352_v2 = vadd.f32 %v4351_v59, %v4223_v46  ;;  %v3915_v20 = vadd.f32 %v3914_v23, %v8820_v1  ;;  %v4083_v3 = vpop.f32.mrf.mxu2 }
 0x763   :  { %v3578_v49 = vpop.f32.mrf.mxu0 }
 0x764   :  { %v4084_v61 = vadd.f32 %v4083_v3, %v3915_v20  ;;  %v3579_v14 = vadd.f32 %v3578_v49, %v8790_v17  ;;  %v3747_v41 = vpop.f32.mrf.mxu1 }
 0x766   :  { %v4224_v50 = vmax.f32 %v4084_v61, 0.0  ;;  %v3748_v7 = vadd.f32 %v3747_v41, %v3579_v14 }
 0x768   :  { %v4389_v57 = vadd.f32 %v4388_v33, %v4224_v50  ;;  %v4225_v4 = vmax.f32 %v3748_v7, 0.0 }
 0x769   :  { %v3916_v18 = vpop.f32.mrf.mxu3 }
 0x76a   :  { %v3917_v5 = vadd.f32 %v3916_v18, %v8820_v1  ;;  %v4085_v28 = vpop.f32.mrf.mxu2  ;;  %v4353_v31 = vadd.f32 %v4352_v2, %v4225_v4 }
 0x76b   :  { %v3581_v43 = vpop.f32.mrf.mxu0 }
 0x76c   :  { %v3582_v12 = vadd.f32 %v3581_v43, %v8790_v17  ;;  %v3750_v27 = vpop.f32.mrf.mxu1  ;;  %v4086_v60 = vadd.f32 %v4085_v28, %v3917_v5 }
 0x76e   :  { %v3751_v16 = vadd.f32 %v3750_v27, %v3582_v12  ;;  %3620 = vmatmul.bf16.gmra.mxu0 %v8890_v6  ;;  %3958 = vmatmul.bf16.gmra.mxu3 %v8890_v6  ;;  %v4226_v30 = vmax.f32 %v4086_v60, 0.0  ;;  %v5811_v60 = vld [vmem:[%s9618_s16 + $0x14] sm:$0xf] }
 0x76f   :  { %3789 = vmatmul.bf16.gmra.mxu1 %v8912_v9  ;;  %4127 = vmatmul.bf16.gmra.mxu2 %v8912_v9 }
 0x770   :  { %v4227_v21 = vmax.f32 %v3751_v16, 0.0  ;;  %v4390_v0 = vadd.f32 %v4389_v57, %v4226_v30  ;;  %v5469_v16 = vld [vmem:[%s9618_s16 + $0x18] sm:$0xf0] }
 0x771   :  { %v3919_v26 = vpop.f32.mrf.mxu3 }
 0x772   :  { %v4354_v32 = vadd.f32 %v4353_v31, %v4227_v21  ;;  %v3920_v53 = vadd.f32 %v3919_v26, %v8820_v1  ;;  %v4088_v52 = vpop.f32.mrf.mxu2  ;;  %v5472_v31 = vor.u32 %v5811_v60, %v5469_v16 }
 0x773   :  { %v3583_v22 = vpop.f32.mrf.mxu0 }
 0x774   :  { %v4089_v11 = vadd.f32 %v4088_v52, %v3920_v53  ;;  %v3752_v13 = vpop.f32.mrf.mxu1  ;;  %v3584_v6 = vadd.f32 %v3583_v22, %v8790_v17  ;;  %4653 = vmatpush.bf16.msrb.mxu3 %v5472_v31  ;;  %v5827_v22 = vld [vmem:[%s9618_s16 + $0x94] sm:$0xf] }
 0x776   :  { %v4228_v8 = vmax.f32 %v4089_v11, 0.0  ;;  %v3753_v10 = vadd.f32 %v3752_v13, %v3584_v6  ;;  %v5533_v11 = vld [vmem:[%s9618_s16 + $0x98] sm:$0xf0]  ;;  %v5467_v6 = vld [vmem:[%s9618_s16 + $0x10] sm:$0xf] }
 0x778   :  { %v4391_v42 = vadd.f32 %v4390_v0, %v4228_v8  ;;  %v4229_v45 = vmax.f32 %v3753_v10, 0.0  ;;  %v5536_v0 = vor.u32 %v5827_v22, %v5533_v11 }
 0x779   :  { %v3921_v44 = vpop.f32.mrf.mxu3 }
 0x77a   :  { %v3922_v58 = vadd.f32 %v3921_v44, %v8820_v1  ;;  %v4090_v9 = vpop.f32.mrf.mxu2  ;;  %v4355_v19 = vadd.f32 %v4354_v32, %v4229_v45  ;;  %4666 = vmatpush.bf16.msra.mxu2 %v5536_v0 }
 0x77b   :  { %v3586_v25 = vpop.f32.mrf.mxu0 }
 0x77c   :  { %v3587_v39 = vadd.f32 %v3586_v25, %v8790_v17  ;;  %v3755_v59 = vpop.f32.mrf.mxu1  ;;  %v4091_v47 = vadd.f32 %v4090_v9, %v3922_v58  ;;  %v5812_v58 = vld [vmem:[%s9618_s16 + $0x14] sm:$0xf0]  ;;  %v5531_v9 = vld [vmem:[%s9618_s16 + $0x90] sm:$0xf] }
 0x77e   :  { %3625 = vmatmul.bf16.gmra.mxu0 %v8918_v63  ;;  %3963 = vmatmul.bf16.gmra.mxu3 %v8918_v63  ;;  %v3756_v35 = vadd.f32 %v3755_v59, %v3587_v39  ;;  %v4230_v48 = vmax.f32 %v4091_v47, 0.0  ;;  %v5468_v39 = vor.u32 %v5812_v58, %v5467_v6  ;;  %v5828_v59 = vld [vmem:[%s9618_s16 + $0x94] sm:$0xf0] }
 0x77f   :  { %3794 = vmatmul.bf16.gmra.mxu1 %v8928_v34  ;;  %4132 = vmatmul.bf16.gmra.mxu2 %v8928_v34 }
 0x780   :  { %v4231_v37 = vmax.f32 %v3756_v35, 0.0  ;;  %v4392_v33 = vadd.f32 %v4391_v42, %v4230_v48  ;;  %4627 = vmatpush.bf16.msrb.mxu0 %v5468_v39 }
 0x781   :  { %v3924_v54 = vpop.f32.mrf.mxu3 }
 0x782   :  { %v3925_v15 = vadd.f32 %v3924_v54, %v8820_v1  ;;  %v4093_v40 = vpop.f32.mrf.mxu2  ;;  %v4356_v23 = vadd.f32 %v4355_v19, %v4231_v37  ;;  %v5532_v54 = vor.u32 %v5828_v59, %v5531_v9 }
 0x783   :  { %v3588_v56 = vpop.f32.mrf.mxu0 }
 0x784   :  { %v4094_v51 = vadd.f32 %v4093_v40, %v3925_v15  ;;  %v3589_v55 = vadd.f32 %v3588_v56, %v8790_v17  ;;  %v3757_v29 = vpop.f32.mrf.mxu1  ;;  %4640 = vmatpush.bf16.msrb.mxu1 %v5532_v54 }
 0x786   :  { %v4232_v63 = vmax.f32 %v4094_v51, 0.0  ;;  %v3758_v46 = vadd.f32 %v3757_v29, %v3589_v55 }
 0x788   :  { %v4393_v2 = vadd.f32 %v4392_v33, %v4232_v63  ;;  %v4233_v34 = vmax.f32 %v3758_v46, 0.0 }
 0x789   :  { %v3926_v20 = vpop.f32.mrf.mxu3 }
 0x78a   :  { %v4357_v3 = vadd.f32 %v4356_v23, %v4233_v34  ;;  %v3927_v49 = vadd.f32 %v3926_v20, %v8820_v1  ;;  %v4095_v61 = vpop.f32.mrf.mxu2 }
 0x78b   :  { %v3591_v14 = vpop.f32.mrf.mxu0 }
 0x78c   :  { %v4096_v41 = vadd.f32 %v4095_v61, %v3927_v49  ;;  %v3592_v50 = vadd.f32 %v3591_v14, %v8790_v17  ;;  %v3760_v57 = vpop.f32.mrf.mxu1 }
 0x78e   :  { %v4234_v7 = vmax.f32 %v4096_v41, 0.0  ;;  %v3761_v18 = vadd.f32 %v3760_v57, %v3592_v50  ;;  %3630 = vmatmul.bf16.gmra.mxu0 %v8934_v24  ;;  %3968 = vmatmul.bf16.gmra.mxu3 %v8934_v24 }
 0x78f   :  { %3799 = vmatmul.bf16.gmra.mxu1 %v8944_v62  ;;  %4137 = vmatmul.bf16.gmra.mxu2 %v8944_v62 }
 0x790   :  { %v4394_v5 = vadd.f32 %v4393_v2, %v4234_v7  ;;  %v4235_v28 = vmax.f32 %v3761_v18, 0.0 }
 0x791   :  { %v3929_v43 = vpop.f32.mrf.mxu3 }
 0x792   :  { %v4358_v4 = vadd.f32 %v4357_v3, %v4235_v28  ;;  %v3930_v12 = vadd.f32 %v3929_v43, %v8820_v1  ;;  %v4098_v27 = vpop.f32.mrf.mxu2 }
 0x793   :  { %v3593_v24 = vpop.f32.mrf.mxu0 }
 0x794   :  { %v4099_v21 = vadd.f32 %v4098_v27, %v3930_v12  ;;  %v3594_v62 = vadd.f32 %v3593_v24, %v8790_v17  ;;  %v3762_v26 = vpop.f32.mrf.mxu1 }
 0x796   :  { %v4236_v30 = vmax.f32 %v4099_v21, 0.0  ;;  %v3763_v32 = vadd.f32 %v3762_v26, %v3594_v62 }
 0x798   :  { %v4395_v53 = vadd.f32 %v4394_v5, %v4236_v30  ;;  %v4237_v52 = vmax.f32 %v3763_v32, 0.0 }
 0x799   :  { %v3931_v13 = vpop.f32.mrf.mxu3 }
 0x79a   :  { %v4359_v8 = vadd.f32 %v4358_v4, %v4237_v52  ;;  %v3932_v42 = vadd.f32 %v3931_v13, %v8820_v1  ;;  %v4100_v44 = vpop.f32.mrf.mxu2 }
 0x79b   :  { %v3596_v25 = vpop.f32.mrf.mxu0 }
 0x79c   :  { %v4101_v10 = vadd.f32 %v4100_v44, %v3932_v42  ;;  %v3597_v47 = vadd.f32 %v3596_v25, %v8790_v17  ;;  %v3765_v35 = vpop.f32.mrf.mxu1 }
 0x79e   :  { %v4238_v45 = vmax.f32 %v4101_v10, 0.0  ;;  %v3766_v48 = vadd.f32 %v3765_v35, %v3597_v47 }
 0x7a0   :  { %v4396_v15 = vadd.f32 %v4395_v53, %v4238_v45  ;;  %v4239_v40 = vmax.f32 %v3766_v48, 0.0 }
 0x7a1   :  { %v3934_v56 = vpop.f32.mrf.mxu3 }
 0x7a2   :  { %v4360_v37 = vadd.f32 %v4359_v8, %v4239_v40  ;;  %v3935_v51 = vadd.f32 %v3934_v56, %v8820_v1  ;;  %v4103_v55 = vpop.f32.mrf.mxu2 }
 0x7a3   :  { %v3598_v29 = vpop.f32.mrf.mxu0 }
 0x7a4   :  { %v4104_v19 = vadd.f32 %v4103_v55, %v3935_v51  ;;  %v3599_v33 = vadd.f32 %v3598_v29, %v8790_v17  ;;  %v3767_v63 = vpop.f32.mrf.mxu1  ;;  %v5809_v55 = vld [vmem:[%s9618_s16 + $0x4] sm:$0xf]  ;;  %v5461_v29 = vld [vmem:[%s9618_s16 + $0x8] sm:$0xf0] }
 0x7a6   :  { %v4240_v46 = vmax.f32 %v4104_v19, 0.0  ;;  %v3768_v23 = vadd.f32 %v3767_v63, %v3599_v33  ;;  %v5464_v33 = vor.u32 %v5809_v55, %v5461_v29 }
 0x7a8   :  { %v4397_v2 = vadd.f32 %v4396_v15, %v4240_v46  ;;  %v4241_v34 = vmax.f32 %v3768_v23, 0.0  ;;  %4654 = vmatpush.bf16.msrb.mxu3 %v5464_v33  ;;  %v5825_v46 = vld [vmem:[%s9618_s16 + $0x84] sm:$0xf]  ;;  %v5525_v23 = vld [vmem:[%s9618_s16 + $0x88] sm:$0xf0] }
 0x7a9   :  { %v3936_v20 = vpop.f32.mrf.mxu3 }
 0x7aa   :  { %v4361_v3 = vadd.f32 %v4360_v37, %v4241_v34  ;;  %v3937_v49 = vadd.f32 %v3936_v20, %v8820_v1  ;;  %v4105_v61 = vpop.f32.mrf.mxu2  ;;  %v5528_v34 = vor.u32 %v5825_v46, %v5525_v23 }
 0x7ab   :  { %v3601_v14 = vpop.f32.mrf.mxu0 }
 0x7ac   :  { %v4106_v41 = vadd.f32 %v4105_v61, %v3937_v49  ;;  %v3602_v50 = vadd.f32 %v3601_v14, %v8790_v17  ;;  %v3770_v57 = vpop.f32.mrf.mxu1  ;;  %v5810_v49 = vld [vmem:[%s9618_s16 + $0x4] sm:$0xf0]  ;;  %v5523_v61 = vld [vmem:[%s9618_s16 + $0x80] sm:$0xf]  ;;  %4667 = vmatpush.bf16.msra.mxu2 %v5528_v34 }
 0x7ae   :  { %v4242_v7 = vmax.f32 %v4106_v41, 0.0  ;;  %v3771_v18 = vadd.f32 %v3770_v57, %v3602_v50  ;;  %v5826_v50 = vld [vmem:[%s9618_s16 + $0x84] sm:$0xf0] }
 0x7b0   :  { %v4398_v5 = vadd.f32 %v4397_v2, %v4242_v7  ;;  %v4243_v28 = vmax.f32 %v3771_v18, 0.0  ;;  %v5524_v7 = vor.u32 %v5826_v50, %v5523_v61 }
 0x7b1   :  { %v3939_v43 = vpop.f32.mrf.mxu3 }
 0x7b2   :  { %v4362_v4 = vadd.f32 %v4361_v3, %v4243_v28  ;;  %v3940_v12 = vadd.f32 %v3939_v43, %v8820_v1  ;;  %v4108_v27 = vpop.f32.mrf.mxu2  ;;  %v5459_v3 = vld [vmem:[%s9618_s16] sm:$0xf]  ;;  %4641 = vmatpush.bf16.msrb.mxu1 %v5524_v7 }
 0x7b3   :  { %v3603_v60 = vpop.f32.mrf.mxu0  ;;  %v5460_v41 = vor.u32 %v5810_v49, %v5459_v3 }
 0x7b4   :  { %v4109_v16 = vadd.f32 %v4108_v27, %v3940_v12  ;;  %v3604_v24 = vadd.f32 %v3603_v60, %v8790_v17  ;;  %v3772_v31 = vpop.f32.mrf.mxu1 }
 0x7b5   :  { %4628 = vmatpush.bf16.msrb.mxu0 %v5460_v41 }
 0x7b6   :  { %v4244_v21 = vmax.f32 %v4109_v16, 0.0  ;;  %v3773_v62 = vadd.f32 %v3772_v31, %v3604_v24 }
 0x7b8   :  { %v4399_v26 = vadd.f32 %v4398_v5, %v4244_v21  ;;  %v4245_v30 = vmax.f32 %v3773_v62, 0.0 }
 0x7b9   :  { %v3941_v32 = vpop.f32.mrf.mxu3 }
 0x7ba   :  { %v4363_v53 = vadd.f32 %v4362_v4, %v4245_v30  ;;  %v3942_v52 = vadd.f32 %v3941_v32, %v8820_v1  ;;  %v4110_v22 = vpop.f32.mrf.mxu2 }
 0x7bb   :  { %v3606_v11 = vpop.f32.mrf.mxu0 }
 0x7bc   :  { %v4111_v13 = vadd.f32 %v4110_v22, %v3942_v52  ;;  %v3607_v0 = vadd.f32 %v3606_v11, %v8790_v17  ;;  %v3775_v8 = vpop.f32.mrf.mxu1 }
 0x7be   :  { %v4246_v42 = vmax.f32 %v4111_v13, 0.0  ;;  %v3776_v44 = vadd.f32 %v3775_v8, %v3607_v0 }
 0x7c0   :  { %v4400_v6 = vadd.f32 %v4399_v26, %v4246_v42  ;;  %v4247_v58 = vmax.f32 %v3776_v44, 0.0 }
 0x7c1   :  { %v3944_v9 = vpop.f32.mrf.mxu3 }
 0x7c2   :  { %v9218_v25 = vadd.f32 %v4363_v53, %v4247_v58  ;;  %v3945_v39 = vadd.f32 %v3944_v9, %v8820_v1  ;;  %v4113_v59 = vpop.f32.mrf.mxu2 }
 0x7c3   :  { %v3608_v10 = vpop.f32.mrf.mxu0 }
 0x7c4   :  { %v4114_v47 = vadd.f32 %v4113_v59, %v3945_v39  ;;  %v3777_v35 = vpop.f32.mrf.mxu1  ;;  %v3609_v62 = vadd.f32 %v3608_v10, %v8790_v17 }
 0x7c6   :  { %v4248_v54 = vmax.f32 %v4114_v47, 0.0  ;;  %v3778_v22 = vadd.f32 %v3777_v35, %v3609_v62 }
 0x7c8   :  { %v9221_v45 = vadd.f32 %v4400_v6, %v4248_v54  ;;  %v4249_v6 = vmax.f32 %v3778_v22, 0.0 }
 0x7c9   :  { %v3946_v48 = vpop.f32.mrf.mxu3 }
 0x7ca   :  { %v4115_v15 = vpop.f32.mrf.mxu2  ;;  %v3947_v26 = vadd.f32 %v3946_v48, %v8820_v1  ;;  %v4365_v55 = vadd.f32 %v9218_v25, %v4249_v6 }
 0x7cb   :  { %v3611_v40 = vpop.f32.mrf.mxu0 }
 0x7cc   :  { %v3780_v56 = vpop.f32.mrf.mxu1  ;;  %v3612_v32 = vadd.f32 %v3611_v40, %v8790_v17  ;;  %v4116_v0 = vadd.f32 %v4115_v15, %v3947_v26 }
 0x7ce   :  { %v3781_v8 = vadd.f32 %v3780_v56, %v3612_v32  ;;  %v4250_v9 = vmax.f32 %v4116_v0, 0.0 }
 0x7d0   :  { %v4251_v47 = vmax.f32 %v3781_v8, 0.0  ;;  %v4402_v33 = vadd.f32 %v9221_v45, %v4250_v9 }
 0x7d1   :  { %v3949_v37 = vpop.f32.mrf.mxu3 }
 0x7d2   :  { %v4118_v51 = vpop.f32.mrf.mxu2  ;;  %v3950_v42 = vadd.f32 %v3949_v37, %v8820_v1  ;;  %v4302_v37 = vrot.slane %v9080_v36, 4 }
 0x7d3   :  { %v3613_v19 = vpop.f32.mrf.mxu0 }
 0x7d4   :  { %v3782_v63 = vpop.f32.mrf.mxu1  ;;  %v3614_v11 = vadd.f32 %v3613_v19, %v8790_v17  ;;  %v4119_v54 = vadd.f32 %v4118_v51, %v3950_v42  ;;  %v4366_v51 = vadd.f32 %v4365_v55, %v4251_v47 }
 0x7d6   :  { %v3783_v58 = vadd.f32 %v3782_v63, %v3614_v11 }
 0x7d8   :  { %v4253_v29 = vmax.f32 %v3783_v58, 0.0 }
 0x7d9   :  { %v3951_v2 = vpop.f32.mrf.mxu3 }
 0x7da   :  { %v4120_v20 = vpop.f32.mrf.mxu2  ;;  %v3952_v39 = vadd.f32 %v3951_v2, %v8820_v1  ;;  %v4252_v2 = vmax.f32 %v4119_v54, 0.0  ;;  %v4367_v25 = vadd.f32 %v4366_v51, %v4253_v29 }
 0x7db   :  { %v3616_v14 = vpop.f32.mrf.mxu0 }
 0x7dc   :  { %v3785_v57 = vpop.f32.mrf.mxu1  ;;  %v3617_v44 = vadd.f32 %v3616_v14, %v8790_v17  ;;  %v4121_v63 = vadd.f32 %v4120_v20, %v3952_v39 }
 0x7de   :  { %v3786_v35 = vadd.f32 %v3785_v57, %v3617_v44  ;;  %v9268_v57 = vadd.f32 %v4302_v37, %v9080_v36  ;;  %v4254_v7 = vmax.f32 %v4121_v63, 0.0  ;;  %v5635_v63 = vld [vmem:[%s9620_s18 + $0x60] sm:$0xf] }
 0x7e0   :  { %v4255_v34 = vmax.f32 %v3786_v35, 0.0 }
 0x7e1   :  { %v3954_v18 = vpop.f32.mrf.mxu3 }
 0x7e2   :  { %v4123_v5 = vpop.f32.mrf.mxu2  ;;  %v3955_v40 = vadd.f32 %v3954_v18, %v8820_v1 }
 0x7e3   :  { %v3618_v28 = vpop.f32.mrf.mxu0 }
 0x7e4   :  { %v3787_v43 = vpop.f32.mrf.mxu1  ;;  %v3619_v59 = vadd.f32 %v3618_v28, %v8790_v17  ;;  %v4124_v49 = vadd.f32 %v4123_v5, %v3955_v40  ;;  %v4403_v5 = vadd.f32 %v4402_v33, %v4252_v2  ;;  %v5856_v40 = vld [vmem:[%s9620_s18 + $0x74] sm:$0xf0]  ;;  %v5645_v33 = vld [vmem:[%s9620_s18 + $0x78] sm:$0xf0] }
 0x7e6   :  { %v3788_v46 = vadd.f32 %v3787_v43, %v3619_v59  ;;  %v4404_v0 = vadd.f32 %v4403_v5, %v4254_v7  ;;  %v5627_v5 = vld [vmem:[%s9620_s18 + $0x50] sm:$0xf] }
 0x7e8   :  { %v4257_v18 = vmax.f32 %v3788_v46, 0.0  ;;  %v5854_v46 = vld [vmem:[%s9620_s18 + $0x64] sm:$0xf0] }
 0x7e9   :  { %v3956_v4 = vpop.f32.mrf.mxu3 }
 0x7ea   :  { %v4125_v12 = vpop.f32.mrf.mxu2  ;;  %v3957_v3 = vadd.f32 %v3956_v4, %v8820_v1  ;;  %v4368_v4 = vadd.f32 %v4367_v25, %v4255_v34  ;;  %v5853_v34 = vld [vmem:[%s9620_s18 + $0x64] sm:$0xf]  ;;  %v5636_v25 = vor.u32 %v5854_v46, %v5635_v63 }
 0x7eb   :  { %v3621_v27 = vpop.f32.mrf.mxu0 }
 0x7ec   :  { %v3790_v60 = vpop.f32.mrf.mxu1  ;;  %v3622_v15 = vadd.f32 %v3621_v27, %v8790_v17  ;;  %v4126_v27 = vadd.f32 %v4125_v12, %v3957_v3  ;;  %v4369_v8 = vadd.f32 %v4368_v4, %v4257_v18  ;;  %v4339_v12 = vrot.slane %v9100_v38, 4  ;;  %v5637_v3 = vld [vmem:[%s9620_s18 + $0x68] sm:$0xf0]  ;;  %v5852_v4 = vld [vmem:[%s9620_s18 + $0x54] sm:$0xf0] }
 0x7ee   :  { %v3791_v61 = vadd.f32 %v3790_v60, %v3622_v15  ;;  %v4258_v44 = vmax.f32 %v4126_v27, 0.0  ;;  %v5855_v15 = vld [vmem:[%s9620_s18 + $0x74] sm:$0xf] }
 0x7ef   :  { %v5648_v2 = vor.u32 %v5855_v15, %v5645_v33  ;;  %v5851_v27 = vld [vmem:[%s9620_s18 + $0x54] sm:$0xf]  ;;  %v5611_v33 = vld [vmem:[%s9620_s18 + $0x30] sm:$0xf] }
 0x7f1   :  { %v3959_v16 = vpop.f32.mrf.mxu3  ;;  %4901 = vmatpush.bf16.msra.mxu3 %v5648_v2  ;;  %v5613_v2 = vld [vmem:[%s9620_s18 + $0x38] sm:$0xf0] }
 0x7f2   :  { %v4128_v24 = vpop.f32.mrf.mxu2  ;;  %v3960_v14 = vadd.f32 %v3959_v16, %v8820_v1  ;;  %v4256_v16 = vmax.f32 %v4124_v49, 0.0  ;;  %v5707_v49 = vld [vmem:[%s9620_s18 + $0xf0] sm:$0xf] }
 0x7f3   :  { %v3623_v31 = vpop.f32.mrf.mxu0 }
 0x7f4   :  { %v3792_v21 = vpop.f32.mrf.mxu1  ;;  %v3624_v23 = vadd.f32 %v3623_v31, %v8790_v17  ;;  %v4259_v31 = vmax.f32 %v3791_v61, 0.0  ;;  %v4129_v62 = vadd.f32 %v4128_v24, %v3960_v14  ;;  %v4405_v6 = vadd.f32 %v4404_v0, %v4256_v16 }
 0x7f6   :  { %v3793_v28 = vadd.f32 %v3792_v21, %v3624_v23  ;;  %v4304_v21 = vrot.slane %v9268_v57, 2  ;;  %v4260_v58 = vmax.f32 %v4129_v62, 0.0  ;;  %v5629_v62 = vld [vmem:[%s9620_s18 + $0x58] sm:$0xf0] }
 0x7f8   :  { %v4261_v42 = vmax.f32 %v3793_v28, 0.0  ;;  %v5640_v28 = vor.u32 %v5853_v34, %v5637_v3 }
 0x7f9   :  { %v3961_v30 = vpop.f32.mrf.mxu3 }
 0x7fa   :  { %v4130_v53 = vpop.f32.mrf.mxu2  ;;  %v3962_v50 = vadd.f32 %v3961_v30, %v8820_v1  ;;  %4902 = vmatpush.bf16.msra.mxu3 %v5640_v28 }
 0x7fb   :  { %v3626_v52 = vpop.f32.mrf.mxu0 }
 0x7fc   :  { %v3795_v13 = vpop.f32.mrf.mxu1  ;;  %v3627_v41 = vadd.f32 %v3626_v52, %v8790_v17  ;;  %v9270_v32 = vadd.f32 %v4130_v53, %v3962_v50  ;;  %v4370_v53 = vadd.f32 %v4369_v8, %v4259_v31  ;;  %v5872_v50 = vld [vmem:[%s9620_s18 + $0xf4] sm:$0xf0]  ;;  %v5628_v8 = vor.u32 %v5852_v4, %v5627_v5 }
 0x7fe   :  { %v3796_v26 = vadd.f32 %v3795_v13, %v3627_v41  ;;  %v4262_v39 = vmax.f32 %v9270_v32, 0.0  ;;  %v4371_v54 = vadd.f32 %v4370_v53, %v4261_v42  ;;  %v5632_v53 = vor.u32 %v5851_v27, %v5629_v62  ;;  %v5683_v62 = vld [vmem:[%s9620_s18 + $0xc0] sm:$0xf] }
 0x800   :  { %v4263_v9 = vmax.f32 %v3796_v26, 0.0  ;;  %v5699_v26 = vld [vmem:[%s9620_s18 + $0xe0] sm:$0xf]  ;;  %4903 = vmatpush.bf16.msra.mxu3 %v5632_v53  ;;  %v5863_v53 = vld [vmem:[%s9620_s18 + $0xb4] sm:$0xf] }
 0x801   :  { %v3964_v10 = vpop.f32.mrf.mxu3 }
 0x802   :  { %v4133_v48 = vpop.f32.mrf.mxu2  ;;  %v3965_v45 = vadd.f32 %v3964_v10, %v8820_v1  ;;  %v4372_v23 = vadd.f32 %v4371_v54, %v4263_v9  ;;  %v5621_v9 = vld [vmem:[%s9620_s18 + $0x48] sm:$0xf0] }
 0x803   :  { %v3628_v56 = vpop.f32.mrf.mxu0 }
 0x804   :  { %v3797_v19 = vpop.f32.mrf.mxu1  ;;  %v3629_v20 = vadd.f32 %v3628_v56, %v8790_v17  ;;  %v9272_v52 = vadd.f32 %v4133_v48, %v3965_v45  ;;  %v5643_v48 = vld [vmem:[%s9620_s18 + $0x70] sm:$0xf]  ;;  %v4406_v56 = vadd.f32 %v4405_v6, %v4258_v44  ;;  %v5871_v45 = vld [vmem:[%s9620_s18 + $0xf4] sm:$0xf] }
 0x806   :  { %v3798_v22 = vadd.f32 %v3797_v19, %v3629_v20  ;;  %v4264_v59 = vmax.f32 %v9272_v52, 0.0  ;;  %v5644_v19 = vor.u32 %v5856_v40, %v5643_v48  ;;  %v4407_v61 = vadd.f32 %v4406_v56, %v4260_v58  ;;  %v5709_v20 = vld [vmem:[%s9620_s18 + $0xf8] sm:$0xf0]  ;;  %v5849_v58 = vld [vmem:[%s9620_s18 + $0x44] sm:$0xf] }
 0x807   :  { %v5867_v48 = vld [vmem:[%s9620_s18 + $0xd4] sm:$0xf]  ;;  %v5693_v40 = vld [vmem:[%s9620_s18 + $0xd8] sm:$0xf0]  ;;  %v4340_v52 = vadd.f32 %v4339_v12, %v9100_v38  ;;  %v5848_v38 = vld [vmem:[%s9620_s18 + $0x34] sm:$0xf0]  ;;  %v4305_v12 = vadd.f32 %v4304_v21, %v9268_v57 }
 0x808   :  { %v4265_v10 = vmax.f32 %v3798_v22, 0.0  ;;  %4875 = vmatpush.bf16.msra.mxu0 %v5644_v19  ;;  %v5870_v22 = vld [vmem:[%s9620_s18 + $0xe4] sm:$0xf0]  ;;  %v5696_v15 = vor.u32 %v5867_v48, %v5693_v40  ;;  %v5624_v19 = vor.u32 %v5849_v58, %v5621_v9  ;;  %v5677_v58 = vld [vmem:[%s9620_s18 + $0xb8] sm:$0xf0] }
 0x809   :  { %v3966_v43 = vpop.f32.mrf.mxu3  ;;  %v5700_v42 = vor.u32 %v5870_v22, %v5699_v26  ;;  %v4341_v34 = vrot.slane %v4340_v52, 2  ;;  %v4306_v21 = vrot.slane %v4305_v12, 1  ;;  %v5866_v26 = vld [vmem:[%s9620_s18 + $0xc4] sm:$0xf0]  ;;  %v5685_v22 = vld [vmem:[%s9620_s18 + $0xc8] sm:$0xf0] }
 0x80a   :  { %v4135_v60 = vpop.f32.mrf.mxu2  ;;  %v3967_v24 = vadd.f32 %v3966_v43, %v8820_v1  ;;  %v4373_v7 = vadd.f32 %v4372_v23, %v4265_v10  ;;  %v5708_v43 = vor.u32 %v5872_v50, %v5707_v49  ;;  %4904 = vmatpush.bf16.msra.mxu3 %v5624_v19  ;;  %v5597_v48 = vld [vmem:[%s9620_s18 + $0x18] sm:$0xf0]  ;;  %v5667_v40 = vld [vmem:[%s9620_s18 + $0xa0] sm:$0xf]  ;;  %v5841_v19 = vld [vmem:[%s9620_s18 + $0x4] sm:$0xf] }
 0x80b   :  { %v3631_v30 = vpop.f32.mrf.mxu0 }
 0x80c   :  { %v3632_v36 = vadd.f32 %v3631_v30, %v8790_v17  ;;  %v3800_v11 = vpop.f32.mrf.mxu1  ;;  %v9289_v37 = vadd.f32 %v4135_v60, %v3967_v24  ;;  %v4408_v30 = vadd.f32 %v4407_v61, %v4262_v39  ;;  %4888 = vmatpush.bf16.msra.mxu1 %v5708_v43  ;;  %4876 = vmatpush.bf16.msra.mxu0 %v5636_v25  ;;  %v5619_v24 = vld [vmem:[%s9620_s18 + $0x40] sm:$0xf]  ;;  %v5691_v39 = vld [vmem:[%s9620_s18 + $0xd0] sm:$0xf] }
 0x80d   :  { %v5612_v61 = vor.u32 %v5848_v38, %v5611_v33  ;;  %v4342_v25 = vadd.f32 %v4341_v34, %v4340_v52  ;;  %v5589_v38 = vld [vmem:[%s9620_s18 + $0x8] sm:$0xf0]  ;;  %v5651_v34 = vld [vmem:[%s9620_s18 + $0x80] sm:$0xf] }
 0x80e   :  { %v3801_v13 = vadd.f32 %v3800_v11, %v3632_v36  ;;  %v4266_v60 = vmax.f32 %v9289_v37, 0.0  ;;  %v5869_v36 = vld [vmem:[%s9620_s18 + $0xe4] sm:$0xf]  ;;  %v5701_v11 = vld [vmem:[%s9620_s18 + $0xe8] sm:$0xf0]  ;;  %v4409_v10 = vadd.f32 %v4408_v30, %v4264_v59 }
 0x80f   :  { %v5704_v44 = vor.u32 %v5869_v36, %v5701_v11  ;;  %v4343_v28 = vrot.slane %v4342_v25, 1  ;;  %v5865_v30 = vld [vmem:[%s9620_s18 + $0xc4] sm:$0xf]  ;;  %v5603_v36 = vld [vmem:[%s9620_s18 + $0x20] sm:$0xf] }
 0x810   :  { %v4267_v47 = vmax.f32 %v3801_v13, 0.0  ;;  %v5850_v13 = vld [vmem:[%s9620_s18 + $0x44] sm:$0xf0]  ;;  %4889 = vmatpush.bf16.msra.mxu1 %v5700_v42  ;;  %v4410_v56 = vadd.f32 %v4409_v10, %v4266_v60  ;;  %4877 = vmatpush.bf16.msra.mxu0 %v5628_v8  ;;  %v5845_v42 = vld [vmem:[%s9620_s18 + $0x24] sm:$0xf] }
 0x811   :  { %v3969_v35 = vpop.f32.mrf.mxu3  ;;  %v4344_v27 = vadd.f32 %v4343_v28, %v4342_v25  ;;  %v5846_v11 = vld [vmem:[%s9620_s18 + $0x24] sm:$0xf0]  ;;  %v5595_v10 = vld [vmem:[%s9620_s18 + $0x10] sm:$0xf] }
 0x812   :  { %v3970_v55 = vadd.f32 %v3969_v35, %v8820_v1  ;;  %v4138_v29 = vpop.f32.mrf.mxu2  ;;  %v4374_v32 = vadd.f32 %v4373_v7, %v4267_v47  ;;  %v5868_v35 = vld [vmem:[%s9620_s18 + $0xd4] sm:$0xf0]  ;;  %v5604_v8 = vor.u32 %v5846_v11, %v5603_v36  ;;  %v4958_v28 = vld [vmem:[%s9622_s20 + $0xe8] sm:$0xff] }
 0x813   :  { %v3633_v51 = vpop.f32.mrf.mxu0 }
 0x814   :  { %v9310_v14 = vadd.f32 %v4138_v29, %v3970_v55  ;;  %v3634_v41 = vadd.f32 %v3633_v51, %v8790_v17  ;;  %v3802_v18 = vpop.f32.mrf.mxu1  ;;  %v5712_v17 = vor.u32 %v5871_v45, %v5709_v20  ;;  %v5620_v29 = vor.u32 %v5850_v13, %v5619_v24  ;;  %v5847_v51 = vld [vmem:[%s9620_s18 + $0x34] sm:$0xf]  ;;  %v5675_v24 = vld [vmem:[%s9620_s18 + $0xb0] sm:$0xf] }
 0x815   :  { %v5616_v57 = vor.u32 %v5847_v51, %v5613_v2  ;;  %v4307_v20 = vadd.f32 %v4306_v21, %v4305_v12  ;;  %v5592_v12 = vor.u32 %v5841_v19, %v5589_v38  ;;  %v5661_v2 = vld [vmem:[%s9620_s18 + $0x98] sm:$0xf0]  ;;  %v4947_v19 = vld [vmem:[%s9622_s20 + $0x90] sm:$0xff]  ;;  %v4945_v38 = vld [vmem:[%s9622_s20 + $0x80] sm:$0xff] }
 0x816   :  { %v4268_v16 = vmax.f32 %v9310_v14, 0.0  ;;  %v3803_v31 = vadd.f32 %v3802_v18, %v3634_v41  ;;  %4914 = vmatpush.bf16.msrb.mxu2 %v5712_v17  ;;  %4878 = vmatpush.bf16.msra.mxu0 %v5620_v29  ;;  %v5842_v29 = vld [vmem:[%s9620_s18 + $0x4] sm:$0xf0] }
 0x817   :  { %4905 = vmatpush.bf16.msra.mxu3 %v5616_v57  ;;  %v5653_v57 = vld [vmem:[%s9620_s18 + $0x88] sm:$0xf0] }
 0x818   :  { %v4269_v0 = vmax.f32 %v3803_v31, 0.0  ;;  %v4411_v63 = vadd.f32 %v4410_v56, %v4268_v16 }
 0x819   :  { %v3971_v6 = vpop.f32.mrf.mxu3 }
 0x81a   :  { %v4375_v47 = vadd.f32 %v4374_v32, %v4269_v0  ;;  %v3972_v54 = vadd.f32 %v3971_v6, %v8820_v1  ;;  %v4140_v59 = vpop.f32.mrf.mxu2  ;;  %4915 = vmatpush.bf16.msrb.mxu2 %v5704_v44  ;;  %v5692_v1 = vor.u32 %v5868_v35, %v5691_v39  ;;  %4879 = vmatpush.bf16.msra.mxu0 %v5612_v61  ;;  %v5605_v44 = vld [vmem:[%s9620_s18 + $0x28] sm:$0xf0]  ;;  %v5864_v6 = vld [vmem:[%s9620_s18 + $0xb4] sm:$0xf0]  ;;  %v5843_v35 = vld [vmem:[%s9620_s18 + $0x14] sm:$0xf] }
 0x81b   :  { %v5684_v32 = vor.u32 %v5866_v26, %v5683_v62  ;;  %v5688_v0 = vor.u32 %v5865_v30, %v5685_v22  ;;  %v5608_v13 = vor.u32 %v5845_v42, %v5605_v44  ;;  %v5676_v9 = vor.u32 %v5864_v6, %v5675_v24  ;;  %v5857_v61 = vld [vmem:[%s9620_s18 + $0x84] sm:$0xf]  ;;  %v4955_v62 = vld [vmem:[%s9622_s20 + $0xd0] sm:$0xff]  ;;  %v4936_v26 = vld [vmem:[%s9622_s20 + $0x38] sm:$0xff] }
 0x81c   :  { %v4376_v37 = vrot.slane %v4375_v47, 4  ;;  %v4141_v55 = vadd.f32 %v4140_v59, %v3972_v54  ;;  %4890 = vmatpush.bf16.msra.mxu1 %v5692_v1  ;;  %v5680_v39 = vor.u32 %v5863_v53, %v5677_v58  ;;  %v5600_v52 = vor.u32 %v5843_v35, %v5597_v48  ;;  %v5862_v59 = vld [vmem:[%s9620_s18 + $0xa4] sm:$0xf0]  ;;  %v5861_v1 = vld [vmem:[%s9620_s18 + $0xa4] sm:$0xf] }
 0x81d   :  { %4906 = vmatpush.bf16.msra.mxu3 %v5608_v13  ;;  %v5668_v56 = vor.u32 %v5862_v59, %v5667_v40  ;;  %v5656_v25 = vor.u32 %v5857_v61, %v5653_v57  ;;  %v4954_v30 = vld [vmem:[%s9622_s20 + $0xc8] sm:$0xff]  ;;  %v4953_v35 = vld [vmem:[%s9622_s20 + $0xc0] sm:$0xff]  ;;  %v4952_v40 = vld [vmem:[%s9622_s20 + $0xb8] sm:$0xff] }
 0x81e   :  { %v4377_v46 = vadd.f32 %v4376_v37, %v4375_v47  ;;  %v4270_v23 = vmax.f32 %v4141_v55, 0.0  ;;  %4916 = vmatpush.bf16.msrb.mxu2 %v5696_v15  ;;  %4880 = vmatpush.bf16.msra.mxu0 %v5604_v8  ;;  %v5844_v47 = vld [vmem:[%s9620_s18 + $0x14] sm:$0xf0]  ;;  %v5669_v15 = vld [vmem:[%s9620_s18 + $0xa8] sm:$0xf0]  ;;  %v4933_v48 = vld [vmem:[%s9622_s20 + $0x20] sm:$0xff] }
 0x81f   :  { %v5596_v54 = vor.u32 %v5844_v47, %v5595_v10  ;;  %v5672_v37 = vor.u32 %v5861_v1, %v5669_v15  ;;  %v5587_v55 = vld [vmem:[%s9620_s18] sm:$0xf]  ;;  %v4951_v59 = vld [vmem:[%s9622_s20 + $0xb0] sm:$0xff]  ;;  %v4950_v15 = vld [vmem:[%s9622_s20 + $0xa8] sm:$0xff] }
 0x820   :  { %v4378_v3 = vrot.slane %v4377_v46, 2  ;;  %v4412_v49 = vadd.f32 %v4411_v63, %v4270_v23  ;;  %4891 = vmatpush.bf16.msra.mxu1 %v5684_v32  ;;  %v5588_v33 = vor.u32 %v5842_v29, %v5587_v55  ;;  %v5659_v63 = vld [vmem:[%s9620_s18 + $0x90] sm:$0xf]  ;;  %v5859_v23 = vld [vmem:[%s9620_s18 + $0x94] sm:$0xf]  ;;  %v4929_v55 = vld [vmem:[%s9622_s20] sm:$0xff] }
 0x821   :  { %4907 = vmatpush.bf16.msra.mxu3 %v5600_v52  ;;  %v4935_v32 = vld [vmem:[%s9622_s20 + $0x30] sm:$0xff]  ;;  %v4932_v52 = vld [vmem:[%s9622_s20 + $0x18] sm:$0xff] }
 0x822   :  { %v4379_v14 = vadd.f32 %v4378_v3, %v4377_v46  ;;  %v4413_v41 = vrot.slane %v4412_v49, 4  ;;  %4917 = vmatpush.bf16.msrb.mxu2 %v5688_v0  ;;  %4881 = vmatpush.bf16.msra.mxu0 %v5596_v54  ;;  %v5860_v46 = vld [vmem:[%s9620_s18 + $0x94] sm:$0xf0]  ;;  %v5858_v3 = vld [vmem:[%s9620_s18 + $0x84] sm:$0xf0]  ;;  %v4931_v1 = vld [vmem:[%s9622_s20 + $0x10] sm:$0xff] }
 0x823   :  { %v5660_v51 = vor.u32 %v5860_v46, %v5659_v63  ;;  %v5652_v21 = vor.u32 %v5858_v3, %v5651_v34  ;;  %v4934_v54 = vld [vmem:[%s9622_s20 + $0x28] sm:$0xff]  ;;  %v4948_v29 = vld [vmem:[%s9622_s20 + $0x98] sm:$0xff] }
 0x824   :  { %v4380_v50 = vrot.slane %v4379_v14, 1  ;;  %v4414_v45 = vadd.f32 %v4413_v41, %v4412_v49  ;;  %4892 = vmatpush.bf16.msra.mxu1 %v5676_v9  ;;  %v5664_v49 = vor.u32 %v5859_v23, %v5661_v2  ;;  %v4943_v41 = vld [vmem:[%s9622_s20 + $0x70] sm:$0xff] }
 0x825   :  { %4908 = vmatpush.bf16.msra.mxu3 %v5592_v12  ;;  %v4709_v12 = vld [vmem:[%s9621_s19] sm:$0x3] }
 0x826   :  { %v4381_v7 = vadd.f32 %v4380_v50, %v4379_v14  ;;  %v4415_v18 = vrot.slane %v4414_v45, 2  ;;  %4918 = vmatpush.bf16.msrb.mxu2 %v5680_v39  ;;  %4882 = vmatpush.bf16.msra.mxu0 %v5588_v33  ;;  %v4944_v14 = vld [vmem:[%s9622_s20 + $0x78] sm:$0xff]  ;;  %v4942_v50 = vld [vmem:[%s9622_s20 + $0x68] sm:$0xff]  ;;  %v4711_v46 = vperm.slane %v4709_v12, 0  ;;  %v4712_v3 = vperm.slane %v4709_v12, 1 }
 0x827   :  { %v4946_v33 = vld [vmem:[%s9622_s20 + $0x88] sm:$0xff] }
 0x828   :  { %v4416_v43 = vadd.f32 %v4415_v18, %v4414_v45  ;;  %v4419_v17 = vsel %vm424_vm14, %v4307_v20, %v4381_v7  ;;  %4893 = vmatpush.bf16.msra.mxu1 %v5668_v56  ;;  %v4960_v45 = vld [vmem:[%s9622_s20 + $0xf8] sm:$0xff]  ;;  %v4941_v20 = vld [vmem:[%s9622_s20 + $0x60] sm:$0xff]  ;;  %v4959_v7 = vld [vmem:[%s9622_s20 + $0xf0] sm:$0xff] }
 0x829   :  { %v4421_v5 = vpack.c.bf16 %v4419_v17, %v4419_v17  ;;  %v4940_v18 = vld [vmem:[%s9622_s20 + $0x58] sm:$0xff]  ;;  %v4957_v17 = vld [vmem:[%s9622_s20 + $0xe0] sm:$0xff]  ;;  %v4930_v56 = vld [vmem:[%s9622_s20 + $0x8] sm:$0xff] }
 0x82a   :  { %v4417_v4 = vrot.slane %v4416_v43, 1  ;;  %4919 = vmatpush.bf16.msrb.mxu2 %v5672_v37  ;;  %v4949_v37 = vld [vmem:[%s9622_s20 + $0xa0] sm:$0xff] }
 0x82b   :  { %4629 = vmatmul.bf16.vlgmr.msrb.gmra.mxu0 %v4421_v5  ;;  %4655 = vmatmul.bf16.vlgmr.msrb.gmra.mxu3 %v4421_v5  ;;  %v4455_v5 = vld [vmem:[%s9619_s17] sm:$0x3] }
 0x82c   :  { %v4418_v60 = vadd.f32 %v4417_v4, %v4416_v43  ;;  %4894 = vmatpush.bf16.msra.mxu1 %v5660_v51  ;;  %4965 = vmatpush.msrb.mxu0 %v4944_v14  ;;  %v4939_v43 = vld [vmem:[%s9622_s20 + $0x50] sm:$0xff]  ;;  %v4938_v4 = vld [vmem:[%s9622_s20 + $0x48] sm:$0xff]  ;;  %v4458_v8 = vperm.slane %v4455_v5, 1 }
 0x82e   :  { %v4420_v16 = vsel %vm424_vm14, %v4344_v27, %v4418_v60  ;;  %4920 = vmatpush.bf16.msrb.mxu2 %v5664_v49  ;;  %4966 = vmatpush.msrb.mxu0 %v4943_v41  ;;  %v4956_v27 = vld [vmem:[%s9622_s20 + $0xd8] sm:$0xff] }
 0x82f   :  { %v4422_v31 = vpack.c.bf16 %v4420_v16, %v4420_v16  ;;  %v4937_v16 = vld [vmem:[%s9622_s20 + $0x40] sm:$0xff] }
 0x830   :  { %4895 = vmatpush.bf16.msra.mxu1 %v5652_v21  ;;  %4967 = vmatpush.msrb.mxu0 %v4942_v50 }
 0x831   :  { %4642 = vmatmul.bf16.vlgmr.msrb.gmra.mxu1 %v4422_v31  ;;  %4668 = vmatmul.bf16.vlgmr.msra.gmra.mxu2 %v4422_v31  ;;  %v4457_v31 = vperm.slane %v4455_v5, 0 }
 0x832   :  { %4921 = vmatpush.bf16.msrb.mxu2 %v5656_v25  ;;  %4968 = vmatpush.msrb.mxu0 %v4941_v20  ;;  %v5877_v20 = vld [vmem:[%s9623_s21] ss:$0 sm:$0xff]  ;;  %s5914_s21 = smov [#allocation2]  }
 0x833   :  { %s5024_s12 = sshll.u32 %s5914_s21, 4  ;;  %s5025_s12 = int_to_ptr.vmem [resolvable:$true] %s5024_s12 }
 0x834   :  { %4985 = vmatpush.msrb.mxu1 %v4960_v45  ;;  %4969 = vmatpush.msrb.mxu0 %v4940_v18 }
 0x836   :  { %4986 = vmatpush.msrb.mxu1 %v4959_v7  ;;  %4970 = vmatpush.msrb.mxu0 %v4939_v43 }
 0x838   :  { %4987 = vmatpush.msrb.mxu1 %v4958_v28  ;;  %4971 = vmatpush.msrb.mxu0 %v4938_v4 }
 0x83a   :  { %4988 = vmatpush.msrb.mxu1 %v4957_v17  ;;  %4972 = vmatpush.msrb.mxu0 %v4937_v16 }
 0x83c   :  { %4989 = vmatpush.msrb.mxu1 %v4956_v27  ;;  %4973 = vmatpush.msrb.mxu0 %v4936_v26 }
 0x83e   :  { %4990 = vmatpush.msrb.mxu1 %v4955_v62  ;;  %4974 = vmatpush.msrb.mxu0 %v4935_v32 }
 0x840   :  { %4991 = vmatpush.msrb.mxu1 %v4954_v30  ;;  %4975 = vmatpush.msrb.mxu0 %v4934_v54 }
 0x842   :  { %4992 = vmatpush.msrb.mxu1 %v4953_v35  ;;  %4976 = vmatpush.msrb.mxu0 %v4933_v48 }
 0x844   :  { %4993 = vmatpush.msrb.mxu1 %v4952_v40  ;;  %4977 = vmatpush.msrb.mxu0 %v4932_v52 }
 0x846   :  { %4994 = vmatpush.msrb.mxu1 %v4951_v59  ;;  %4978 = vmatpush.msrb.mxu0 %v4931_v1 }
 0x848   :  { %4995 = vmatpush.msrb.mxu1 %v4950_v15  ;;  %4979 = vmatpush.msrb.mxu0 %v4930_v56 }
 0x84a   :  { %4996 = vmatpush.msrb.mxu1 %v4949_v37  ;;  %4980 = vmatpush.msrb.mxu0 %v4929_v55 }
 0x84c   :  { %4997 = vmatpush.msrb.mxu1 %v4948_v29 }
 0x84e   :  { %4998 = vmatpush.msrb.mxu1 %v4947_v19 }
 0x850   :  { %4999 = vmatpush.msrb.mxu1 %v4946_v33 }
 0x852   :  { %5000 = vmatpush.msrb.mxu1 %v4945_v38 }
 0x8a8   :  { %v4630_v60 = vpop.f32.mrf.mxu0 }
 0x8a9   :  { %v4631_v22 = vadd.f32 %v4630_v60, %v4457_v31 }
 0x8ae   :  { %v4643_v36 = vpop.f32.mrf.mxu1  ;;  %v4656_v11 = vpop.f32.mrf.mxu3 }
 0x8af   :  { %v4644_v0 = vadd.f32 %v4643_v36, %v4631_v22  ;;  %v4657_v13 = vadd.f32 %v4656_v11, %v4458_v8 }
 0x8b0   :  { %v4632_v42 = vpop.f32.mrf.mxu0 }
 0x8b1   :  { %v4673_v44 = vmax.f32 %v4644_v0, 0.0 }
 0x8b3   :  { %v4675_v24 = vpack.c.bf16 %v4673_v44, %v4673_v44 }
 0x8b4   :  { %v4669_v6 = vpop.f32.mrf.mxu2 }
 0x8b5   :  { %v4670_v53 = vadd.f32 %v4669_v6, %v4657_v13  ;;  %4883 = vmatmul.bf16.vlgmr.msra.gmra.mxu0 %v4675_v24  ;;  %4909 = vmatmul.bf16.vlgmr.msra.gmra.mxu3 %v4675_v24 }
 0x8b6   :  { %v4645_v58 = vpop.f32.mrf.mxu1  ;;  %v4658_v9 = vpop.f32.mrf.mxu3 }
 0x8b7   :  { %v4674_v39 = vmax.f32 %v4670_v53, 0.0 }
 0x8b9   :  { %v4676_v10 = vpack.c.bf16 %v4674_v39, %v4674_v39 }
 0x8bb   :  { %4896 = vmatmul.bf16.vlgmr.msra.gmra.mxu1 %v4676_v10  ;;  %4922 = vmatmul.bf16.vlgmr.msrb.gmra.mxu2 %v4676_v10 }
 0x8bc   :  { %v4671_v47 = vpop.f32.mrf.mxu2 }
 0x932   :  { %v4884_v63 = vpop.f32.mrf.mxu0 }
 0x933   :  { %v4885_v23 = vadd.f32 %v4884_v63, %v4711_v46 }
 0x938   :  { %v4897_v51 = vpop.f32.mrf.mxu1  ;;  %v4910_v2 = vpop.f32.mrf.mxu3 }
 0x939   :  { %v4898_v34 = vadd.f32 %v4897_v51, %v4885_v23  ;;  %v4911_v57 = vadd.f32 %v4910_v2, %v4712_v3 }
 0x93a   :  { %v4886_v49 = vpop.f32.mrf.mxu0 }
 0x93b   :  { %v4927_v61 = vmax.f32 %v4898_v34, 0.0 }
 0x93d   :  { %4981 = vmatmul.f32.vlgmr.msrb.gmra.mxu0 %v4927_v61 }
 0x93e   :  { %v4923_v21 = vpop.f32.mrf.mxu2 }
 0x93f   :  { %v4924_v14 = vadd.f32 %v4923_v21, %v4911_v57 }
 0x940   :  { %v4899_v41 = vpop.f32.mrf.mxu1  ;;  %v4912_v25 = vpop.f32.mrf.mxu3 }
 0x941   :  { %v4928_v50 = vmax.f32 %v4924_v14, 0.0 }
 0x943   :  { %5001 = vmatmul.f32.vlgmr.msrb.gmra.mxu1 %v4928_v50 }
 0x946   :  { %v4925_v45 = vpop.f32.mrf.mxu2 }
 0x9ba   :  { %v4982_v7 = vpop.f32.mrf.mxu0 }
 0x9bb   :  { %v4983_v18 = vadd.f32 %v5877_v20, %v4982_v7 }
 0x9c0   :  { %v5002_v28 = vpop.f32.mrf.mxu1 }
 0x9c1   :  { %v5003_v43 = vadd.f32 %v5002_v28, %v4983_v18 }
 0x9c3   :  { %v5006_v17 = vsel %vm5005_vm1, %v5003_v43, -inf }
 0x9c4   :  { %5007 = vmax.xlane.f32.xlu1 %v5006_v17 }
 0xa37   :  { %v5008_v5 = vpop.xlane.xlu1 %5007 }
 0xa38   :  { %v5009_v4 = vsub.f32 %v5003_v43, %v5008_v5 }
 0xa3a   :  { %v5010_v27 = vmul.f32 1.442695, %v5009_v4 }
 0xa3c   :  { %5882 = vpow2.f32 %v5010_v27 }
 0xa42   :  { %v5883_v60 = vpop.eup %5882 }
 0xa43   :  { %v5012_v16 = vsel %vm5005_vm1, %v5883_v60, 0.0 }
 0xa44   :  { %5013 = vadd.xlane.f32.xlu1 %v5012_v16 }
 0xab7   :  { %v5014_v31 = vpop.xlane.xlu1 %5013 }
 0xab8   :  { %5884 = vlog2.f32 %v5014_v31 }
 0xabe   :  { %v5885_v62 = vpop.eup %5884 }
 0xabf   :  { %v5016_v26 = vmul.f32 0.6931472, %v5885_v62 }
 0xac1   :  { %v5017_v30 = vsub.f32 %v5009_v4, %v5016_v26 }
 0xac3   :  { %5018 = vst.msk [vmem:[#allocation2] sm:$0x3] %vm5005_vm1, %v5017_v30 }
 0xac4   :  { %5029 = dma.vmem_to_hbm [thread:$0]  %s5025_s12, 32, %s5027_s5, [#allocation3]  }
 0xac5   :  { %5910 = dma.done.wait [#allocation3], 32  }
 0xac6   :  { %5911 = vsyncadd [#allocation3], 4294967264 }
 0xac7   :  { %5034 = vsyncpa [#allocation3], 1 }

</bundles_post_ra>
